<compile_context>
chip_gen: v7x
topology: tpu7x:2x2x1
jax: 0.10.0
libtpu: 0.0.40
codegen_flags: <defaults>
</compile_context>

<pallas_src>
import math

import jax
import jax.numpy as jnp
from jax.experimental import pallas as pl
from jax.experimental.pallas import tpu as pltpu

LN_EPS = 1e-5  # nn.LayerNorm / LayerNorm2d eps in DMF


def _row_tile(n, prefs=(512, 256, 128, 64, 32, 16, 8)):
    """Largest multiple-of-8 row tile that divides n (fallback: full extent)."""
    for t in prefs:
        if n % t == 0:
            return t
    return n


def _blockdiag(blocks):
    """(K, D, C) -> (K*D, K*C) block-diagonal matrix (wrapper-side, XLA)."""
    kb, db, cb = blocks.shape
    out = jnp.zeros((kb * db, kb * cb), blocks.dtype)
    for k in range(kb):
        out = out.at[k * db:(k + 1) * db, k * cb:(k + 1) * cb].set(blocks[k])
    return out


# ----------------------------------------------------------------------------
# Kernel 1: batched projection  (x_proj + dt_proj + softplus), row-tiled
# ----------------------------------------------------------------------------
def _proj_kernel(u_ref, w_ref, bias_ref, dts_ref, bc_ref):
    # u: (TR, KD); w: (KD, KD + 2*KN) block-diagonal over the 4 scan directions.
    z = jnp.dot(u_ref[...], w_ref[...], preferred_element_type=jnp.float32)
    kd = u_ref.shape[1]
    dt_raw = z[:, :kd] + bias_ref[...]                 # delta + delta_bias
    # F.softplus with threshold 20 (dead exp branch yields inf, discarded).
    dts_ref[...] = jnp.where(dt_raw > 20.0, dt_raw, jnp.log1p(jnp.exp(dt_raw)))
    bc_ref[...] = z[:, kd:]                            # [B | C] compact, per direction


# ----------------------------------------------------------------------------
# Kernel 2: selective scan, 4 directions folded into 128 lanes (lane = k*D+d)
# ----------------------------------------------------------------------------
def _scan_kernel(u_ref, dts_ref, bc_ref, atile_ref, r_ref, st_ref, m_ref,
                 e_ref, ds_ref, y_ref, da_s, dbu_s, cexp_s, ch_s):
    L, KD = u_ref.shape
    LN_rows, KN = m_ref.shape
    N = LN_rows // L                                   # d_state

    u = u_ref[...]                                     # (L, KD)
    dts = dts_ref[...]                                 # (L, KD)   softplus'd delta
    rep = r_ref[...]                                   # (L*N, L)  row-replication (0/1)
    msk = m_ref[...]                                   # (L*N, KN) [r%N == c%N]
    exp_mat = e_ref[...]                               # (KN, KD)  direction expansion

    # ---- vectorized precompute over the whole sequence (hoisted off the loop)
    # dA[l*N+n, c] = exp(delta[l,c] * A[c,n])
    da_s[...] = jnp.exp(
        jnp.dot(rep, dts, preferred_element_type=jnp.float32) * atile_ref[...])
    # dBu[l*N+n, c] = B_k[l,n] * delta[l,c] * u[l,c]
    bexp = jnp.dot(
        jnp.dot(rep, bc_ref[:, :KN], preferred_element_type=jnp.float32) * msk,
        exp_mat, preferred_element_type=jnp.float32)
    dbu_s[...] = bexp * jnp.dot(rep, dts * u, preferred_element_type=jnp.float32)
    # Cexp[l*N+n, c] = C_k[l,n]
    cexp_s[...] = jnp.dot(
        jnp.dot(rep, bc_ref[:, KN:], preferred_element_type=jnp.float32) * msk,
        exp_mat, preferred_element_type=jnp.float32)

    # ---- serial recurrence: only the FMA stays in the loop -------------------
    def body(l, h):
        r0 = pl.multiple_of(l * N, N)
        h = da_s[pl.ds(r0, N), :] * h + dbu_s[pl.ds(r0, N), :]     # (N, KD)
        ch_s[pl.ds(r0, N), :] = cexp_s[pl.ds(r0, N), :] * h        # aligned 16-row store
        return h

    jax.lax.fori_loop(0, L, body, jnp.zeros((N, KD), jnp.float32))

    # y[l, c] = sum_n C*h + D*u   (segment-sum over n done on the MXU)
    y_ref[...] = (jnp.dot(st_ref[...], ch_s[...], preferred_element_type=jnp.float32)
                  + ds_ref[...] * u)
    # TODO(synk): for large H*W the (L*N, 128) precompute/scratch should be chunked over L.


# ----------------------------------------------------------------------------
# Kernel 3: per-pixel LayerNorm over channels (LayerNorm2d), row-tiled
# ----------------------------------------------------------------------------
def _rowln_kernel(x_ref, g_ref, b_ref, o_ref):
    x = x_ref[...]
    mu = jnp.mean(x, axis=-1, keepdims=True)
    var = jnp.mean(jnp.square(x - mu), axis=-1, keepdims=True)
    o_ref[...] = (x - mu) * jax.lax.rsqrt(var + LN_EPS) * g_ref[...] + b_ref[...]


# ----------------------------------------------------------------------------
# Kernel 4: DFT local branch = 3x3 conv (zero-offset deform_conv2d) via im2col
#           single K=9*Cin matmul, fused with LayerNorm2d.
# ----------------------------------------------------------------------------
def _dft_conv_ln_kernel(xp_ref, w_ref, b_ref, g_ref, bt_ref, o_ref, pat_s):
    Hp, Wp, Cin = xp_ref.shape
    H, W = Hp - 2, Wp - 2
    Cout = o_ref.shape[-1]
    # im2col staging: 9 static-offset column stores into one VMEM buffer.
    for idx in range(9):
        ky, kx = idx // 3, idx % 3
        pat_s[:, idx * Cin:(idx + 1) * Cin] = (
            xp_ref[ky:ky + H, kx:kx + W, :].reshape(H * W, Cin))
    acc = jnp.dot(pat_s[...], w_ref[...], preferred_element_type=jnp.float32) + b_ref[...]
    mu = jnp.mean(acc, axis=-1, keepdims=True)
    var = jnp.mean(jnp.square(acc - mu), axis=-1, keepdims=True)
    y = (acc - mu) * jax.lax.rsqrt(var + LN_EPS) * g_ref[...] + bt_ref[...]
    o_ref[...] = y.reshape(H, W, Cout)
    # TODO(synk): spatial halo tiling for large H, W (currently one image per grid step).


# ----------------------------------------------------------------------------
# Kernel 5: DMF tail — norm1 -> 1x1 conv -> norm2 -> residual, row-tiled
# ----------------------------------------------------------------------------
def _tail_kernel(x_ref, w_ref, b_ref, g1_ref, b1_ref, g2_ref, b2_ref, o_ref):
    x = x_ref[...]

    def ln(v, g, b):
        mu = jnp.mean(v, axis=-1, keepdims=True)
        var = jnp.mean(jnp.square(v - mu), axis=-1, keepdims=True)
        return (v - mu) * jax.lax.rsqrt(var + LN_EPS) * g + b

    t = ln(x, g1_ref[...], b1_ref[...])                               # norm1(cat)
    y = jnp.dot(t, w_ref[...], preferred_element_type=jnp.float32) + b_ref[...]
    y = ln(y, g2_ref[...], b2_ref[...])                               # norm2
    # Reference: x = norm1(cat); x = x + drop_path(norm2(conv(x)))  (DropPath(0) == id)
    o_ref[...] = t + y


# ----------------------------------------------------------------------------
# Wrappers
# ----------------------------------------------------------------------------
def rowln(x_rows, gamma, beta):
    T, C = x_rows.shape
    TR = _row_tile(T)
    return pl.pallas_call(
        _rowln_kernel,
        out_shape=jax.ShapeDtypeStruct((T, C), jnp.float32),
        grid=(T // TR,),
        in_specs=[pl.BlockSpec((TR, C), lambda i: (i, 0)),
                  pl.BlockSpec((1, C), lambda i: (0, 0)),
                  pl.BlockSpec((1, C), lambda i: (0, 0))],
        out_specs=pl.BlockSpec((TR, C), lambda i: (i, 0)),
        compiler_params=pltpu.CompilerParams(dimension_semantics=("parallel",)),
    )(x_rows, gamma.reshape(1, C), beta.reshape(1, C))


def ss2d_forward(x_nchw, p):
    """SS2D global branch -> per-pixel rows (B*H*W, dim), post out_norm + GELU."""
    B, D, H, W = x_nchw.shape
    L, K = H * W, 4
    N = p["A_logs"].shape[-1]
    Rr = p["dt_projs_w"].shape[-1]
    KD, KN = K * D, K * N

    # ---- cross-scan (pure layout glue, XLA) ---------------------------------
    x_flat = x_nchw.reshape(B, D, L)
    x_t = jnp.transpose(x_nchw, (0, 1, 3, 2)).reshape(B, D, L)
    xs = jnp.stack([x_flat, x_t, x_flat[:, :, ::-1], x_t[:, :, ::-1]], axis=1)  # (B,K,D,L)
    u = jnp.transpose(xs, (0, 3, 1, 2)).reshape(B, L, KD)          # lane = k*D + d

    # ---- block-diagonal projection weights (dt bottleneck folded away) ------
    xw = p["x_proj_w"]                                             # (K, R+2N, D)
    w_dt_in = xw[:, :Rr, :]
    w_b = xw[:, Rr:Rr + N, :]
    w_c = xw[:, Rr + N:, :]
    w_dt_comb = jnp.einsum("krd,ker->kde", w_dt_in, p["dt_projs_w"])   # (K, D, D)
    w_all = jnp.concatenate(
        [_blockdiag(w_dt_comb),
         _blockdiag(jnp.transpose(w_b, (0, 2, 1))),
         _blockdiag(jnp.transpose(w_c, (0, 2, 1)))], axis=1)       # (KD, KD+2KN)
    dt_bias = p["dt_projs_b"].reshape(1, KD)

    # ---- projection kernel over all B*L rows --------------------------------
    TR = _row_tile(B * L)
    dts2, bc2 = pl.pallas_call(
        _proj_kernel,
        out_shape=(jax.ShapeDtypeStruct((B * L, KD), jnp.float32),
                   jax.ShapeDtypeStruct((B * L, 2 * KN), jnp.float32)),
        grid=(B * L // TR,),
        in_specs=[pl.BlockSpec((TR, KD), lambda i: (i, 0)),
                  pl.BlockSpec((KD, KD + 2 * KN), lambda i: (0, 0)),
                  pl.BlockSpec((1, KD), lambda i: (0, 0))],
        out_specs=(pl.BlockSpec((TR, KD), lambda i: (i, 0)),
                   pl.BlockSpec((TR, 2 * KN), lambda i: (i, 0))),
        compiler_params=pltpu.CompilerParams(dimension_semantics=("parallel",)),
    )(u.reshape(B * L, KD), w_all, dt_bias)
    dts = dts2.reshape(B, L, KD)
    bc = bc2.reshape(B, L, 2 * KN)

    # ---- constants for the scan kernel (0/1 selection / expansion matrices) -
    a_rep = (-jnp.exp(p["A_logs"].astype(jnp.float32))).T          # (N, KD)
    a_tile = jnp.tile(a_rep, (L, 1))                               # (L*N, KD)
    ds_row = p["Ds"].astype(jnp.float32).reshape(1, KD)
    rows = jnp.arange(L * N)
    r_mat = (rows[:, None] // N == jnp.arange(L)[None, :]).astype(jnp.float32)      # (L*N, L)
    st_mat = r_mat.T                                                                # (L, L*N)
    m_mat = (rows[:, None] % N == jnp.arange(KN)[None, :] % N).astype(jnp.float32)  # (L*N, KN)
    e_mat = (jnp.arange(KN)[:, None] // N
             == jnp.arange(KD)[None, :] // D).astype(jnp.float32)                   # (KN, KD)

    ys = pl.pallas_call(
        _scan_kernel,
        out_shape=jax.ShapeDtypeStruct((B, L, KD), jnp.float32),
        grid=(B,),
        in_specs=[
            pl.BlockSpec((None, L, KD), lambda b: (b, 0, 0)),        # u
            pl.BlockSpec((None, L, KD), lambda b: (b, 0, 0)),        # softplus(dt)
            pl.BlockSpec((None, L, 2 * KN), lambda b: (b, 0, 0)),    # [B|C] compact
            pl.BlockSpec((L * N, KD), lambda b: (0, 0)),             # A tiled
            pl.BlockSpec((L * N, L), lambda b: (0, 0)),              # R (replicate)
            pl.BlockSpec((L, L * N), lambda b: (0, 0)),              # R^T (segment-sum)
            pl.BlockSpec((L * N, KN), lambda b: (0, 0)),             # M mask
            pl.BlockSpec((KN, KD), lambda b: (0, 0)),                # E expansion
            pl.BlockSpec((1, KD), lambda b: (0, 0)),                 # Ds
        ],
        out_specs=pl.BlockSpec((None, L, KD), lambda b: (b, 0, 0)),
        scratch_shapes=[pltpu.VMEM((L * N, KD), jnp.float32)] * 4,   # dA, dBu, Cexp, C*h
        compiler_params=pltpu.CompilerParams(dimension_semantics=("parallel",)),
    )(u, dts, bc, a_tile, r_mat, st_mat, m_mat, e_mat, ds_row)

    # ---- cross-merge (layout glue, XLA) -------------------------------------
    ys_k = jnp.transpose(ys.reshape(B, L, K, D), (0, 2, 3, 1))     # (B, K, D, L)
    y = ys_k[:, 0] + ys_k[:, 2, :, ::-1]
    y13 = ys_k[:, 1] + ys_k[:, 3, :, ::-1]
    y = y + jnp.transpose(y13.reshape(B, D, W, H), (0, 1, 3, 2)).reshape(B, D, L)

    # ---- out_norm (LayerNorm2d) + exact GELU --------------------------------
    y_rows = jnp.transpose(y, (0, 2, 1)).reshape(B * L, D)
    y_rows = rowln(y_rows, p["out_norm_g"], p["out_norm_b"])
    return jax.nn.gelu(y_rows, approximate=False)                  # dropout == Identity


def dft_forward(x_nchw, p):
    """DFT local branch -> per-pixel rows (B*H*W, dim), post conv + LN + GELU."""
    B, C, H, W = x_nchw.shape
    x = jnp.transpose(x_nchw, (0, 2, 3, 1))                        # NHWC
    xp = jnp.pad(x, ((0, 0), (1, 1), (1, 1), (0, 0)))
    # torch conv weight (Cout, Cin, 3, 3) -> im2col weight (9*Cin, Cout)
    w9 = jnp.transpose(p["dft_proj_w"], (2, 3, 1, 0)).reshape(9 * C, C)
    y = pl.pallas_call(
        _dft_conv_ln_kernel,
        out_shape=jax.ShapeDtypeStruct((B, H, W, C), jnp.float32),
        grid=(B,),
        in_specs=[
            pl.BlockSpec((None, H + 2, W + 2, C), lambda b: (b, 0, 0, 0)),
            pl.BlockSpec((9 * C, C), lambda b: (0, 0)),
            pl.BlockSpec((1, C), lambda b: (0, 0)),
            pl.BlockSpec((1, C), lambda b: (0, 0)),
            pl.BlockSpec((1, C), lambda b: (0, 0)),
        ],
        out_specs=pl.BlockSpec((None, H, W, C), lambda b: (b, 0, 0, 0)),
        scratch_shapes=[pltpu.VMEM((H * W, 9 * C), jnp.float32)],
        compiler_params=pltpu.CompilerParams(dimension_semantics=("parallel",)),
    )(xp, w9, p["dft_proj_b"].reshape(1, C),
      p["dft_ln_g"].reshape(1, C), p["dft_ln_b"].reshape(1, C))
    return jax.nn.gelu(y, approximate=False).reshape(B * H * W, C)


def dmf_forward(x_deep, x_shallow, p):
    B, C, H, W = x_deep.shape
    deep_rows = ss2d_forward(x_deep, p)                            # (B*HW, C)
    shallow_rows = dft_forward(x_shallow, p)                       # (B*HW, C)
    cat = jnp.concatenate([deep_rows, shallow_rows], axis=-1)      # (B*HW, 2C)

    T, C2 = cat.shape
    TR = _row_tile(T)
    w1x1 = p["conv_w"].T                                           # torch (out,in) -> (in,out)
    out_rows = pl.pallas_call(
        _tail_kernel,
        out_shape=jax.ShapeDtypeStruct((T, C2), jnp.float32),
        grid=(T // TR,),
        in_specs=[pl.BlockSpec((TR, C2), lambda i: (i, 0)),
                  pl.BlockSpec((C2, C2), lambda i: (0, 0)),
                  pl.BlockSpec((1, C2), lambda i: (0, 0)),
                  pl.BlockSpec((1, C2), lambda i: (0, 0)),
                  pl.BlockSpec((1, C2), lambda i: (0, 0)),
                  pl.BlockSpec((1, C2), lambda i: (0, 0)),
                  pl.BlockSpec((1, C2), lambda i: (0, 0))],
        out_specs=pl.BlockSpec((TR, C2), lambda i: (i, 0)),
        compiler_params=pltpu.CompilerParams(dimension_semantics=("parallel",)),
    )(cat, w1x1, p["conv_b"].reshape(1, C2),
      p["n1_g"].reshape(1, C2), p["n1_b"].reshape(1, C2),
      p["n2_g"].reshape(1, C2), p["n2_b"].reshape(1, C2))

    out = out_rows.reshape(B, H, W, C2)
    return jnp.transpose(out, (0, 3, 1, 2))                        # back to NCHW


# ----------------------------------------------------------------------------
# Deterministic parameter initialization (shapes per the module __init__)
# ----------------------------------------------------------------------------
def init_params(key, dim, d_state=16, k_group=4,
                dt_min=1e-3, dt_max=0.1, dt_scale=1.0, dt_init_floor=1e-4):
    d_inner = dim                              # ssm_ratio = 1.0 (shape-consistent)
    dt_rank = int(math.ceil(dim / 16))
    ks = jax.random.split(key, 8)
    C = dt_rank + 2 * d_state

    lim = 1.0 / math.sqrt(d_inner)
    x_proj_w = jax.random.uniform(ks[0], (k_group, C, d_inner), jnp.float32, -lim, lim)

    dt_std = dt_rank ** -0.5 * dt_scale
    dt_projs_w = jax.random.uniform(ks[1], (k_group, d_inner, dt_rank), jnp.float32,
                                    -dt_std, dt_std)
    dt = jnp.exp(jax.random.uniform(ks[2], (k_group, d_inner), jnp.float32)
                 * (math.log(dt_max) - math.log(dt_min)) + math.log(dt_min))
    dt = jnp.maximum(dt, dt_init_floor)
    dt_projs_b = dt + jnp.log(-jnp.expm1(-dt))          # inverse softplus

    A = jnp.tile(jnp.arange(1, d_state + 1, dtype=jnp.float32)[None, :],
                 (k_group * d_inner, 1))
    A_logs = jnp.log(A)
    Ds = jnp.ones((k_group * d_inner,), jnp.float32)

    lim_c = 1.0 / math.sqrt(dim * 9)
    dft_proj_w = jax.random.uniform(ks[3], (dim, dim, 3, 3), jnp.float32, -lim_c, lim_c)
    dft_proj_b = jax.random.uniform(ks[4], (dim,), jnp.float32, -lim_c, lim_c)

    lim1 = 1.0 / math.sqrt(2 * dim)
    conv_w = jax.random.uniform(ks[5], (2 * dim, 2 * dim), jnp.float32, -lim1, lim1)
    conv_b = jax.random.uniform(ks[6], (2 * dim,), jnp.float32, -lim1, lim1)

    return dict(
        x_proj_w=x_proj_w, dt_projs_w=dt_projs_w, dt_projs_b=dt_projs_b,
        A_logs=A_logs, Ds=Ds,
        out_norm_g=jnp.ones((d_inner,), jnp.float32),
        out_norm_b=jnp.zeros((d_inner,), jnp.float32),
        dft_proj_w=dft_proj_w, dft_proj_b=dft_proj_b,
        dft_ln_g=jnp.ones((dim,), jnp.float32), dft_ln_b=jnp.zeros((dim,), jnp.float32),
        conv_w=conv_w, conv_b=conv_b,
        n1_g=jnp.ones((2 * dim,), jnp.float32), n1_b=jnp.zeros((2 * dim,), jnp.float32),
        n2_g=jnp.ones((2 * dim,), jnp.float32), n2_b=jnp.zeros((2 * dim,), jnp.float32),
    )


if __name__ == "__main__":
    dim, B, H, W = 32, 2, 8, 8                 # K*dim = 128 lanes for the scan
    key = jax.random.PRNGKey(0)
    k1, k2, k3 = jax.random.split(key, 3)
    x_deep = jax.random.normal(k1, (B, dim, H, W), jnp.float32)      # NCHW (PyTorch)
    x_shallow = jax.random.normal(k2, (B, dim, H, W), jnp.float32)   # NCHW (PyTorch)
    params = init_params(k3, dim)

    out = jax.jit(dmf_forward)(x_deep, x_shallow, params)
    out = jax.block_until_ready(out)
    assert out.shape == (B, 2 * dim, H, W), out.shape
    assert bool(jnp.all(jnp.isfinite(out)))
    print("KERNEL_OK")
</pallas_src>

<mosaic_0001>
module attributes {stable_mosaic.version = 11 : i64} {
  func.func @_proj_kernel(%arg0: i32, %arg1: memref<128x128xf32, #tpu.memory_space<vmem>>, %arg2: memref<128x256xf32, #tpu.memory_space<vmem>>, %arg3: memref<1x128xf32, #tpu.memory_space<vmem>>, %arg4: memref<128x128xf32, #tpu.memory_space<vmem>>, %arg5: memref<128x128xf32, #tpu.memory_space<vmem>>) attributes {dimension_semantics = [#tpu.dimension_semantics<parallel>], iteration_bounds = array<i64: 1>, scalar_prefetch = 0 : i64, scratch_operands = 0 : i64, tpu.core_type = #tpu.core_type<tc>, window_params = [{transform_indices = @transform_0, window_bounds = array<i64: 128, 128>}, {pipeline_mode = #tpu.pipeline_mode<synchronous>, transform_indices = @transform_1, window_bounds = array<i64: 128, 256>}, {pipeline_mode = #tpu.pipeline_mode<synchronous>, transform_indices = @transform_2, window_bounds = array<i64: 1, 128>}, {transform_indices = @transform_3, window_bounds = array<i64: 128, 128>}, {transform_indices = @transform_4, window_bounds = array<i64: 128, 128>}]} {
    %c0 = arith.constant 0 : index
    %c0_0 = arith.constant 0 : index
    %0 = vector.load %arg1[%c0, %c0_0] : memref<128x128xf32, #tpu.memory_space<vmem>>, vector<128x128xf32>
    %c0_1 = arith.constant 0 : index
    %c0_2 = arith.constant 0 : index
    %1 = vector.load %arg2[%c0_1, %c0_2] : memref<128x256xf32, #tpu.memory_space<vmem>>, vector<128x256xf32>
    %cst = arith.constant dense<0.000000e+00> : vector<128x256xf32>
    %2 = tpu.matmul %0, %1, %cst {dimension_numbers = #tpu.dot_dimension_numbers<[1], [0], [0], [1], [0, 0, 1, 1], [], []>} : vector<128x128xf32>, vector<128x256xf32>, vector<128x256xf32> -> vector<128x256xf32>
    %3 = vector.extract_strided_slice %2 {offsets = [0, 0], sizes = [128, 128], strides = [1, 1]} : vector<128x256xf32> to vector<128x128xf32>
    %c0_3 = arith.constant 0 : index
    %c0_4 = arith.constant 0 : index
    %4 = vector.load %arg3[%c0_3, %c0_4] : memref<1x128xf32, #tpu.memory_space<vmem>>, vector<1x128xf32>
    %5 = vector.broadcast %4 : vector<1x128xf32> to vector<128x128xf32>
    %6 = arith.addf %3, %5 : vector<128x128xf32>
    %cst_5 = arith.constant 2.000000e+01 : f32
    %7 = vector.broadcast %cst_5 : f32 to vector<128x128xf32>
    %8 = arith.cmpf ogt, %6, %7 : vector<128x128xf32>
    %9 = math.exp %6 : vector<128x128xf32>
    %10 = math.log1p %9 : vector<128x128xf32>
    %11 = arith.select %8, %6, %10 : vector<128x128xi1>, vector<128x128xf32>
    %c0_6 = arith.constant 0 : index
    %c0_7 = arith.constant 0 : index
    %12 = vector.load %arg4[%c0_6, %c0_7] : memref<128x128xf32, #tpu.memory_space<vmem>>, vector<128x128xf32>
    tpu.vector_store %arg4[%c0_6, %c0_7], %11 {strides = array<i32>} : memref<128x128xf32, #tpu.memory_space<vmem>>, vector<128x128xf32>,
    %13 = vector.extract_strided_slice %2 {offsets = [0, 128], sizes = [128, 128], strides = [1, 1]} : vector<128x256xf32> to vector<128x128xf32>
    %c0_8 = arith.constant 0 : index
    %c0_9 = arith.constant 0 : index
    %14 = vector.load %arg5[%c0_8, %c0_9] : memref<128x128xf32, #tpu.memory_space<vmem>>, vector<128x128xf32>
    tpu.vector_store %arg5[%c0_8, %c0_9], %13 {strides = array<i32>} : memref<128x128xf32, #tpu.memory_space<vmem>>, vector<128x128xf32>,
    return
  }
  func.func @transform_0(%arg0: i32) -> (i32, i32) {
    %c0_i32 = arith.constant 0 : i32
    %c0_i32_0 = arith.constant 0 : i32
    return %arg0, %c0_i32 : i32, i32
  }
  func.func @transform_1(%arg0: i32) -> (i32, i32) {
    %c0_i32 = arith.constant 0 : i32
    %c0_i32_0 = arith.constant 0 : i32
    %c0_i32_1 = arith.constant 0 : i32
    return %c0_i32, %c0_i32_0 : i32, i32
  }
  func.func @transform_2(%arg0: i32) -> (i32, i32) {
    %c0_i32 = arith.constant 0 : i32
    %c0_i32_0 = arith.constant 0 : i32
    %c0_i32_1 = arith.constant 0 : i32
    return %c0_i32, %c0_i32_0 : i32, i32
  }
  func.func @transform_3(%arg0: i32) -> (i32, i32) {
    %c0_i32 = arith.constant 0 : i32
    %c0_i32_0 = arith.constant 0 : i32
    return %arg0, %c0_i32 : i32, i32
  }
  func.func @transform_4(%arg0: i32) -> (i32, i32) {
    %c0_i32 = arith.constant 0 : i32
    %c0_i32_0 = arith.constant 0 : i32
    return %arg0, %c0_i32 : i32, i32
  }
}

module attributes {stable_mosaic.version = 11 : i64} {
  func.func @_scan_kernel(%arg0: i32, %arg1: memref<1x64x128xf32, #tpu.memory_space<vmem>>, %arg2: memref<1x64x128xf32, #tpu.memory_space<vmem>>, %arg3: memref<1x64x128xf32, #tpu.memory_space<vmem>>, %arg4: memref<1024x128xf32, #tpu.memory_space<vmem>>, %arg5: memref<1024x64xf32, #tpu.memory_space<vmem>>, %arg6: memref<64x1024xf32, #tpu.memory_space<vmem>>, %arg7: memref<1024x64xf32, #tpu.memory_space<vmem>>, %arg8: memref<64x128xf32, #tpu.memory_space<vmem>>, %arg9: memref<1x128xf32, #tpu.memory_space<vmem>>, %arg10: memref<1x64x128xf32, #tpu.memory_space<vmem>>, %arg11: memref<1024x128xf32, #tpu.memory_space<vmem>>, %arg12: memref<1024x128xf32, #tpu.memory_space<vmem>>, %arg13: memref<1024x128xf32, #tpu.memory_space<vmem>>, %arg14: memref<1024x128xf32, #tpu.memory_space<vmem>>) attributes {dimension_semantics = [#tpu.dimension_semantics<parallel>], iteration_bounds = array<i64: 2>, scalar_prefetch = 0 : i64, scratch_operands = 4 : i64, tpu.core_type = #tpu.core_type<tc>, window_params = [{transform_indices = @transform_0, window_bounds = array<i64: 1, 64, 128>}, {transform_indices = @transform_1, window_bounds = array<i64: 1, 64, 128>}, {transform_indices = @transform_2, window_bounds = array<i64: 1, 64, 128>}, {pipeline_mode = #tpu.pipeline_mode<synchronous>, transform_indices = @transform_3, window_bounds = array<i64: 1024, 128>}, {pipeline_mode = #tpu.pipeline_mode<synchronous>, transform_indices = @transform_4, window_bounds = array<i64: 1024, 64>}, {pipeline_mode = #tpu.pipeline_mode<synchronous>, transform_indices = @transform_5, window_bounds = array<i64: 64, 1024>}, {pipeline_mode = #tpu.pipeline_mode<synchronous>, transform_indices = @transform_6, window_bounds = array<i64: 1024, 64>}, {pipeline_mode = #tpu.pipeline_mode<synchronous>, transform_indices = @transform_7, window_bounds = array<i64: 64, 128>}, {pipeline_mode = #tpu.pipeline_mode<synchronous>, transform_indices = @transform_8, window_bounds = array<i64: 1, 128>}, {transform_indices = @transform_9, window_bounds = array<i64: 1, 64, 128>}]} {
    %c0 = arith.constant 0 : index
    %c0_0 = arith.constant 0 : index
    %c0_1 = arith.constant 0 : index
    %0 = vector.load %arg1[%c0, %c0_0, %c0_1] : memref<1x64x128xf32, #tpu.memory_space<vmem>>, vector<1x64x128xf32>
    %1 = vector.shape_cast %0 : vector<1x64x128xf32> to vector<64x128xf32>
    %c0_2 = arith.constant 0 : index
    %c0_3 = arith.constant 0 : index
    %c0_4 = arith.constant 0 : index
    %2 = vector.load %arg2[%c0_2, %c0_3, %c0_4] : memref<1x64x128xf32, #tpu.memory_space<vmem>>, vector<1x64x128xf32>
    %3 = vector.shape_cast %2 : vector<1x64x128xf32> to vector<64x128xf32>
    %c0_5 = arith.constant 0 : index
    %c0_6 = arith.constant 0 : index
    %4 = vector.load %arg5[%c0_5, %c0_6] : memref<1024x64xf32, #tpu.memory_space<vmem>>, vector<1024x64xf32>
    %c0_7 = arith.constant 0 : index
    %c0_8 = arith.constant 0 : index
    %5 = vector.load %arg7[%c0_7, %c0_8] : memref<1024x64xf32, #tpu.memory_space<vmem>>, vector<1024x64xf32>
    %c0_9 = arith.constant 0 : index
    %c0_10 = arith.constant 0 : index
    %6 = vector.load %arg8[%c0_9, %c0_10] : memref<64x128xf32, #tpu.memory_space<vmem>>, vector<64x128xf32>
    %cst = arith.constant dense<0.000000e+00> : vector<1024x128xf32>
    %7 = tpu.matmul %4, %3, %cst {dimension_numbers = #tpu.dot_dimension_numbers<[1], [0], [0], [1], [0, 0, 1, 1], [], []>} : vector<1024x64xf32>, vector<64x128xf32>, vector<1024x128xf32> -> vector<1024x128xf32>
    %c0_11 = arith.constant 0 : index
    %c0_12 = arith.constant 0 : index
    %8 = vector.load %arg4[%c0_11, %c0_12] : memref<1024x128xf32, #tpu.memory_space<vmem>>, vector<1024x128xf32>
    %9 = arith.mulf %7, %8 : vector<1024x128xf32>
    %10 = math.exp %9 : vector<1024x128xf32>
    %c0_13 = arith.constant 0 : index
    %c0_14 = arith.constant 0 : index
    %11 = vector.load %arg11[%c0_13, %c0_14] : memref<1024x128xf32, #tpu.memory_space<vmem>>, vector<1024x128xf32>
    tpu.vector_store %arg11[%c0_13, %c0_14], %10 {strides = array<i32>} : memref<1024x128xf32, #tpu.memory_space<vmem>>, vector<1024x128xf32>,
    %c0_15 = arith.constant 0 : index
    %c0_16 = arith.constant 0 : index
    %c0_17 = arith.constant 0 : index
    %12 = vector.load %arg3[%c0_15, %c0_16, %c0_17] : memref<1x64x128xf32, #tpu.memory_space<vmem>>, vector<1x64x64xf32>
    %13 = vector.shape_cast %12 : vector<1x64x64xf32> to vector<64x64xf32>
    %cst_18 = arith.constant dense<0.000000e+00> : vector<1024x64xf32>
    %14 = tpu.matmul %4, %13, %cst_18 {dimension_numbers = #tpu.dot_dimension_numbers<[1], [0], [0], [1], [0, 0, 1, 1], [], []>} : vector<1024x64xf32>, vector<64x64xf32>, vector<1024x64xf32> -> vector<1024x64xf32>
    %15 = arith.mulf %14, %5 : vector<1024x64xf32>
    %cst_19 = arith.constant dense<0.000000e+00> : vector<1024x128xf32>
    %16 = tpu.matmul %15, %6, %cst_19 {dimension_numbers = #tpu.dot_dimension_numbers<[1], [0], [0], [1], [0, 0, 1, 1], [], []>} : vector<1024x64xf32>, vector<64x128xf32>, vector<1024x128xf32> -> vector<1024x128xf32>
    %17 = arith.mulf %3, %1 : vector<64x128xf32>
    %cst_20 = arith.constant dense<0.000000e+00> : vector<1024x128xf32>
    %18 = tpu.matmul %4, %17, %cst_20 {dimension_numbers = #tpu.dot_dimension_numbers<[1], [0], [0], [1], [0, 0, 1, 1], [], []>} : vector<1024x64xf32>, vector<64x128xf32>, vector<1024x128xf32> -> vector<1024x128xf32>
    %19 = arith.mulf %16, %18 : vector<1024x128xf32>
    %c0_21 = arith.constant 0 : index
    %c0_22 = arith.constant 0 : index
    %20 = vector.load %arg12[%c0_21, %c0_22] : memref<1024x128xf32, #tpu.memory_space<vmem>>, vector<1024x128xf32>
    tpu.vector_store %arg12[%c0_21, %c0_22], %19 {strides = array<i32>} : memref<1024x128xf32, #tpu.memory_space<vmem>>, vector<1024x128xf32>,
    %c0_23 = arith.constant 0 : index
    %c0_24 = arith.constant 0 : index
    %c64 = arith.constant 64 : index
    %21 = vector.load %arg3[%c0_23, %c0_24, %c64] : memref<1x64x128xf32, #tpu.memory_space<vmem>>, vector<1x64x64xf32>
    %22 = vector.shape_cast %21 : vector<1x64x64xf32> to vector<64x64xf32>
    %cst_25 = arith.constant dense<0.000000e+00> : vector<1024x64xf32>
    %23 = tpu.matmul %4, %22, %cst_25 {dimension_numbers = #tpu.dot_dimension_numbers<[1], [0], [0], [1], [0, 0, 1, 1], [], []>} : vector<1024x64xf32>, vector<64x64xf32>, vector<1024x64xf32> -> vector<1024x64xf32>
    %24 = arith.mulf %23, %5 : vector<1024x64xf32>
    %cst_26 = arith.constant dense<0.000000e+00> : vector<1024x128xf32>
    %25 = tpu.matmul %24, %6, %cst_26 {dimension_numbers = #tpu.dot_dimension_numbers<[1], [0], [0], [1], [0, 0, 1, 1], [], []>} : vector<1024x64xf32>, vector<64x128xf32>, vector<1024x128xf32> -> vector<1024x128xf32>
    %c0_27 = arith.constant 0 : index
    %c0_28 = arith.constant 0 : index
    %26 = vector.load %arg13[%c0_27, %c0_28] : memref<1024x128xf32, #tpu.memory_space<vmem>>, vector<1024x128xf32>
    tpu.vector_store %arg13[%c0_27, %c0_28], %25 {strides = array<i32>} : memref<1024x128xf32, #tpu.memory_space<vmem>>, vector<1024x128xf32>,
    %cst_29 = arith.constant 0.000000e+00 : f32
    %27 = vector.broadcast %cst_29 : f32 to vector<16x128xf32>
    %c0_i32 = arith.constant 0 : i32
    %c64_i32 = arith.constant 64 : i32
    %28 = arith.addi %c0_i32, %c64_i32 : i32
    %c1_i32 = arith.constant 1 : i32
    %29 = scf.for %arg15 = %c0_i32 to %28 step %c1_i32 iter_args(%arg16 = %27) -> (vector<16x128xf32>)  : i32 {
      %c16_i32 = arith.constant 16 : i32
      %40 = arith.muli %arg15, %c16_i32 : i32
      %41 = tpu.assume_multiple %40, 16 : i32
      %42 = arith.index_cast %41 : i32 to index
      %c0_41 = arith.constant 0 : index
      %43 = vector.load %arg11[%42, %c0_41] : memref<1024x128xf32, #tpu.memory_space<vmem>>, vector<16x128xf32>
      %44 = arith.mulf %43, %arg16 : vector<16x128xf32>
      %45 = arith.index_cast %41 : i32 to index
      %c0_42 = arith.constant 0 : index
      %46 = vector.load %arg12[%45, %c0_42] : memref<1024x128xf32, #tpu.memory_space<vmem>>, vector<16x128xf32>
      %47 = arith.addf %44, %46 : vector<16x128xf32>
      %48 = arith.index_cast %41 : i32 to index
      %c0_43 = arith.constant 0 : index
      %49 = vector.load %arg13[%48, %c0_43] : memref<1024x128xf32, #tpu.memory_space<vmem>>, vector<16x128xf32>
      %50 = arith.mulf %49, %47 : vector<16x128xf32>
      %51 = arith.index_cast %41 : i32 to index
      %c0_44 = arith.constant 0 : index
      %52 = vector.load %arg14[%51, %c0_44] : memref<1024x128xf32, #tpu.memory_space<vmem>>, vector<16x128xf32>
      tpu.vector_store %arg14[%51, %c0_44], %50 {strides = array<i32>} : memref<1024x128xf32, #tpu.memory_space<vmem>>, vector<16x128xf32>,
      scf.yield %47 : vector<16x128xf32>
    }
    %c64_i32_30 = arith.constant 64 : i32
    %c0_31 = arith.constant 0 : index
    %c0_32 = arith.constant 0 : index
    %30 = vector.load %arg6[%c0_31, %c0_32] : memref<64x1024xf32, #tpu.memory_space<vmem>>, vector<64x1024xf32>
    %c0_33 = arith.constant 0 : index
    %c0_34 = arith.constant 0 : index
    %31 = vector.load %arg14[%c0_33, %c0_34] : memref<1024x128xf32, #tpu.memory_space<vmem>>, vector<1024x128xf32>
    %cst_35 = arith.constant dense<0.000000e+00> : vector<64x128xf32>
    %32 = tpu.matmul %30, %31, %cst_35 {dimension_numbers = #tpu.dot_dimension_numbers<[1], [0], [0], [1], [0, 0, 1, 1], [], []>} : vector<64x1024xf32>, vector<1024x128xf32>, vector<64x128xf32> -> vector<64x128xf32>
    %c0_36 = arith.constant 0 : index
    %c0_37 = arith.constant 0 : index
    %33 = vector.load %arg9[%c0_36, %c0_37] : memref<1x128xf32, #tpu.memory_space<vmem>>, vector<1x128xf32>
    %34 = vector.broadcast %33 : vector<1x128xf32> to vector<64x128xf32>
    %35 = arith.mulf %34, %1 : vector<64x128xf32>
    %36 = arith.addf %32, %35 : vector<64x128xf32>
    %c0_38 = arith.constant 0 : index
    %c0_39 = arith.constant 0 : index
    %c0_40 = arith.constant 0 : index
    %37 = vector.load %arg10[%c0_38, %c0_39, %c0_40] : memref<1x64x128xf32, #tpu.memory_space<vmem>>, vector<1x64x128xf32>
    %38 = vector.shape_cast %37 : vector<1x64x128xf32> to vector<64x128xf32>
    %39 = vector.shape_cast %36 : vector<64x128xf32> to vector<1x64x128xf32>
    tpu.vector_store %arg10[%c0_38, %c0_39, %c0_40], %39 {strides = array<i32>} : memref<1x64x128xf32, #tpu.memory_space<vmem>>, vector<1x64x128xf32>,
    return
  }
  func.func @transform_0(%arg0: i32) -> (i32, i32, i32) {
    %c0_i32 = arith.constant 0 : i32
    %c0_i32_0 = arith.constant 0 : i32
    %c0_i32_1 = arith.constant 0 : i32
    return %arg0, %c0_i32, %c0_i32_0 : i32, i32, i32
  }
  func.func @transform_1(%arg0: i32) -> (i32, i32, i32) {
    %c0_i32 = arith.constant 0 : i32
    %c0_i32_0 = arith.constant 0 : i32
    %c0_i32_1 = arith.constant 0 : i32
    return %arg0, %c0_i32, %c0_i32_0 : i32, i32, i32
  }
  func.func @transform_2(%arg0: i32) -> (i32, i32, i32) {
    %c0_i32 = arith.constant 0 : i32
    %c0_i32_0 = arith.constant 0 : i32
    %c0_i32_1 = arith.constant 0 : i32
    return %arg0, %c0_i32, %c0_i32_0 : i32, i32, i32
  }
  func.func @transform_3(%arg0: i32) -> (i32, i32) {
    %c0_i32 = arith.constant 0 : i32
    %c0_i32_0 = arith.constant 0 : i32
    %c0_i32_1 = arith.constant 0 : i32
    return %c0_i32, %c0_i32_0 : i32, i32
  }
  func.func @transform_4(%arg0: i32) -> (i32, i32) {
    %c0_i32 = arith.constant 0 : i32
    %c0_i32_0 = arith.constant 0 : i32
    %c0_i32_1 = arith.constant 0 : i32
    return %c0_i32, %c0_i32_0 : i32, i32
  }
  func.func @transform_5(%arg0: i32) -> (i32, i32) {
    %c0_i32 = arith.constant 0 : i32
    %c0_i32_0 = arith.constant 0 : i32
    %c0_i32_1 = arith.constant 0 : i32
    return %c0_i32, %c0_i32_0 : i32, i32
  }
  func.func @transform_6(%arg0: i32) -> (i32, i32) {
    %c0_i32 = arith.constant 0 : i32
    %c0_i32_0 = arith.constant 0 : i32
    %c0_i32_1 = arith.constant 0 : i32
    return %c0_i32, %c0_i32_0 : i32, i32
  }
  func.func @transform_7(%arg0: i32) -> (i32, i32) {
    %c0_i32 = arith.constant 0 : i32
    %c0_i32_0 = arith.constant 0 : i32
    %c0_i32_1 = arith.constant 0 : i32
    return %c0_i32, %c0_i32_0 : i32, i32
  }
  func.func @transform_8(%arg0: i32) -> (i32, i32) {
    %c0_i32 = arith.constant 0 : i32
    %c0_i32_0 = arith.constant 0 : i32
    %c0_i32_1 = arith.constant 0 : i32
    return %c0_i32, %c0_i32_0 : i32, i32
  }
  func.func @transform_9(%arg0: i32) -> (i32, i32, i32) {
    %c0_i32 = arith.constant 0 : i32
    %c0_i32_0 = arith.constant 0 : i32
    %c0_i32_1 = arith.constant 0 : i32
    return %arg0, %c0_i32, %c0_i32_0 : i32, i32, i32
  }
}

module attributes {stable_mosaic.version = 11 : i64} {
  func.func @_rowln_kernel(%arg0: i32, %arg1: memref<128x32xf32, #tpu.memory_space<vmem>>, %arg2: memref<1x32xf32, #tpu.memory_space<vmem>>, %arg3: memref<1x32xf32, #tpu.memory_space<vmem>>, %arg4: memref<128x32xf32, #tpu.memory_space<vmem>>) attributes {dimension_semantics = [#tpu.dimension_semantics<parallel>], iteration_bounds = array<i64: 1>, scalar_prefetch = 0 : i64, scratch_operands = 0 : i64, tpu.core_type = #tpu.core_type<tc>, window_params = [{transform_indices = @transform_0, window_bounds = array<i64: 128, 32>}, {pipeline_mode = #tpu.pipeline_mode<synchronous>, transform_indices = @transform_1, window_bounds = array<i64: 1, 32>}, {pipeline_mode = #tpu.pipeline_mode<synchronous>, transform_indices = @transform_2, window_bounds = array<i64: 1, 32>}, {transform_indices = @transform_3, window_bounds = array<i64: 128, 32>}]} {
    %c0 = arith.constant 0 : index
    %c0_0 = arith.constant 0 : index
    %0 = vector.load %arg1[%c0, %c0_0] : memref<128x32xf32, #tpu.memory_space<vmem>>, vector<128x32xf32>
    %cst = arith.constant dense<0.000000e+00> : vector<128xf32>
    %1 = vector.multi_reduction <add>, %0, %cst [1] : vector<128x32xf32> to vector<128xf32>
    %2 = vector.shape_cast %1 : vector<128xf32> to vector<128x1xf32>
    %cst_1 = arith.constant 3.200000e+01 : f32
    %3 = vector.broadcast %cst_1 : f32 to vector<128x1xf32>
    %4 = arith.divf %2, %3 : vector<128x1xf32>
    %5 = vector.broadcast %4 : vector<128x1xf32> to vector<128x32xf32>
    %6 = arith.subf %0, %5 : vector<128x32xf32>
    %7 = arith.mulf %6, %6 : vector<128x32xf32>
    %cst_2 = arith.constant dense<0.000000e+00> : vector<128xf32>
    %8 = vector.multi_reduction <add>, %7, %cst_2 [1] : vector<128x32xf32> to vector<128xf32>
    %9 = vector.shape_cast %8 : vector<128xf32> to vector<128x1xf32>
    %cst_3 = arith.constant 3.200000e+01 : f32
    %10 = vector.broadcast %cst_3 : f32 to vector<128x1xf32>
    %11 = arith.divf %9, %10 : vector<128x1xf32>
    %12 = vector.broadcast %4 : vector<128x1xf32> to vector<128x32xf32>
    %13 = arith.subf %0, %12 : vector<128x32xf32>
    %cst_4 = arith.constant 9.99999974E-6 : f32
    %14 = vector.broadcast %cst_4 : f32 to vector<128x1xf32>
    %15 = arith.addf %11, %14 : vector<128x1xf32>
    %16 = math.rsqrt %15 : vector<128x1xf32>
    %17 = vector.broadcast %16 : vector<128x1xf32> to vector<128x32xf32>
    %18 = arith.mulf %13, %17 : vector<128x32xf32>
    %c0_5 = arith.constant 0 : index
    %c0_6 = arith.constant 0 : index
    %19 = vector.load %arg2[%c0_5, %c0_6] : memref<1x32xf32, #tpu.memory_space<vmem>>, vector<1x32xf32>
    %20 = vector.broadcast %19 : vector<1x32xf32> to vector<128x32xf32>
    %21 = arith.mulf %18, %20 : vector<128x32xf32>
    %c0_7 = arith.constant 0 : index
    %c0_8 = arith.constant 0 : index
    %22 = vector.load %arg3[%c0_7, %c0_8] : memref<1x32xf32, #tpu.memory_space<vmem>>, vector<1x32xf32>
    %23 = vector.broadcast %22 : vector<1x32xf32> to vector<128x32xf32>
    %24 = arith.addf %21, %23 : vector<128x32xf32>
    %c0_9 = arith.constant 0 : index
    %c0_10 = arith.constant 0 : index
    %25 = vector.load %arg4[%c0_9, %c0_10] : memref<128x32xf32, #tpu.memory_space<vmem>>, vector<128x32xf32>
    tpu.vector_store %arg4[%c0_9, %c0_10], %24 {strides = array<i32>} : memref<128x32xf32, #tpu.memory_space<vmem>>, vector<128x32xf32>,
    return
  }
  func.func @transform_0(%arg0: i32) -> (i32, i32) {
    %c0_i32 = arith.constant 0 : i32
    %c0_i32_0 = arith.constant 0 : i32
    return %arg0, %c0_i32 : i32, i32
  }
  func.func @transform_1(%arg0: i32) -> (i32, i32) {
    %c0_i32 = arith.constant 0 : i32
    %c0_i32_0 = arith.constant 0 : i32
    %c0_i32_1 = arith.constant 0 : i32
    return %c0_i32, %c0_i32_0 : i32, i32
  }
  func.func @transform_2(%arg0: i32) -> (i32, i32) {
    %c0_i32 = arith.constant 0 : i32
    %c0_i32_0 = arith.constant 0 : i32
    %c0_i32_1 = arith.constant 0 : i32
    return %c0_i32, %c0_i32_0 : i32, i32
  }
  func.func @transform_3(%arg0: i32) -> (i32, i32) {
    %c0_i32 = arith.constant 0 : i32
    %c0_i32_0 = arith.constant 0 : i32
    return %arg0, %c0_i32 : i32, i32
  }
}

module attributes {stable_mosaic.version = 11 : i64} {
  func.func @_dft_conv_ln_kernel(%arg0: i32, %arg1: memref<1x10x10x32xf32, #tpu.memory_space<vmem>>, %arg2: memref<288x32xf32, #tpu.memory_space<vmem>>, %arg3: memref<1x32xf32, #tpu.memory_space<vmem>>, %arg4: memref<1x32xf32, #tpu.memory_space<vmem>>, %arg5: memref<1x32xf32, #tpu.memory_space<vmem>>, %arg6: memref<1x8x8x32xf32, #tpu.memory_space<vmem>>, %arg7: memref<64x288xf32, #tpu.memory_space<vmem>>) attributes {dimension_semantics = [#tpu.dimension_semantics<parallel>], iteration_bounds = array<i64: 2>, scalar_prefetch = 0 : i64, scratch_operands = 1 : i64, tpu.core_type = #tpu.core_type<tc>, window_params = [{transform_indices = @transform_0, window_bounds = array<i64: 1, 10, 10, 32>}, {pipeline_mode = #tpu.pipeline_mode<synchronous>, transform_indices = @transform_1, window_bounds = array<i64: 288, 32>}, {pipeline_mode = #tpu.pipeline_mode<synchronous>, transform_indices = @transform_2, window_bounds = array<i64: 1, 32>}, {pipeline_mode = #tpu.pipeline_mode<synchronous>, transform_indices = @transform_3, window_bounds = array<i64: 1, 32>}, {pipeline_mode = #tpu.pipeline_mode<synchronous>, transform_indices = @transform_4, window_bounds = array<i64: 1, 32>}, {transform_indices = @transform_5, window_bounds = array<i64: 1, 8, 8, 32>}]} {
    %c0 = arith.constant 0 : index
    %c0_0 = arith.constant 0 : index
    %c0_1 = arith.constant 0 : index
    %c0_2 = arith.constant 0 : index
    %0 = vector.load %arg1[%c0, %c0_0, %c0_1, %c0_2] : memref<1x10x10x32xf32, #tpu.memory_space<vmem>>, vector<1x8x8x32xf32>
    %1 = vector.shape_cast %0 : vector<1x8x8x32xf32> to vector<8x8x32xf32>
    %2 = vector.shape_cast %1 : vector<8x8x32xf32> to vector<64x32xf32>
    %c0_3 = arith.constant 0 : index
    %c0_4 = arith.constant 0 : index
    %3 = vector.load %arg7[%c0_3, %c0_4] : memref<64x288xf32, #tpu.memory_space<vmem>>, vector<64x32xf32>
    tpu.vector_store %arg7[%c0_3, %c0_4], %2 {strides = array<i32>} : memref<64x288xf32, #tpu.memory_space<vmem>>, vector<64x32xf32>,
    %c0_5 = arith.constant 0 : index
    %c0_6 = arith.constant 0 : index
    %c1 = arith.constant 1 : index
    %c0_7 = arith.constant 0 : index
    %4 = vector.load %arg1[%c0_5, %c0_6, %c1, %c0_7] : memref<1x10x10x32xf32, #tpu.memory_space<vmem>>, vector<1x8x8x32xf32>
    %5 = vector.shape_cast %4 : vector<1x8x8x32xf32> to vector<8x8x32xf32>
    %6 = vector.shape_cast %5 : vector<8x8x32xf32> to vector<64x32xf32>
    %c0_8 = arith.constant 0 : index
    %c32 = arith.constant 32 : index
    %7 = vector.load %arg7[%c0_8, %c32] : memref<64x288xf32, #tpu.memory_space<vmem>>, vector<64x32xf32>
    tpu.vector_store %arg7[%c0_8, %c32], %6 {strides = array<i32>} : memref<64x288xf32, #tpu.memory_space<vmem>>, vector<64x32xf32>,
    %c0_9 = arith.constant 0 : index
    %c0_10 = arith.constant 0 : index
    %c2 = arith.constant 2 : index
    %c0_11 = arith.constant 0 : index
    %8 = vector.load %arg1[%c0_9, %c0_10, %c2, %c0_11] : memref<1x10x10x32xf32, #tpu.memory_space<vmem>>, vector<1x8x8x32xf32>
    %9 = vector.shape_cast %8 : vector<1x8x8x32xf32> to vector<8x8x32xf32>
    %10 = vector.shape_cast %9 : vector<8x8x32xf32> to vector<64x32xf32>
    %c0_12 = arith.constant 0 : index
    %c64 = arith.constant 64 : index
    %11 = vector.load %arg7[%c0_12, %c64] : memref<64x288xf32, #tpu.memory_space<vmem>>, vector<64x32xf32>
    tpu.vector_store %arg7[%c0_12, %c64], %10 {strides = array<i32>} : memref<64x288xf32, #tpu.memory_space<vmem>>, vector<64x32xf32>,
    %c0_13 = arith.constant 0 : index
    %c1_14 = arith.constant 1 : index
    %c0_15 = arith.constant 0 : index
    %c0_16 = arith.constant 0 : index
    %12 = vector.load %arg1[%c0_13, %c1_14, %c0_15, %c0_16] : memref<1x10x10x32xf32, #tpu.memory_space<vmem>>, vector<1x8x8x32xf32>
    %13 = vector.shape_cast %12 : vector<1x8x8x32xf32> to vector<8x8x32xf32>
    %14 = vector.shape_cast %13 : vector<8x8x32xf32> to vector<64x32xf32>
    %c0_17 = arith.constant 0 : index
    %c96 = arith.constant 96 : index
    %15 = vector.load %arg7[%c0_17, %c96] : memref<64x288xf32, #tpu.memory_space<vmem>>, vector<64x32xf32>
    tpu.vector_store %arg7[%c0_17, %c96], %14 {strides = array<i32>} : memref<64x288xf32, #tpu.memory_space<vmem>>, vector<64x32xf32>,
    %c0_18 = arith.constant 0 : index
    %c1_19 = arith.constant 1 : index
    %c1_20 = arith.constant 1 : index
    %c0_21 = arith.constant 0 : index
    %16 = vector.load %arg1[%c0_18, %c1_19, %c1_20, %c0_21] : memref<1x10x10x32xf32, #tpu.memory_space<vmem>>, vector<1x8x8x32xf32>
    %17 = vector.shape_cast %16 : vector<1x8x8x32xf32> to vector<8x8x32xf32>
    %18 = vector.shape_cast %17 : vector<8x8x32xf32> to vector<64x32xf32>
    %c0_22 = arith.constant 0 : index
    %c128 = arith.constant 128 : index
    %19 = vector.load %arg7[%c0_22, %c128] : memref<64x288xf32, #tpu.memory_space<vmem>>, vector<64x32xf32>
    tpu.vector_store %arg7[%c0_22, %c128], %18 {strides = array<i32>} : memref<64x288xf32, #tpu.memory_space<vmem>>, vector<64x32xf32>,
    %c0_23 = arith.constant 0 : index
    %c1_24 = arith.constant 1 : index
    %c2_25 = arith.constant 2 : index
    %c0_26 = arith.constant 0 : index
    %20 = vector.load %arg1[%c0_23, %c1_24, %c2_25, %c0_26] : memref<1x10x10x32xf32, #tpu.memory_space<vmem>>, vector<1x8x8x32xf32>
    %21 = vector.shape_cast %20 : vector<1x8x8x32xf32> to vector<8x8x32xf32>
    %22 = vector.shape_cast %21 : vector<8x8x32xf32> to vector<64x32xf32>
    %c0_27 = arith.constant 0 : index
    %c160 = arith.constant 160 : index
    %23 = vector.load %arg7[%c0_27, %c160] : memref<64x288xf32, #tpu.memory_space<vmem>>, vector<64x32xf32>
    tpu.vector_store %arg7[%c0_27, %c160], %22 {strides = array<i32>} : memref<64x288xf32, #tpu.memory_space<vmem>>, vector<64x32xf32>,
    %c0_28 = arith.constant 0 : index
    %c2_29 = arith.constant 2 : index
    %c0_30 = arith.constant 0 : index
    %c0_31 = arith.constant 0 : index
    %24 = vector.load %arg1[%c0_28, %c2_29, %c0_30, %c0_31] : memref<1x10x10x32xf32, #tpu.memory_space<vmem>>, vector<1x8x8x32xf32>
    %25 = vector.shape_cast %24 : vector<1x8x8x32xf32> to vector<8x8x32xf32>
    %26 = vector.shape_cast %25 : vector<8x8x32xf32> to vector<64x32xf32>
    %c0_32 = arith.constant 0 : index
    %c192 = arith.constant 192 : index
    %27 = vector.load %arg7[%c0_32, %c192] : memref<64x288xf32, #tpu.memory_space<vmem>>, vector<64x32xf32>
    tpu.vector_store %arg7[%c0_32, %c192], %26 {strides = array<i32>} : memref<64x288xf32, #tpu.memory_space<vmem>>, vector<64x32xf32>,
    %c0_33 = arith.constant 0 : index
    %c2_34 = arith.constant 2 : index
    %c1_35 = arith.constant 1 : index
    %c0_36 = arith.constant 0 : index
    %28 = vector.load %arg1[%c0_33, %c2_34, %c1_35, %c0_36] : memref<1x10x10x32xf32, #tpu.memory_space<vmem>>, vector<1x8x8x32xf32>
    %29 = vector.shape_cast %28 : vector<1x8x8x32xf32> to vector<8x8x32xf32>
    %30 = vector.shape_cast %29 : vector<8x8x32xf32> to vector<64x32xf32>
    %c0_37 = arith.constant 0 : index
    %c224 = arith.constant 224 : index
    %31 = vector.load %arg7[%c0_37, %c224] : memref<64x288xf32, #tpu.memory_space<vmem>>, vector<64x32xf32>
    tpu.vector_store %arg7[%c0_37, %c224], %30 {strides = array<i32>} : memref<64x288xf32, #tpu.memory_space<vmem>>, vector<64x32xf32>,
    %c0_38 = arith.constant 0 : index
    %c2_39 = arith.constant 2 : index
    %c2_40 = arith.constant 2 : index
    %c0_41 = arith.constant 0 : index
    %32 = vector.load %arg1[%c0_38, %c2_39, %c2_40, %c0_41] : memref<1x10x10x32xf32, #tpu.memory_space<vmem>>, vector<1x8x8x32xf32>
    %33 = vector.shape_cast %32 : vector<1x8x8x32xf32> to vector<8x8x32xf32>
    %34 = vector.shape_cast %33 : vector<8x8x32xf32> to vector<64x32xf32>
    %c0_42 = arith.constant 0 : index
    %c256 = arith.constant 256 : index
    %35 = vector.load %arg7[%c0_42, %c256] : memref<64x288xf32, #tpu.memory_space<vmem>>, vector<64x32xf32>
    tpu.vector_store %arg7[%c0_42, %c256], %34 {strides = array<i32>} : memref<64x288xf32, #tpu.memory_space<vmem>>, vector<64x32xf32>,
    %c0_43 = arith.constant 0 : index
    %c0_44 = arith.constant 0 : index
    %36 = vector.load %arg7[%c0_43, %c0_44] : memref<64x288xf32, #tpu.memory_space<vmem>>, vector<64x288xf32>
    %c0_45 = arith.constant 0 : index
    %c0_46 = arith.constant 0 : index
    %37 = vector.load %arg2[%c0_45, %c0_46] : memref<288x32xf32, #tpu.memory_space<vmem>>, vector<288x32xf32>
    %cst = arith.constant dense<0.000000e+00> : vector<64x32xf32>
    %38 = tpu.matmul %36, %37, %cst {dimension_numbers = #tpu.dot_dimension_numbers<[1], [0], [0], [1], [0, 0, 1, 1], [], []>} : vector<64x288xf32>, vector<288x32xf32>, vector<64x32xf32> -> vector<64x32xf32>
    %c0_47 = arith.constant 0 : index
    %c0_48 = arith.constant 0 : index
    %39 = vector.load %arg3[%c0_47, %c0_48] : memref<1x32xf32, #tpu.memory_space<vmem>>, vector<1x32xf32>
    %40 = vector.broadcast %39 : vector<1x32xf32> to vector<64x32xf32>
    %41 = arith.addf %38, %40 : vector<64x32xf32>
    %cst_49 = arith.constant dense<0.000000e+00> : vector<64xf32>
    %42 = vector.multi_reduction <add>, %41, %cst_49 [1] : vector<64x32xf32> to vector<64xf32>
    %43 = vector.shape_cast %42 : vector<64xf32> to vector<64x1xf32>
    %cst_50 = arith.constant 3.200000e+01 : f32
    %44 = vector.broadcast %cst_50 : f32 to vector<64x1xf32>
    %45 = arith.divf %43, %44 : vector<64x1xf32>
    %46 = vector.broadcast %45 : vector<64x1xf32> to vector<64x32xf32>
    %47 = arith.subf %41, %46 : vector<64x32xf32>
    %48 = arith.mulf %47, %47 : vector<64x32xf32>
    %cst_51 = arith.constant dense<0.000000e+00> : vector<64xf32>
    %49 = vector.multi_reduction <add>, %48, %cst_51 [1] : vector<64x32xf32> to vector<64xf32>
    %50 = vector.shape_cast %49 : vector<64xf32> to vector<64x1xf32>
    %cst_52 = arith.constant 3.200000e+01 : f32
    %51 = vector.broadcast %cst_52 : f32 to vector<64x1xf32>
    %52 = arith.divf %50, %51 : vector<64x1xf32>
    %53 = vector.broadcast %45 : vector<64x1xf32> to vector<64x32xf32>
    %54 = arith.subf %41, %53 : vector<64x32xf32>
    %cst_53 = arith.constant 9.99999974E-6 : f32
    %55 = vector.broadcast %cst_53 : f32 to vector<64x1xf32>
    %56 = arith.addf %52, %55 : vector<64x1xf32>
    %57 = math.rsqrt %56 : vector<64x1xf32>
    %58 = vector.broadcast %57 : vector<64x1xf32> to vector<64x32xf32>
    %59 = arith.mulf %54, %58 : vector<64x32xf32>
    %c0_54 = arith.constant 0 : index
    %c0_55 = arith.constant 0 : index
    %60 = vector.load %arg4[%c0_54, %c0_55] : memref<1x32xf32, #tpu.memory_space<vmem>>, vector<1x32xf32>
    %61 = vector.broadcast %60 : vector<1x32xf32> to vector<64x32xf32>
    %62 = arith.mulf %59, %61 : vector<64x32xf32>
    %c0_56 = arith.constant 0 : index
    %c0_57 = arith.constant 0 : index
    %63 = vector.load %arg5[%c0_56, %c0_57] : memref<1x32xf32, #tpu.memory_space<vmem>>, vector<1x32xf32>
    %64 = vector.broadcast %63 : vector<1x32xf32> to vector<64x32xf32>
    %65 = arith.addf %62, %64 : vector<64x32xf32>
    %66 = vector.shape_cast %65 : vector<64x32xf32> to vector<8x8x32xf32>
    %c0_58 = arith.constant 0 : index
    %c0_59 = arith.constant 0 : index
    %c0_60 = arith.constant 0 : index
    %c0_61 = arith.constant 0 : index
    %67 = vector.load %arg6[%c0_58, %c0_59, %c0_60, %c0_61] : memref<1x8x8x32xf32, #tpu.memory_space<vmem>>, vector<1x8x8x32xf32>
    %68 = vector.shape_cast %67 : vector<1x8x8x32xf32> to vector<8x8x32xf32>
    %69 = vector.shape_cast %66 : vector<8x8x32xf32> to vector<1x8x8x32xf32>
    tpu.vector_store %arg6[%c0_58, %c0_59, %c0_60, %c0_61], %69 {strides = array<i32>} : memref<1x8x8x32xf32, #tpu.memory_space<vmem>>, vector<1x8x8x32xf32>,
    return
  }
  func.func @transform_0(%arg0: i32) -> (i32, i32, i32, i32) {
    %c0_i32 = arith.constant 0 : i32
    %c0_i32_0 = arith.constant 0 : i32
    %c0_i32_1 = arith.constant 0 : i32
    %c0_i32_2 = arith.constant 0 : i32
    return %arg0, %c0_i32, %c0_i32_0, %c0_i32_1 : i32, i32, i32, i32
  }
  func.func @transform_1(%arg0: i32) -> (i32, i32) {
    %c0_i32 = arith.constant 0 : i32
    %c0_i32_0 = arith.constant 0 : i32
    %c0_i32_1 = arith.constant 0 : i32
    return %c0_i32, %c0_i32_0 : i32, i32
  }
  func.func @transform_2(%arg0: i32) -> (i32, i32) {
    %c0_i32 = arith.constant 0 : i32
    %c0_i32_0 = arith.constant 0 : i32
    %c0_i32_1 = arith.constant 0 : i32
    return %c0_i32, %c0_i32_0 : i32, i32
  }
  func.func @transform_3(%arg0: i32) -> (i32, i32) {
    %c0_i32 = arith.constant 0 : i32
    %c0_i32_0 = arith.constant 0 : i32
    %c0_i32_1 = arith.constant 0 : i32
    return %c0_i32, %c0_i32_0 : i32, i32
  }
  func.func @transform_4(%arg0: i32) -> (i32, i32) {
    %c0_i32 = arith.constant 0 : i32
    %c0_i32_0 = arith.constant 0 : i32
    %c0_i32_1 = arith.constant 0 : i32
    return %c0_i32, %c0_i32_0 : i32, i32
  }
  func.func @transform_5(%arg0: i32) -> (i32, i32, i32, i32) {
    %c0_i32 = arith.constant 0 : i32
    %c0_i32_0 = arith.constant 0 : i32
    %c0_i32_1 = arith.constant 0 : i32
    %c0_i32_2 = arith.constant 0 : i32
    return %arg0, %c0_i32, %c0_i32_0, %c0_i32_1 : i32, i32, i32, i32
  }
}

module attributes {stable_mosaic.version = 11 : i64} {
  func.func @_tail_kernel(%arg0: i32, %arg1: memref<128x64xf32, #tpu.memory_space<vmem>>, %arg2: memref<64x64xf32, #tpu.memory_space<vmem>>, %arg3: memref<1x64xf32, #tpu.memory_space<vmem>>, %arg4: memref<1x64xf32, #tpu.memory_space<vmem>>, %arg5: memref<1x64xf32, #tpu.memory_space<vmem>>, %arg6: memref<1x64xf32, #tpu.memory_space<vmem>>, %arg7: memref<1x64xf32, #tpu.memory_space<vmem>>, %arg8: memref<128x64xf32, #tpu.memory_space<vmem>>) attributes {dimension_semantics = [#tpu.dimension_semantics<parallel>], iteration_bounds = array<i64: 1>, scalar_prefetch = 0 : i64, scratch_operands = 0 : i64, tpu.core_type = #tpu.core_type<tc>, window_params = [{transform_indices = @transform_0, window_bounds = array<i64: 128, 64>}, {pipeline_mode = #tpu.pipeline_mode<synchronous>, transform_indices = @transform_1, window_bounds = array<i64: 64, 64>}, {pipeline_mode = #tpu.pipeline_mode<synchronous>, transform_indices = @transform_2, window_bounds = array<i64: 1, 64>}, {pipeline_mode = #tpu.pipeline_mode<synchronous>, transform_indices = @transform_3, window_bounds = array<i64: 1, 64>}, {pipeline_mode = #tpu.pipeline_mode<synchronous>, transform_indices = @transform_4, window_bounds = array<i64: 1, 64>}, {pipeline_mode = #tpu.pipeline_mode<synchronous>, transform_indices = @transform_5, window_bounds = array<i64: 1, 64>}, {pipeline_mode = #tpu.pipeline_mode<synchronous>, transform_indices = @transform_6, window_bounds = array<i64: 1, 64>}, {transform_indices = @transform_7, window_bounds = array<i64: 128, 64>}]} {
    %c0 = arith.constant 0 : index
    %c0_0 = arith.constant 0 : index
    %0 = vector.load %arg1[%c0, %c0_0] : memref<128x64xf32, #tpu.memory_space<vmem>>, vector<128x64xf32>
    %c0_1 = arith.constant 0 : index
    %c0_2 = arith.constant 0 : index
    %1 = vector.load %arg4[%c0_1, %c0_2] : memref<1x64xf32, #tpu.memory_space<vmem>>, vector<1x64xf32>
    %c0_3 = arith.constant 0 : index
    %c0_4 = arith.constant 0 : index
    %2 = vector.load %arg5[%c0_3, %c0_4] : memref<1x64xf32, #tpu.memory_space<vmem>>, vector<1x64xf32>
    %cst = arith.constant dense<0.000000e+00> : vector<128xf32>
    %3 = vector.multi_reduction <add>, %0, %cst [1] : vector<128x64xf32> to vector<128xf32>
    %4 = vector.shape_cast %3 : vector<128xf32> to vector<128x1xf32>
    %cst_5 = arith.constant 6.400000e+01 : f32
    %5 = vector.broadcast %cst_5 : f32 to vector<128x1xf32>
    %6 = arith.divf %4, %5 : vector<128x1xf32>
    %7 = vector.broadcast %6 : vector<128x1xf32> to vector<128x64xf32>
    %8 = arith.subf %0, %7 : vector<128x64xf32>
    %9 = arith.mulf %8, %8 : vector<128x64xf32>
    %cst_6 = arith.constant dense<0.000000e+00> : vector<128xf32>
    %10 = vector.multi_reduction <add>, %9, %cst_6 [1] : vector<128x64xf32> to vector<128xf32>
    %11 = vector.shape_cast %10 : vector<128xf32> to vector<128x1xf32>
    %cst_7 = arith.constant 6.400000e+01 : f32
    %12 = vector.broadcast %cst_7 : f32 to vector<128x1xf32>
    %13 = arith.divf %11, %12 : vector<128x1xf32>
    %14 = vector.broadcast %6 : vector<128x1xf32> to vector<128x64xf32>
    %15 = arith.subf %0, %14 : vector<128x64xf32>
    %cst_8 = arith.constant 9.99999974E-6 : f32
    %16 = vector.broadcast %cst_8 : f32 to vector<128x1xf32>
    %17 = arith.addf %13, %16 : vector<128x1xf32>
    %18 = math.rsqrt %17 : vector<128x1xf32>
    %19 = vector.broadcast %18 : vector<128x1xf32> to vector<128x64xf32>
    %20 = arith.mulf %15, %19 : vector<128x64xf32>
    %21 = vector.broadcast %1 : vector<1x64xf32> to vector<128x64xf32>
    %22 = arith.mulf %20, %21 : vector<128x64xf32>
    %23 = vector.broadcast %2 : vector<1x64xf32> to vector<128x64xf32>
    %24 = arith.addf %22, %23 : vector<128x64xf32>
    %c0_9 = arith.constant 0 : index
    %c0_10 = arith.constant 0 : index
    %25 = vector.load %arg2[%c0_9, %c0_10] : memref<64x64xf32, #tpu.memory_space<vmem>>, vector<64x64xf32>
    %cst_11 = arith.constant dense<0.000000e+00> : vector<128x64xf32>
    %26 = tpu.matmul %24, %25, %cst_11 {dimension_numbers = #tpu.dot_dimension_numbers<[1], [0], [0], [1], [0, 0, 1, 1], [], []>} : vector<128x64xf32>, vector<64x64xf32>, vector<128x64xf32> -> vector<128x64xf32>
    %c0_12 = arith.constant 0 : index
    %c0_13 = arith.constant 0 : index
    %27 = vector.load %arg3[%c0_12, %c0_13] : memref<1x64xf32, #tpu.memory_space<vmem>>, vector<1x64xf32>
    %28 = vector.broadcast %27 : vector<1x64xf32> to vector<128x64xf32>
    %29 = arith.addf %26, %28 : vector<128x64xf32>
    %c0_14 = arith.constant 0 : index
    %c0_15 = arith.constant 0 : index
    %30 = vector.load %arg6[%c0_14, %c0_15] : memref<1x64xf32, #tpu.memory_space<vmem>>, vector<1x64xf32>
    %c0_16 = arith.constant 0 : index
    %c0_17 = arith.constant 0 : index
    %31 = vector.load %arg7[%c0_16, %c0_17] : memref<1x64xf32, #tpu.memory_space<vmem>>, vector<1x64xf32>
    %cst_18 = arith.constant dense<0.000000e+00> : vector<128xf32>
    %32 = vector.multi_reduction <add>, %29, %cst_18 [1] : vector<128x64xf32> to vector<128xf32>
    %33 = vector.shape_cast %32 : vector<128xf32> to vector<128x1xf32>
    %cst_19 = arith.constant 6.400000e+01 : f32
    %34 = vector.broadcast %cst_19 : f32 to vector<128x1xf32>
    %35 = arith.divf %33, %34 : vector<128x1xf32>
    %36 = vector.broadcast %35 : vector<128x1xf32> to vector<128x64xf32>
    %37 = arith.subf %29, %36 : vector<128x64xf32>
    %38 = arith.mulf %37, %37 : vector<128x64xf32>
    %cst_20 = arith.constant dense<0.000000e+00> : vector<128xf32>
    %39 = vector.multi_reduction <add>, %38, %cst_20 [1] : vector<128x64xf32> to vector<128xf32>
    %40 = vector.shape_cast %39 : vector<128xf32> to vector<128x1xf32>
    %cst_21 = arith.constant 6.400000e+01 : f32
    %41 = vector.broadcast %cst_21 : f32 to vector<128x1xf32>
    %42 = arith.divf %40, %41 : vector<128x1xf32>
    %43 = vector.broadcast %35 : vector<128x1xf32> to vector<128x64xf32>
    %44 = arith.subf %29, %43 : vector<128x64xf32>
    %cst_22 = arith.constant 9.99999974E-6 : f32
    %45 = vector.broadcast %cst_22 : f32 to vector<128x1xf32>
    %46 = arith.addf %42, %45 : vector<128x1xf32>
    %47 = math.rsqrt %46 : vector<128x1xf32>
    %48 = vector.broadcast %47 : vector<128x1xf32> to vector<128x64xf32>
    %49 = arith.mulf %44, %48 : vector<128x64xf32>
    %50 = vector.broadcast %30 : vector<1x64xf32> to vector<128x64xf32>
    %51 = arith.mulf %49, %50 : vector<128x64xf32>
    %52 = vector.broadcast %31 : vector<1x64xf32> to vector<128x64xf32>
    %53 = arith.addf %51, %52 : vector<128x64xf32>
    %54 = arith.addf %24, %53 : vector<128x64xf32>
    %c0_23 = arith.constant 0 : index
    %c0_24 = arith.constant 0 : index
    %55 = vector.load %arg8[%c0_23, %c0_24] : memref<128x64xf32, #tpu.memory_space<vmem>>, vector<128x64xf32>
    tpu.vector_store %arg8[%c0_23, %c0_24], %54 {strides = array<i32>} : memref<128x64xf32, #tpu.memory_space<vmem>>, vector<128x64xf32>,
    return
  }
  func.func @transform_0(%arg0: i32) -> (i32, i32) {
    %c0_i32 = arith.constant 0 : i32
    %c0_i32_0 = arith.constant 0 : i32
    return %arg0, %c0_i32 : i32, i32
  }
  func.func @transform_1(%arg0: i32) -> (i32, i32) {
    %c0_i32 = arith.constant 0 : i32
    %c0_i32_0 = arith.constant 0 : i32
    %c0_i32_1 = arith.constant 0 : i32
    return %c0_i32, %c0_i32_0 : i32, i32
  }
  func.func @transform_2(%arg0: i32) -> (i32, i32) {
    %c0_i32 = arith.constant 0 : i32
    %c0_i32_0 = arith.constant 0 : i32
    %c0_i32_1 = arith.constant 0 : i32
    return %c0_i32, %c0_i32_0 : i32, i32
  }
  func.func @transform_3(%arg0: i32) -> (i32, i32) {
    %c0_i32 = arith.constant 0 : i32
    %c0_i32_0 = arith.constant 0 : i32
    %c0_i32_1 = arith.constant 0 : i32
    return %c0_i32, %c0_i32_0 : i32, i32
  }
  func.func @transform_4(%arg0: i32) -> (i32, i32) {
    %c0_i32 = arith.constant 0 : i32
    %c0_i32_0 = arith.constant 0 : i32
    %c0_i32_1 = arith.constant 0 : i32
    return %c0_i32, %c0_i32_0 : i32, i32
  }
  func.func @transform_5(%arg0: i32) -> (i32, i32) {
    %c0_i32 = arith.constant 0 : i32
    %c0_i32_0 = arith.constant 0 : i32
    %c0_i32_1 = arith.constant 0 : i32
    return %c0_i32, %c0_i32_0 : i32, i32
  }
  func.func @transform_6(%arg0: i32) -> (i32, i32) {
    %c0_i32 = arith.constant 0 : i32
    %c0_i32_0 = arith.constant 0 : i32
    %c0_i32_1 = arith.constant 0 : i32
    return %c0_i32, %c0_i32_0 : i32, i32
  }
  func.func @transform_7(%arg0: i32) -> (i32, i32) {
    %c0_i32 = arith.constant 0 : i32
    %c0_i32_0 = arith.constant 0 : i32
    return %arg0, %c0_i32 : i32, i32
  }
}

</mosaic_0001>

<bundles_post_ra>
// kernel: dmf_forward.5
= control target key start
LH: loop header
LB: loop body
LE: loop exit
PB: predicated region body
PF: predicated region fallthrough
CT: control target
= control target key end

     0   :  { %v610_v3 = vmov 0.0   ;;  %s1115_s1 = inlined_call_operand.vmem [shape: f32[128,256], index: 1, kind: input, shape index: {}]   ;;  %s1116_s0 = inlined_call_operand.vmem [shape: f32[128,128], index: 0, kind: input, shape index: {}]   ;;  %s1117_s2 = inlined_call_operand.vmem [shape: f32[1,128], index: 2, kind: input, shape index: {}]   ;;  %s1118_s4 = inlined_call_operand.vmem [shape: f32[128,128], index: 4, kind: output, shape index: {1}]   ;;  %s1119_s3 = inlined_call_operand.vmem [shape: f32[128,128], index: 3, kind: output, shape index: {0}]  }
   0x1   :  { %v33_v0 = vld [vmem:[%s1115_s1 + $0x8] sm:$0xff]  ;;  %v35_v1 = vld [vmem:[%s1115_s1 + $0x18] sm:$0xff]  ;;  %v32_v2 = vld [vmem:[%s1115_s1] sm:$0xff]  ;;  %128 = vmatprep.mubr.f32.mxu0 %v610_v3  ;;  %176 = vmatprep.mubr.f32.mxu1 %v610_v3 }
   0x2   :  { %v497_v4 = vpack.c.bf16 %v35_v1, %v33_v0  ;;  %v34_v5 = vld [vmem:[%s1115_s1 + $0x10] sm:$0xff]  ;;  %v37_v6 = vld [vmem:[%s1115_s1 + $0x28] sm:$0xff]  ;;  %v39_v7 = vld [vmem:[%s1115_s1 + $0x38] sm:$0xff] }
   0x3   :  { %v499_v8 = vpack.c.bf16 %v34_v5, %v32_v2  ;;  %v501_v9 = vpack.c.bf16 %v39_v7, %v37_v6  ;;  %v36_v10 = vld [vmem:[%s1115_s1 + $0x20] sm:$0xff]  ;;  %v38_v11 = vld [vmem:[%s1115_s1 + $0x30] sm:$0xff]  ;;  %v41_v12 = vld [vmem:[%s1115_s1 + $0x48] sm:$0xff] }
   0x4   :  { %498 = vmatprep.subr.bf16.mxu0 %v497_v4  ;;  %529 = vmatprep.subr.bf16.mxu1 %v497_v4  ;;  %v43_v13 = vld [vmem:[%s1115_s1 + $0x58] sm:$0xff]  ;;  %v503_v14 = vpack.c.bf16 %v38_v11, %v36_v10  ;;  %v40_v16 = vld [vmem:[%s1115_s1 + $0x40] sm:$0xff]  ;;  %v42_v17 = vld [vmem:[%s1115_s1 + $0x50] sm:$0xff] }
   0x5   :  { %500 = vmatpush1.bf16.msra.mxu0 %v499_v8  ;;  %537 = vmatpush1.bf16.msra.mxu1 %v499_v8  ;;  %v505_v15 = vpack.c.bf16 %v43_v13, %v41_v12  ;;  %v45_v18 = vld [vmem:[%s1115_s1 + $0x68] sm:$0xff]  ;;  %v47_v19 = vld [vmem:[%s1115_s1 + $0x78] sm:$0xff]  ;;  %v507_v20 = vpack.c.bf16 %v42_v17, %v40_v16  ;;  %v44_v22 = vld [vmem:[%s1115_s1 + $0x60] sm:$0xff] }
   0x6   :  { %502 = vmatprep.subr.bf16.mxu0 %v501_v9  ;;  %530 = vmatprep.subr.bf16.mxu1 %v501_v9  ;;  %v509_v21 = vpack.c.bf16 %v47_v19, %v45_v18  ;;  %v46_v23 = vld [vmem:[%s1115_s1 + $0x70] sm:$0xff]  ;;  %v49_v24 = vld [vmem:[%s1115_s1 + $0x88] sm:$0xff]  ;;  %v51_v25 = vld [vmem:[%s1115_s1 + $0x98] sm:$0xff] }
   0x7   :  { %v511_v26 = vpack.c.bf16 %v46_v23, %v44_v22  ;;  %v513_v27 = vpack.c.bf16 %v51_v25, %v49_v24  ;;  %v48_v28 = vld [vmem:[%s1115_s1 + $0x80] sm:$0xff]  ;;  %v50_v29 = vld [vmem:[%s1115_s1 + $0x90] sm:$0xff]  ;;  %v53_v30 = vld [vmem:[%s1115_s1 + $0xa8] sm:$0xff] }
   0x8   :  { %v55_v31 = vld [vmem:[%s1115_s1 + $0xb8] sm:$0xff]  ;;  %v515_v32 = vpack.c.bf16 %v50_v29, %v48_v28  ;;  %v52_v34 = vld [vmem:[%s1115_s1 + $0xa0] sm:$0xff]  ;;  %v54_v35 = vld [vmem:[%s1115_s1 + $0xb0] sm:$0xff] }
   0x9   :  { %504 = vmatpush1.bf16.msra.mxu0 %v503_v14  ;;  %538 = vmatpush1.bf16.msra.mxu1 %v503_v14  ;;  %v517_v33 = vpack.c.bf16 %v55_v31, %v53_v30  ;;  %v57_v36 = vld [vmem:[%s1115_s1 + $0xc8] sm:$0xff]  ;;  %v59_v37 = vld [vmem:[%s1115_s1 + $0xd8] sm:$0xff]  ;;  %v519_v38 = vpack.c.bf16 %v54_v35, %v52_v34  ;;  %v56_v40 = vld [vmem:[%s1115_s1 + $0xc0] sm:$0xff] }
   0xa   :  { %506 = vmatprep.subr.bf16.mxu0 %v505_v15  ;;  %531 = vmatprep.subr.bf16.mxu1 %v505_v15  ;;  %v521_v39 = vpack.c.bf16 %v59_v37, %v57_v36  ;;  %v58_v41 = vld [vmem:[%s1115_s1 + $0xd0] sm:$0xff]  ;;  %v61_v42 = vld [vmem:[%s1115_s1 + $0xe8] sm:$0xff]  ;;  %v63_v43 = vld [vmem:[%s1115_s1 + $0xf8] sm:$0xff] }
   0xb   :  { %v523_v44 = vpack.c.bf16 %v58_v41, %v56_v40  ;;  %v525_v45 = vpack.c.bf16 %v63_v43, %v61_v42  ;;  %v60_v46 = vld [vmem:[%s1115_s1 + $0xe0] sm:$0xff]  ;;  %v62_v47 = vld [vmem:[%s1115_s1 + $0xf0] sm:$0xff]  ;;  %v17_v51 = vld [vmem:[%s1116_s0 + $0x8] sm:$0xff] }
   0xc   :  { %v527_v48 = vpack.c.bf16 %v62_v47, %v60_v46  ;;  %v16_v49 = vld [vmem:[%s1116_s0] sm:$0xff]  ;;  %v25_v52 = vld [vmem:[%s1116_s0 + $0x48] sm:$0xff]  ;;  %v18_v53 = vld [vmem:[%s1116_s0 + $0x10] sm:$0xff] }
   0xd   :  { %508 = vmatpush1.bf16.msra.mxu0 %v507_v20  ;;  %539 = vmatpush1.bf16.msra.mxu1 %v507_v20  ;;  %v24_v50 = vld [vmem:[%s1116_s0 + $0x40] sm:$0xff]  ;;  %v26_v54 = vld [vmem:[%s1116_s0 + $0x50] sm:$0xff]  ;;  %v19_v55 = vld [vmem:[%s1116_s0 + $0x18] sm:$0xff] }
   0xe   :  { %510 = vmatprep.subr.bf16.mxu0 %v509_v21  ;;  %532 = vmatprep.subr.bf16.mxu1 %v509_v21  ;;  %v27_v56 = vld [vmem:[%s1116_s0 + $0x58] sm:$0xff]  ;;  %v20_v57 = vld [vmem:[%s1116_s0 + $0x20] sm:$0xff]  ;;  %v21_v59 = vld [vmem:[%s1116_s0 + $0x28] sm:$0xff] }
   0xf   :  { %v28_v58 = vld [vmem:[%s1116_s0 + $0x60] sm:$0xff]  ;;  %v29_v60 = vld [vmem:[%s1116_s0 + $0x68] sm:$0xff]  ;;  %v22_v61 = vld [vmem:[%s1116_s0 + $0x30] sm:$0xff] }
  0x10   :  { %v30_v62 = vld [vmem:[%s1116_s0 + $0x70] sm:$0xff]  ;;  %v23_v63 = vld [vmem:[%s1116_s0 + $0x38] sm:$0xff]  ;;  %v799_v1 = vld [vmem:[%s1117_s2] ss:$0 sm:$0xff] }
  0x11   :  { %512 = vmatpush1.bf16.msra.mxu0 %v511_v26  ;;  %540 = vmatpush1.bf16.msra.mxu1 %v511_v26  ;;  %v31_v0 = vld [vmem:[%s1116_s0 + $0x78] sm:$0xff] }
  0x12   :  { %514 = vmatprep.subr.bf16.mxu0 %v513_v27  ;;  %533 = vmatprep.subr.bf16.mxu1 %v513_v27 }
  0x15   :  { %516 = vmatpush1.bf16.msra.mxu0 %v515_v32  ;;  %541 = vmatpush1.bf16.msra.mxu1 %v515_v32 }
  0x16   :  { %518 = vmatprep.subr.bf16.mxu0 %v517_v33  ;;  %534 = vmatprep.subr.bf16.mxu1 %v517_v33 }
  0x19   :  { %520 = vmatpush1.bf16.msra.mxu0 %v519_v38  ;;  %542 = vmatpush1.bf16.msra.mxu1 %v519_v38 }
  0x1a   :  { %522 = vmatprep.subr.bf16.mxu0 %v521_v39  ;;  %535 = vmatprep.subr.bf16.mxu1 %v521_v39 }
  0x1d   :  { %524 = vmatpush1.bf16.msra.mxu0 %v523_v44  ;;  %543 = vmatpush1.bf16.msra.mxu1 %v523_v44 }
  0x1e   :  { %526 = vmatprep.subr.bf16.mxu0 %v525_v45  ;;  %536 = vmatprep.subr.bf16.mxu1 %v525_v45 }
  0x21   :  { %528 = vmatpush1.bf16.msra.mxu0 %v527_v48  ;;  %544 = vmatpush1.bf16.msra.mxu1 %v527_v48 }
  0x24   :  { %129 = vmatmul.mubr.f32.vlgmr.msra.gmra.mrb[0].mxu0 %v16_v49  ;;  %177 = vmatmul.mubr.f32.vlgmr.msra.gmra.mrb[0].mxu1 %v24_v50 }
  0x25   :  { %134 = vmatprep.mubr.f32.mxu0 %v610_v3  ;;  %182 = vmatprep.mubr.f32.mxu1 %v610_v3 }
  0x28   :  { %135 = vmatmul.mubr.f32.gmra.mrb[2].mxu0 %v17_v51  ;;  %183 = vmatmul.mubr.f32.gmra.mrb[2].mxu1 %v25_v52 }
  0x29   :  { %140 = vmatprep.mubr.f32.mxu0 %v610_v3  ;;  %188 = vmatprep.mubr.f32.mxu1 %v610_v3 }
  0x2c   :  { %141 = vmatmul.mubr.f32.gmra.mrb[4].mxu0 %v18_v53  ;;  %189 = vmatmul.mubr.f32.gmra.mrb[4].mxu1 %v26_v54 }
  0x2d   :  { %146 = vmatprep.mubr.f32.mxu0 %v610_v3  ;;  %194 = vmatprep.mubr.f32.mxu1 %v610_v3 }
  0x30   :  { %147 = vmatmul.mubr.f32.gmra.mrb[6].mxu0 %v19_v55  ;;  %195 = vmatmul.mubr.f32.gmra.mrb[6].mxu1 %v27_v56 }
  0x31   :  { %152 = vmatprep.mubr.f32.mxu0 %v610_v3  ;;  %200 = vmatprep.mubr.f32.mxu1 %v610_v3 }
  0x34   :  { %153 = vmatmul.mubr.f32.gmra.mrb[8].mxu0 %v20_v57  ;;  %201 = vmatmul.mubr.f32.gmra.mrb[8].mxu1 %v28_v58 }
  0x35   :  { %158 = vmatprep.mubr.f32.mxu0 %v610_v3  ;;  %206 = vmatprep.mubr.f32.mxu1 %v610_v3 }
  0x38   :  { %159 = vmatmul.mubr.f32.gmra.mrb[10].mxu0 %v21_v59  ;;  %207 = vmatmul.mubr.f32.gmra.mrb[10].mxu1 %v29_v60 }
  0x39   :  { %164 = vmatprep.mubr.f32.mxu0 %v610_v3  ;;  %212 = vmatprep.mubr.f32.mxu1 %v610_v3 }
  0x3c   :  { %165 = vmatmul.mubr.f32.gmra.mrb[12].mxu0 %v22_v61  ;;  %213 = vmatmul.mubr.f32.gmra.mrb[12].mxu1 %v30_v62 }
  0x3d   :  { %170 = vmatprep.mubr.f32.mxu0 %v610_v3  ;;  %218 = vmatprep.mubr.f32.mxu1 %v610_v3 }
  0x40   :  { %171 = vmatmul.mubr.f32.gmra.mrb[14].mxu0 %v23_v63  ;;  %219 = vmatmul.mubr.f32.gmra.mrb[14].mxu1 %v31_v0 }
  0xf7   :  { %v130_v2 = vpop.f32.mrb[0].mxu0  ;;  %v178_v4 = vpop.f32.mrb[0].mxu1 }
  0xf8   :  { %v802_v5 = vadd.f32 %v799_v1, %v130_v2  ;;  %v805_v3 = vadd.f32 %v799_v1, %v178_v4  ;;  %v132_v6 = vpop.f32.mrb[1].mxu0  ;;  %v180_v7 = vpop.f32.mrb[1].mxu1 }
  0xf9   :  { %472 = vst [vmem:[%s1118_s4] sm:$0xff] %v132_v6  ;;  %480 = vst [vmem:[%s1118_s4 + $0x40] sm:$0xff] %v180_v7 }
  0xfa   :  { %v264_v8 = vmul.f32 1.442695, %v802_v5  ;;  %v280_v9 = vmul.f32 1.442695, %v805_v3  ;;  %vm248_vm0 = vcmp.gt.f32.partialorder %v802_v5, 20.0  ;;  %vm256_vm1 = vcmp.gt.f32.partialorder %v805_v3, 20.0 }
  0xfb   :  { %v136_v10 = vpop.f32.mrb[2].mxu0  ;;  %v184_v11 = vpop.f32.mrb[2].mxu1 }
  0xfc   :  { %546 = vpow2.f32 %v264_v8  ;;  %v816_v12 = vadd.f32 %v799_v1, %v136_v10  ;;  %v819_v13 = vadd.f32 %v799_v1, %v184_v11  ;;  %v138_v14 = vpop.f32.mrb[3].mxu0  ;;  %v186_v15 = vpop.f32.mrb[3].mxu1 }
  0xfd   :  { %548 = vpow2.f32 %v280_v9  ;;  %473 = vst [vmem:[%s1118_s4 + $0x8] sm:$0xff] %v138_v14  ;;  %481 = vst [vmem:[%s1118_s4 + $0x48] sm:$0xff] %v186_v15 }
  0xfe   :  { %v266_v16 = vmul.f32 1.442695, %v816_v12  ;;  %v282_v17 = vmul.f32 1.442695, %v819_v13  ;;  %vm249_vm5 = vcmp.gt.f32.partialorder %v816_v12, 20.0  ;;  %vm257_vm7 = vcmp.gt.f32.partialorder %v819_v13, 20.0 }
  0xff   :  { %v142_v18 = vpop.f32.mrb[4].mxu0  ;;  %v190_v19 = vpop.f32.mrb[4].mxu1 }
 0x100   :  { %550 = vpow2.f32 %v266_v16  ;;  %v830_v20 = vadd.f32 %v799_v1, %v142_v18  ;;  %v833_v21 = vadd.f32 %v799_v1, %v190_v19  ;;  %v144_v22 = vpop.f32.mrb[5].mxu0  ;;  %v192_v23 = vpop.f32.mrb[5].mxu1 }
 0x101   :  { %552 = vpow2.f32 %v282_v17  ;;  %474 = vst [vmem:[%s1118_s4 + $0x10] sm:$0xff] %v144_v22  ;;  %482 = vst [vmem:[%s1118_s4 + $0x50] sm:$0xff] %v192_v23 }
 0x102   :  { %v268_v24 = vmul.f32 1.442695, %v830_v20  ;;  %v284_v25 = vmul.f32 1.442695, %v833_v21  ;;  %vm250_vm9 = vcmp.gt.f32.partialorder %v830_v20, 20.0  ;;  %vm258_vm11 = vcmp.gt.f32.partialorder %v833_v21, 20.0 }
 0x103   :  { %v148_v26 = vpop.f32.mrb[6].mxu0  ;;  %v196_v27 = vpop.f32.mrb[6].mxu1 }
 0x104   :  { %554 = vpow2.f32 %v268_v24  ;;  %v844_v28 = vadd.f32 %v799_v1, %v148_v26  ;;  %v150_v29 = vpop.f32.mrb[7].mxu0  ;;  %v198_v30 = vpop.f32.mrb[7].mxu1  ;;  %v863_v42 = vadd.f32 %v799_v1, %v196_v27 }
 0x105   :  { %556 = vpow2.f32 %v284_v25  ;;  %475 = vst [vmem:[%s1118_s4 + $0x18] sm:$0xff] %v150_v29  ;;  %483 = vst [vmem:[%s1118_s4 + $0x58] sm:$0xff] %v198_v30 }
 0x106   :  { %v547_v31 = vpop.eup %546  ;;  %v270_v32 = vmul.f32 1.442695, %v844_v28  ;;  %v286_v59 = vmul.f32 1.442695, %v863_v42  ;;  %vm251_vm13 = vcmp.gt.f32.partialorder %v844_v28, 20.0  ;;  %vm259_vm14 = vcmp.gt.f32.partialorder %v863_v42, 20.0 }
 0x107   :  { %v853_v33 = vpop.eup %548  ;;  %v296_v34 = vadd.f32 1.0, %v547_v31  ;;  %v154_v35 = vpop.f32.mrb[8].mxu0  ;;  %v299_v40 = vmul.f32 -0.5, %v547_v31  ;;  %v302_v49 = vand.u32 2147483647, %v547_v31 }
 0x108   :  { %v202_v36 = vpop.f32.mrb[8].mxu1  ;;  %v368_v37 = vadd.f32 1.0, %v853_v33  ;;  %558 = vpow2.f32 %v270_v32  ;;  %v156_v38 = vpop.f32.mrb[9].mxu0  ;;  %v371_v44 = vmul.f32 -0.5, %v853_v33  ;;  %v374_v55 = vand.u32 2147483647, %v853_v33 }
 0x109   :  { %v204_v39 = vpop.f32.mrb[9].mxu1  ;;  %560 = vlog2.f32 %v296_v34  ;;  %476 = vst [vmem:[%s1118_s4 + $0x20] sm:$0xff] %v156_v38  ;;  %v300_v54 = vadd.f32 1.0, %v299_v40  ;;  %v880_v60 = vadd.f32 %v799_v1, %v154_v35  ;;  %v887_v2 = vadd.f32 %v799_v1, %v202_v36 }
 0x10a   :  { %484 = vst [vmem:[%s1118_s4 + $0x60] sm:$0xff] %v204_v39  ;;  %v551_v41 = vpop.eup %550  ;;  %562 = vlog2.f32 %v368_v37  ;;  %v372_v62 = vadd.f32 1.0, %v371_v44  ;;  %vm889_vm2 = vcmp.lt.f32.partialorder %v302_v49, 0.0004427343  ;;  %vm894_vm3 = vcmp.lt.f32.partialorder %v374_v55, 0.0004427343 }
 0x10b   :  { %v553_v43 = vpop.eup %552  ;;  %v305_v45 = vadd.f32 1.0, %v551_v41  ;;  %v308_v46 = vmul.f32 -0.5, %v551_v41  ;;  %v160_v47 = vpop.f32.mrb[10].mxu0  ;;  %v311_v56 = vand.u32 2147483647, %v551_v41  ;;  %v301_v14 = vmul.f32 %v547_v31, %v300_v54 }
 0x10c   :  { %v866_v48 = vpop.f32.mrb[10].mxu1  ;;  %v377_v50 = vadd.f32 1.0, %v553_v43  ;;  %v380_v51 = vmul.f32 -0.5, %v553_v43  ;;  %v162_v52 = vpop.f32.mrb[11].mxu0  ;;  %v383_v58 = vand.u32 2147483647, %v553_v43  ;;  %v373_v25 = vmul.f32 %v853_v33, %v372_v62 }
 0x10d   :  { %v210_v53 = vpop.f32.mrb[11].mxu1  ;;  %564 = vlog2.f32 %v305_v45  ;;  %477 = vst [vmem:[%s1118_s4 + $0x28] sm:$0xff] %v162_v52  ;;  %v309_v63 = vadd.f32 1.0, %v308_v46  ;;  %vm898_vm4 = vcmp.lt.f32.partialorder %v311_v56, 0.0004427343  ;;  %v925_v36 = vadd.f32 %v799_v1, %v160_v47 }
 0x10e   :  { %485 = vst [vmem:[%s1118_s4 + $0x68] sm:$0xff] %v210_v53  ;;  %v875_v57 = vpop.eup %554  ;;  %566 = vlog2.f32 %v377_v50  ;;  %v381_v8 = vadd.f32 1.0, %v380_v51  ;;  %vm911_vm6 = vcmp.lt.f32.partialorder %v383_v58, 0.0004427343  ;;  %v272_v23 = vmul.f32 1.442695, %v880_v60 }
 0x10f   :  { %v882_v61 = vpop.eup %556  ;;  %v314_v0 = vadd.f32 1.0, %v875_v57  ;;  %v166_v4 = vpop.f32.mrb[12].mxu0  ;;  %v317_v19 = vmul.f32 -0.5, %v875_v57  ;;  %v320_v22 = vand.u32 2147483647, %v875_v57  ;;  %v310_v26 = vmul.f32 %v551_v41, %v309_v63 }
 0x110   :  { %v214_v6 = vpop.f32.mrb[12].mxu1  ;;  %v386_v9 = vadd.f32 1.0, %v882_v61  ;;  %v168_v10 = vpop.f32.mrb[13].mxu0  ;;  %v288_v29 = vmul.f32 1.442695, %v887_v2  ;;  %v382_v35 = vmul.f32 %v553_v43, %v381_v8  ;;  %v389_v39 = vmul.f32 -0.5, %v882_v61 }
 0x111   :  { %v216_v11 = vpop.f32.mrb[13].mxu1  ;;  %568 = vlog2.f32 %v314_v0  ;;  %478 = vst [vmem:[%s1118_s4 + $0x30] sm:$0xff] %v168_v10  ;;  %v392_v40 = vand.u32 2147483647, %v882_v61  ;;  %v318_v43 = vadd.f32 1.0, %v317_v19  ;;  %v958_v55 = vadd.f32 %v799_v1, %v166_v4 }
 0x112   :  { %486 = vst [vmem:[%s1118_s4 + $0x70] sm:$0xff] %v216_v11  ;;  %v908_v17 = vpop.eup %558  ;;  %570 = vlog2.f32 %v386_v9  ;;  %v274_v44 = vmul.f32 1.442695, %v925_v36  ;;  %v390_v54 = vadd.f32 1.0, %v389_v39  ;;  %v961_v56 = vadd.f32 %v799_v1, %v214_v6 }
 0x113   :  { %v561_v24 = vpop.eup %560  ;;  %v323_v27 = vadd.f32 1.0, %v908_v17  ;;  %v172_v30 = vpop.f32.mrb[14].mxu0  ;;  %572 = vpow2.f32 %v286_v59  ;;  %v326_v49 = vmul.f32 -0.5, %v908_v17  ;;  %v319_v58 = vmul.f32 %v875_v57, %v318_v43 }
 0x114   :  { %v922_v31 = vpop.f32.mrb[14].mxu1  ;;  %v563_v32 = vpop.eup %562  ;;  %v298_v34 = vmul.f32 0.6931472, %v561_v24  ;;  %vm966_vm8 = vcmp.lt.f32.partialorder %v320_v22, 0.0004427343  ;;  %v391_v10 = vmul.f32 %v882_v61, %v390_v54  ;;  %vm252_vm15 = vcmp.gt.f32.partialorder %v880_v60, 20.0 }
 0x115   :  { %v174_v37 = vpop.f32.mrb[15].mxu0  ;;  %v222_v38 = vpop.f32.mrb[15].mxu1  ;;  %v370_v33 = vmul.f32 0.6931472, %v563_v32  ;;  %574 = vlog2.f32 %v323_v27  ;;  %v329_v4 = vand.u32 2147483647, %v908_v17 }
 0x116   :  { %479 = vst [vmem:[%s1118_s4 + $0x38] sm:$0xff] %v174_v37  ;;  %487 = vst [vmem:[%s1118_s4 + $0x78] sm:$0xff] %v222_v38  ;;  %v304_v41 = vsel %vm889_vm2, %v301_v14, %v298_v34  ;;  %576 = vpow2.f32 %v272_v23  ;;  %v276_v6 = vmul.f32 1.442695, %v958_v55  ;;  %v327_v9 = vadd.f32 1.0, %v326_v49 }
 0x117   :  { %v565_v45 = vpop.eup %564  ;;  %v440_v46 = vsel %vm248_vm0, %v802_v5, %v304_v41  ;;  %v376_v47 = vsel %vm894_vm3, %v373_v25, %v370_v33  ;;  %578 = vpow2.f32 %v288_v29  ;;  %v952_v5 = vadd.f32 %v799_v1, %v866_v48 }
 0x118   :  { %v567_v50 = vpop.eup %566  ;;  %456 = vst [vmem:[%s1119_s3] sm:$0xff] %v440_v46  ;;  %v448_v51 = vsel %vm256_vm1, %v805_v3, %v376_v47  ;;  %v307_v52 = vmul.f32 0.6931472, %v565_v45  ;;  %580 = vpow2.f32 %v274_v44  ;;  %v292_v11 = vmul.f32 1.442695, %v961_v56 }
 0x119   :  { %464 = vst [vmem:[%s1119_s3 + $0x40] sm:$0xff] %v448_v51  ;;  %v379_v53 = vmul.f32 0.6931472, %v567_v50  ;;  %v290_v59 = vmul.f32 1.442695, %v952_v5  ;;  %v328_v25 = vmul.f32 %v908_v17, %v327_v9  ;;  %v1018_v34 = vadd.f32 %v799_v1, %v922_v31 }
 0x11a   :  { %v313_v3 = vsel %vm898_vm4, %v310_v26, %v307_v52  ;;  %vm393_vm10 = vcmp.lt.f32.partialorder %v392_v40, 0.0004427343  ;;  %vm330_vm12 = vcmp.lt.f32.partialorder %v329_v4, 0.0004427343  ;;  %vm260_vm0 = vcmp.gt.f32.partialorder %v887_v2, 20.0 }
 0x11b   :  { %v569_v62 = vpop.eup %568  ;;  %v441_v63 = vsel %vm249_vm5, %v816_v12, %v313_v3  ;;  %v385_v0 = vsel %vm911_vm6, %v382_v35, %v379_v53  ;;  %582 = vpow2.f32 %v290_v59  ;;  %vm253_vm4 = vcmp.gt.f32.partialorder %v925_v36, 20.0 }
 0x11c   :  { %v571_v7 = vpop.eup %570  ;;  %457 = vst [vmem:[%s1119_s3 + $0x8] sm:$0xff] %v441_v63  ;;  %v449_v57 = vsel %vm257_vm7, %v819_v13, %v385_v0  ;;  %v316_v8 = vmul.f32 0.6931472, %v569_v62  ;;  %584 = vpow2.f32 %v276_v6  ;;  %v993_v13 = vadd.f32 %v799_v1, %v172_v30 }
 0x11d   :  { %465 = vst [vmem:[%s1119_s3 + $0x48] sm:$0xff] %v449_v57  ;;  %v388_v12 = vmul.f32 0.6931472, %v571_v7  ;;  %v573_v14 = vpop.eup %572  ;;  %586 = vpow2.f32 %v292_v11  ;;  %v294_v1 = vmul.f32 1.442695, %v1018_v34  ;;  %vm261_vm7 = vcmp.gt.f32.partialorder %v952_v5, 20.0 }
 0x11e   :  { %v322_v15 = vsel %vm966_vm8, %v319_v58, %v316_v8  ;;  %v395_v61 = vadd.f32 1.0, %v573_v14  ;;  %v278_v30 = vmul.f32 1.442695, %v993_v13  ;;  %v398_v32 = vmul.f32 -0.5, %v573_v14 }
 0x11f   :  { %v575_v16 = vpop.eup %574  ;;  %v442_v18 = vsel %vm250_vm9, %v830_v20, %v322_v15  ;;  %v394_v19 = vsel %vm393_vm10, %v391_v10, %v388_v12  ;;  %v401_v33 = vand.u32 2147483647, %v573_v14  ;;  %vm254_vm9 = vcmp.gt.f32.partialorder %v958_v55, 20.0 }
 0x120   :  { %v577_v22 = vpop.eup %576  ;;  %458 = vst [vmem:[%s1119_s3 + $0x10] sm:$0xff] %v442_v18  ;;  %v450_v23 = vsel %vm258_vm11, %v833_v21, %v394_v19  ;;  %v325_v24 = vmul.f32 0.6931472, %v575_v16  ;;  %588 = vlog2.f32 %v395_v61  ;;  %vm262_vm11 = vcmp.gt.f32.partialorder %v961_v56, 20.0 }
 0x121   :  { %v1002_v26 = vpop.eup %578  ;;  %466 = vst [vmem:[%s1119_s3 + $0x50] sm:$0xff] %v450_v23  ;;  %v332_v20 = vadd.f32 1.0, %v577_v22  ;;  %v335_v35 = vmul.f32 -0.5, %v577_v22  ;;  %v338_v44 = vand.u32 2147483647, %v577_v22 }
 0x122   :  { %v1007_v27 = vpop.eup %580  ;;  %v331_v29 = vsel %vm330_vm12, %v328_v25, %v325_v24  ;;  %v404_v21 = vadd.f32 1.0, %v1002_v26  ;;  %v407_v40 = vmul.f32 -0.5, %v1002_v26  ;;  %vm1035_vm1 = vcmp.lt.f32.partialorder %v401_v33, 0.0004427343 }
 0x123   :  { %v443_v17 = vsel %vm251_vm13, %v844_v28, %v331_v29  ;;  %590 = vlog2.f32 %v332_v20  ;;  %v341_v37 = vadd.f32 1.0, %v1007_v27  ;;  %v399_v28 = vadd.f32 1.0, %v398_v32 }
 0x124   :  { %459 = vst [vmem:[%s1119_s3 + $0x18] sm:$0xff] %v443_v17  ;;  %592 = vlog2.f32 %v404_v21  ;;  %v336_v31 = vadd.f32 1.0, %v335_v35  ;;  %v344_v46 = vmul.f32 -0.5, %v1007_v27  ;;  %v408_v51 = vadd.f32 1.0, %v407_v40 }
 0x125   :  { %v1021_v38 = vpop.eup %582  ;;  %594 = vpow2.f32 %v278_v30  ;;  %v400_v49 = vmul.f32 %v573_v14, %v399_v28  ;;  %v410_v54 = vand.u32 2147483647, %v1002_v26  ;;  %vm1042_vm2 = vcmp.lt.f32.partialorder %v338_v44, 0.0004427343 }
 0x126   :  { %v1023_v39 = vpop.eup %584  ;;  %596 = vlog2.f32 %v341_v37  ;;  %v413_v41 = vadd.f32 1.0, %v1021_v38  ;;  %v416_v3 = vmul.f32 -0.5, %v1021_v38  ;;  %v337_v48 = vmul.f32 %v577_v22, %v336_v31 }
 0x127   :  { %v350_v43 = vadd.f32 1.0, %v1023_v39  ;;  %v1030_v45 = vpop.eup %586  ;;  %v353_v62 = vmul.f32 -0.5, %v1023_v39  ;;  %v345_v6 = vadd.f32 1.0, %v344_v46  ;;  %v347_v7 = vand.u32 2147483647, %v1007_v27 }
 0x128   :  { %598 = vlog2.f32 %v413_v41  ;;  %v422_v52 = vadd.f32 1.0, %v1030_v45  ;;  %v409_v9 = vmul.f32 %v1002_v26, %v408_v51  ;;  %v419_v12 = vand.u32 2147483647, %v1021_v38 }
 0x129   :  { %600 = vlog2.f32 %v350_v43  ;;  %vm411_vm3 = vcmp.lt.f32.partialorder %v410_v54, 0.0004427343  ;;  %v417_v14 = vadd.f32 1.0, %v416_v3  ;;  %v425_v15 = vmul.f32 -0.5, %v1030_v45 }
 0x12a   :  { %v589_v47 = vpop.eup %588  ;;  %602 = vpow2.f32 %v294_v1  ;;  %v354_v19 = vadd.f32 1.0, %v353_v62  ;;  %v346_v24 = vmul.f32 %v1007_v27, %v345_v6  ;;  %v356_v25 = vand.u32 2147483647, %v1023_v39 }
 0x12b   :  { %v397_v53 = vmul.f32 0.6931472, %v589_v47  ;;  %604 = vlog2.f32 %v422_v52  ;;  %vm348_vm5 = vcmp.lt.f32.partialorder %v347_v7, 0.0004427343  ;;  %vm1076_vm6 = vcmp.lt.f32.partialorder %v419_v12, 0.0004427343 }
 0x12c   :  { %v418_v27 = vmul.f32 %v1021_v38, %v417_v14  ;;  %v426_v21 = vadd.f32 1.0, %v425_v15  ;;  %v355_v32 = vmul.f32 %v1023_v39, %v354_v19  ;;  %v428_v35 = vand.u32 2147483647, %v1030_v45 }
 0x12d   :  { %v591_v58 = vpop.eup %590  ;;  %v403_v0 = vsel %vm1035_vm1, %v400_v49, %v397_v53  ;;  %vm357_vm8 = vcmp.lt.f32.partialorder %v356_v25, 0.0004427343  ;;  %vm255_vm13 = vcmp.gt.f32.partialorder %v993_v13, 20.0 }
 0x12e   :  { %v593_v63 = vpop.eup %592  ;;  %v334_v4 = vmul.f32 0.6931472, %v591_v58  ;;  %v451_v57 = vsel %vm259_vm14, %v863_v42, %v403_v0  ;;  %v427_v1 = vmul.f32 %v1030_v45, %v426_v21  ;;  %vm429_vm10 = vcmp.lt.f32.partialorder %v428_v35, 0.0004427343 }
 0x12f   :  { %v406_v8 = vmul.f32 0.6931472, %v593_v63  ;;  %v595_v10 = vpop.eup %594  ;;  %467 = vst [vmem:[%s1119_s3 + $0x58] sm:$0xff] %v451_v57 }
 0x130   :  { %v340_v11 = vsel %vm1042_vm2, %v337_v48, %v334_v4  ;;  %v597_v16 = vpop.eup %596  ;;  %v359_v61 = vadd.f32 1.0, %v595_v10  ;;  %v362_v38 = vmul.f32 -0.5, %v595_v10  ;;  %v365_v46 = vand.u32 2147483647, %v595_v10 }
 0x131   :  { %v444_v42 = vsel %vm252_vm15, %v880_v60, %v340_v11  ;;  %v412_v18 = vsel %vm411_vm3, %v409_v9, %v406_v8  ;;  %v343_v23 = vmul.f32 0.6931472, %v597_v16  ;;  %vm263_vm15 = vcmp.gt.f32.partialorder %v1018_v34, 20.0 }
 0x132   :  { %460 = vst [vmem:[%s1119_s3 + $0x20] sm:$0xff] %v444_v42  ;;  %v452_v22 = vsel %vm260_vm0, %v887_v2, %v412_v18  ;;  %v599_v26 = vpop.eup %598  ;;  %606 = vlog2.f32 %v359_v61  ;;  %v363_v31 = vadd.f32 1.0, %v362_v38  ;;  %vm366_vm12 = vcmp.lt.f32.partialorder %v365_v46, 0.0004427343 }
 0x133   :  { %468 = vst [vmem:[%s1119_s3 + $0x60] sm:$0xff] %v452_v22  ;;  %v601_v20 = vpop.eup %600  ;;  %v349_v2 = vsel %vm348_vm5, %v346_v24, %v343_v23  ;;  %v415_v29 = vmul.f32 0.6931472, %v599_v26 }
 0x134   :  { %v445_v30 = vsel %vm253_vm4, %v925_v36, %v349_v2  ;;  %v352_v17 = vmul.f32 0.6931472, %v601_v20  ;;  %v603_v37 = vpop.eup %602  ;;  %v364_v49 = vmul.f32 %v595_v10, %v363_v31 }
 0x135   :  { %461 = vst [vmem:[%s1119_s3 + $0x28] sm:$0xff] %v445_v30  ;;  %v421_v33 = vsel %vm1076_vm6, %v418_v27, %v415_v29  ;;  %v605_v28 = vpop.eup %604  ;;  %v431_v40 = vadd.f32 1.0, %v603_v37  ;;  %v437_v53 = vand.u32 2147483647, %v603_v37 }
 0x136   :  { %v453_v36 = vsel %vm261_vm7, %v952_v5, %v421_v33  ;;  %v358_v39 = vsel %vm357_vm8, %v355_v32, %v352_v17  ;;  %v424_v43 = vmul.f32 0.6931472, %v605_v28 }
 0x137   :  { %469 = vst [vmem:[%s1119_s3 + $0x68] sm:$0xff] %v453_v36  ;;  %v446_v41 = vsel %vm254_vm9, %v958_v55, %v358_v39  ;;  %608 = vlog2.f32 %v431_v40  ;;  %v434_v55 = vmul.f32 -0.5, %v603_v37  ;;  %vm438_vm14 = vcmp.lt.f32.partialorder %v437_v53, 0.0004427343 }
 0x138   :  { %462 = vst [vmem:[%s1119_s3 + $0x30] sm:$0xff] %v446_v41  ;;  %v430_v5 = vsel %vm429_vm10, %v427_v1, %v424_v43 }
 0x139   :  { %v454_v44 = vsel %vm262_vm11, %v961_v56, %v430_v5  ;;  %v435_v51 = vadd.f32 1.0, %v434_v55 }
 0x13a   :  { %470 = vst [vmem:[%s1119_s3 + $0x70] sm:$0xff] %v454_v44 }
 0x13b   :  { %v436_v3 = vmul.f32 %v603_v37, %v435_v51 }
 0x13c   :  { %v607_v47 = vpop.eup %606 }
 0x13d   :  { %v361_v45 = vmul.f32 0.6931472, %v607_v47 }
 0x13f   :  { %v367_v50 = vsel %vm366_vm12, %v364_v49, %v361_v45 }
 0x140   :  { %v447_v52 = vsel %vm255_vm13, %v993_v13, %v367_v50 }
 0x141   :  { %463 = vst [vmem:[%s1119_s3 + $0x38] sm:$0xff] %v447_v52  ;;  %v609_v56 = vpop.eup %608 }
 0x142   :  { %v433_v54 = vmul.f32 0.6931472, %v609_v56 }
 0x144   :  { %v439_v58 = vsel %vm438_vm14, %v436_v3, %v433_v54 }
 0x145   :  { %v455_v48 = vsel %vm263_vm15, %v1018_v34, %v439_v58 }
 0x146   :  { %471 = vst [vmem:[%s1119_s3 + $0x78] sm:$0xff] %v455_v48 }

// kernel: dmf_forward.7
= control target key start
LH: loop header
LB: loop body
LE: loop exit
PB: predicated region body
PF: predicated region fallthrough
CT: control target
= control target key end

     0   :  { %vm30_vm0 = vcmask 261120   ;;  %s666_s0 = inlined_call_operand.vmem [shape: f32[128,32], index: 0, kind: input, shape index: {}]   ;;  %s667_s1 = inlined_call_operand.vmem [shape: f32[1,32], index: 1, kind: input, shape index: {}]   ;;  %s668_s2 = inlined_call_operand.vmem [shape: f32[1,32], index: 2, kind: input, shape index: {}]   ;;  %s669_s3 = inlined_call_operand.vmem [shape: f32[128,32], index: 3, kind: output, shape index: {}]  }
   0x1   :  { %v14_v0 = vld [vmem:[%s666_s0] sm:$0xff]  ;;  %v16_v1 = vld [vmem:[%s666_s0 + $0x10] sm:$0xff]  ;;  %v15_v2 = vld [vmem:[%s666_s0 + $0x8] sm:$0xff] }
   0x2   :  { %v31_v3 = vsel %vm30_vm0, %v14_v0, 0.0  ;;  %v37_v4 = vsel %vm30_vm0, %v16_v1, 0.0  ;;  %v17_v5 = vld [vmem:[%s666_s0 + $0x18] sm:$0xff]  ;;  %v34_v6 = vsel %vm30_vm0, %v15_v2, 0.0  ;;  %v18_v8 = vld [vmem:[%s666_s0 + $0x20] sm:$0xff]  ;;  %v19_v9 = vld [vmem:[%s666_s0 + $0x28] sm:$0xff] }
   0x3   :  { %32 = vadd.xlane.f32.xlu0 %v31_v3  ;;  %38 = vadd.xlane.f32.xlu1 %v37_v4  ;;  %v40_v7 = vsel %vm30_vm0, %v17_v5, 0.0  ;;  %v43_v10 = vsel %vm30_vm0, %v18_v8, 0.0  ;;  %v46_v11 = vsel %vm30_vm0, %v19_v9, 0.0  ;;  %v387_v12 = vld [vmem:[%s666_s0 + $0x30] sm:$0xff]  ;;  %v392_v13 = vld [vmem:[%s666_s0 + $0x38] sm:$0xff]  ;;  %v401_v16 = vld [vmem:[%s666_s0 + $0x40] sm:$0xff] }
   0x4   :  { %v49_v14 = vsel %vm30_vm0, %v387_v12, 0.0  ;;  %v52_v15 = vsel %vm30_vm0, %v392_v13, 0.0  ;;  %v406_v17 = vld [vmem:[%s666_s0 + $0x48] sm:$0xff]  ;;  %v55_v18 = vsel %vm30_vm0, %v401_v16, 0.0  ;;  %v415_v20 = vld [vmem:[%s666_s0 + $0x50] sm:$0xff]  ;;  %v420_v21 = vld [vmem:[%s666_s0 + $0x58] sm:$0xff] }
   0x5   :  { %v58_v19 = vsel %vm30_vm0, %v406_v17, 0.0  ;;  %v61_v22 = vsel %vm30_vm0, %v415_v20, 0.0  ;;  %v64_v23 = vsel %vm30_vm0, %v420_v21, 0.0  ;;  %v429_v24 = vld [vmem:[%s666_s0 + $0x60] sm:$0xff]  ;;  %v434_v25 = vld [vmem:[%s666_s0 + $0x68] sm:$0xff]  ;;  %v443_v28 = vld [vmem:[%s666_s0 + $0x70] sm:$0xff] }
   0x6   :  { %v67_v26 = vsel %vm30_vm0, %v429_v24, 0.0  ;;  %v70_v27 = vsel %vm30_vm0, %v434_v25, 0.0  ;;  %v448_v29 = vld [vmem:[%s666_s0 + $0x78] sm:$0xff]  ;;  %v73_v30 = vsel %vm30_vm0, %v443_v28, 0.0 }
   0x7   :  { %35 = vadd.xlane.f32.xlu0 %v34_v6  ;;  %41 = vadd.xlane.f32.xlu1 %v40_v7  ;;  %v76_v31 = vsel %vm30_vm0, %v448_v29, 0.0 }
   0xb   :  { %44 = vadd.xlane.f32.xlu0 %v43_v10  ;;  %47 = vadd.xlane.f32.xlu1 %v46_v11 }
   0xf   :  { %50 = vadd.xlane.f32.xlu0 %v49_v14  ;;  %53 = vadd.xlane.f32.xlu1 %v52_v15 }
  0x13   :  { %56 = vadd.xlane.f32.xlu0 %v55_v18  ;;  %59 = vadd.xlane.f32.xlu1 %v58_v19 }
  0x17   :  { %62 = vadd.xlane.f32.xlu0 %v61_v22  ;;  %65 = vadd.xlane.f32.xlu1 %v64_v23 }
  0x1b   :  { %68 = vadd.xlane.f32.xlu0 %v67_v26  ;;  %71 = vadd.xlane.f32.xlu1 %v70_v27 }
  0x1f   :  { %74 = vadd.xlane.f32.xlu0 %v73_v30  ;;  %77 = vadd.xlane.f32.xlu1 %v76_v31 }
  0x90   :  { %v33_v32 = vpop.xlane.xlu0 %32  ;;  %v39_v33 = vpop.xlane.xlu1 %38 }
  0x91   :  { %v80_v34 = vmul.f32 0.03125, %v33_v32  ;;  %v82_v35 = vmul.f32 0.03125, %v39_v33 }
  0x93   :  { %v454_v36 = vsub.f32 %v14_v0, %v80_v34  ;;  %v456_v37 = vsub.f32 %v16_v1, %v82_v35 }
  0x94   :  { %v36_v38 = vpop.xlane.xlu0 %35  ;;  %v42_v39 = vpop.xlane.xlu1 %41 }
  0x95   :  { %v81_v40 = vmul.f32 0.03125, %v36_v38  ;;  %v83_v41 = vmul.f32 0.03125, %v42_v39  ;;  %v112_v42 = vmul.f32 %v454_v36, %v454_v36  ;;  %v114_v43 = vmul.f32 %v456_v37, %v456_v37 }
  0x97   :  { %v462_v44 = vsub.f32 %v15_v2, %v81_v40  ;;  %v464_v45 = vsub.f32 %v17_v5, %v83_v41  ;;  %v128_v46 = vsel %vm30_vm0, %v112_v42, 0.0  ;;  %v134_v49 = vsel %vm30_vm0, %v114_v43, 0.0 }
  0x98   :  { %129 = vadd.xlane.f32.xlu0 %v128_v46  ;;  %v45_v47 = vpop.xlane.xlu0 %44  ;;  %v48_v48 = vpop.xlane.xlu1 %47 }
  0x99   :  { %v84_v50 = vmul.f32 0.03125, %v45_v47  ;;  %v85_v51 = vmul.f32 0.03125, %v48_v48  ;;  %v113_v52 = vmul.f32 %v462_v44, %v462_v44  ;;  %v115_v53 = vmul.f32 %v464_v45, %v464_v45 }
  0x9b   :  { %v472_v54 = vsub.f32 %v18_v8, %v84_v50  ;;  %v474_v55 = vsub.f32 %v19_v9, %v85_v51  ;;  %v131_v56 = vsel %vm30_vm0, %v113_v52, 0.0  ;;  %v137_v59 = vsel %vm30_vm0, %v115_v53, 0.0 }
  0x9c   :  { %135 = vadd.xlane.f32.xlu0 %v134_v49  ;;  %132 = vadd.xlane.f32.xlu1 %v131_v56  ;;  %v51_v57 = vpop.xlane.xlu0 %50  ;;  %v54_v58 = vpop.xlane.xlu1 %53 }
  0x9d   :  { %v86_v60 = vmul.f32 0.03125, %v51_v57  ;;  %v87_v61 = vmul.f32 0.03125, %v54_v58  ;;  %v116_v62 = vmul.f32 %v472_v54, %v472_v54  ;;  %v117_v63 = vmul.f32 %v474_v55, %v474_v55 }
  0x9f   :  { %v483_v0 = vsub.f32 %v387_v12, %v86_v60  ;;  %v486_v1 = vsub.f32 %v392_v13, %v87_v61  ;;  %v140_v2 = vsel %vm30_vm0, %v116_v62, 0.0  ;;  %v143_v5 = vsel %vm30_vm0, %v117_v63, 0.0 }
  0xa0   :  { %138 = vadd.xlane.f32.xlu1 %v137_v59  ;;  %141 = vadd.xlane.f32.xlu0 %v140_v2  ;;  %v57_v3 = vpop.xlane.xlu0 %56  ;;  %v60_v4 = vpop.xlane.xlu1 %59 }
  0xa1   :  { %v88_v6 = vmul.f32 0.03125, %v57_v3  ;;  %v89_v7 = vmul.f32 0.03125, %v60_v4  ;;  %v118_v8 = vmul.f32 %v483_v0, %v483_v0  ;;  %v119_v9 = vmul.f32 %v486_v1, %v486_v1 }
  0xa3   :  { %v495_v10 = vsub.f32 %v401_v16, %v88_v6  ;;  %v498_v11 = vsub.f32 %v406_v17, %v89_v7  ;;  %v146_v12 = vsel %vm30_vm0, %v118_v8, 0.0  ;;  %v149_v15 = vsel %vm30_vm0, %v119_v9, 0.0 }
  0xa4   :  { %144 = vadd.xlane.f32.xlu1 %v143_v5  ;;  %147 = vadd.xlane.f32.xlu0 %v146_v12  ;;  %v63_v13 = vpop.xlane.xlu0 %62  ;;  %v66_v14 = vpop.xlane.xlu1 %65 }
  0xa5   :  { %v90_v18 = vmul.f32 0.03125, %v63_v13  ;;  %v91_v19 = vmul.f32 0.03125, %v66_v14  ;;  %v120_v22 = vmul.f32 %v495_v10, %v495_v10  ;;  %v121_v16 = vmul.f32 %v498_v11, %v498_v11  ;;  %v547_v14 = vld [vmem:[%s667_s1] ss:$0 sm:$0xff] }
  0xa7   :  { %v507_v23 = vsub.f32 %v415_v20, %v90_v18  ;;  %v510_v17 = vsub.f32 %v420_v21, %v91_v19  ;;  %v152_v26 = vsel %vm30_vm0, %v120_v22, 0.0  ;;  %v155_v31 = vsel %vm30_vm0, %v121_v16, 0.0 }
  0xa8   :  { %150 = vadd.xlane.f32.xlu1 %v149_v15  ;;  %153 = vadd.xlane.f32.xlu0 %v152_v26  ;;  %v69_v27 = vpop.xlane.xlu0 %68  ;;  %v72_v30 = vpop.xlane.xlu1 %71  ;;  %v553_v26 = vld [vmem:[%s668_s2] ss:$0 sm:$0xff] }
  0xa9   :  { %v92_v32 = vmul.f32 0.03125, %v69_v27  ;;  %v93_v33 = vmul.f32 0.03125, %v72_v30  ;;  %v122_v34 = vmul.f32 %v507_v23, %v507_v23  ;;  %v123_v20 = vmul.f32 %v510_v17, %v510_v17 }
  0xab   :  { %v519_v35 = vsub.f32 %v429_v24, %v92_v32  ;;  %v522_v21 = vsub.f32 %v434_v25, %v93_v33  ;;  %v158_v38 = vsel %vm30_vm0, %v122_v34, 0.0  ;;  %v161_v41 = vsel %vm30_vm0, %v123_v20, 0.0 }
  0xac   :  { %156 = vadd.xlane.f32.xlu1 %v155_v31  ;;  %159 = vadd.xlane.f32.xlu0 %v158_v38  ;;  %v75_v39 = vpop.xlane.xlu0 %74  ;;  %v78_v40 = vpop.xlane.xlu1 %77 }
  0xad   :  { %v94_v42 = vmul.f32 0.03125, %v75_v39  ;;  %v95_v43 = vmul.f32 0.03125, %v78_v40  ;;  %v124_v46 = vmul.f32 %v519_v35, %v519_v35  ;;  %v125_v24 = vmul.f32 %v522_v21, %v522_v21 }
  0xaf   :  { %v531_v47 = vsub.f32 %v443_v28, %v94_v42  ;;  %v534_v25 = vsub.f32 %v448_v29, %v95_v43  ;;  %v164_v48 = vsel %vm30_vm0, %v124_v46, 0.0  ;;  %v167_v49 = vsel %vm30_vm0, %v125_v24, 0.0 }
  0xb0   :  { %162 = vadd.xlane.f32.xlu1 %v161_v41  ;;  %165 = vadd.xlane.f32.xlu0 %v164_v48 }
  0xb1   :  { %v126_v50 = vmul.f32 %v531_v47, %v531_v47  ;;  %v127_v51 = vmul.f32 %v534_v25, %v534_v25 }
  0xb3   :  { %v170_v52 = vsel %vm30_vm0, %v126_v50, 0.0  ;;  %v173_v28 = vsel %vm30_vm0, %v127_v51, 0.0 }
  0xb4   :  { %168 = vadd.xlane.f32.xlu1 %v167_v49  ;;  %171 = vadd.xlane.f32.xlu0 %v170_v52 }
  0xb8   :  { %174 = vadd.xlane.f32.xlu1 %v173_v28 }
 0x125   :  { %v130_v29 = vpop.xlane.xlu0 %129 }
 0x126   :  { %v176_v53 = vmul.f32 0.03125, %v130_v29 }
 0x128   :  { %v192_v56 = vadd.f32 1e-05, %v176_v53 }
 0x129   :  { %v133_v57 = vpop.xlane.xlu1 %132  ;;  %v136_v58 = vpop.xlane.xlu0 %135 }
 0x12a   :  { %308 = vrsqrt.f32 %v192_v56  ;;  %v177_v59 = vmul.f32 0.03125, %v133_v57  ;;  %v178_v60 = vmul.f32 0.03125, %v136_v58 }
 0x12c   :  { %v193_v61 = vadd.f32 1e-05, %v177_v59  ;;  %v194_v62 = vadd.f32 1e-05, %v178_v60 }
 0x12d   :  { %v139_v63 = vpop.xlane.xlu1 %138  ;;  %v142_v2 = vpop.xlane.xlu0 %141 }
 0x12e   :  { %310 = vrsqrt.f32 %v193_v61  ;;  %v179_v3 = vmul.f32 0.03125, %v139_v63  ;;  %v180_v4 = vmul.f32 0.03125, %v142_v2 }
 0x12f   :  { %312 = vrsqrt.f32 %v194_v62 }
 0x130   :  { %v195_v5 = vadd.f32 1e-05, %v179_v3  ;;  %v196_v6 = vadd.f32 1e-05, %v180_v4 }
 0x131   :  { %v145_v7 = vpop.xlane.xlu1 %144  ;;  %v148_v8 = vpop.xlane.xlu0 %147 }
 0x132   :  { %314 = vrsqrt.f32 %v195_v5  ;;  %v181_v9 = vmul.f32 0.03125, %v145_v7  ;;  %v182_v12 = vmul.f32 0.03125, %v148_v8 }
 0x133   :  { %316 = vrsqrt.f32 %v196_v6 }
 0x134   :  { %v309_v13 = vpop.eup %308  ;;  %v197_v15 = vadd.f32 1e-05, %v181_v9  ;;  %v198_v18 = vadd.f32 1e-05, %v182_v12 }
 0x135   :  { %v224_v19 = vmul.f32 %v309_v13, %v454_v36  ;;  %v151_v22 = vpop.xlane.xlu1 %150  ;;  %v154_v16 = vpop.xlane.xlu0 %153 }
 0x136   :  { %318 = vrsqrt.f32 %v197_v15  ;;  %v183_v27 = vmul.f32 0.03125, %v151_v22  ;;  %v184_v30 = vmul.f32 0.03125, %v154_v16 }
 0x137   :  { %v247_v31 = vmul.f32 %v547_v14, %v224_v19  ;;  %320 = vrsqrt.f32 %v198_v18 }
 0x138   :  { %v311_v32 = vpop.eup %310  ;;  %v199_v33 = vadd.f32 1e-05, %v183_v27  ;;  %v200_v34 = vadd.f32 1e-05, %v184_v30 }
 0x139   :  { %v313_v20 = vpop.eup %312  ;;  %v270_v38 = vadd.f32 %v553_v26, %v247_v31  ;;  %v225_v36 = vmul.f32 %v311_v32, %v462_v44  ;;  %v157_v39 = vpop.xlane.xlu1 %156 }
 0x13a   :  { %v160_v40 = vpop.xlane.xlu0 %159  ;;  %v226_v41 = vmul.f32 %v313_v20, %v456_v37  ;;  %322 = vrsqrt.f32 %v199_v33  ;;  %v185_v42 = vmul.f32 0.03125, %v157_v39 }
 0x13b   :  { %v186_v43 = vmul.f32 0.03125, %v160_v40  ;;  %286 = vst.msk [vmem:[%s669_s3] sm:$0xff] %vm30_vm0, %v270_v38  ;;  %v248_v46 = vmul.f32 %v547_v14, %v225_v36  ;;  %324 = vrsqrt.f32 %v200_v34 }
 0x13c   :  { %v315_v24 = vpop.eup %314  ;;  %v249_v48 = vmul.f32 %v547_v14, %v226_v41  ;;  %v201_v49 = vadd.f32 1e-05, %v185_v42 }
 0x13d   :  { %v202_v44 = vadd.f32 1e-05, %v186_v43  ;;  %v317_v50 = vpop.eup %316  ;;  %v271_v51 = vadd.f32 %v553_v26, %v248_v46  ;;  %v227_v37 = vmul.f32 %v315_v24, %v464_v45  ;;  %v163_v52 = vpop.xlane.xlu1 %162 }
 0x13e   :  { %v166_v28 = vpop.xlane.xlu0 %165  ;;  %v272_v29 = vadd.f32 %v553_v26, %v249_v48  ;;  %v228_v53 = vmul.f32 %v317_v50, %v472_v54  ;;  %326 = vrsqrt.f32 %v201_v49  ;;  %v187_v56 = vmul.f32 0.03125, %v163_v52 }
 0x13f   :  { %287 = vst.msk [vmem:[%s669_s3 + $0x8] sm:$0xff] %vm30_vm0, %v271_v51  ;;  %v250_v57 = vmul.f32 %v547_v14, %v227_v37  ;;  %328 = vrsqrt.f32 %v202_v44  ;;  %v188_v58 = vmul.f32 0.03125, %v166_v28 }
 0x140   :  { %v319_v59 = vpop.eup %318  ;;  %288 = vst.msk [vmem:[%s669_s3 + $0x10] sm:$0xff] %vm30_vm0, %v272_v29  ;;  %v251_v45 = vmul.f32 %v547_v14, %v228_v53  ;;  %v203_v54 = vadd.f32 1e-05, %v187_v56 }
 0x141   :  { %v321_v60 = vpop.eup %320  ;;  %v273_v61 = vadd.f32 %v553_v26, %v250_v57  ;;  %v229_v62 = vmul.f32 %v319_v59, %v474_v55  ;;  %v204_v63 = vadd.f32 1e-05, %v188_v58  ;;  %v169_v2 = vpop.xlane.xlu1 %168 }
 0x142   :  { %v172_v3 = vpop.xlane.xlu0 %171  ;;  %v274_v4 = vadd.f32 %v553_v26, %v251_v45  ;;  %v230_v5 = vmul.f32 %v321_v60, %v483_v0  ;;  %330 = vrsqrt.f32 %v203_v54  ;;  %v189_v6 = vmul.f32 0.03125, %v169_v2 }
 0x143   :  { %289 = vst.msk [vmem:[%s669_s3 + $0x18] sm:$0xff] %vm30_vm0, %v273_v61  ;;  %v252_v7 = vmul.f32 %v547_v14, %v229_v62  ;;  %332 = vrsqrt.f32 %v204_v63  ;;  %v190_v8 = vmul.f32 0.03125, %v172_v3 }
 0x144   :  { %v323_v9 = vpop.eup %322  ;;  %290 = vst.msk [vmem:[%s669_s3 + $0x20] sm:$0xff] %vm30_vm0, %v274_v4  ;;  %v253_v55 = vmul.f32 %v547_v14, %v230_v5  ;;  %v205_v0 = vadd.f32 1e-05, %v189_v6 }
 0x145   :  { %v325_v12 = vpop.eup %324  ;;  %v275_v13 = vadd.f32 %v553_v26, %v252_v7  ;;  %v231_v15 = vmul.f32 %v323_v9, %v486_v1  ;;  %v206_v18 = vadd.f32 1e-05, %v190_v8  ;;  %v175_v19 = vpop.xlane.xlu1 %174 }
 0x146   :  { %v276_v22 = vadd.f32 %v553_v26, %v253_v55  ;;  %v232_v16 = vmul.f32 %v325_v12, %v495_v10  ;;  %334 = vrsqrt.f32 %v205_v0  ;;  %v191_v27 = vmul.f32 0.03125, %v175_v19 }
 0x147   :  { %291 = vst.msk [vmem:[%s669_s3 + $0x28] sm:$0xff] %vm30_vm0, %v275_v13  ;;  %v254_v30 = vmul.f32 %v547_v14, %v231_v15  ;;  %336 = vrsqrt.f32 %v206_v18 }
 0x148   :  { %v327_v31 = vpop.eup %326  ;;  %292 = vst.msk [vmem:[%s669_s3 + $0x30] sm:$0xff] %vm30_vm0, %v276_v22  ;;  %v255_v1 = vmul.f32 %v547_v14, %v232_v16  ;;  %v207_v32 = vadd.f32 1e-05, %v191_v27 }
 0x149   :  { %v329_v10 = vpop.eup %328  ;;  %v277_v33 = vadd.f32 %v553_v26, %v254_v30  ;;  %v233_v34 = vmul.f32 %v327_v31, %v498_v11 }
 0x14a   :  { %v278_v20 = vadd.f32 %v553_v26, %v255_v1  ;;  %v234_v38 = vmul.f32 %v329_v10, %v507_v23  ;;  %338 = vrsqrt.f32 %v207_v32 }
 0x14b   :  { %293 = vst.msk [vmem:[%s669_s3 + $0x38] sm:$0xff] %vm30_vm0, %v277_v33  ;;  %v256_v36 = vmul.f32 %v547_v14, %v233_v34 }
 0x14c   :  { %v331_v39 = vpop.eup %330  ;;  %294 = vst.msk [vmem:[%s669_s3 + $0x40] sm:$0xff] %vm30_vm0, %v278_v20  ;;  %v257_v11 = vmul.f32 %v547_v14, %v234_v38 }
 0x14d   :  { %v333_v40 = vpop.eup %332  ;;  %v279_v41 = vadd.f32 %v553_v26, %v256_v36  ;;  %v235_v23 = vmul.f32 %v331_v39, %v510_v17 }
 0x14e   :  { %v280_v42 = vadd.f32 %v553_v26, %v257_v11  ;;  %v236_v43 = vmul.f32 %v333_v40, %v519_v35 }
 0x14f   :  { %295 = vst.msk [vmem:[%s669_s3 + $0x48] sm:$0xff] %vm30_vm0, %v279_v41  ;;  %v258_v46 = vmul.f32 %v547_v14, %v235_v23 }
 0x150   :  { %v335_v24 = vpop.eup %334  ;;  %296 = vst.msk [vmem:[%s669_s3 + $0x50] sm:$0xff] %vm30_vm0, %v280_v42  ;;  %v259_v48 = vmul.f32 %v547_v14, %v236_v43 }
 0x151   :  { %v337_v17 = vpop.eup %336  ;;  %v281_v49 = vadd.f32 %v553_v26, %v258_v46  ;;  %v237_v35 = vmul.f32 %v335_v24, %v522_v21 }
 0x152   :  { %v282_v44 = vadd.f32 %v553_v26, %v259_v48  ;;  %v238_v50 = vmul.f32 %v337_v17, %v531_v47 }
 0x153   :  { %297 = vst.msk [vmem:[%s669_s3 + $0x58] sm:$0xff] %vm30_vm0, %v281_v49  ;;  %v260_v51 = vmul.f32 %v547_v14, %v237_v35 }
 0x154   :  { %v339_v37 = vpop.eup %338  ;;  %298 = vst.msk [vmem:[%s669_s3 + $0x60] sm:$0xff] %vm30_vm0, %v282_v44  ;;  %v261_v52 = vmul.f32 %v547_v14, %v238_v50 }
 0x155   :  { %v283_v21 = vadd.f32 %v553_v26, %v260_v51  ;;  %v239_v28 = vmul.f32 %v339_v37, %v534_v25 }
 0x156   :  { %v284_v47 = vadd.f32 %v553_v26, %v261_v52 }
 0x157   :  { %299 = vst.msk [vmem:[%s669_s3 + $0x68] sm:$0xff] %vm30_vm0, %v283_v21  ;;  %v262_v29 = vmul.f32 %v547_v14, %v239_v28 }
 0x158   :  { %300 = vst.msk [vmem:[%s669_s3 + $0x70] sm:$0xff] %vm30_vm0, %v284_v47 }
 0x159   :  { %v285_v53 = vadd.f32 %v553_v26, %v262_v29 }
 0x15b   :  { %301 = vst.msk [vmem:[%s669_s3 + $0x78] sm:$0xff] %vm30_vm0, %v285_v53 }

// kernel: dmf_forward.8
= control target key start
LH: loop header
LB: loop body
LE: loop exit
PB: predicated region body
PF: predicated region fallthrough
CT: control target
= control target key end

     0   :  { %s1349_s18 = smov 0   ;;  %s1830_s0 = inlined_call_operand.vmem [shape: f32[2,10,10,32], index: 0, kind: input, shape index: {}]   ;;  %s1831_s1 = inlined_call_operand.vmem [shape: f32[288,32], index: 1, kind: input, shape index: {}]   ;;  %s1832_s2 = inlined_call_operand.vmem [shape: f32[1,32], index: 2, kind: input, shape index: {}]   ;;  %s1833_s3 = inlined_call_operand.vmem [shape: f32[1,32], index: 3, kind: input, shape index: {}]   ;;  %s1834_s4 = inlined_call_operand.vmem [shape: f32[1,32], index: 4, kind: input, shape index: {}]   ;;  %s1835_s5 = inlined_call_operand.vmem [shape: f32[2,8,8,32], index: 5, kind: output, shape index: {}]  }
   0x1 LB: > { %s1066_s19 = sadd.s32 4294967295, %s1314_s18   ;;  %p1070_p0 = scmp.ge.s32.totalorder %s1314_s18, 1  ;;  %s1314_s18 = sphi %s1349_s18, %s15_s18  }
   0x2   : > { %p187_p1 = scmp.lt.s32.totalorder %s1314_s18, 3 }
   0x4   : > { %p188_p2 = pnand %p1070_p0, %p187_p1 }
   0x5   : > { %p215_p3 = scmp.lt.s32.totalorder (!%p188_p2), %s1066_s19, 1  ;;  %v607_v0 = vld [vmem:[%s1831_s1 + $0x80] sm:$0xff] (!%p188_p2)  ;;  %v608_v1 = vld [vmem:[%s1831_s1 + $0x88] sm:$0xff] (!%p188_p2)  ;;  %v609_v5 = vld [vmem:[%s1831_s1 + $0x90] sm:$0xff] (!%p188_p2)  ;;  %vm233_vm0 = vcmask (!%p188_p2), 261120   ;;  %s1316_s29 = smov (!%p188_p2), 64  }
   0x6   : > { %191 = sbr.rel (%p188_p2) target bundleno = 771 (0x303), region = 40  ;;  %v591_v2 = vld [vmem:[%s1831_s1] sm:$0xff] (!%p188_p2)  ;;  %v1224_v3 = vpack.c.bf16 (!%p188_p2), %v608_v1, %v607_v0  ;;  %v592_v4 = vld [vmem:[%s1831_s1 + $0x8] sm:$0xff] (!%p188_p2)  ;;  %v610_v6 = vld [vmem:[%s1831_s1 + $0x98] sm:$0xff] (!%p188_p2)  ;;  %s1317_s30 = smov (!%p188_p2), 32   ;;  %vm282_vm1 = vcmask (!%p188_p2), 523520  }
   0x7   : > { %v1226_v7 = vpack.c.bf16 (!%p188_p2), %v592_v4, %v591_v2  ;;  %v1228_v8 = vpack.c.bf16 (!%p188_p2), %v610_v6, %v609_v5  ;;  %v593_v9 = vld [vmem:[%s1831_s1 + $0x10] sm:$0xff] (!%p188_p2)  ;;  %v594_v10 = vld [vmem:[%s1831_s1 + $0x18] sm:$0xff] (!%p188_p2)  ;;  %v611_v11 = vld [vmem:[%s1831_s1 + $0xa0] sm:$0xff] (!%p188_p2)  ;;  %s1318_s23 = smov (!%p188_p2), 96   ;;  %vm331_vm2 = vcmask (!%p188_p2), 785920   ;;  %vm381_vm3 = vcmask (!%p188_p2), 1048320  }
   0x8   : > { %1225 = vmatprep.subr.bf16.mxu0 (!%p188_p2), %v1224_v3  ;;  %v612_v12 = vld [vmem:[%s1831_s1 + $0xa8] sm:$0xff] (!%p188_p2)  ;;  %1264 = vmatprep.subr.bf16.mxu1 (!%p188_p2), %v1224_v3  ;;  %v1230_v13 = vpack.c.bf16 (!%p188_p2), %v594_v10, %v593_v9  ;;  %v595_v14 = vld [vmem:[%s1831_s1 + $0x20] sm:$0xff] (!%p188_p2)  ;;  %v613_v17 = vld [vmem:[%s1831_s1 + $0xb0] sm:$0xff] (!%p188_p2) }
   0x9   : > { %1227 = vmatpush3.bf16.msra.mxu0 (!%p188_p2), %v1226_v7  ;;  %1272 = vmatpush3.bf16.msra.mxu1 (!%p188_p2), %v1226_v7  ;;  %v1232_v15 = vpack.c.bf16 (!%p188_p2), %v612_v12, %v611_v11  ;;  %v596_v16 = vld [vmem:[%s1831_s1 + $0x28] sm:$0xff] (!%p188_p2)  ;;  %v614_v18 = vld [vmem:[%s1831_s1 + $0xb8] sm:$0xff] (!%p188_p2)  ;;  %v597_v24 = vld [vmem:[%s1831_s1 + $0x30] sm:$0xff] (!%p188_p2) }
   0xa   : > { %1229 = vmatprep.subr.bf16.mxu0 (!%p188_p2), %v1228_v8  ;;  %1265 = vmatprep.subr.bf16.mxu1 (!%p188_p2), %v1228_v8  ;;  %v598_v25 = vld [vmem:[%s1831_s1 + $0x38] sm:$0xff] (!%p188_p2)  ;;  %v1234_v29 = vpack.c.bf16 (!%p188_p2), %v596_v16, %v595_v14  ;;  %v615_v30 = vld [vmem:[%s1831_s1 + $0xc0] sm:$0xff] (!%p188_p2)  ;;  %v1236_v33 = vpack.c.bf16 (!%p188_p2), %v614_v18, %v613_v17  ;;  %v616_v34 = vld [vmem:[%s1831_s1 + $0xc8] sm:$0xff] (!%p188_p2) }
   0xb   : > { %v599_v40 = vld [vmem:[%s1831_s1 + $0x40] sm:$0xff] (!%p188_p2)  ;;  %v1238_v44 = vpack.c.bf16 (!%p188_p2), %v598_v25, %v597_v24  ;;  %v1240_v46 = vpack.c.bf16 (!%p188_p2), %v616_v34, %v615_v30  ;;  %v600_v47 = vld [vmem:[%s1831_s1 + $0x48] sm:$0xff] (!%p188_p2)  ;;  %v617_v48 = vld [vmem:[%s1831_s1 + $0xd0] sm:$0xff] (!%p188_p2) }
   0xc   : > { %v1242_v55 = vpack.c.bf16 (!%p188_p2), %v600_v47, %v599_v40  ;;  %v618_v57 = vld [vmem:[%s1831_s1 + $0xd8] sm:$0xff] (!%p188_p2)  ;;  %v601_v59 = vld [vmem:[%s1831_s1 + $0x50] sm:$0xff] (!%p188_p2)  ;;  %v619_v61 = vld [vmem:[%s1831_s1 + $0xe0] sm:$0xff] (!%p188_p2) }
   0xd   : > { %s1837_s19 = smov (!%p215_p3, %s1066_s19), 1  ;;  %1231 = vmatpush3.bf16.msra.mxu0 %v1230_v13  ;;  %1273 = vmatpush3.bf16.msra.mxu1 %v1230_v13  ;;  %v1244_v58 = vpack.c.bf16 %v618_v57, %v617_v48  ;;  %v602_v60 = vld [vmem:[%s1831_s1 + $0x58] sm:$0xff]  ;;  %v620_v62 = vld [vmem:[%s1831_s1 + $0xe8] sm:$0xff]  ;;  %v603_v1 = vld [vmem:[%s1831_s1 + $0x60] sm:$0xff] }
   0xe   : > { %s1280_s15 = smul.u32 160, %s1837_s19  ;;  %1233 = vmatprep.subr.bf16.mxu0 %v1232_v15  ;;  %1266 = vmatprep.subr.bf16.mxu1 %v1232_v15  ;;  %v1246_v63 = vpack.c.bf16 %v602_v60, %v601_v59  ;;  %v1248_v0 = vpack.c.bf16 %v620_v62, %v619_v61  ;;  %v604_v2 = vld [vmem:[%s1831_s1 + $0x68] sm:$0xff]  ;;  %v621_v3 = vld [vmem:[%s1831_s1 + $0xf0] sm:$0xff]  ;;  %v622_v4 = vld [vmem:[%s1831_s1 + $0xf8] sm:$0xff]  ;;  %s1135_s12 = sshll.u32 %s1837_s19, 6 }
   0xf   : > { %v1250_v6 = vpack.c.bf16 %v604_v2, %v603_v1  ;;  %v1252_v7 = vpack.c.bf16 %v622_v4, %v621_v3  ;;  %v605_v8 = vld [vmem:[%s1831_s1 + $0x70] sm:$0xff]  ;;  %v606_v9 = vld [vmem:[%s1831_s1 + $0x78] sm:$0xff]  ;;  %v623_v12 = vld [vmem:[%s1831_s1 + $0x100] sm:$0xff]  ;;  %s1803_s17 = scalar_lea.vmem %s1835_s5, %s1135_s12 }
  0x10   : > { %s1396_s22 = scalar_lea.vmem %s1830_s0, %s1280_s15  ;;  %v1254_v10 = vpack.c.bf16 %v606_v9, %v605_v8  ;;  %v624_v13 = vld [vmem:[%s1831_s1 + $0x108] sm:$0xff] }
  0x11   : > { %v1408_v19 = vld [vmem:[%s1396_s22 + $0x20] sm:$0xff]  ;;  %v1411_v20 = vld [vmem:[%s1396_s22 + $0x12] sm:$0xff]  ;;  %1235 = vmatpush3.bf16.msra.mxu0 %v1234_v29  ;;  %1274 = vmatpush3.bf16.msra.mxu1 %v1234_v29  ;;  %v1626_v14 = vpack.c.bf16 %v624_v13, %v623_v12 }
  0x12   : > { %v291_v21 = vld [vmem:[%s1396_s22 + $0x2] sm:$0xff]  ;;  %471 = vrot.lane.b32.xlu1 %v1408_v19, %s1316_s29  ;;  %422 = vrot.lane.b32.xlu0 %v1411_v20, %s1317_s30  ;;  %v1074_v23 = vld [vmem:[%s1396_s22 + $0x10] sm:$0xff]  ;;  %236 = vst.msk [vmem:[#allocation2 + $0x30] sm:$0xff] %vm233_vm0, %v1408_v19 }
  0x13   : > { %v242_v22 = vld [vmem:[%s1396_s22 + $0x1] sm:$0xff]  ;;  %v1432_v27 = vld [vmem:[%s1396_s22 + $0x72] sm:$0xff]  ;;  %235 = vst.msk [vmem:[#allocation2 + $0x18] sm:$0xff] %vm233_vm0, %v1074_v23  ;;  %1237 = vmatprep.subr.bf16.mxu0 %v1236_v33  ;;  %1267 = vmatprep.subr.bf16.mxu1 %v1236_v33 }
  0x14   : > { %v1429_v26 = vld [vmem:[%s1396_s22 + $0x21] sm:$0xff]  ;;  %v1445_v32 = vld [vmem:[%s1396_s22 + $0x11] sm:$0xff]  ;;  %564 = vst.msk [vmem:[#allocation2 + $0x88] sm:$0xff] %vm233_vm0, %v1432_v27 }
  0x15   : > { %v1435_v28 = vld [vmem:[%s1396_s22 + $0x22] sm:$0xff]  ;;  %399 = vst.msk [vmem:[#allocation2 + $0x20] sm:$0xff] %vm233_vm0, %v1429_v26  ;;  %v1457_v35 = vld [vmem:[%s1396_s22 + $0x30] sm:$0xff]  ;;  %398 = vst.msk [vmem:[#allocation2 + $0x8] sm:$0xff] %vm233_vm0, %v1445_v32  ;;  %1239 = vmatpush3.bf16.msra.mxu0 %v1238_v44  ;;  %1275 = vmatpush3.bf16.msra.mxu1 %v1238_v44 }
  0x16   : > { %v1442_v31 = vld [vmem:[%s1396_s22 + $0x61] sm:$0xff]  ;;  %559 = vst.msk [vmem:[#allocation2 + $0x10] sm:$0xff] %vm233_vm0, %v1435_v28  ;;  %307 = vrot.lane.b32.xlu1 %v291_v21, %s1316_s29  ;;  %258 = vrot.lane.b32.xlu0 %v242_v22, %s1317_s30  ;;  %v1472_v38 = vld [vmem:[%s1396_s22 + $0x31] sm:$0xff]  ;;  %237 = vst.msk [vmem:[#allocation2 + $0x48] sm:$0xff] %vm233_vm0, %v1457_v35 }
  0x17   : > { %v1460_v36 = vld [vmem:[%s1396_s22 + $0x62] sm:$0xff]  ;;  %403 = vst.msk [vmem:[#allocation2 + $0x80] sm:$0xff] %vm233_vm0, %v1442_v31  ;;  %v1475_v39 = vld [vmem:[%s1396_s22 + $0x70] sm:$0xff]  ;;  %400 = vst.msk [vmem:[#allocation2 + $0x38] sm:$0xff] %vm233_vm0, %v1472_v38  ;;  %1241 = vmatprep.subr.bf16.mxu0 %v1240_v46  ;;  %1268 = vmatprep.subr.bf16.mxu1 %v1240_v46 }
  0x18   : > { %v1463_v37 = vld [vmem:[%s1396_s22 + $0x81] sm:$0xff]  ;;  %563 = vst.msk [vmem:[#allocation2 + $0x70] sm:$0xff] %vm233_vm0, %v1460_v36  ;;  %v1490_v42 = vld [vmem:[%s1396_s22 + $0x32] sm:$0xff]  ;;  %241 = vst.msk [vmem:[#allocation2 + $0xa8] sm:$0xff] %vm233_vm0, %v1475_v39 }
  0x19   : > { %405 = vst.msk [vmem:[#allocation2 + $0xb0] sm:$0xff] %vm233_vm0, %v1463_v37  ;;  %v1487_v41 = vld [vmem:[%s1396_s22 + $0x82] sm:$0xff]  ;;  %v1493_v43 = vld [vmem:[%s1396_s22 + $0x71] sm:$0xff]  ;;  %560 = vst.msk [vmem:[#allocation2 + $0x28] sm:$0xff] %vm233_vm0, %v1490_v42  ;;  %1243 = vmatpush3.bf16.msra.mxu0 %v1242_v55  ;;  %1276 = vmatpush3.bf16.msra.mxu1 %v1242_v55 }
  0x1a   : > { %v1500_v45 = vld [vmem:[%s1396_s22 + $0x40] sm:$0xff]  ;;  %404 = vst.msk [vmem:[#allocation2 + $0x98] sm:$0xff] %vm233_vm0, %v1493_v43  ;;  %565 = vst.msk [vmem:[#allocation2 + $0xa0] sm:$0xff] %vm233_vm0, %v1487_v41  ;;  %v1521_v51 = vld [vmem:[%s1396_s22 + $0x50] sm:$0xff]  ;;  %357 = vrot.lane.b32.xlu1 %v1074_v23, %s1318_s23  ;;  %519 = vrot.lane.b32.xlu0 %v1429_v26, %s1318_s23 }
  0x1b   : > { %v1515_v49 = vld [vmem:[%s1396_s22 + $0x41] sm:$0xff]  ;;  %238 = vst.msk [vmem:[#allocation2 + $0x60] sm:$0xff] %vm233_vm0, %v1500_v45  ;;  %v1529_v52 = vld [vmem:[%s1396_s22 + $0x51] sm:$0xff]  ;;  %239 = vst.msk [vmem:[#allocation2 + $0x78] sm:$0xff] %vm233_vm0, %v1521_v51  ;;  %1245 = vmatprep.subr.bf16.mxu0 %v1244_v58  ;;  %1269 = vmatprep.subr.bf16.mxu1 %v1244_v58 }
  0x1c   : > { %v1518_v50 = vld [vmem:[%s1396_s22 + $0x42] sm:$0xff]  ;;  %v1532_v53 = vld [vmem:[%s1396_s22 + $0x52] sm:$0xff]  ;;  %401 = vst.msk [vmem:[#allocation2 + $0x50] sm:$0xff] %vm233_vm0, %v1515_v49  ;;  %402 = vst.msk [vmem:[#allocation2 + $0x68] sm:$0xff] %vm233_vm0, %v1529_v52 }
  0x1d   : > { %561 = vst.msk [vmem:[#allocation2 + $0x40] sm:$0xff] %vm233_vm0, %v1518_v50  ;;  %v1541_v54 = vld [vmem:[%s1396_s22 + $0x60] sm:$0xff]  ;;  %562 = vst.msk [vmem:[#allocation2 + $0x58] sm:$0xff] %vm233_vm0, %v1532_v53  ;;  %1247 = vmatpush3.bf16.msra.mxu0 %v1246_v63  ;;  %1277 = vmatpush3.bf16.msra.mxu1 %v1246_v63  ;;  %v1105_v11 = vld [vmem:[%s1396_s22 + $0x90] sm:$0xff] }
  0x1e   : > { %v225_v56 = vld [vmem:[%s1396_s22] sm:$0xff]  ;;  %240 = vst.msk [vmem:[#allocation2 + $0x90] sm:$0xff] %vm233_vm0, %v1541_v54  ;;  %434 = vrot.lane.b32.xlu1 %v1432_v27, %s1317_s30  ;;  %424 = vrot.lane.b32.xlu0 %v1435_v28, %s1317_s30  ;;  %v1113_v15 = vld [vmem:[%s1396_s22 + $0x91] sm:$0xff]  ;;  %v584_v9 = vld [vmem:[#allocation2 + $0x88] sm:$0xff] }
  0x1f   : > { %234 = vst.msk [vmem:[#allocation2] sm:$0xff] %vm233_vm0, %v225_v56  ;;  %v1104_v5 = vld [vmem:[%s1396_s22 + $0x80] sm:$0xff]  ;;  %1249 = vmatprep.subr.bf16.mxu0 %v1248_v0  ;;  %1270 = vmatprep.subr.bf16.mxu1 %v1248_v0  ;;  %v1121_v16 = vld [vmem:[%s1396_s22 + $0x92] sm:$0xff] }
  0x20   : > { %566 = vst.msk [vmem:[#allocation2 + $0xb8] sm:$0xff] %vm233_vm0, %v1121_v16  ;;  %v569_v60 = vld [vmem:[#allocation2 + $0x10] sm:$0xff]  ;;  %v572_v1 = vld [vmem:[#allocation2 + $0x28] sm:$0xff] }
  0x21   : > { %1251 = vmatpush3.bf16.msra.mxu0 %v1250_v6  ;;  %1278 = vmatpush3.bf16.msra.mxu1 %v1250_v6  ;;  %v581_v6 = vld [vmem:[#allocation2 + $0x70] sm:$0xff] }
  0x22   : > { %270 = vrot.lane.b32.xlu1 %v1442_v31, %s1317_s30  ;;  %260 = vrot.lane.b32.xlu0 %v1445_v32, %s1317_s30 }
  0x23   : > { %1253 = vmatprep.subr.bf16.mxu0 %v1252_v7  ;;  %1271 = vmatprep.subr.bf16.mxu1 %v1252_v7 }
  0x24   : > { %v575_v2 = vld [vmem:[#allocation2 + $0x40] sm:$0xff] }
  0x25   : > { %1255 = vmatpush3.bf16.msra.mxu0 %v1254_v10  ;;  %1279 = vmatpush3.bf16.msra.mxu1 %v1254_v10  ;;  %v587_v10 = vld [vmem:[#allocation2 + $0xa0] sm:$0xff] }
  0x26   : > { %483 = vrot.lane.b32.xlu1 %v1104_v5, %s1316_s29  ;;  %473 = vrot.lane.b32.xlu0 %v1457_v35, %s1316_s29 }
  0x27   : > { %1257 = vmatprep.subr.bf16.mxu1 %v1626_v14 }
  0x2a   : > { %319 = vrot.lane.b32.xlu1 %v1460_v36, %s1316_s29  ;;  %309 = vrot.lane.b32.xlu0 %v1411_v20, %s1316_s29 }
  0x2e   : > { %531 = vrot.lane.b32.xlu1 %v1463_v37, %s1318_s23  ;;  %521 = vrot.lane.b32.xlu0 %v1472_v38, %s1318_s23  ;;  %v625_v37 = vld [vmem:[%s1831_s1 + $0x110] sm:$0xff] }
  0x32   : > { %369 = vrot.lane.b32.xlu1 %v1475_v39, %s1318_s23  ;;  %359 = vrot.lane.b32.xlu0 %v1408_v19, %s1318_s23 }
  0x36   : > { %436 = vrot.lane.b32.xlu1 %v1487_v41, %s1317_s30  ;;  %426 = vrot.lane.b32.xlu0 %v1490_v42, %s1317_s30 }
  0x3a   : > { %272 = vrot.lane.b32.xlu1 %v1493_v43, %s1317_s30  ;;  %262 = vrot.lane.b32.xlu0 %v1429_v26, %s1317_s30 }
  0x3e   : > { %485 = vrot.lane.b32.xlu1 %v1105_v11, %s1316_s29  ;;  %475 = vrot.lane.b32.xlu0 %v1500_v45, %s1316_s29 }
  0x42   : > { %321 = vrot.lane.b32.xlu1 %v1432_v27, %s1316_s29  ;;  %311 = vrot.lane.b32.xlu0 %v1435_v28, %s1316_s29 }
  0x46   : > { %533 = vrot.lane.b32.xlu1 %v1113_v15, %s1318_s23  ;;  %523 = vrot.lane.b32.xlu0 %v1515_v49, %s1318_s23  ;;  %v590_v15 = vld [vmem:[#allocation2 + $0xb8] sm:$0xff] }
  0x4a   : > { %371 = vrot.lane.b32.xlu1 %v1104_v5, %s1318_s23  ;;  %361 = vrot.lane.b32.xlu0 %v1457_v35, %s1318_s23  ;;  %v578_v5 = vld [vmem:[#allocation2 + $0x58] sm:$0xff] }
  0x4e   : > { %428 = vrot.lane.b32.xlu0 %v1518_v50, %s1317_s30  ;;  %264 = vrot.lane.b32.xlu1 %v1472_v38, %s1317_s30 }
  0x52   : > { %477 = vrot.lane.b32.xlu0 %v1521_v51, %s1316_s29  ;;  %313 = vrot.lane.b32.xlu1 %v1490_v42, %s1316_s29  ;;  %v626_v42 = vld [vmem:[%s1831_s1 + $0x118] sm:$0xff] }
  0x56   : > { %525 = vrot.lane.b32.xlu0 %v1529_v52, %s1318_s23  ;;  %363 = vrot.lane.b32.xlu1 %v1500_v45, %s1318_s23 }
  0x5a   : > { %430 = vrot.lane.b32.xlu0 %v1532_v53, %s1317_s30  ;;  %266 = vrot.lane.b32.xlu1 %v1515_v49, %s1317_s30 }
  0x5e   : > { %479 = vrot.lane.b32.xlu0 %v1541_v54, %s1316_s29  ;;  %315 = vrot.lane.b32.xlu1 %v1518_v50, %s1316_s29 }
  0x62   : > { %527 = vrot.lane.b32.xlu0 %v1442_v31, %s1318_s23  ;;  %365 = vrot.lane.b32.xlu1 %v1521_v51, %s1318_s23 }
  0x66   : > { %432 = vrot.lane.b32.xlu0 %v1460_v36, %s1317_s30  ;;  %268 = vrot.lane.b32.xlu1 %v1529_v52, %s1317_s30 }
  0x6a   : > { %481 = vrot.lane.b32.xlu0 %v1475_v39, %s1316_s29  ;;  %317 = vrot.lane.b32.xlu1 %v1532_v53, %s1316_s29 }
  0x6e   : > { %529 = vrot.lane.b32.xlu0 %v1493_v43, %s1318_s23  ;;  %367 = vrot.lane.b32.xlu1 %v1541_v54, %s1318_s23  ;;  %v1260_v43 = vpack.c.bf16 %v626_v42, %v625_v37 }
  0x84   : > { %v472_v17 = vpop.permute.xlu1 %471  ;;  %v423_v18 = vpop.permute.xlu0 %422 }
  0x85   : > { %446 = vst.msk [vmem:[#allocation2 + $0x8] sm:$0xff] %vm282_vm1, %v423_v18 }
  0x86   : > { %495 = vst.msk [vmem:[#allocation2 + $0x8] sm:$0xff] %vm331_vm2, %v472_v17 }
  0x88   : > { %v308_v19 = vpop.permute.xlu1 %307  ;;  %v259_v20 = vpop.permute.xlu0 %258 }
  0x89   : > { %283 = vst.msk [vmem:[#allocation2] sm:$0xff] %vm282_vm1, %v259_v20 }
  0x8a   : > { %332 = vst.msk [vmem:[#allocation2] sm:$0xff] %vm331_vm2, %v308_v19 }
  0x8c   : > { %v358_v21 = vpop.permute.xlu1 %357  ;;  %v520_v22 = vpop.permute.xlu0 %519 }
  0x8d   : > { %382 = vst.msk [vmem:[#allocation2] sm:$0xff] %vm381_vm3, %v358_v21  ;;  %543 = vst.msk [vmem:[#allocation2 + $0x8] sm:$0xff] %vm381_vm3, %v520_v22 }
  0x90   : > { %v435_v23 = vpop.permute.xlu1 %434  ;;  %v425_v24 = vpop.permute.xlu0 %424 }
  0x91   : > { %452 = vst.msk [vmem:[#allocation2 + $0x98] sm:$0xff] %vm282_vm1, %v435_v23  ;;  %447 = vst.msk [vmem:[#allocation2 + $0x20] sm:$0xff] %vm282_vm1, %v425_v24 }
  0x94   : > { %v271_v25 = vpop.permute.xlu1 %270  ;;  %v261_v26 = vpop.permute.xlu0 %260  ;;  %v568_v27 = vld [vmem:[#allocation2 + $0x8] sm:$0xff]  ;;  %v567_v28 = vld [vmem:[#allocation2] sm:$0xff] }
  0x95   : > { %289 = vst.msk [vmem:[#allocation2 + $0x90] sm:$0xff] %vm282_vm1, %v271_v25  ;;  %284 = vst.msk [vmem:[#allocation2 + $0x18] sm:$0xff] %vm282_vm1, %v261_v26  ;;  %722 = vmatprep.mubr.f32.mxu0 %v568_v27 }
  0x96   : > { %723 = vmatmul.mubr.f32.vlgmr.msra.gmra.mrb[0].mxu0 %v567_v28 }
  0x98   : > { %v484_v29 = vpop.permute.xlu1 %483  ;;  %v474_v30 = vpop.permute.xlu0 %473 }
  0x99   : > { %501 = vst.msk [vmem:[#allocation2 + $0x98] sm:$0xff] %vm331_vm2, %v484_v29  ;;  %496 = vst.msk [vmem:[#allocation2 + $0x20] sm:$0xff] %vm331_vm2, %v474_v30 }
  0x9c   : > { %v320_v31 = vpop.permute.xlu1 %319  ;;  %v310_v32 = vpop.permute.xlu0 %309 }
  0x9d   : > { %338 = vst.msk [vmem:[#allocation2 + $0x90] sm:$0xff] %vm331_vm2, %v320_v31  ;;  %333 = vst.msk [vmem:[#allocation2 + $0x18] sm:$0xff] %vm331_vm2, %v310_v32 }
  0xa0   : > { %v532_v33 = vpop.permute.xlu1 %531  ;;  %v522_v34 = vpop.permute.xlu0 %521 }
  0xa1   : > { %549 = vst.msk [vmem:[#allocation2 + $0x98] sm:$0xff] %vm381_vm3, %v532_v33  ;;  %544 = vst.msk [vmem:[#allocation2 + $0x20] sm:$0xff] %vm381_vm3, %v522_v34 }
  0xa4   : > { %v370_v35 = vpop.permute.xlu1 %369  ;;  %v360_v36 = vpop.permute.xlu0 %359 }
  0xa5   : > { %388 = vst.msk [vmem:[#allocation2 + $0x90] sm:$0xff] %vm381_vm3, %v370_v35  ;;  %383 = vst.msk [vmem:[#allocation2 + $0x18] sm:$0xff] %vm381_vm3, %v360_v36 }
  0xa8   : > { %v437_v38 = vpop.permute.xlu1 %436  ;;  %v427_v39 = vpop.permute.xlu0 %426  ;;  %v571_v40 = vld [vmem:[#allocation2 + $0x20] sm:$0xff]  ;;  %v586_v41 = vld [vmem:[#allocation2 + $0x98] sm:$0xff] }
  0xa9   : > { %453 = vst.msk [vmem:[#allocation2 + $0xb0] sm:$0xff] %vm282_vm1, %v437_v38  ;;  %448 = vst.msk [vmem:[#allocation2 + $0x38] sm:$0xff] %vm282_vm1, %v427_v39  ;;  %727 = vmatprep.mubr.f32.mxu0 %v571_v40  ;;  %752 = vmatprep.mubr.f32.mxu1 %v586_v41  ;;  %v1122_v41 = vld [vmem:[%s1832_s2] ss:$0 sm:$0xff] }
  0xac   : > { %v273_v44 = vpop.permute.xlu1 %272  ;;  %v263_v45 = vpop.permute.xlu0 %262  ;;  %v570_v46 = vld [vmem:[#allocation2 + $0x18] sm:$0xff]  ;;  %v585_v47 = vld [vmem:[#allocation2 + $0x90] sm:$0xff] }
  0xad   : > { %290 = vst.msk [vmem:[#allocation2 + $0xa8] sm:$0xff] %vm282_vm1, %v273_v44  ;;  %285 = vst.msk [vmem:[#allocation2 + $0x30] sm:$0xff] %vm282_vm1, %v263_v45  ;;  %728 = vmatmul.mubr.f32.gmra.mrb[2].mxu0 %v570_v46  ;;  %753 = vmatmul.mubr.f32.vlgmr.msra.gmra.mrb[0].mxu1 %v585_v47 }
  0xae   : > { %1259 = vmatpush3.bf16.msra.mxu1 %v1626_v14 }
  0xaf   : > { %1261 = vmatprep.subr.bf16.mxu1 %v1260_v43 }
  0xb0   : > { %v486_v48 = vpop.permute.xlu1 %485  ;;  %v476_v49 = vpop.permute.xlu0 %475 }
  0xb1   : > { %502 = vst.msk [vmem:[#allocation2 + $0xb0] sm:$0xff] %vm331_vm2, %v486_v48  ;;  %497 = vst.msk [vmem:[#allocation2 + $0x38] sm:$0xff] %vm331_vm2, %v476_v49 }
  0xb2   : > { %1263 = vmatpush3.bf16.msra.mxu1 %v1260_v43 }
  0xb4   : > { %v322_v50 = vpop.permute.xlu1 %321  ;;  %v312_v51 = vpop.permute.xlu0 %311 }
  0xb5   : > { %339 = vst.msk [vmem:[#allocation2 + $0xa8] sm:$0xff] %vm331_vm2, %v322_v50  ;;  %334 = vst.msk [vmem:[#allocation2 + $0x30] sm:$0xff] %vm331_vm2, %v312_v51 }
  0xb8   : > { %v534_v52 = vpop.permute.xlu1 %533  ;;  %v524_v53 = vpop.permute.xlu0 %523 }
  0xb9   : > { %550 = vst.msk [vmem:[#allocation2 + $0xb0] sm:$0xff] %vm381_vm3, %v534_v52  ;;  %545 = vst.msk [vmem:[#allocation2 + $0x38] sm:$0xff] %vm381_vm3, %v524_v53 }
  0xbc   : > { %v372_v54 = vpop.permute.xlu1 %371  ;;  %v362_v55 = vpop.permute.xlu0 %361 }
  0xbd   : > { %389 = vst.msk [vmem:[#allocation2 + $0xa8] sm:$0xff] %vm381_vm3, %v372_v54  ;;  %384 = vst.msk [vmem:[#allocation2 + $0x30] sm:$0xff] %vm381_vm3, %v362_v55 }
  0xc0   : > { %v429_v56 = vpop.permute.xlu0 %428  ;;  %v265_v57 = vpop.permute.xlu1 %264  ;;  %v574_v58 = vld [vmem:[#allocation2 + $0x38] sm:$0xff]  ;;  %v589_v59 = vld [vmem:[#allocation2 + $0xb0] sm:$0xff] }
  0xc1   : > { %449 = vst.msk [vmem:[#allocation2 + $0x50] sm:$0xff] %vm282_vm1, %v429_v56  ;;  %286 = vst.msk [vmem:[#allocation2 + $0x48] sm:$0xff] %vm282_vm1, %v265_v57  ;;  %732 = vmatprep.mubr.f32.mxu0 %v574_v58  ;;  %757 = vmatprep.mubr.f32.mxu1 %v589_v59 }
  0xc4   : > { %v478_v61 = vpop.permute.xlu0 %477  ;;  %v314_v62 = vpop.permute.xlu1 %313  ;;  %v573_v63 = vld [vmem:[#allocation2 + $0x30] sm:$0xff]  ;;  %v588_v0 = vld [vmem:[#allocation2 + $0xa8] sm:$0xff] }
  0xc5   : > { %498 = vst.msk [vmem:[#allocation2 + $0x50] sm:$0xff] %vm331_vm2, %v478_v61  ;;  %335 = vst.msk [vmem:[#allocation2 + $0x48] sm:$0xff] %vm331_vm2, %v314_v62  ;;  %733 = vmatmul.mubr.f32.gmra.mrb[4].mxu0 %v573_v63  ;;  %758 = vmatmul.mubr.f32.gmra.mrb[2].mxu1 %v588_v0 }
  0xc6   : > { %1212 = vmatprep.mubr.msk.f32.mxu1 %vm233_vm0, %v569_v60 }
  0xc8   : > { %v526_v3 = vpop.permute.xlu0 %525  ;;  %v364_v4 = vpop.permute.xlu1 %363 }
  0xc9   : > { %546 = vst.msk [vmem:[#allocation2 + $0x50] sm:$0xff] %vm381_vm3, %v526_v3  ;;  %385 = vst.msk [vmem:[#allocation2 + $0x48] sm:$0xff] %vm381_vm3, %v364_v4  ;;  %1213 = vmatmul.mubr.msk.f32.vlgmr.msra.gmra.mrb[4].mxu1 %vm233_vm0, %v572_v1 }
  0xca   : > { %1215 = vmatprep.mubr.msk.f32.mxu1 %vm233_vm0, %v575_v2 }
  0xcc   : > { %v431_v7 = vpop.permute.xlu0 %430  ;;  %v267_v8 = vpop.permute.xlu1 %266 }
  0xcd   : > { %450 = vst.msk [vmem:[#allocation2 + $0x68] sm:$0xff] %vm282_vm1, %v431_v7  ;;  %287 = vst.msk [vmem:[#allocation2 + $0x60] sm:$0xff] %vm282_vm1, %v267_v8  ;;  %1216 = vmatmul.mubr.msk.f32.gmra.mrb[6].mxu1 %vm233_vm0, %v578_v5 }
  0xce   : > { %1218 = vmatprep.mubr.msk.f32.mxu1 %vm233_vm0, %v581_v6 }
  0xd0   : > { %v480_v11 = vpop.permute.xlu0 %479  ;;  %v316_v12 = vpop.permute.xlu1 %315  ;;  %v577_v13 = vld [vmem:[#allocation2 + $0x50] sm:$0xff]  ;;  %v576_v14 = vld [vmem:[#allocation2 + $0x48] sm:$0xff] }
  0xd1   : > { %499 = vst.msk [vmem:[#allocation2 + $0x68] sm:$0xff] %vm331_vm2, %v480_v11  ;;  %336 = vst.msk [vmem:[#allocation2 + $0x60] sm:$0xff] %vm331_vm2, %v316_v12  ;;  %737 = vmatprep.mubr.f32.mxu0 %v577_v13  ;;  %1219 = vmatmul.mubr.msk.f32.gmra.mrb[8].mxu1 %vm233_vm0, %v584_v9 }
  0xd2   : > { %738 = vmatmul.mubr.f32.gmra.mrb[6].mxu0 %v576_v14  ;;  %1221 = vmatprep.mubr.msk.f32.mxu1 %vm233_vm0, %v587_v10 }
  0xd4   : > { %v528_v16 = vpop.permute.xlu0 %527  ;;  %v366_v17 = vpop.permute.xlu1 %365 }
  0xd5   : > { %547 = vst.msk [vmem:[#allocation2 + $0x68] sm:$0xff] %vm381_vm3, %v528_v16  ;;  %386 = vst.msk [vmem:[#allocation2 + $0x60] sm:$0xff] %vm381_vm3, %v366_v17  ;;  %1222 = vmatmul.mubr.msk.f32.gmra.mrb[10].mxu1 %vm233_vm0, %v590_v15 }
  0xd8   : > { %v433_v18 = vpop.permute.xlu0 %432  ;;  %v269_v19 = vpop.permute.xlu1 %268 }
  0xd9   : > { %451 = vst.msk [vmem:[#allocation2 + $0x80] sm:$0xff] %vm282_vm1, %v433_v18  ;;  %288 = vst.msk [vmem:[#allocation2 + $0x78] sm:$0xff] %vm282_vm1, %v269_v19 }
  0xdc   : > { %v482_v20 = vpop.permute.xlu0 %481  ;;  %v318_v21 = vpop.permute.xlu1 %317  ;;  %v580_v22 = vld [vmem:[#allocation2 + $0x68] sm:$0xff]  ;;  %v579_v23 = vld [vmem:[#allocation2 + $0x60] sm:$0xff] }
  0xdd   : > { %500 = vst.msk [vmem:[#allocation2 + $0x80] sm:$0xff] %vm331_vm2, %v482_v20  ;;  %337 = vst.msk [vmem:[#allocation2 + $0x78] sm:$0xff] %vm331_vm2, %v318_v21  ;;  %742 = vmatprep.mubr.f32.mxu0 %v580_v22 }
  0xde   : > { %743 = vmatmul.mubr.f32.gmra.mrb[8].mxu0 %v579_v23 }
  0xe0   : > { %v530_v24 = vpop.permute.xlu0 %529  ;;  %v368_v25 = vpop.permute.xlu1 %367 }
  0xe1   : > { %548 = vst.msk [vmem:[#allocation2 + $0x80] sm:$0xff] %vm381_vm3, %v530_v24  ;;  %387 = vst.msk [vmem:[#allocation2 + $0x78] sm:$0xff] %vm381_vm3, %v368_v25 }
  0xe8   : > { %v583_v26 = vld [vmem:[#allocation2 + $0x80] sm:$0xff]  ;;  %v582_v27 = vld [vmem:[#allocation2 + $0x78] sm:$0xff] }
  0xe9   : > { %747 = vmatprep.mubr.f32.mxu0 %v583_v26 }
  0xea   : > { %748 = vmatmul.mubr.f32.gmra.mrb[10].mxu0 %v582_v27 }
 0x169   : > { %v1168_v28 = vpop.f32.mrb[0].mxu0 }
 0x16a   : > { %v1169_v29 = vpop.f32.mrb[1].mxu0 }
 0x16b   : > { %v1170_v30 = vadd.f32 %v1169_v29, %v1168_v28 }
 0x16d   : > { %v725_v46 = vadd.f32 %v1170_v30, %v1122_v41 }
 0x180   : > { %v1171_v31 = vpop.f32.mrb[2].mxu0  ;;  %v1186_v32 = vpop.f32.mrb[0].mxu1 }
 0x181   : > { %v1172_v33 = vpop.f32.mrb[3].mxu0  ;;  %v1187_v34 = vpop.f32.mrb[1].mxu1 }
 0x182   : > { %v1173_v35 = vadd.f32 %v1172_v33, %v1171_v31  ;;  %v1188_v36 = vadd.f32 %v1187_v34, %v1186_v32 }
 0x184   : > { %v730_v44 = vadd.f32 %v1173_v35, %v1122_v41  ;;  %v755_v0 = vadd.f32 %v1188_v36, %v1122_v41 }
 0x198   : > { %v1174_v37 = vpop.f32.mrb[4].mxu0  ;;  %v1189_v38 = vpop.f32.mrb[2].mxu1 }
 0x199   : > { %v1175_v39 = vpop.f32.mrb[5].mxu0  ;;  %v1190_v40 = vpop.f32.mrb[3].mxu1 }
 0x19a   : > { %v1176_v42 = vadd.f32 %v1175_v39, %v1174_v37  ;;  %v1191_v43 = vadd.f32 %v1190_v40, %v1189_v38 }
 0x19c   : > { %v1214_v45 = vpop.f32.mrb[4].mxu1  ;;  %v735_v52 = vadd.f32 %v1176_v42, %v1122_v41  ;;  %v760_v62 = vadd.f32 %v1191_v43, %v1122_v41 }
 0x19d   : > { %v835_v47 = vadd.f32 %v1214_v45, %v730_v44  ;;  %v829_v48 = vpop.f32.mrb[5].mxu1 }
 0x19e   : > { %v830_v49 = vadd.f32 %v829_v48, %v725_v46 }
 0x19f   : > { %v871_v50 = vsel %vm233_vm0, %v835_v47, 0.0 }
 0x1a0   : > { %v1217_v51 = vpop.f32.mrb[6].mxu1  ;;  %872 = vadd.xlane.f32.xlu1 %v871_v50  ;;  %v868_v53 = vsel %vm233_vm0, %v830_v49, 0.0 }
 0x1a1   : > { %v839_v54 = vpop.f32.mrb[7].mxu1  ;;  %869 = vadd.xlane.f32.xlu0 %v868_v53 }
 0x1a2   : > { %v840_v55 = vadd.f32 %v839_v54, %v735_v52 }
 0x1a4   : > { %v874_v56 = vsel %vm233_vm0, %v840_v55, 0.0  ;;  %v1220_v57 = vpop.f32.mrb[8].mxu1 }
 0x1a5   : > { %v1177_v58 = vpop.f32.mrb[6].mxu0  ;;  %875 = vadd.xlane.f32.xlu0 %v874_v56  ;;  %v849_v59 = vpop.f32.mrb[9].mxu1 }
 0x1a6   : > { %v1178_v60 = vpop.f32.mrb[7].mxu0 }
 0x1a7   : > { %v1179_v61 = vadd.f32 %v1178_v60, %v1177_v58 }
 0x1a8   : > { %v1223_v63 = vpop.f32.mrb[10].mxu1 }
 0x1a9   : > { %v740_v1 = vadd.f32 %v1179_v61, %v1122_v41  ;;  %v1747_v2 = vadd.f32 %v1223_v63, %v760_v62  ;;  %v859_v3 = vpop.f32.mrb[11].mxu1 }
 0x1aa   : > { %v860_v4 = vadd.f32 %v859_v3, %v755_v0 }
 0x1ab   : > { %v845_v5 = vadd.f32 %v1217_v51, %v740_v1  ;;  %v889_v20 = vsel %vm233_vm0, %v1747_v2, 0.0 }
 0x1ac   : > { %v886_v14 = vsel %vm233_vm0, %v860_v4, 0.0 }
 0x1ad   : > { %v877_v6 = vsel %vm233_vm0, %v845_v5, 0.0 }
 0x1ae   : > { %878 = vadd.xlane.f32.xlu0 %v877_v6 }
 0x1b1   : > { %v1180_v7 = vpop.f32.mrb[8].mxu0 }
 0x1b2   : > { %v1181_v8 = vpop.f32.mrb[9].mxu0 }
 0x1b3   : > { %v1182_v9 = vadd.f32 %v1181_v8, %v1180_v7  ;;  %v1131_v8 = vld [vmem:[%s1833_s3] ss:$0 sm:$0xff] }
 0x1b5   : > { %v745_v10 = vadd.f32 %v1182_v9, %v1122_v41 }
 0x1b7   : > { %v850_v11 = vadd.f32 %v849_v59, %v745_v10 }
 0x1b9   : > { %v880_v12 = vsel %vm233_vm0, %v850_v11, 0.0 }
 0x1ba   : > { %881 = vadd.xlane.f32.xlu1 %v880_v12  ;;  %v1132_v12 = vld [vmem:[%s1834_s4] ss:$0 sm:$0xff] }
 0x1bd   : > { %v1183_v13 = vpop.f32.mrb[10].mxu0 }
 0x1be   : > { %v1184_v15 = vpop.f32.mrb[11].mxu0  ;;  %887 = vadd.xlane.f32.xlu1 %v886_v14 }
 0x1bf   : > { %v1185_v16 = vadd.f32 %v1184_v15, %v1183_v13 }
 0x1c1   : > { %v750_v17 = vadd.f32 %v1185_v16, %v1122_v41 }
 0x1c3   : > { %v855_v18 = vadd.f32 %v1220_v57, %v750_v17 }
 0x1c5   : > { %v883_v19 = vsel %vm233_vm0, %v855_v18, 0.0 }
 0x1c6   : > { %884 = vadd.xlane.f32.xlu0 %v883_v19 }
 0x1ca   : > { %890 = vadd.xlane.f32.xlu0 %v889_v20 }
 0x22d   : > { %v873_v21 = vpop.xlane.xlu1 %872 }
 0x22e   : > { %v894_v22 = vmul.f32 0.03125, %v873_v21  ;;  %v870_v23 = vpop.xlane.xlu0 %869 }
 0x22f   : > { %v893_v24 = vmul.f32 0.03125, %v870_v23 }
 0x230   : > { %v902_v25 = vsub.f32 %v835_v47, %v894_v22 }
 0x231   : > { %v1755_v26 = vsub.f32 %v830_v49, %v893_v24 }
 0x232   : > { %v876_v27 = vpop.xlane.xlu0 %875  ;;  %v910_v28 = vmul.f32 %v902_v25, %v902_v25 }
 0x233   : > { %v895_v29 = vmul.f32 0.03125, %v876_v27  ;;  %v909_v30 = vmul.f32 %v1755_v26, %v1755_v26 }
 0x234   : > { %v920_v31 = vsel %vm233_vm0, %v910_v28, 0.0 }
 0x235   : > { %v1760_v32 = vsub.f32 %v840_v55, %v895_v29  ;;  %921 = vadd.xlane.f32.xlu0 %v920_v31  ;;  %v917_v33 = vsel %vm233_vm0, %v909_v30, 0.0 }
 0x236   : > { %918 = vadd.xlane.f32.xlu1 %v917_v33 }
 0x237   : > { %v911_v34 = vmul.f32 %v1760_v32, %v1760_v32 }
 0x239   : > { %v923_v35 = vsel %vm233_vm0, %v911_v34, 0.0 }
 0x23a   : > { %924 = vadd.xlane.f32.xlu1 %v923_v35 }
 0x23b   : > { %v879_v36 = vpop.xlane.xlu0 %878 }
 0x23c   : > { %v896_v37 = vmul.f32 0.03125, %v879_v36 }
 0x23e   : > { %v1766_v38 = vsub.f32 %v845_v5, %v896_v37 }
 0x240   : > { %v912_v39 = vmul.f32 %v1766_v38, %v1766_v38 }
 0x242   : > { %v926_v40 = vsel %vm233_vm0, %v912_v39, 0.0 }
 0x243   : > { %927 = vadd.xlane.f32.xlu0 %v926_v40 }
 0x247   : > { %v882_v41 = vpop.xlane.xlu1 %881 }
 0x248   : > { %v897_v42 = vmul.f32 0.03125, %v882_v41 }
 0x24a   : > { %v1771_v43 = vsub.f32 %v850_v11, %v897_v42 }
 0x24b   : > { %v888_v44 = vpop.xlane.xlu1 %887 }
 0x24c   : > { %v899_v45 = vmul.f32 0.03125, %v888_v44  ;;  %v913_v46 = vmul.f32 %v1771_v43, %v1771_v43 }
 0x24e   : > { %v1775_v47 = vsub.f32 %v860_v4, %v899_v45  ;;  %v929_v48 = vsel %vm233_vm0, %v913_v46, 0.0 }
 0x24f   : > { %930 = vadd.xlane.f32.xlu1 %v929_v48 }
 0x250   : > { %v915_v49 = vmul.f32 %v1775_v47, %v1775_v47 }
 0x252   : > { %v935_v50 = vsel %vm233_vm0, %v915_v49, 0.0 }
 0x253   : > { %936 = vadd.xlane.f32.xlu1 %v935_v50  ;;  %v885_v51 = vpop.xlane.xlu0 %884 }
 0x254   : > { %v898_v52 = vmul.f32 0.03125, %v885_v51 }
 0x256   : > { %v1781_v53 = vsub.f32 %v855_v18, %v898_v52 }
 0x257   : > { %v891_v54 = vpop.xlane.xlu0 %890 }
 0x258   : > { %v900_v55 = vmul.f32 0.03125, %v891_v54  ;;  %v914_v56 = vmul.f32 %v1781_v53, %v1781_v53 }
 0x25a   : > { %v1786_v57 = vsub.f32 %v1747_v2, %v900_v55  ;;  %v932_v58 = vsel %vm233_vm0, %v914_v56, 0.0 }
 0x25b   : > { %933 = vadd.xlane.f32.xlu0 %v932_v58 }
 0x25c   : > { %v916_v59 = vmul.f32 %v1786_v57, %v1786_v57 }
 0x25e   : > { %v938_v60 = vsel %vm233_vm0, %v916_v59, 0.0 }
 0x25f   : > { %939 = vadd.xlane.f32.xlu0 %v938_v60 }
 0x2c2   : > { %v922_v61 = vpop.xlane.xlu0 %921 }
 0x2c3   : > { %v942_v62 = vmul.f32 0.03125, %v922_v61  ;;  %v919_v63 = vpop.xlane.xlu1 %918 }
 0x2c4   : > { %v941_v0 = vmul.f32 0.03125, %v919_v63 }
 0x2c5   : > { %v950_v1 = vadd.f32 1e-05, %v942_v62 }
 0x2c6   : > { %v949_v3 = vadd.f32 1e-05, %v941_v0 }
 0x2c7   : > { %1292 = vrsqrt.f32 %v950_v1  ;;  %v925_v4 = vpop.xlane.xlu1 %924 }
 0x2c8   : > { %1294 = vrsqrt.f32 %v949_v3  ;;  %v943_v2 = vmul.f32 0.03125, %v925_v4 }
 0x2ca   : > { %v951_v5 = vadd.f32 1e-05, %v943_v2 }
 0x2cc   : > { %1296 = vrsqrt.f32 %v951_v5 }
 0x2d0   : > { %v928_v6 = vpop.xlane.xlu0 %927 }
 0x2d1   : > { %v1293_v7 = vpop.eup %1292  ;;  %v944_v9 = vmul.f32 0.03125, %v928_v6 }
 0x2d2   : > { %v1295_v10 = vpop.eup %1294  ;;  %v966_v11 = vmul.f32 %v1293_v7, %v902_v25 }
 0x2d3   : > { %v965_v13 = vmul.f32 %v1295_v10, %v1755_v26  ;;  %v952_v14 = vadd.f32 1e-05, %v944_v9 }
 0x2d4   : > { %v981_v15 = vmul.f32 %v1131_v8, %v966_v11 }
 0x2d5   : > { %v980_v16 = vmul.f32 %v1131_v8, %v965_v13  ;;  %1298 = vrsqrt.f32 %v952_v14 }
 0x2d6   : > { %v1297_v17 = vpop.eup %1296  ;;  %v996_v18 = vadd.f32 %v1132_v12, %v981_v15 }
 0x2d7   : > { %v995_v19 = vadd.f32 %v1132_v12, %v980_v16  ;;  %v967_v20 = vmul.f32 %v1297_v17, %v1760_v32 }
 0x2d8   : > { %1004 = vst.msk [vmem:[%s1803_s17 + $0x8] sm:$0xff] %vm233_vm0, %v996_v18 }
 0x2d9   : > { %1003 = vst.msk [vmem:[%s1803_s17] sm:$0xff] %vm233_vm0, %v995_v19  ;;  %v982_v21 = vmul.f32 %v1131_v8, %v967_v20 }
 0x2db   : > { %v997_v22 = vadd.f32 %v1132_v12, %v982_v21 }
 0x2dc   : > { %v931_v23 = vpop.xlane.xlu1 %930 }
 0x2dd   : > { %1005 = vst.msk [vmem:[%s1803_s17 + $0x10] sm:$0xff] %vm233_vm0, %v997_v22  ;;  %v945_v24 = vmul.f32 0.03125, %v931_v23 }
 0x2df   : > { %v1299_v25 = vpop.eup %1298  ;;  %v953_v26 = vadd.f32 1e-05, %v945_v24 }
 0x2e0   : > { %v968_v27 = vmul.f32 %v1299_v25, %v1766_v38  ;;  %v937_v28 = vpop.xlane.xlu1 %936 }
 0x2e1   : > { %1300 = vrsqrt.f32 %v953_v26  ;;  %v947_v29 = vmul.f32 0.03125, %v937_v28 }
 0x2e2   : > { %v983_v30 = vmul.f32 %v1131_v8, %v968_v27 }
 0x2e3   : > { %v955_v31 = vadd.f32 1e-05, %v947_v29 }
 0x2e4   : > { %v998_v32 = vadd.f32 %v1132_v12, %v983_v30 }
 0x2e5   : > { %1302 = vrsqrt.f32 %v955_v31 }
 0x2e6   : > { %1006 = vst.msk [vmem:[%s1803_s17 + $0x18] sm:$0xff] %vm233_vm0, %v998_v32 }
 0x2e8   : > { %v934_v33 = vpop.xlane.xlu0 %933 }
 0x2e9   : > { %v946_v34 = vmul.f32 0.03125, %v934_v33 }
 0x2eb   : > { %v1301_v35 = vpop.eup %1300  ;;  %v954_v36 = vadd.f32 1e-05, %v946_v34 }
 0x2ec   : > { %v969_v37 = vmul.f32 %v1301_v35, %v1771_v43  ;;  %v940_v39 = vpop.xlane.xlu0 %939 }
 0x2ed   : > { %1304 = vrsqrt.f32 %v954_v36  ;;  %v948_v38 = vmul.f32 0.03125, %v940_v39 }
 0x2ee   : > { %v984_v40 = vmul.f32 %v1131_v8, %v969_v37 }
 0x2ef   : > { %v1303_v41 = vpop.eup %1302  ;;  %v956_v42 = vadd.f32 1e-05, %v948_v38 }
 0x2f0   : > { %v999_v44 = vadd.f32 %v1132_v12, %v984_v40  ;;  %v971_v45 = vmul.f32 %v1303_v41, %v1775_v47 }
 0x2f1   : > { %1306 = vrsqrt.f32 %v956_v42 }
 0x2f2   : > { %1007 = vst.msk [vmem:[%s1803_s17 + $0x20] sm:$0xff] %vm233_vm0, %v999_v44  ;;  %v986_v46 = vmul.f32 %v1131_v8, %v971_v45 }
 0x2f4   : > { %v1001_v48 = vadd.f32 %v1132_v12, %v986_v46 }
 0x2f6   : > { %1009 = vst.msk [vmem:[%s1803_s17 + $0x30] sm:$0xff] %vm233_vm0, %v1001_v48 }
 0x2f7   : > { %v1305_v49 = vpop.eup %1304 }
 0x2f8   : > { %v970_v43 = vmul.f32 %v1305_v49, %v1781_v53 }
 0x2fa   : > { %v985_v50 = vmul.f32 %v1131_v8, %v970_v43 }
 0x2fb   : > { %v1307_v51 = vpop.eup %1306 }
 0x2fc   : > { %v1000_v52 = vadd.f32 %v1132_v12, %v985_v50  ;;  %v972_v54 = vmul.f32 %v1307_v51, %v1786_v57 }
 0x2fe   : > { %1008 = vst.msk [vmem:[%s1803_s17 + $0x28] sm:$0xff] %vm233_vm0, %v1000_v52  ;;  %v987_v55 = vmul.f32 %v1131_v8, %v972_v54 }
 0x300   : > { %v1002_v56 = vadd.f32 %v1132_v12, %v987_v55 }
 0x302   : > { %1010 = vst.msk [vmem:[%s1803_s17 + $0x38] sm:$0xff] %vm233_vm0, %v1002_v56 }
 0x303 PF: > { %s15_s18 = sadd.s32 1, %s1314_s18  }
 0x304   : > { %p12_p4 = scmp.ge.s32.totalorder %s15_s18, 4  }
 0x306   :  { %14 = sbr.rel (!%p12_p4) target bundleno = 1 (0x1), region = 72 }

// kernel: dmf_forward.9
= control target key start
LH: loop header
LB: loop body
LE: loop exit
PB: predicated region body
PF: predicated region fallthrough
CT: control target
= control target key end

     0   :  { %vm45_vm0 = vcmask 523264   ;;  %s1647_s0 = inlined_call_operand.vmem [shape: f32[128,64], index: 0, kind: input, shape index: {}]   ;;  %s1648_s1 = inlined_call_operand.vmem [shape: f32[64,64], index: 1, kind: input, shape index: {}]   ;;  %s1649_s2 = inlined_call_operand.vmem [shape: f32[1,64], index: 2, kind: input, shape index: {}]   ;;  %s1650_s3 = inlined_call_operand.vmem [shape: f32[1,64], index: 3, kind: input, shape index: {}]   ;;  %s1651_s4 = inlined_call_operand.vmem [shape: f32[1,64], index: 4, kind: input, shape index: {}]   ;;  %s1652_s5 = inlined_call_operand.vmem [shape: f32[1,64], index: 5, kind: input, shape index: {}]   ;;  %s1653_s6 = inlined_call_operand.vmem [shape: f32[1,64], index: 6, kind: input, shape index: {}]   ;;  %s1654_s7 = inlined_call_operand.hbm [shape: f32[128,64], index: 7, kind: output, shape index: {}]  }
   0x1   :  { %v27_v0 = vld [vmem:[%s1647_s0] sm:$0xff]  ;;  %v28_v1 = vld [vmem:[%s1647_s0 + $0x8] sm:$0xff]  ;;  %v29_v8 = vld [vmem:[%s1647_s0 + $0x10] sm:$0xff] }
   0x2   :  { %v35_v2 = vld [vmem:[%s1647_s0 + $0x40] sm:$0xff]  ;;  %v46_v3 = vsel %vm45_vm0, %v27_v0, 0.0  ;;  %v49_v4 = vsel %vm45_vm0, %v28_v1, 0.0  ;;  %v36_v5 = vld [vmem:[%s1647_s0 + $0x48] sm:$0xff]  ;;  %v37_v9 = vld [vmem:[%s1647_s0 + $0x50] sm:$0xff] }
   0x3   :  { %47 = vadd.xlane.f32.xlu0 %v46_v3  ;;  %50 = vadd.xlane.f32.xlu1 %v49_v4  ;;  %v70_v6 = vsel %vm45_vm0, %v35_v2, 0.0  ;;  %v73_v7 = vsel %vm45_vm0, %v36_v5, 0.0 }
   0x4   :  { %12 = vsyncpa [#allocation3], 0  ;;  %v52_v10 = vsel %vm45_vm0, %v29_v8, 0.0  ;;  %v76_v11 = vsel %vm45_vm0, %v37_v9, 0.0  ;;  %v1079_v12 = vld [vmem:[%s1647_s0 + $0x18] sm:$0xff]  ;;  %v1093_v16 = vld [vmem:[%s1647_s0 + $0x20] sm:$0xff] }
   0x5   :  { %v1084_v13 = vld [vmem:[%s1647_s0 + $0x58] sm:$0xff]  ;;  %v55_v14 = vsel %vm45_vm0, %v1079_v12, 0.0  ;;  %v1098_v17 = vld [vmem:[%s1647_s0 + $0x60] sm:$0xff]  ;;  %v58_v18 = vsel %vm45_vm0, %v1093_v16, 0.0  ;;  %v1107_v20 = vld [vmem:[%s1647_s0 + $0x28] sm:$0xff] }
   0x6   :  { %v79_v15 = vsel %vm45_vm0, %v1084_v13, 0.0  ;;  %v82_v19 = vsel %vm45_vm0, %v1098_v17, 0.0  ;;  %v1112_v21 = vld [vmem:[%s1647_s0 + $0x68] sm:$0xff]  ;;  %v61_v22 = vsel %vm45_vm0, %v1107_v20, 0.0  ;;  %v1121_v24 = vld [vmem:[%s1647_s0 + $0x30] sm:$0xff]  ;;  %v1135_v28 = vld [vmem:[%s1647_s0 + $0x38] sm:$0xff] }
   0x7   :  { %71 = vadd.xlane.f32.xlu0 %v70_v6  ;;  %74 = vadd.xlane.f32.xlu1 %v73_v7  ;;  %v85_v23 = vsel %vm45_vm0, %v1112_v21, 0.0  ;;  %v1126_v25 = vld [vmem:[%s1647_s0 + $0x70] sm:$0xff]  ;;  %v64_v26 = vsel %vm45_vm0, %v1121_v24, 0.0  ;;  %v1140_v29 = vld [vmem:[%s1647_s0 + $0x78] sm:$0xff]  ;;  %v67_v30 = vsel %vm45_vm0, %v1135_v28, 0.0 }
   0x8   :  { %v88_v27 = vsel %vm45_vm0, %v1126_v25, 0.0  ;;  %v91_v31 = vsel %vm45_vm0, %v1140_v29, 0.0 }
   0xb   :  { %53 = vadd.xlane.f32.xlu0 %v52_v10  ;;  %77 = vadd.xlane.f32.xlu1 %v76_v11 }
   0xf   :  { %56 = vadd.xlane.f32.xlu0 %v55_v14  ;;  %80 = vadd.xlane.f32.xlu1 %v79_v15 }
  0x13   :  { %59 = vadd.xlane.f32.xlu0 %v58_v18  ;;  %83 = vadd.xlane.f32.xlu1 %v82_v19 }
  0x17   :  { %62 = vadd.xlane.f32.xlu0 %v61_v22  ;;  %86 = vadd.xlane.f32.xlu1 %v85_v23 }
  0x1b   :  { %65 = vadd.xlane.f32.xlu0 %v64_v26  ;;  %89 = vadd.xlane.f32.xlu1 %v88_v27 }
  0x1f   :  { %68 = vadd.xlane.f32.xlu0 %v67_v30  ;;  %92 = vadd.xlane.f32.xlu1 %v91_v31 }
  0x90   :  { %v48_v32 = vpop.xlane.xlu0 %47  ;;  %v51_v33 = vpop.xlane.xlu1 %50 }
  0x91   :  { %v95_v34 = vmul.f32 0.015625, %v48_v32  ;;  %v96_v35 = vmul.f32 0.015625, %v51_v33 }
  0x93   :  { %v1146_v36 = vsub.f32 %v27_v0, %v95_v34  ;;  %v1148_v37 = vsub.f32 %v28_v1, %v96_v35 }
  0x94   :  { %v72_v38 = vpop.xlane.xlu0 %71  ;;  %v75_v39 = vpop.xlane.xlu1 %74 }
  0x95   :  { %v103_v40 = vmul.f32 0.015625, %v72_v38  ;;  %v104_v41 = vmul.f32 0.015625, %v75_v39  ;;  %v127_v42 = vmul.f32 %v1146_v36, %v1146_v36  ;;  %v128_v43 = vmul.f32 %v1148_v37, %v1148_v37 }
  0x97   :  { %v1154_v44 = vsub.f32 %v35_v2, %v103_v40  ;;  %v1156_v45 = vsub.f32 %v36_v5, %v104_v41  ;;  %v143_v46 = vsel %vm45_vm0, %v127_v42, 0.0  ;;  %v146_v49 = vsel %vm45_vm0, %v128_v43, 0.0 }
  0x98   :  { %144 = vadd.xlane.f32.xlu0 %v143_v46  ;;  %v54_v47 = vpop.xlane.xlu0 %53  ;;  %v78_v48 = vpop.xlane.xlu1 %77 }
  0x99   :  { %v97_v50 = vmul.f32 0.015625, %v54_v47  ;;  %v105_v51 = vmul.f32 0.015625, %v78_v48  ;;  %v135_v52 = vmul.f32 %v1154_v44, %v1154_v44  ;;  %v136_v53 = vmul.f32 %v1156_v45, %v1156_v45  ;;  %v300_v47 = vld [vmem:[%s1648_s1 + $0x8] sm:$0xff] }
  0x9b   :  { %v1164_v54 = vsub.f32 %v29_v8, %v97_v50  ;;  %v1166_v55 = vsub.f32 %v37_v9, %v105_v51  ;;  %v167_v56 = vsel %vm45_vm0, %v135_v52, 0.0  ;;  %v170_v59 = vsel %vm45_vm0, %v136_v53, 0.0 }
  0x9c   :  { %147 = vadd.xlane.f32.xlu0 %v146_v49  ;;  %168 = vadd.xlane.f32.xlu1 %v167_v56  ;;  %v57_v57 = vpop.xlane.xlu0 %56  ;;  %v81_v58 = vpop.xlane.xlu1 %80 }
  0x9d   :  { %v98_v60 = vmul.f32 0.015625, %v57_v57  ;;  %v106_v61 = vmul.f32 0.015625, %v81_v58  ;;  %v129_v62 = vmul.f32 %v1164_v54, %v1164_v54  ;;  %v137_v63 = vmul.f32 %v1166_v55, %v1166_v55 }
  0x9f   :  { %v1175_v0 = vsub.f32 %v1079_v12, %v98_v60  ;;  %v1178_v1 = vsub.f32 %v1084_v13, %v106_v61  ;;  %v149_v2 = vsel %vm45_vm0, %v129_v62, 0.0  ;;  %v173_v5 = vsel %vm45_vm0, %v137_v63, 0.0  ;;  %v303_v60 = vld [vmem:[%s1648_s1 + $0x20] sm:$0xff]  ;;  %v304_v61 = vld [vmem:[%s1648_s1 + $0x28] sm:$0xff]  ;;  %v305_v63 = vld [vmem:[%s1648_s1 + $0x30] sm:$0xff] }
  0xa0   :  { %171 = vadd.xlane.f32.xlu1 %v170_v59  ;;  %150 = vadd.xlane.f32.xlu0 %v149_v2  ;;  %v60_v3 = vpop.xlane.xlu0 %59  ;;  %v84_v4 = vpop.xlane.xlu1 %83  ;;  %v902_v62 = vpack.c.bf16 %v304_v61, %v303_v60  ;;  %v306_v2 = vld [vmem:[%s1648_s1 + $0x38] sm:$0xff] }
  0xa1   :  { %v99_v6 = vmul.f32 0.015625, %v60_v3  ;;  %v107_v7 = vmul.f32 0.015625, %v84_v4  ;;  %v130_v8 = vmul.f32 %v1175_v0, %v1175_v0  ;;  %v138_v9 = vmul.f32 %v1178_v1, %v1178_v1 }
  0xa2   :  { %v906_v3 = vpack.c.bf16 %v306_v2, %v305_v63 }
  0xa3   :  { %v1187_v10 = vsub.f32 %v1093_v16, %v99_v6  ;;  %v1190_v11 = vsub.f32 %v1098_v17, %v107_v7  ;;  %v152_v12 = vsel %vm45_vm0, %v130_v8, 0.0  ;;  %v176_v15 = vsel %vm45_vm0, %v138_v9, 0.0 }
  0xa4   :  { %174 = vadd.xlane.f32.xlu1 %v173_v5  ;;  %153 = vadd.xlane.f32.xlu0 %v152_v12  ;;  %v63_v13 = vpop.xlane.xlu0 %62  ;;  %v87_v14 = vpop.xlane.xlu1 %86 }
  0xa5   :  { %v100_v18 = vmul.f32 0.015625, %v63_v13  ;;  %v108_v19 = vmul.f32 0.015625, %v87_v14  ;;  %v131_v22 = vmul.f32 %v1187_v10, %v1187_v10  ;;  %v139_v16 = vmul.f32 %v1190_v11, %v1190_v11 }
  0xa7   :  { %v1199_v23 = vsub.f32 %v1107_v20, %v100_v18  ;;  %v1202_v17 = vsub.f32 %v1112_v21, %v108_v19  ;;  %v155_v26 = vsel %vm45_vm0, %v131_v22, 0.0  ;;  %v179_v31 = vsel %vm45_vm0, %v139_v16, 0.0 }
  0xa8   :  { %177 = vadd.xlane.f32.xlu1 %v176_v15  ;;  %156 = vadd.xlane.f32.xlu0 %v155_v26  ;;  %v66_v27 = vpop.xlane.xlu0 %65  ;;  %v90_v30 = vpop.xlane.xlu1 %89 }
  0xa9   :  { %v101_v32 = vmul.f32 0.015625, %v66_v27  ;;  %v109_v33 = vmul.f32 0.015625, %v90_v30  ;;  %v132_v34 = vmul.f32 %v1199_v23, %v1199_v23  ;;  %v140_v20 = vmul.f32 %v1202_v17, %v1202_v17 }
  0xab   :  { %v1211_v35 = vsub.f32 %v1121_v24, %v101_v32  ;;  %v1214_v21 = vsub.f32 %v1126_v25, %v109_v33  ;;  %v158_v38 = vsel %vm45_vm0, %v132_v34, 0.0  ;;  %v182_v41 = vsel %vm45_vm0, %v140_v20, 0.0  ;;  %v299_v25 = vld [vmem:[%s1648_s1] sm:$0xff] }
  0xac   :  { %180 = vadd.xlane.f32.xlu1 %v179_v31  ;;  %159 = vadd.xlane.f32.xlu0 %v158_v38  ;;  %v69_v39 = vpop.xlane.xlu0 %68  ;;  %v93_v40 = vpop.xlane.xlu1 %92  ;;  %v894_v48 = vpack.c.bf16 %v300_v47, %v299_v25  ;;  %v1263_v38 = vld [vmem:[%s1650_s3] ss:$0 sm:$0xff] }
  0xad   :  { %v102_v42 = vmul.f32 0.015625, %v69_v39  ;;  %v110_v43 = vmul.f32 0.015625, %v93_v40  ;;  %v133_v46 = vmul.f32 %v1211_v35, %v1211_v35  ;;  %v141_v24 = vmul.f32 %v1214_v21, %v1214_v21 }
  0xae   :  { %895 = vmatprep.subr.bf16.mxu0 %v894_v48  ;;  %910 = vmatprep.subr.bf16.mxu1 %v894_v48 }
  0xaf   :  { %v1229_v49 = vsub.f32 %v1135_v28, %v102_v42  ;;  %v1232_v50 = vsub.f32 %v1140_v29, %v110_v43  ;;  %v161_v51 = vsel %vm45_vm0, %v133_v46, 0.0  ;;  %v185_v52 = vsel %vm45_vm0, %v141_v24, 0.0  ;;  %v301_v28 = vld [vmem:[%s1648_s1 + $0x10] sm:$0xff]  ;;  %v302_v29 = vld [vmem:[%s1648_s1 + $0x18] sm:$0xff]  ;;  %897 = vmatpush3.bf16.msra.mxu0 %v894_v48  ;;  %914 = vmatpush3.bf16.msra.mxu1 %v894_v48  ;;  %v1269_v46 = vld [vmem:[%s1651_s4] ss:$0 sm:$0xff] }
  0xb0   :  { %183 = vadd.xlane.f32.xlu1 %v182_v41  ;;  %162 = vadd.xlane.f32.xlu0 %v161_v51  ;;  %v898_v57 = vpack.c.bf16 %v302_v29, %v301_v28 }
  0xb1   :  { %v134_v53 = vmul.f32 %v1229_v49, %v1229_v49  ;;  %v142_v56 = vmul.f32 %v1232_v50, %v1232_v50 }
  0xb2   :  { %899 = vmatprep.subr.bf16.mxu0 %v898_v57  ;;  %911 = vmatprep.subr.bf16.mxu1 %v898_v57 }
  0xb3   :  { %v164_v58 = vsel %vm45_vm0, %v134_v53, 0.0  ;;  %v188_v59 = vsel %vm45_vm0, %v142_v56, 0.0  ;;  %901 = vmatpush3.bf16.msra.mxu0 %v898_v57  ;;  %915 = vmatpush3.bf16.msra.mxu1 %v898_v57 }
  0xb4   :  { %186 = vadd.xlane.f32.xlu1 %v185_v52  ;;  %165 = vadd.xlane.f32.xlu0 %v164_v58 }
  0xb5   :  { %903 = vmatprep.subr.bf16.mxu0 %v902_v62  ;;  %912 = vmatprep.subr.bf16.mxu1 %v902_v62 }
  0xb7   :  { %905 = vmatpush3.bf16.msra.mxu0 %v902_v62  ;;  %916 = vmatpush3.bf16.msra.mxu1 %v902_v62 }
  0xb8   :  { %189 = vadd.xlane.f32.xlu1 %v188_v59  ;;  %907 = vmatprep.subr.bf16.mxu0 %v906_v3 }
  0xb9   :  { %913 = vmatprep.subr.bf16.mxu1 %v906_v3 }
  0xbb   :  { %909 = vmatpush3.bf16.msra.mxu0 %v906_v3  ;;  %917 = vmatpush3.bf16.msra.mxu1 %v906_v3 }
 0x125   :  { %v145_v4 = vpop.xlane.xlu0 %144 }
 0x126   :  { %v191_v5 = vmul.f32 0.015625, %v145_v4 }
 0x128   :  { %v207_v6 = vadd.f32 1e-05, %v191_v5 }
 0x129   :  { %v169_v7 = vpop.xlane.xlu1 %168  ;;  %v148_v8 = vpop.xlane.xlu0 %147 }
 0x12a   :  { %921 = vrsqrt.f32 %v207_v6  ;;  %v199_v9 = vmul.f32 0.015625, %v169_v7  ;;  %v192_v12 = vmul.f32 0.015625, %v148_v8 }
 0x12c   :  { %v215_v13 = vadd.f32 1e-05, %v199_v9  ;;  %v208_v14 = vadd.f32 1e-05, %v192_v12 }
 0x12d   :  { %v172_v15 = vpop.xlane.xlu1 %171  ;;  %v151_v18 = vpop.xlane.xlu0 %150 }
 0x12e   :  { %923 = vrsqrt.f32 %v215_v13  ;;  %v200_v19 = vmul.f32 0.015625, %v172_v15  ;;  %v193_v22 = vmul.f32 0.015625, %v151_v18 }
 0x12f   :  { %925 = vrsqrt.f32 %v208_v14 }
 0x130   :  { %v216_v16 = vadd.f32 1e-05, %v200_v19  ;;  %v209_v26 = vadd.f32 1e-05, %v193_v22 }
 0x131   :  { %v175_v27 = vpop.xlane.xlu1 %174  ;;  %v154_v30 = vpop.xlane.xlu0 %153 }
 0x132   :  { %927 = vrsqrt.f32 %v216_v16  ;;  %v201_v31 = vmul.f32 0.015625, %v175_v27  ;;  %v194_v32 = vmul.f32 0.015625, %v154_v30 }
 0x133   :  { %929 = vrsqrt.f32 %v209_v26 }
 0x134   :  { %v922_v33 = vpop.eup %921  ;;  %v217_v34 = vadd.f32 1e-05, %v201_v31  ;;  %v210_v20 = vadd.f32 1e-05, %v194_v32 }
 0x135   :  { %v178_v39 = vpop.xlane.xlu1 %177  ;;  %v157_v40 = vpop.xlane.xlu0 %156  ;;  %v239_v41 = vmul.f32 %v922_v33, %v1146_v36 }
 0x136   :  { %931 = vrsqrt.f32 %v217_v34  ;;  %v202_v42 = vmul.f32 0.015625, %v178_v39  ;;  %v195_v43 = vmul.f32 0.015625, %v157_v40 }
 0x137   :  { %933 = vrsqrt.f32 %v210_v20  ;;  %v261_v24 = vmul.f32 %v1263_v38, %v239_v41 }
 0x138   :  { %v924_v25 = vpop.eup %923  ;;  %v218_v47 = vadd.f32 1e-05, %v202_v42  ;;  %v211_v48 = vadd.f32 1e-05, %v195_v43 }
 0x139   :  { %v926_v51 = vpop.eup %925  ;;  %v181_v52 = vpop.xlane.xlu1 %180  ;;  %v1273_v56 = vadd.f32 %v1269_v46, %v261_v24  ;;  %v247_v36 = vmul.f32 %v924_v25, %v1154_v44 }
 0x13a   :  { %v160_v53 = vpop.xlane.xlu0 %159  ;;  %935 = vrsqrt.f32 %v218_v47  ;;  %v203_v28 = vmul.f32 0.015625, %v181_v52  ;;  %v240_v57 = vmul.f32 %v926_v51, %v1148_v37 }
 0x13b   :  { %v196_v29 = vmul.f32 0.015625, %v160_v53  ;;  %937 = vrsqrt.f32 %v211_v48  ;;  %870 = vmatprep.mubr.msk.f32.mxu0 %vm45_vm0, %v1273_v56  ;;  %v269_v58 = vmul.f32 %v1263_v38, %v247_v36 }
 0x13c   :  { %v928_v59 = vpop.eup %927  ;;  %v219_v60 = vadd.f32 1e-05, %v203_v28  ;;  %v262_v62 = vmul.f32 %v1263_v38, %v240_v57 }
 0x13d   :  { %v212_v61 = vadd.f32 1e-05, %v196_v29  ;;  %v930_v63 = vpop.eup %929  ;;  %v184_v2 = vpop.xlane.xlu1 %183  ;;  %v1282_v44 = vadd.f32 %v1269_v46, %v269_v58  ;;  %v248_v4 = vmul.f32 %v928_v59, %v1156_v45 }
 0x13e   :  { %v163_v3 = vpop.xlane.xlu0 %162  ;;  %939 = vrsqrt.f32 %v219_v60  ;;  %v204_v37 = vmul.f32 0.015625, %v184_v2  ;;  %v1286_v6 = vadd.f32 %v1269_v46, %v262_v62  ;;  %v241_v7 = vmul.f32 %v930_v63, %v1164_v54 }
 0x13f   :  { %v197_v5 = vmul.f32 0.015625, %v163_v3  ;;  %941 = vrsqrt.f32 %v212_v61  ;;  %882 = vmatprep.mubr.msk.f32.mxu1 %vm45_vm0, %v1282_v44  ;;  %v270_v8 = vmul.f32 %v1263_v38, %v248_v4 }
 0x140   :  { %v932_v9 = vpop.eup %931  ;;  %v220_v12 = vadd.f32 1e-05, %v204_v37  ;;  %871 = vmatmul.mubr.msk.f32.vlgmr.msra.gmra.mrb[0].mxu0 %vm45_vm0, %v1286_v6  ;;  %v263_v18 = vmul.f32 %v1263_v38, %v241_v7 }
 0x141   :  { %v213_v13 = vadd.f32 1e-05, %v197_v5  ;;  %v934_v45 = vpop.eup %933  ;;  %v187_v14 = vpop.xlane.xlu1 %186  ;;  %v1296_v19 = vadd.f32 %v1269_v46, %v270_v8  ;;  %v249_v22 = vmul.f32 %v932_v9, %v1166_v55 }
 0x142   :  { %v166_v15 = vpop.xlane.xlu0 %165  ;;  %943 = vrsqrt.f32 %v220_v12  ;;  %v205_v54 = vmul.f32 0.015625, %v187_v14  ;;  %v242_v26 = vmul.f32 %v934_v45, %v1175_v0  ;;  %v1301_v27 = vadd.f32 %v1269_v46, %v263_v18 }
 0x143   :  { %v198_v16 = vmul.f32 0.015625, %v166_v15  ;;  %945 = vrsqrt.f32 %v213_v13  ;;  %883 = vmatmul.mubr.msk.f32.vlgmr.msra.gmra.mrb[0].mxu1 %vm45_vm0, %v1296_v19  ;;  %v271_v30 = vmul.f32 %v1263_v38, %v249_v22 }
 0x144   :  { %v936_v31 = vpop.eup %935  ;;  %v221_v32 = vadd.f32 1e-05, %v205_v54  ;;  %v264_v34 = vmul.f32 %v1263_v38, %v242_v26  ;;  %873 = vmatprep.mubr.msk.f32.mxu0 %vm45_vm0, %v1301_v27 }
 0x145   :  { %v214_v33 = vadd.f32 1e-05, %v198_v16  ;;  %v938_v55 = vpop.eup %937  ;;  %v190_v20 = vpop.xlane.xlu1 %189  ;;  %v1310_v0 = vadd.f32 %v1269_v46, %v271_v30  ;;  %v250_v39 = vmul.f32 %v936_v31, %v1178_v1 }
 0x146   :  { %947 = vrsqrt.f32 %v221_v32  ;;  %v206_v40 = vmul.f32 0.015625, %v190_v20  ;;  %v1314_v41 = vadd.f32 %v1269_v46, %v264_v34  ;;  %v243_v42 = vmul.f32 %v938_v55, %v1187_v10 }
 0x147   :  { %949 = vrsqrt.f32 %v214_v33  ;;  %885 = vmatprep.mubr.msk.f32.mxu1 %vm45_vm0, %v1310_v0  ;;  %v272_v43 = vmul.f32 %v1263_v38, %v250_v39 }
 0x148   :  { %v940_v24 = vpop.eup %939  ;;  %v222_v25 = vadd.f32 1e-05, %v206_v40  ;;  %874 = vmatmul.mubr.msk.f32.gmra.mrb[2].mxu0 %vm45_vm0, %v1314_v41  ;;  %v265_v1 = vmul.f32 %v1263_v38, %v243_v42 }
 0x149   :  { %v942_v47 = vpop.eup %941  ;;  %v1324_v48 = vadd.f32 %v1269_v46, %v272_v43  ;;  %v251_v51 = vmul.f32 %v940_v24, %v1190_v11 }
 0x14a   :  { %951 = vrsqrt.f32 %v222_v25  ;;  %v1328_v10 = vadd.f32 %v1269_v46, %v265_v1  ;;  %v244_v52 = vmul.f32 %v942_v47, %v1199_v23 }
 0x14b   :  { %886 = vmatmul.mubr.msk.f32.gmra.mrb[2].mxu1 %vm45_vm0, %v1324_v48  ;;  %v273_v53 = vmul.f32 %v1263_v38, %v251_v51 }
 0x14c   :  { %v944_v36 = vpop.eup %943  ;;  %876 = vmatprep.mubr.msk.f32.mxu0 %vm45_vm0, %v1328_v10  ;;  %v266_v28 = vmul.f32 %v1263_v38, %v244_v52 }
 0x14d   :  { %v946_v29 = vpop.eup %945  ;;  %v1338_v11 = vadd.f32 %v1269_v46, %v273_v53  ;;  %v252_v57 = vmul.f32 %v944_v36, %v1202_v17 }
 0x14e   :  { %v1342_v58 = vadd.f32 %v1269_v46, %v266_v28  ;;  %v245_v23 = vmul.f32 %v946_v29, %v1211_v35 }
 0x14f   :  { %888 = vmatprep.mubr.msk.f32.mxu1 %vm45_vm0, %v1338_v11  ;;  %v274_v59 = vmul.f32 %v1263_v38, %v252_v57 }
 0x150   :  { %v948_v60 = vpop.eup %947  ;;  %877 = vmatmul.mubr.msk.f32.gmra.mrb[4].mxu0 %vm45_vm0, %v1342_v58  ;;  %v267_v61 = vmul.f32 %v1263_v38, %v245_v23 }
 0x151   :  { %v950_v62 = vpop.eup %949  ;;  %v1352_v63 = vadd.f32 %v1269_v46, %v274_v59  ;;  %v253_v17 = vmul.f32 %v948_v60, %v1214_v21 }
 0x152   :  { %v1356_v2 = vadd.f32 %v1269_v46, %v267_v61  ;;  %v246_v35 = vmul.f32 %v950_v62, %v1229_v49 }
 0x153   :  { %889 = vmatmul.mubr.msk.f32.gmra.mrb[4].mxu1 %vm45_vm0, %v1352_v63  ;;  %v275_v3 = vmul.f32 %v1263_v38, %v253_v17 }
 0x154   :  { %v952_v4 = vpop.eup %951  ;;  %879 = vmatprep.mubr.msk.f32.mxu0 %vm45_vm0, %v1356_v2  ;;  %v268_v37 = vmul.f32 %v1263_v38, %v246_v35 }
 0x155   :  { %v1366_v5 = vadd.f32 %v1269_v46, %v275_v3  ;;  %v254_v21 = vmul.f32 %v952_v4, %v1232_v50  ;;  %v811_v50 = vld [vmem:[%s1649_s2] ss:$0 sm:$0xff] }
 0x156   :  { %v1370_v7 = vadd.f32 %v1269_v46, %v268_v37 }
 0x157   :  { %891 = vmatprep.mubr.msk.f32.mxu1 %vm45_vm0, %v1366_v5  ;;  %v276_v49 = vmul.f32 %v1263_v38, %v254_v21 }
 0x158   :  { %880 = vmatmul.mubr.msk.f32.gmra.mrb[6].mxu0 %vm45_vm0, %v1370_v7 }
 0x159   :  { %v1378_v8 = vadd.f32 %v1269_v46, %v276_v49 }
 0x15b   :  { %892 = vmatmul.mubr.msk.f32.gmra.mrb[6].mxu1 %vm45_vm0, %v1378_v8 }
 0x213   :  { %v872_v9 = vpop.f32.mrb[0].mxu0 }
 0x214   :  { %v1385_v12 = vadd.f32 %v872_v9, %v811_v50  ;;  %v428_v13 = vpop.f32.mrb[1].mxu0 }
 0x215   :  { %v1387_v45 = vadd.f32 %v811_v50, %v428_v13 }
 0x216   :  { %v884_v38 = vpop.f32.mrb[0].mxu1  ;;  %v512_v14 = vsel %vm45_vm0, %v1385_v12, 0.0 }
 0x217   :  { %v1391_v15 = vadd.f32 %v884_v38, %v811_v50  ;;  %513 = vadd.xlane.f32.xlu1 %v512_v14  ;;  %v468_v46 = vpop.f32.mrb[1].mxu1  ;;  %v509_v18 = vsel %vm45_vm0, %v1387_v45, 0.0 }
 0x218   :  { %v1395_v22 = vadd.f32 %v811_v50, %v468_v46  ;;  %510 = vadd.xlane.f32.xlu0 %v509_v18 }
 0x219   :  { %v536_v54 = vsel %vm45_vm0, %v1391_v15, 0.0 }
 0x21a   :  { %v533_v16 = vsel %vm45_vm0, %v1395_v22, 0.0 }
 0x21b   :  { %537 = vadd.xlane.f32.xlu1 %v536_v54  ;;  %v875_v26 = vpop.f32.mrb[2].mxu0 }
 0x21c   :  { %v1401_v30 = vadd.f32 %v875_v26, %v811_v50  ;;  %534 = vadd.xlane.f32.xlu0 %v533_v16  ;;  %v438_v31 = vpop.f32.mrb[3].mxu0 }
 0x21d   :  { %v1403_v32 = vadd.f32 %v811_v50, %v438_v31 }
 0x21e   :  { %v887_v33 = vpop.f32.mrb[2].mxu1  ;;  %v518_v34 = vsel %vm45_vm0, %v1401_v30, 0.0 }
 0x21f   :  { %v1407_v55 = vadd.f32 %v887_v33, %v811_v50  ;;  %519 = vadd.xlane.f32.xlu1 %v518_v34  ;;  %v478_v20 = vpop.f32.mrb[3].mxu1  ;;  %v515_v39 = vsel %vm45_vm0, %v1403_v32, 0.0 }
 0x220   :  { %v1411_v40 = vadd.f32 %v811_v50, %v478_v20  ;;  %516 = vadd.xlane.f32.xlu0 %v515_v39 }
 0x221   :  { %v542_v42 = vsel %vm45_vm0, %v1407_v55, 0.0 }
 0x222   :  { %v539_v43 = vsel %vm45_vm0, %v1411_v40, 0.0 }
 0x223   :  { %543 = vadd.xlane.f32.xlu1 %v542_v42  ;;  %v878_v24 = vpop.f32.mrb[4].mxu0 }
 0x224   :  { %v1417_v25 = vadd.f32 %v878_v24, %v811_v50  ;;  %540 = vadd.xlane.f32.xlu0 %v539_v43  ;;  %v448_v1 = vpop.f32.mrb[5].mxu0 }
 0x225   :  { %v1419_v47 = vadd.f32 %v811_v50, %v448_v1 }
 0x226   :  { %v890_v51 = vpop.f32.mrb[4].mxu1  ;;  %v524_v52 = vsel %vm45_vm0, %v1417_v25, 0.0 }
 0x227   :  { %v1423_v53 = vadd.f32 %v890_v51, %v811_v50  ;;  %525 = vadd.xlane.f32.xlu1 %v524_v52  ;;  %v488_v36 = vpop.f32.mrb[5].mxu1  ;;  %v521_v28 = vsel %vm45_vm0, %v1419_v47, 0.0 }
 0x228   :  { %v1427_v29 = vadd.f32 %v811_v50, %v488_v36  ;;  %522 = vadd.xlane.f32.xlu0 %v521_v28 }
 0x229   :  { %v548_v57 = vsel %vm45_vm0, %v1423_v53, 0.0 }
 0x22a   :  { %v545_v23 = vsel %vm45_vm0, %v1427_v29, 0.0 }
 0x22b   :  { %549 = vadd.xlane.f32.xlu1 %v548_v57  ;;  %v881_v59 = vpop.f32.mrb[6].mxu0 }
 0x22c   :  { %v1433_v60 = vadd.f32 %v881_v59, %v811_v50  ;;  %546 = vadd.xlane.f32.xlu0 %v545_v23  ;;  %v458_v61 = vpop.f32.mrb[7].mxu0 }
 0x22d   :  { %v1435_v62 = vadd.f32 %v811_v50, %v458_v61 }
 0x22e   :  { %v893_v17 = vpop.f32.mrb[6].mxu1  ;;  %v530_v35 = vsel %vm45_vm0, %v1433_v60, 0.0 }
 0x22f   :  { %v1439_v3 = vadd.f32 %v893_v17, %v811_v50  ;;  %531 = vadd.xlane.f32.xlu1 %v530_v35  ;;  %v498_v4 = vpop.f32.mrb[7].mxu1  ;;  %v527_v37 = vsel %vm45_vm0, %v1435_v62, 0.0 }
 0x230   :  { %v1443_v21 = vadd.f32 %v811_v50, %v498_v4  ;;  %528 = vadd.xlane.f32.xlu0 %v527_v37 }
 0x231   :  { %v554_v49 = vsel %vm45_vm0, %v1439_v3, 0.0 }
 0x232   :  { %v551_v9 = vsel %vm45_vm0, %v1443_v21, 0.0 }
 0x233   :  { %555 = vadd.xlane.f32.xlu1 %v554_v49 }
 0x234   :  { %552 = vadd.xlane.f32.xlu0 %v551_v9 }
 0x2a4   :  { %v514_v13 = vpop.xlane.xlu1 %513 }
 0x2a5   :  { %v558_v38 = vmul.f32 0.015625, %v514_v13  ;;  %v511_v14 = vpop.xlane.xlu0 %510 }
 0x2a6   :  { %v557_v46 = vmul.f32 0.015625, %v511_v14 }
 0x2a7   :  { %v1450_v18 = vsub.f32 %v1385_v12, %v558_v38 }
 0x2a8   :  { %v1453_v54 = vsub.f32 %v1387_v45, %v557_v46  ;;  %v538_v50 = vpop.xlane.xlu1 %537 }
 0x2a9   :  { %v566_v16 = vmul.f32 0.015625, %v538_v50  ;;  %v535_v26 = vpop.xlane.xlu0 %534  ;;  %v590_v31 = vmul.f32 %v1450_v18, %v1450_v18 }
 0x2aa   :  { %v565_v33 = vmul.f32 0.015625, %v535_v26  ;;  %v589_v34 = vmul.f32 %v1453_v54, %v1453_v54 }
 0x2ab   :  { %v1460_v20 = vsub.f32 %v1391_v15, %v566_v16  ;;  %v608_v39 = vsel %vm45_vm0, %v590_v31, 0.0 }
 0x2ac   :  { %v1464_v12 = vsub.f32 %v1395_v22, %v565_v33  ;;  %v520_v45 = vpop.xlane.xlu1 %519  ;;  %609 = vadd.xlane.f32.xlu1 %v608_v39  ;;  %v605_v42 = vsel %vm45_vm0, %v589_v34, 0.0 }
 0x2ad   :  { %v560_v43 = vmul.f32 0.015625, %v520_v45  ;;  %606 = vadd.xlane.f32.xlu0 %v605_v42  ;;  %v517_v24 = vpop.xlane.xlu0 %516  ;;  %v598_v1 = vmul.f32 %v1460_v20, %v1460_v20 }
 0x2ae   :  { %v559_v51 = vmul.f32 0.015625, %v517_v24  ;;  %v597_v15 = vmul.f32 %v1464_v12, %v1464_v12 }
 0x2af   :  { %v1472_v52 = vsub.f32 %v1401_v30, %v560_v43  ;;  %v632_v22 = vsel %vm45_vm0, %v598_v1, 0.0 }
 0x2b0   :  { %v1476_v36 = vsub.f32 %v1403_v32, %v559_v51  ;;  %v544_v28 = vpop.xlane.xlu1 %543  ;;  %633 = vadd.xlane.f32.xlu1 %v632_v22  ;;  %v629_v57 = vsel %vm45_vm0, %v597_v15, 0.0 }
 0x2b1   :  { %v568_v23 = vmul.f32 0.015625, %v544_v28  ;;  %630 = vadd.xlane.f32.xlu0 %v629_v57  ;;  %v541_v59 = vpop.xlane.xlu0 %540  ;;  %v592_v61 = vmul.f32 %v1472_v52, %v1472_v52 }
 0x2b2   :  { %v567_v17 = vmul.f32 0.015625, %v541_v59  ;;  %v591_v30 = vmul.f32 %v1476_v36, %v1476_v36 }
 0x2b3   :  { %v1484_v35 = vsub.f32 %v1407_v55, %v568_v23  ;;  %v614_v32 = vsel %vm45_vm0, %v592_v61, 0.0 }
 0x2b4   :  { %v1488_v4 = vsub.f32 %v1411_v40, %v567_v17  ;;  %v526_v37 = vpop.xlane.xlu1 %525  ;;  %615 = vadd.xlane.f32.xlu1 %v614_v32  ;;  %v611_v49 = vsel %vm45_vm0, %v591_v30, 0.0 }
 0x2b5   :  { %v562_v9 = vmul.f32 0.015625, %v526_v37  ;;  %612 = vadd.xlane.f32.xlu0 %v611_v49  ;;  %v523_v13 = vpop.xlane.xlu0 %522  ;;  %v600_v38 = vmul.f32 %v1484_v35, %v1484_v35 }
 0x2b6   :  { %v561_v14 = vmul.f32 0.015625, %v523_v13  ;;  %v599_v55 = vmul.f32 %v1488_v4, %v1488_v4 }
 0x2b7   :  { %v1496_v46 = vsub.f32 %v1417_v25, %v562_v9  ;;  %v638_v40 = vsel %vm45_vm0, %v600_v38, 0.0 }
 0x2b8   :  { %v1500_v50 = vsub.f32 %v1419_v47, %v561_v14  ;;  %v550_v16 = vpop.xlane.xlu1 %549  ;;  %639 = vadd.xlane.f32.xlu1 %v638_v40  ;;  %v635_v26 = vsel %vm45_vm0, %v599_v55, 0.0 }
 0x2b9   :  { %v570_v31 = vmul.f32 0.015625, %v550_v16  ;;  %636 = vadd.xlane.f32.xlu0 %v635_v26  ;;  %v547_v33 = vpop.xlane.xlu0 %546  ;;  %v594_v34 = vmul.f32 %v1496_v46, %v1496_v46 }
 0x2ba   :  { %v569_v39 = vmul.f32 0.015625, %v547_v33  ;;  %v593_v25 = vmul.f32 %v1500_v50, %v1500_v50 }
 0x2bb   :  { %v1508_v45 = vsub.f32 %v1423_v53, %v570_v31  ;;  %v620_v47 = vsel %vm45_vm0, %v594_v34, 0.0 }
 0x2bc   :  { %v1512_v42 = vsub.f32 %v1427_v29, %v569_v39  ;;  %621 = vadd.xlane.f32.xlu1 %v620_v47  ;;  %v532_v43 = vpop.xlane.xlu1 %531  ;;  %v617_v24 = vsel %vm45_vm0, %v593_v25, 0.0 }
 0x2bd   :  { %v564_v1 = vmul.f32 0.015625, %v532_v43  ;;  %618 = vadd.xlane.f32.xlu0 %v617_v24  ;;  %v529_v51 = vpop.xlane.xlu0 %528  ;;  %v602_v15 = vmul.f32 %v1508_v45, %v1508_v45 }
 0x2be   :  { %v563_v22 = vmul.f32 0.015625, %v529_v51  ;;  %v601_v53 = vmul.f32 %v1512_v42, %v1512_v42 }
 0x2bf   :  { %v1520_v28 = vsub.f32 %v1433_v60, %v564_v1  ;;  %v644_v29 = vsel %vm45_vm0, %v602_v15, 0.0 }
 0x2c0   :  { %v1524_v57 = vsub.f32 %v1435_v62, %v563_v22  ;;  %645 = vadd.xlane.f32.xlu1 %v644_v29  ;;  %v556_v23 = vpop.xlane.xlu1 %555  ;;  %v641_v59 = vsel %vm45_vm0, %v601_v53, 0.0 }
 0x2c1   :  { %v572_v61 = vmul.f32 0.015625, %v556_v23  ;;  %642 = vadd.xlane.f32.xlu0 %v641_v59  ;;  %v553_v17 = vpop.xlane.xlu0 %552  ;;  %v596_v30 = vmul.f32 %v1520_v28, %v1520_v28 }
 0x2c2   :  { %v571_v32 = vmul.f32 0.015625, %v553_v17  ;;  %v595_v60 = vmul.f32 %v1524_v57, %v1524_v57 }
 0x2c3   :  { %v1532_v37 = vsub.f32 %v1439_v3, %v572_v61  ;;  %v626_v62 = vsel %vm45_vm0, %v596_v30, 0.0  ;;  %v1548_v30 = vld [vmem:[%s1652_s5] ss:$0 sm:$0xff]  ;;  %s1009_s5 = smov [#allocation2]  }
 0x2c4   :  { %v1536_v49 = vsub.f32 %v1443_v21, %v571_v32  ;;  %627 = vadd.xlane.f32.xlu1 %v626_v62  ;;  %v623_v9 = vsel %vm45_vm0, %v595_v60, 0.0 }
 0x2c5   :  { %624 = vadd.xlane.f32.xlu0 %v623_v9  ;;  %v604_v13 = vmul.f32 %v1532_v37, %v1532_v37 }
 0x2c6   :  { %v603_v38 = vmul.f32 %v1536_v49, %v1536_v49 }
 0x2c7   :  { %v650_v14 = vsel %vm45_vm0, %v604_v13, 0.0 }
 0x2c8   :  { %651 = vadd.xlane.f32.xlu1 %v650_v14  ;;  %v647_v3 = vsel %vm45_vm0, %v603_v38, 0.0  ;;  %v1554_v38 = vld [vmem:[%s1653_s6] ss:$0 sm:$0xff]  ;;  %s798_s6 = sshll.u32 %s1009_s5, 4  ;;  %s799_s6 = int_to_ptr.vmem [resolvable:$true] %s798_s6 }
 0x2c9   :  { %648 = vadd.xlane.f32.xlu0 %v647_v3  ;;  %s985_s8 = scalar_lea.vmem %s799_s6, 2048  ;;  %p990_p1 = scmp.lt.s32.totalorder %s799_s6, %s799_s6 }
 0x2ca   :  { %p986_p0 = scmp.ne.s32.totalorder %s799_s6, %s985_s8  ;;  %p991_p2 = scmp.lt.s32.totalorder %s985_s8, %s985_s8 }
 0x2cc   :  { %p992_p3 = por %p991_p2, %p990_p1 }
 0x2ce   :  { %p993_p4 = pnand %p992_p3, %p986_p0 }
 0x339   :  { %v610_v55 = vpop.xlane.xlu1 %609 }
 0x33a   :  { %v654_v40 = vmul.f32 0.015625, %v610_v55  ;;  %v607_v21 = vpop.xlane.xlu0 %606 }
 0x33b   :  { %v653_v16 = vmul.f32 0.015625, %v607_v21 }
 0x33c   :  { %v670_v26 = vadd.f32 1e-05, %v654_v40 }
 0x33d   :  { %v669_v31 = vadd.f32 1e-05, %v653_v16  ;;  %v634_v33 = vpop.xlane.xlu1 %633 }
 0x33e   :  { %953 = vrsqrt.f32 %v670_v26  ;;  %v662_v34 = vmul.f32 0.015625, %v634_v33  ;;  %v631_v39 = vpop.xlane.xlu0 %630 }
 0x33f   :  { %955 = vrsqrt.f32 %v669_v31  ;;  %v661_v25 = vmul.f32 0.015625, %v631_v39 }
 0x340   :  { %v678_v47 = vadd.f32 1e-05, %v662_v34 }
 0x341   :  { %v677_v43 = vadd.f32 1e-05, %v661_v25  ;;  %v616_v24 = vpop.xlane.xlu1 %615 }
 0x342   :  { %957 = vrsqrt.f32 %v678_v47  ;;  %v656_v1 = vmul.f32 0.015625, %v616_v24  ;;  %v613_v51 = vpop.xlane.xlu0 %612 }
 0x343   :  { %959 = vrsqrt.f32 %v677_v43  ;;  %v655_v15 = vmul.f32 0.015625, %v613_v51 }
 0x344   :  { %v672_v22 = vadd.f32 1e-05, %v656_v1 }
 0x345   :  { %v671_v53 = vadd.f32 1e-05, %v655_v15  ;;  %v640_v29 = vpop.xlane.xlu1 %639 }
 0x346   :  { %961 = vrsqrt.f32 %v672_v22  ;;  %v664_v23 = vmul.f32 0.015625, %v640_v29  ;;  %v637_v59 = vpop.xlane.xlu0 %636 }
 0x347   :  { %963 = vrsqrt.f32 %v671_v53  ;;  %v663_v61 = vmul.f32 0.015625, %v637_v59 }
 0x348   :  { %v954_v17 = vpop.eup %953  ;;  %v680_v32 = vadd.f32 1e-05, %v664_v23 }
 0x349   :  { %v956_v60 = vpop.eup %955  ;;  %v702_v62 = vmul.f32 %v954_v17, %v1450_v18  ;;  %v679_v9 = vadd.f32 1e-05, %v663_v61  ;;  %v622_v13 = vpop.xlane.xlu1 %621 }
 0x34a   :  { %v701_v14 = vmul.f32 %v956_v60, %v1453_v54  ;;  %965 = vrsqrt.f32 %v680_v32  ;;  %v658_v3 = vmul.f32 0.015625, %v622_v13  ;;  %v619_v55 = vpop.xlane.xlu0 %618 }
 0x34b   :  { %v724_v40 = vmul.f32 %v1548_v30, %v702_v62  ;;  %967 = vrsqrt.f32 %v679_v9  ;;  %v657_v21 = vmul.f32 0.015625, %v619_v55 }
 0x34c   :  { %v958_v16 = vpop.eup %957  ;;  %v723_v26 = vmul.f32 %v1548_v30, %v701_v14  ;;  %v674_v18 = vadd.f32 1e-05, %v658_v3 }
 0x34d   :  { %v960_v31 = vpop.eup %959  ;;  %v746_v33 = vadd.f32 %v1554_v38, %v724_v40  ;;  %v710_v34 = vmul.f32 %v958_v16, %v1460_v20  ;;  %v673_v39 = vadd.f32 1e-05, %v657_v21  ;;  %v646_v25 = vpop.xlane.xlu1 %645 }
 0x34e   :  { %v745_v54 = vadd.f32 %v1554_v38, %v723_v26  ;;  %v709_v47 = vmul.f32 %v960_v31, %v1464_v12  ;;  %969 = vrsqrt.f32 %v674_v18  ;;  %v666_v43 = vmul.f32 0.015625, %v646_v25  ;;  %v643_v24 = vpop.xlane.xlu0 %642 }
 0x34f   :  { %v762_v1 = vadd.f32 %v746_v33, %v1286_v6  ;;  %v732_v51 = vmul.f32 %v1548_v30, %v710_v34  ;;  %971 = vrsqrt.f32 %v673_v39  ;;  %v665_v15 = vmul.f32 0.015625, %v643_v24 }
 0x350   :  { %v962_v22 = vpop.eup %961  ;;  %v761_v53 = vadd.f32 %v745_v54, %v1273_v56  ;;  %v731_v20 = vmul.f32 %v1548_v30, %v709_v47  ;;  %v682_v29 = vadd.f32 1e-05, %v666_v43 }
 0x351   :  { %v964_v23 = vpop.eup %963  ;;  %778 = vst.msk [vmem:[#allocation2 + $0x8] sm:$0xff] %vm45_vm0, %v762_v1  ;;  %v754_v12 = vadd.f32 %v1554_v38, %v732_v51  ;;  %v704_v59 = vmul.f32 %v962_v22, %v1472_v52  ;;  %v681_v61 = vadd.f32 1e-05, %v665_v15  ;;  %v628_v17 = vpop.xlane.xlu1 %627 }
 0x352   :  { %777 = vst.msk [vmem:[#allocation2] sm:$0xff] %vm45_vm0, %v761_v53  ;;  %v753_v6 = vadd.f32 %v1554_v38, %v731_v20  ;;  %v703_v32 = vmul.f32 %v964_v23, %v1476_v36  ;;  %973 = vrsqrt.f32 %v682_v29  ;;  %v660_v56 = vmul.f32 0.015625, %v628_v17  ;;  %v625_v60 = vpop.xlane.xlu0 %624 }
 0x353   :  { %v770_v62 = vadd.f32 %v754_v12, %v1296_v19  ;;  %v726_v9 = vmul.f32 %v1548_v30, %v704_v59  ;;  %975 = vrsqrt.f32 %v681_v61  ;;  %v659_v13 = vmul.f32 0.015625, %v625_v60 }
 0x354   :  { %v966_v14 = vpop.eup %965  ;;  %v769_v52 = vadd.f32 %v753_v6, %v1282_v44  ;;  %v725_v3 = vmul.f32 %v1548_v30, %v703_v32  ;;  %v676_v55 = vadd.f32 1e-05, %v660_v56 }
 0x355   :  { %v968_v40 = vpop.eup %967  ;;  %786 = vst.msk [vmem:[#allocation2 + $0x48] sm:$0xff] %vm45_vm0, %v770_v62  ;;  %v748_v36 = vadd.f32 %v1554_v38, %v726_v9  ;;  %v712_v21 = vmul.f32 %v966_v14, %v1484_v35  ;;  %v675_v16 = vadd.f32 1e-05, %v659_v13  ;;  %v652_v26 = vpop.xlane.xlu1 %651 }
 0x356   :  { %785 = vst.msk [vmem:[#allocation2 + $0x40] sm:$0xff] %vm45_vm0, %v769_v52  ;;  %v747_v19 = vadd.f32 %v1554_v38, %v725_v3  ;;  %v711_v18 = vmul.f32 %v968_v40, %v1488_v4  ;;  %977 = vrsqrt.f32 %v676_v55  ;;  %v668_v44 = vmul.f32 0.015625, %v652_v26  ;;  %v649_v31 = vpop.xlane.xlu0 %648 }
 0x357   :  { %v764_v33 = vadd.f32 %v748_v36, %v1314_v41  ;;  %v734_v34 = vmul.f32 %v1548_v30, %v712_v21  ;;  %979 = vrsqrt.f32 %v675_v16  ;;  %v667_v39 = vmul.f32 0.015625, %v649_v31 }
 0x358   :  { %v970_v25 = vpop.eup %969  ;;  %v763_v35 = vadd.f32 %v747_v19, %v1301_v27  ;;  %v733_v54 = vmul.f32 %v1548_v30, %v711_v18  ;;  %v684_v47 = vadd.f32 1e-05, %v668_v44 }
 0x359   :  { %v972_v43 = vpop.eup %971  ;;  %780 = vst.msk [vmem:[#allocation2 + $0x18] sm:$0xff] %vm45_vm0, %v764_v33  ;;  %v756_v4 = vadd.f32 %v1554_v38, %v734_v34  ;;  %v706_v24 = vmul.f32 %v970_v25, %v1496_v46  ;;  %v683_v1 = vadd.f32 1e-05, %v667_v39 }
 0x35a   :  { %779 = vst.msk [vmem:[#allocation2 + $0x10] sm:$0xff] %vm45_vm0, %v763_v35  ;;  %v755_v41 = vadd.f32 %v1554_v38, %v733_v54  ;;  %v705_v51 = vmul.f32 %v972_v43, %v1500_v50  ;;  %981 = vrsqrt.f32 %v684_v47 }
 0x35b   :  { %v772_v27 = vadd.f32 %v756_v4, %v1324_v48  ;;  %v728_v15 = vmul.f32 %v1548_v30, %v706_v24  ;;  %983 = vrsqrt.f32 %v683_v1 }
 0x35c   :  { %v974_v22 = vpop.eup %973  ;;  %v771_v53 = vadd.f32 %v755_v41, %v1310_v0  ;;  %v727_v20 = vmul.f32 %v1548_v30, %v705_v51 }
 0x35d   :  { %v976_v29 = vpop.eup %975  ;;  %788 = vst.msk [vmem:[#allocation2 + $0x58] sm:$0xff] %vm45_vm0, %v772_v27  ;;  %v750_v46 = vadd.f32 %v1554_v38, %v728_v15  ;;  %v714_v23 = vmul.f32 %v974_v22, %v1508_v45 }
 0x35e   :  { %787 = vst.msk [vmem:[#allocation2 + $0x50] sm:$0xff] %vm45_vm0, %v771_v53  ;;  %v749_v50 = vadd.f32 %v1554_v38, %v727_v20  ;;  %v713_v48 = vmul.f32 %v976_v29, %v1512_v42 }
 0x35f   :  { %v766_v12 = vadd.f32 %v750_v46, %v1342_v58  ;;  %v736_v59 = vmul.f32 %v1548_v30, %v714_v23 }
 0x360   :  { %v978_v0 = vpop.eup %977  ;;  %v765_v61 = vadd.f32 %v749_v50, %v1328_v10  ;;  %v735_v17 = vmul.f32 %v1548_v30, %v713_v48 }
 0x361   :  { %v980_v6 = vpop.eup %979  ;;  %782 = vst.msk [vmem:[#allocation2 + $0x28] sm:$0xff] %vm45_vm0, %v766_v12  ;;  %v758_v45 = vadd.f32 %v1554_v38, %v736_v59  ;;  %v708_v32 = vmul.f32 %v978_v0, %v1520_v28 }
 0x362   :  { %781 = vst.msk [vmem:[#allocation2 + $0x20] sm:$0xff] %vm45_vm0, %v765_v61  ;;  %v757_v42 = vadd.f32 %v1554_v38, %v735_v17  ;;  %v707_v58 = vmul.f32 %v980_v6, %v1524_v57 }
 0x363   :  { %v774_v56 = vadd.f32 %v758_v45, %v1352_v63  ;;  %v730_v60 = vmul.f32 %v1548_v30, %v708_v32 }
 0x364   :  { %v982_v10 = vpop.eup %981  ;;  %v773_v62 = vadd.f32 %v757_v42, %v1338_v11  ;;  %v729_v9 = vmul.f32 %v1548_v30, %v707_v58 }
 0x365   :  { %v984_v13 = vpop.eup %983  ;;  %790 = vst.msk [vmem:[#allocation2 + $0x68] sm:$0xff] %vm45_vm0, %v774_v56  ;;  %v752_v28 = vadd.f32 %v1554_v38, %v730_v60  ;;  %v716_v14 = vmul.f32 %v982_v10, %v1532_v37 }
 0x366   :  { %789 = vst.msk [vmem:[#allocation2 + $0x60] sm:$0xff] %vm45_vm0, %v773_v62  ;;  %v751_v57 = vadd.f32 %v1554_v38, %v729_v9  ;;  %v715_v63 = vmul.f32 %v984_v13, %v1536_v49 }
 0x367   :  { %v768_v52 = vadd.f32 %v752_v28, %v1370_v7  ;;  %v738_v3 = vmul.f32 %v1548_v30, %v716_v14 }
 0x368   :  { %v767_v11 = vadd.f32 %v751_v57, %v1356_v2  ;;  %v737_v55 = vmul.f32 %v1548_v30, %v715_v63 }
 0x369   :  { %784 = vst.msk [vmem:[#allocation2 + $0x38] sm:$0xff] %vm45_vm0, %v768_v52  ;;  %v760_v40 = vadd.f32 %v1554_v38, %v738_v3 }
 0x36a   :  { %783 = vst.msk [vmem:[#allocation2 + $0x30] sm:$0xff] %vm45_vm0, %v767_v11  ;;  %v759_v37 = vadd.f32 %v1554_v38, %v737_v55 }
 0x36b   :  { %v776_v49 = vadd.f32 %v760_v40, %v1378_v8 }
 0x36c   :  { %v775_v7 = vadd.f32 %v759_v37, %v1366_v5 }
 0x36d   :  { %792 = vst.msk [vmem:[#allocation2 + $0x78] sm:$0xff] %vm45_vm0, %v776_v49 }
 0x36e   :  { %791 = vst.msk [vmem:[#allocation2 + $0x70] sm:$0xff] %vm45_vm0, %v775_v7 }
 0x36f   :  { %996 = shalt.err (!%p993_p4)
}
 0x370   :  { %s997_s10 = scalar_lea.hbm %s1654_s7, 2048 }
 0x371   :  { %p998_p5 = scmp.ne.s32.totalorder %s1654_s7, %s997_s10  ;;  %p1001_p6 = scmp.lt.u32.totalorder %s997_s10, %s1654_s7 }
 0x373   :  { %p1003_p7 = pnand %p1001_p6, %p998_p5 }
 0x375   :  { %1006 = shalt.err (!%p1003_p7)
}
 0x376   :  { %s1010_s15 = smov 128   ;;  %s1011_s16 = smov 8  }
 0x377   :  { %804 = dma.vmem_to_hbm [thread:$0]  %s799_s6, 2048, %s1654_s7, [#allocation3], %s1010_s15, %s1010_s15, %s1011_s16  }
 0x378   :  { %1007 = dma.done.wait [#allocation3], 2048  }
 0x379   :  { %1008 = vsyncadd [#allocation3], 4294965248 }
 0x37a   :  { %808 = vsyncpa [#allocation3], 1 }

// kernel: dmf_forward.6
= control target key start
LH: loop header
LB: loop body
LE: loop exit
PB: predicated region body
PF: predicated region fallthrough
CT: control target
= control target key end

     0   :  { %s12209_s30 = smov 0   ;;  %s16100_s0 = inlined_call_operand.vmem [shape: f32[2,64,128], index: 0, kind: input, shape index: {}]   ;;  %s16101_s1 = inlined_call_operand.vmem [shape: f32[2,64,128], index: 1, kind: input, shape index: {}]   ;;  %s16102_s2 = inlined_call_operand.vmem [shape: f32[2,64,128], index: 2, kind: input, shape index: {}]   ;;  %s16103_s3 = inlined_call_operand.vmem [shape: f32[1024,128], index: 3, kind: input, shape index: {}]   ;;  %s16104_s4 = inlined_call_operand.vmem [shape: f32[1024,64], index: 4, kind: input, shape index: {}]   ;;  %s16105_s5 = inlined_call_operand.vmem [shape: f32[64,1024], index: 5, kind: input, shape index: {}]   ;;  %s16106_s6 = inlined_call_operand.vmem [shape: f32[1024,64], index: 6, kind: input, shape index: {}]   ;;  %s16107_s7 = inlined_call_operand.vmem [shape: f32[64,128], index: 7, kind: input, shape index: {}]   ;;  %s16108_s8 = inlined_call_operand.vmem [shape: f32[1,128], index: 8, kind: input, shape index: {}]   ;;  %s16109_s9 = inlined_call_operand.vmem [shape: f32[2,64,128], index: 9, kind: output, shape index: {}]  }
   0x1 LB: > { %s8132_s10 = sadd.s32 4294967295, %s12144_s30   ;;  %p8136_p0 = scmp.ge.s32.totalorder %s12144_s30, 1  ;;  %s12144_s30 = sphi %s12209_s30, %s19_s30  }
   0x2   : > { %p307_p1 = scmp.lt.s32.totalorder %s12144_s30, 3 }
   0x4   : > { %p308_p2 = pnand %p8136_p0, %p307_p1 }
   0x5   : > { %p353_p3 = scmp.lt.s32.totalorder (!%p308_p2), %s8132_s10, 1  ;;  %v389_v0 = vld [vmem:[%s16104_s4] sm:$0xff] (!%p308_p2)  ;;  %vm653_vm0 = vcmask (!%p308_p2), 523264   ;;  %v646_v30 = vld [vmem:[%s16107_s7 + $0x8] sm:$0xff] (!%p308_p2)  ;;  %v647_v32 = vld [vmem:[%s16107_s7 + $0x10] sm:$0xff] (!%p308_p2)  ;;  %s15847_s15 = smov (!%p308_p2), 0  }
   0x6   : > { %311 = sbr.rel (%p308_p2) target bundleno = 1561 (0x619), region = 56  ;;  %9977 = vmatprep.mubr.msk.f32.mxu0 (!%p308_p2), %vm653_vm0, %v389_v0  ;;  %10185 = vmatprep.mubr.msk.f32.mxu1 (!%p308_p2), %vm653_vm0, %v389_v0  ;;  %v645_v29 = vld [vmem:[%s16107_s7] sm:$0xff] (!%p308_p2)  ;;  %v648_v33 = vld [vmem:[%s16107_s7 + $0x18] sm:$0xff] (!%p308_p2)  ;;  %v390_v34 = vld [vmem:[%s16104_s4 + $0x8] sm:$0xff] (!%p308_p2) }
   0x7   : > { %v12306_v31 = vpack.c.bf16 (!%p308_p2), %v646_v30, %v645_v29  ;;  %v391_v35 = vld [vmem:[%s16104_s4 + $0x10] sm:$0xff] (!%p308_p2)  ;;  %v12321_v36 = vpack.c.bf16 (!%p308_p2), %v648_v33, %v647_v32  ;;  %v392_v37 = vld [vmem:[%s16104_s4 + $0x18] sm:$0xff] (!%p308_p2)  ;;  %v393_v38 = vld [vmem:[%s16104_s4 + $0x20] sm:$0xff] (!%p308_p2) }
   0x8   : > { %v649_v39 = vld [vmem:[%s16107_s7 + $0x20] sm:$0xff] (!%p308_p2)  ;;  %v650_v40 = vld [vmem:[%s16107_s7 + $0x28] sm:$0xff] (!%p308_p2)  ;;  %v395_v44 = vld [vmem:[%s16104_s4 + $0x30] sm:$0xff] (!%p308_p2) }
   0x9   : > { %v12343_v41 = vpack.c.bf16 (!%p308_p2), %v650_v40, %v649_v39  ;;  %v394_v42 = vld [vmem:[%s16104_s4 + $0x28] sm:$0xff] (!%p308_p2)  ;;  %v396_v45 = vld [vmem:[%s16104_s4 + $0x38] sm:$0xff] (!%p308_p2)  ;;  %v397_v46 = vld [vmem:[%s16104_s4 + $0x40] sm:$0xff] (!%p308_p2) }
   0xa   : > { %v398_v47 = vld [vmem:[%s16104_s4 + $0x48] sm:$0xff] (!%p308_p2)  ;;  %v399_v48 = vld [vmem:[%s16104_s4 + $0x50] sm:$0xff] (!%p308_p2)  ;;  %v400_v49 = vld [vmem:[%s16104_s4 + $0x58] sm:$0xff] (!%p308_p2) }
   0xb   : > { %v401_v50 = vld [vmem:[%s16104_s4 + $0x60] sm:$0xff] (!%p308_p2)  ;;  %v402_v51 = vld [vmem:[%s16104_s4 + $0x68] sm:$0xff] (!%p308_p2)  ;;  %v403_v52 = vld [vmem:[%s16104_s4 + $0x70] sm:$0xff] (!%p308_p2) }
   0xc   : > { %v404_v53 = vld [vmem:[%s16104_s4 + $0x78] sm:$0xff] (!%p308_p2)  ;;  %v405_v54 = vld [vmem:[%s16104_s4 + $0x80] sm:$0xff] (!%p308_p2)  ;;  %v406_v55 = vld [vmem:[%s16104_s4 + $0x88] sm:$0xff] (!%p308_p2) }
   0xd   : > { %s16111_s10 = smov (!%p353_p3, %s8132_s10), 1  ;;  %v407_v56 = vld [vmem:[%s16104_s4 + $0x90] sm:$0xff]  ;;  %v408_v57 = vld [vmem:[%s16104_s4 + $0x98] sm:$0xff]  ;;  %v409_v58 = vld [vmem:[%s16104_s4 + $0xa0] sm:$0xff] }
   0xe   : > { %s8917_s13 = sshll.u32 %s16111_s10, 6  ;;  %v410_v59 = vld [vmem:[%s16104_s4 + $0xa8] sm:$0xff]  ;;  %v411_v60 = vld [vmem:[%s16104_s4 + $0xb0] sm:$0xff]  ;;  %v412_v61 = vld [vmem:[%s16104_s4 + $0xb8] sm:$0xff] }
   0xf   : > { %s12225_s16 = scalar_lea.vmem %s16100_s0, %s8917_s13  ;;  %s12230_s19 = scalar_lea.vmem %s16101_s1, %s8917_s13  ;;  %v413_v62 = vld [vmem:[%s16104_s4 + $0xc0] sm:$0xff]  ;;  %v414_v63 = vld [vmem:[%s16104_s4 + $0xc8] sm:$0xff]  ;;  %v415_v0 = vld [vmem:[%s16104_s4 + $0xd0] sm:$0xff] }
  0x10   : > { %s12235_s22 = scalar_lea.vmem %s16102_s2, %s8917_s13  ;;  %s12240_s25 = scalar_lea.vmem %s16109_s9, %s8917_s13  ;;  %v12243_v1 = vld [vmem:[%s12225_s16] sm:$0xff]  ;;  %v12246_v2 = vld [vmem:[%s12225_s16 + $0x8] sm:$0xff]  ;;  %v12265_v11 = vld [vmem:[%s12230_s19 + $0x10] sm:$0xff] }
  0x11   : > { %v381_v3 = vld [vmem:[%s12230_s19] sm:$0xff]  ;;  %v382_v4 = vld [vmem:[%s12230_s19 + $0x8] sm:$0xff]  ;;  %v12268_v12 = vld [vmem:[%s12230_s19 + $0x18] sm:$0xff]  ;;  %s12158_s13 = smov 64  }
  0x12   : > { %v12251_v5 = vmul.f32 %v381_v3, %v12243_v1  ;;  %v12254_v6 = vld [vmem:[%s12235_s22] sm:$0xff]  ;;  %v12257_v7 = vld [vmem:[%s12235_s22 + $0x8] sm:$0xff]  ;;  %v11209_v8 = vpack.c.bf16 %v382_v4, %v381_v3  ;;  %v12260_v9 = vmul.f32 %v382_v4, %v12246_v2  ;;  %v12271_v13 = vld [vmem:[%s12235_s22 + $0x10] sm:$0xff]  ;;  %v11213_v14 = vpack.c.bf16 %v12268_v12, %v12265_v11 }
  0x13   : > { %v11225_v10 = vpack.c.bf16 %v12257_v7, %v12254_v6  ;;  %v12276_v15 = vld [vmem:[%s12235_s22 + $0x18] sm:$0xff]  ;;  %v12279_v16 = vld [vmem:[%s12230_s19 + $0x20] sm:$0xff]  ;;  %v12282_v17 = vld [vmem:[%s12230_s19 + $0x28] sm:$0xff]  ;;  %v11466_v43 = vpack.i.bf16 %v12257_v7, %v12254_v6 }
  0x14   : > { %11210 = vmatprep.subr.bf16.mxu0 %v11209_v8  ;;  %v11229_v18 = vpack.c.bf16 %v12276_v15, %v12271_v13  ;;  %v2387_v19 = vld [vmem:[%s12235_s22 + $0x20] sm:$0xff]  ;;  %v2388_v20 = vld [vmem:[%s12235_s22 + $0x28] sm:$0xff]  ;;  %v11217_v21 = vpack.c.bf16 %v12282_v17, %v12279_v16  ;;  %v12291_v23 = vld [vmem:[%s12230_s19 + $0x30] sm:$0xff] }
  0x15   : > { %11226 = vmatprep.subr.bf16.mxu1 %v11225_v10  ;;  %11212 = vmatpush3.bf16.msra.mxu0 %v11209_v8  ;;  %v11233_v22 = vpack.c.bf16 %v2388_v20, %v2387_v19  ;;  %v12294_v24 = vld [vmem:[%s12230_s19 + $0x38] sm:$0xff]  ;;  %v2389_v25 = vld [vmem:[%s12235_s22 + $0x30] sm:$0xff]  ;;  %v417_v4 = vld [vmem:[%s16104_s4 + $0xe0] sm:$0xff] }
  0x16   : > { %11228 = vmatpush3.bf16.msra.mxu1 %v11225_v10  ;;  %11214 = vmatprep.subr.bf16.mxu0 %v11213_v14  ;;  %v2390_v26 = vld [vmem:[%s12235_s22 + $0x38] sm:$0xff]  ;;  %v11221_v27 = vpack.c.bf16 %v12294_v24, %v12291_v23  ;;  %v418_v6 = vld [vmem:[%s16104_s4 + $0xe8] sm:$0xff]  ;;  %v419_v7 = vld [vmem:[%s16104_s4 + $0xf0] sm:$0xff] }
  0x17   : > { %11230 = vmatprep.subr.bf16.mxu1 %v11229_v18  ;;  %v11237_v28 = vpack.c.bf16 %v2390_v26, %v2389_v25  ;;  %11467 = vrot.lane.b32.xlu0 %v11466_v43, %s12158_s13  ;;  %v416_v3 = vld [vmem:[%s16104_s4 + $0xd8] sm:$0xff]  ;;  %v421_v10 = vld [vmem:[%s16104_s4 + $0x100] sm:$0xff]  ;;  %v651_v19 = vld [vmem:[%s16107_s7 + $0x30] sm:$0xff] }
  0x18   : > { %v420_v8 = vld [vmem:[%s16104_s4 + $0xf8] sm:$0xff]  ;;  %v425_v25 = vld [vmem:[%s16104_s4 + $0x120] sm:$0xff]  ;;  %v426_v26 = vld [vmem:[%s16104_s4 + $0x128] sm:$0xff] }
  0x19   : > { %11216 = vmatpush3.bf16.msra.mxu0 %v11213_v14  ;;  %v422_v14 = vld [vmem:[%s16104_s4 + $0x108] sm:$0xff]  ;;  %v652_v20 = vld [vmem:[%s16107_s7 + $0x38] sm:$0xff]  ;;  %v431_v30 = vld [vmem:[%s16104_s4 + $0x150] sm:$0xff] }
  0x1a   : > { %11232 = vmatpush3.bf16.msra.mxu1 %v11229_v18  ;;  %11218 = vmatprep.subr.bf16.mxu0 %v11217_v21  ;;  %v423_v18 = vld [vmem:[%s16104_s4 + $0x110] sm:$0xff]  ;;  %v430_v29 = vld [vmem:[%s16104_s4 + $0x148] sm:$0xff]  ;;  %v432_v32 = vld [vmem:[%s16104_s4 + $0x158] sm:$0xff] }
  0x1b   : > { %11234 = vmatprep.subr.bf16.mxu1 %v11233_v22  ;;  %v433_v33 = vld [vmem:[%s16104_s4 + $0x160] sm:$0xff]  ;;  %v438_v39 = vld [vmem:[%s16104_s4 + $0x188] sm:$0xff]  ;;  %v439_v40 = vld [vmem:[%s16104_s4 + $0x190] sm:$0xff] }
  0x1c   : > { %v441_v43 = vld [vmem:[%s16104_s4 + $0x1a0] sm:$0xff] }
  0x1d   : > { %11220 = vmatpush3.bf16.msra.mxu0 %v11217_v21  ;;  %v424_v21 = vld [vmem:[%s16104_s4 + $0x118] sm:$0xff] }
  0x1e   : > { %11236 = vmatpush3.bf16.msra.mxu1 %v11233_v22  ;;  %11222 = vmatprep.subr.bf16.mxu0 %v11221_v27  ;;  %v12512_v22 = vpack.c.bf16 %v652_v20, %v651_v19  ;;  %v461_v20 = vld [vmem:[%s16104_s4 + $0x240] sm:$0xff] }
  0x1f   : > { %11238 = vmatprep.subr.bf16.mxu1 %v11237_v28 }
  0x21   : > { %11224 = vmatpush3.bf16.msra.mxu0 %v11221_v27  ;;  %v11471_v27 = vpack.i.bf16 %v12276_v15, %v12271_v13  ;;  %v428_v13 = vld [vmem:[%s16104_s4 + $0x138] sm:$0xff]  ;;  %v429_v15 = vld [vmem:[%s16104_s4 + $0x140] sm:$0xff] }
  0x22   : > { %11240 = vmatpush3.bf16.msra.mxu1 %v11237_v28  ;;  %11242 = vmatprep.subr.bf16.mxu0 %v12306_v31  ;;  %v427_v28 = vld [vmem:[%s16104_s4 + $0x130] sm:$0xff] }
  0x23   : > { %11472 = vrot.lane.b32.xlu0 %v11471_v27, %s12158_s13  ;;  %v464_v27 = vld [vmem:[%s16104_s4 + $0x258] sm:$0xff] }
  0x24   : > { %9978 = vmatmul.mubr.msk.f32.vlgmr.msra.gmra.mrb[0].mxu0 %vm653_vm0, %v390_v34 }
  0x25   : > { %10186 = vmatmul.mubr.msk.f32.vlgmr.msra.gmra.mrb[0].mxu1 %vm653_vm0, %v390_v34  ;;  %11244 = vmatpush3.bf16.msra.mxu0 %v12306_v31  ;;  %v434_v34 = vld [vmem:[%s16104_s4 + $0x168] sm:$0xff] }
  0x26   : > { %9980 = vmatprep.mubr.msk.f32.mxu0 %vm653_vm0, %v391_v35  ;;  %10188 = vmatprep.mubr.msk.f32.mxu1 %vm653_vm0, %v391_v35  ;;  %v435_v35 = vld [vmem:[%s16104_s4 + $0x170] sm:$0xff] }
  0x27   : > { %11246 = vmatprep.subr.bf16.mxu0 %v12321_v36 }
  0x28   : > { %9981 = vmatmul.mubr.msk.f32.gmra.mrb[2].mxu0 %vm653_vm0, %v392_v37 }
  0x29   : > { %10189 = vmatmul.mubr.msk.f32.gmra.mrb[2].mxu1 %vm653_vm0, %v392_v37  ;;  %9983 = vmatprep.mubr.msk.f32.mxu0 %vm653_vm0, %v393_v38  ;;  %v436_v37 = vld [vmem:[%s16104_s4 + $0x178] sm:$0xff] }
  0x2a   : > { %10191 = vmatprep.mubr.msk.f32.mxu1 %vm653_vm0, %v393_v38  ;;  %11248 = vmatpush3.bf16.msra.mxu0 %v12321_v36  ;;  %v437_v38 = vld [vmem:[%s16104_s4 + $0x180] sm:$0xff] }
  0x2b   : > { %11250 = vmatprep.subr.bf16.mxu0 %v12343_v41 }
  0x2c   : > { %9984 = vmatmul.mubr.msk.f32.gmra.mrb[4].mxu0 %vm653_vm0, %v394_v42 }
  0x2d   : > { %10192 = vmatmul.mubr.msk.f32.gmra.mrb[4].mxu1 %vm653_vm0, %v394_v42  ;;  %9986 = vmatprep.mubr.msk.f32.mxu0 %vm653_vm0, %v395_v44  ;;  %v440_v42 = vld [vmem:[%s16104_s4 + $0x198] sm:$0xff] }
  0x2e   : > { %10194 = vmatprep.mubr.msk.f32.mxu1 %vm653_vm0, %v395_v44  ;;  %11252 = vmatpush3.bf16.msra.mxu0 %v12343_v41  ;;  %v442_v44 = vld [vmem:[%s16104_s4 + $0x1a8] sm:$0xff] }
  0x2f   : > { %11254 = vmatprep.subr.bf16.mxu0 %v12512_v22 }
  0x30   : > { %9987 = vmatmul.mubr.msk.f32.gmra.mrb[6].mxu0 %vm653_vm0, %v396_v45 }
  0x31   : > { %10195 = vmatmul.mubr.msk.f32.gmra.mrb[6].mxu1 %vm653_vm0, %v396_v45  ;;  %9989 = vmatprep.mubr.msk.f32.mxu0 %vm653_vm0, %v397_v46  ;;  %v443_v45 = vld [vmem:[%s16104_s4 + $0x1b0] sm:$0xff] }
  0x32   : > { %10197 = vmatprep.mubr.msk.f32.mxu1 %vm653_vm0, %v397_v46  ;;  %11256 = vmatpush3.bf16.msra.mxu0 %v12512_v22  ;;  %v11257_v46 = vpack.c.bf16 %v12260_v9, %v12251_v5  ;;  %v446_v5 = vld [vmem:[%s16104_s4 + $0x1c8] sm:$0xff]  ;;  %v447_v9 = vld [vmem:[%s16104_s4 + $0x1d0] sm:$0xff] }
  0x34   : > { %9990 = vmatmul.mubr.msk.f32.gmra.mrb[8].mxu0 %vm653_vm0, %v398_v47  ;;  %11258 = vmatprep.subr.bf16.mxu1 %v11257_v46 }
  0x35   : > { %10198 = vmatmul.mubr.msk.f32.gmra.mrb[8].mxu1 %vm653_vm0, %v398_v47  ;;  %9992 = vmatprep.mubr.msk.f32.mxu0 %vm653_vm0, %v399_v48  ;;  %v444_v47 = vld [vmem:[%s16104_s4 + $0x1b8] sm:$0xff] }
  0x36   : > { %10200 = vmatprep.mubr.msk.f32.mxu1 %vm653_vm0, %v399_v48  ;;  %v445_v48 = vld [vmem:[%s16104_s4 + $0x1c0] sm:$0xff]  ;;  %11260 = vmatpush3.bf16.msra.mxu1 %v11257_v46  ;;  %v479_v46 = vld [vmem:[%s16104_s4 + $0x2d0] sm:$0xff] }
  0x38   : > { %9993 = vmatmul.mubr.msk.f32.gmra.mrb[10].mxu0 %vm653_vm0, %v400_v49 }
  0x39   : > { %10201 = vmatmul.mubr.msk.f32.gmra.mrb[10].mxu1 %vm653_vm0, %v400_v49  ;;  %9995 = vmatprep.mubr.msk.f32.mxu0 %vm653_vm0, %v401_v50  ;;  %v12635_v49 = vld [vmem:[%s12225_s16 + $0x10] sm:$0xff] }
  0x3a   : > { %10203 = vmatprep.mubr.msk.f32.mxu1 %vm653_vm0, %v401_v50  ;;  %v12640_v50 = vld [vmem:[%s12225_s16 + $0x18] sm:$0xff] }
  0x3c   : > { %9996 = vmatmul.mubr.msk.f32.gmra.mrb[12].mxu0 %vm653_vm0, %v402_v51 }
  0x3d   : > { %10204 = vmatmul.mubr.msk.f32.gmra.mrb[12].mxu1 %vm653_vm0, %v402_v51  ;;  %9998 = vmatprep.mubr.msk.f32.mxu0 %vm653_vm0, %v403_v52  ;;  %v4315_v51 = vmul.f32 %v12265_v11, %v12635_v49  ;;  %v12660_v11 = vld [vmem:[%s12225_s16 + $0x28] sm:$0xff] }
  0x3e   : > { %10206 = vmatprep.mubr.msk.f32.mxu1 %vm653_vm0, %v403_v52  ;;  %v448_v52 = vld [vmem:[%s16104_s4 + $0x1d8] sm:$0xff] }
  0x40   : > { %9999 = vmatmul.mubr.msk.f32.gmra.mrb[14].mxu0 %vm653_vm0, %v404_v53 }
  0x41   : > { %10207 = vmatmul.mubr.msk.f32.gmra.mrb[14].mxu1 %vm653_vm0, %v404_v53  ;;  %10001 = vmatprep.mubr.msk.f32.mxu0 %vm653_vm0, %v405_v54  ;;  %v4316_v53 = vmul.f32 %v12268_v12, %v12640_v50  ;;  %v450_v12 = vld [vmem:[%s16104_s4 + $0x1e8] sm:$0xff] }
  0x42   : > { %10209 = vmatprep.mubr.msk.f32.mxu1 %vm653_vm0, %v405_v54  ;;  %v449_v54 = vld [vmem:[%s16104_s4 + $0x1e0] sm:$0xff] }
  0x44   : > { %10002 = vmatmul.mubr.msk.f32.gmra.mrb[16].mxu0 %vm653_vm0, %v406_v55 }
  0x45   : > { %10210 = vmatmul.mubr.msk.f32.gmra.mrb[16].mxu1 %vm653_vm0, %v406_v55  ;;  %10004 = vmatprep.mubr.msk.f32.mxu0 %vm653_vm0, %v407_v56  ;;  %v11261_v55 = vpack.c.bf16 %v4316_v53, %v4315_v51  ;;  %v484_v51 = vld [vmem:[%s16104_s4 + $0x2f8] sm:$0xff]  ;;  %v486_v53 = vld [vmem:[%s16104_s4 + $0x308] sm:$0xff] }
  0x46   : > { %10212 = vmatprep.mubr.msk.f32.mxu1 %vm653_vm0, %v407_v56  ;;  %v12655_v56 = vld [vmem:[%s12225_s16 + $0x20] sm:$0xff] }
  0x47   : > { %11262 = vmatprep.subr.bf16.mxu1 %v11261_v55 }
  0x48   : > { %10005 = vmatmul.mubr.msk.f32.gmra.mrb[18].mxu0 %vm653_vm0, %v408_v57  ;;  %11264 = vmatpush3.bf16.msra.mxu1 %v11261_v55  ;;  %v488_v55 = vld [vmem:[%s16104_s4 + $0x318] sm:$0xff] }
  0x49   : > { %10213 = vmatmul.mubr.msk.f32.gmra.mrb[18].mxu1 %vm653_vm0, %v408_v57  ;;  %10007 = vmatprep.mubr.msk.f32.mxu0 %vm653_vm0, %v409_v58  ;;  %v4317_v57 = vmul.f32 %v12279_v16, %v12655_v56  ;;  %v12680_v16 = vld [vmem:[%s12225_s16 + $0x38] sm:$0xff] }
  0x4a   : > { %10215 = vmatprep.mubr.msk.f32.mxu1 %vm653_vm0, %v409_v58  ;;  %v4318_v58 = vmul.f32 %v12282_v17, %v12660_v11  ;;  %v452_v17 = vld [vmem:[%s16104_s4 + $0x1f8] sm:$0xff] }
  0x4c   : > { %10008 = vmatmul.mubr.msk.f32.gmra.mrb[20].mxu0 %vm653_vm0, %v410_v59 }
  0x4d   : > { %10216 = vmatmul.mubr.msk.f32.gmra.mrb[20].mxu1 %vm653_vm0, %v410_v59  ;;  %10010 = vmatprep.mubr.msk.f32.mxu0 %vm653_vm0, %v411_v60  ;;  %v451_v59 = vld [vmem:[%s16104_s4 + $0x1f0] sm:$0xff] }
  0x4e   : > { %10218 = vmatprep.mubr.msk.f32.mxu1 %vm653_vm0, %v411_v60  ;;  %v11265_v60 = vpack.c.bf16 %v4318_v58, %v4317_v57  ;;  %v489_v57 = vld [vmem:[%s16104_s4 + $0x320] sm:$0xff]  ;;  %v491_v58 = vld [vmem:[%s16104_s4 + $0x330] sm:$0xff] }
  0x50   : > { %10011 = vmatmul.mubr.msk.f32.gmra.mrb[22].mxu0 %vm653_vm0, %v412_v61  ;;  %11266 = vmatprep.subr.bf16.mxu1 %v11265_v60 }
  0x51   : > { %10219 = vmatmul.mubr.msk.f32.gmra.mrb[22].mxu1 %vm653_vm0, %v412_v61  ;;  %10013 = vmatprep.mubr.msk.f32.mxu0 %vm653_vm0, %v413_v62  ;;  %v12675_v61 = vld [vmem:[%s12225_s16 + $0x30] sm:$0xff] }
  0x52   : > { %10221 = vmatprep.mubr.msk.f32.mxu1 %vm653_vm0, %v413_v62  ;;  %v4319_v62 = vmul.f32 %v12291_v23, %v12675_v61  ;;  %11268 = vmatpush3.bf16.msra.mxu1 %v11265_v60  ;;  %v454_v23 = vld [vmem:[%s16104_s4 + $0x208] sm:$0xff]  ;;  %v493_v60 = vld [vmem:[%s16104_s4 + $0x340] sm:$0xff] }
  0x54   : > { %10014 = vmatmul.mubr.msk.f32.gmra.mrb[24].mxu0 %vm653_vm0, %v414_v63 }
  0x55   : > { %10222 = vmatmul.mubr.msk.f32.gmra.mrb[24].mxu1 %vm653_vm0, %v414_v63  ;;  %10016 = vmatprep.mubr.msk.f32.mxu0 %vm653_vm0, %v415_v0  ;;  %v4320_v63 = vmul.f32 %v12294_v24, %v12680_v16  ;;  %v455_v24 = vld [vmem:[%s16104_s4 + $0x210] sm:$0xff] }
  0x56   : > { %10224 = vmatprep.mubr.msk.f32.mxu1 %vm653_vm0, %v415_v0  ;;  %v453_v0 = vld [vmem:[%s16104_s4 + $0x200] sm:$0xff] }
  0x58   : > { %10017 = vmatmul.mubr.msk.f32.gmra.mrb[26].mxu0 %vm653_vm0, %v416_v3 }
  0x59   : > { %10225 = vmatmul.mubr.msk.f32.gmra.mrb[26].mxu1 %vm653_vm0, %v416_v3  ;;  %10019 = vmatprep.mubr.msk.f32.mxu0 %vm653_vm0, %v417_v4  ;;  %v11269_v3 = vpack.c.bf16 %v4320_v63, %v4319_v62  ;;  %v494_v62 = vld [vmem:[%s16104_s4 + $0x348] sm:$0xff] }
  0x5a   : > { %10227 = vmatprep.mubr.msk.f32.mxu1 %vm653_vm0, %v417_v4  ;;  %v456_v4 = vld [vmem:[%s16104_s4 + $0x218] sm:$0xff]  ;;  %v1744_v63 = vld [vmem:[%s16103_s3 + $0x8] sm:$0xff] }
  0x5b   : > { %11270 = vmatprep.subr.bf16.mxu1 %v11269_v3 }
  0x5c   : > { %10020 = vmatmul.mubr.msk.f32.gmra.mrb[28].mxu0 %vm653_vm0, %v418_v6  ;;  %11272 = vmatpush3.bf16.msra.mxu1 %v11269_v3  ;;  %v1743_v3 = vld [vmem:[%s16103_s3] sm:$0xff] }
  0x5d   : > { %10228 = vmatmul.mubr.msk.f32.gmra.mrb[28].mxu1 %vm653_vm0, %v418_v6  ;;  %10022 = vmatprep.mubr.msk.f32.mxu0 %vm653_vm0, %v419_v7  ;;  %v457_v6 = vld [vmem:[%s16104_s4 + $0x220] sm:$0xff] }
  0x5e   : > { %10230 = vmatprep.mubr.msk.f32.mxu1 %vm653_vm0, %v419_v7  ;;  %11290 = vmatprep.subr.bf16.mxu1 %v12306_v31  ;;  %v458_v7 = vld [vmem:[%s16104_s4 + $0x228] sm:$0xff] }
  0x60   : > { %10023 = vmatmul.mubr.msk.f32.gmra.mrb[30].mxu0 %vm653_vm0, %v420_v8 }
  0x61   : > { %10231 = vmatmul.mubr.msk.f32.gmra.mrb[30].mxu1 %vm653_vm0, %v420_v8  ;;  %10025 = vmatprep.mubr.msk.f32.mxu0 %vm653_vm0, %v421_v10  ;;  %v459_v8 = vld [vmem:[%s16104_s4 + $0x230] sm:$0xff] }
  0x62   : > { %10233 = vmatprep.mubr.msk.f32.mxu1 %vm653_vm0, %v421_v10 }
  0x64   : > { %10026 = vmatmul.mubr.msk.f32.gmra.mrb[32].mxu0 %vm653_vm0, %v422_v14 }
  0x65   : > { %10234 = vmatmul.mubr.msk.f32.gmra.mrb[32].mxu1 %vm653_vm0, %v422_v14  ;;  %10028 = vmatprep.mubr.msk.f32.mxu0 %vm653_vm0, %v423_v18  ;;  %v460_v14 = vld [vmem:[%s16104_s4 + $0x238] sm:$0xff] }
  0x66   : > { %10236 = vmatprep.mubr.msk.f32.mxu1 %vm653_vm0, %v423_v18 }
  0x68   : > { %10029 = vmatmul.mubr.msk.f32.gmra.mrb[34].mxu0 %vm653_vm0, %v424_v21 }
  0x69   : > { %10237 = vmatmul.mubr.msk.f32.gmra.mrb[34].mxu1 %vm653_vm0, %v424_v21  ;;  %10031 = vmatprep.mubr.msk.f32.mxu0 %vm653_vm0, %v425_v25 }
  0x6a   : > { %10239 = vmatprep.mubr.msk.f32.mxu1 %vm653_vm0, %v425_v25  ;;  %v462_v25 = vld [vmem:[%s16104_s4 + $0x248] sm:$0xff] }
  0x6c   : > { %10032 = vmatmul.mubr.msk.f32.gmra.mrb[36].mxu0 %vm653_vm0, %v426_v26 }
  0x6d   : > { %10240 = vmatmul.mubr.msk.f32.gmra.mrb[36].mxu1 %vm653_vm0, %v426_v26  ;;  %10034 = vmatprep.mubr.msk.f32.mxu0 %vm653_vm0, %v427_v28  ;;  %v463_v26 = vld [vmem:[%s16104_s4 + $0x250] sm:$0xff] }
  0x6e   : > { %10242 = vmatprep.mubr.msk.f32.mxu1 %vm653_vm0, %v427_v28  ;;  %v465_v28 = vld [vmem:[%s16104_s4 + $0x260] sm:$0xff] }
  0x70   : > { %10035 = vmatmul.mubr.msk.f32.gmra.mrb[38].mxu0 %vm653_vm0, %v428_v13 }
  0x71   : > { %10243 = vmatmul.mubr.msk.f32.gmra.mrb[38].mxu1 %vm653_vm0, %v428_v13  ;;  %10037 = vmatprep.mubr.msk.f32.mxu0 %vm653_vm0, %v429_v15  ;;  %v466_v13 = vld [vmem:[%s16104_s4 + $0x268] sm:$0xff] }
  0x72   : > { %10245 = vmatprep.mubr.msk.f32.mxu1 %vm653_vm0, %v429_v15  ;;  %v467_v15 = vld [vmem:[%s16104_s4 + $0x270] sm:$0xff] }
  0x74   : > { %10038 = vmatmul.mubr.msk.f32.gmra.mrb[40].mxu0 %vm653_vm0, %v430_v29 }
  0x75   : > { %10246 = vmatmul.mubr.msk.f32.gmra.mrb[40].mxu1 %vm653_vm0, %v430_v29  ;;  %10040 = vmatprep.mubr.msk.f32.mxu0 %vm653_vm0, %v431_v30  ;;  %v5286_v29 = vld [vmem:[%s12235_s22 + $0x20] sm:$0xff] }
  0x76   : > { %10248 = vmatprep.mubr.msk.f32.mxu1 %vm653_vm0, %v431_v30  ;;  %v5287_v30 = vld [vmem:[%s12235_s22 + $0x28] sm:$0xff] }
  0x78   : > { %10041 = vmatmul.mubr.msk.f32.gmra.mrb[42].mxu0 %vm653_vm0, %v432_v32 }
  0x79   : > { %10249 = vmatmul.mubr.msk.f32.gmra.mrb[42].mxu1 %vm653_vm0, %v432_v32  ;;  %10043 = vmatprep.mubr.msk.f32.mxu0 %vm653_vm0, %v433_v33  ;;  %v11476_v32 = vpack.i.bf16 %v5287_v30, %v5286_v29 }
  0x7a   : > { %10251 = vmatprep.mubr.msk.f32.mxu1 %vm653_vm0, %v433_v33  ;;  %v468_v33 = vld [vmem:[%s16104_s4 + $0x278] sm:$0xff] }
  0x7b   : > { %11477 = vrot.lane.b32.xlu1 %v11476_v32, %s12158_s13 }
  0x7c   : > { %10044 = vmatmul.mubr.msk.f32.gmra.mrb[44].mxu0 %vm653_vm0, %v434_v34 }
  0x7d   : > { %10252 = vmatmul.mubr.msk.f32.gmra.mrb[44].mxu1 %vm653_vm0, %v434_v34  ;;  %10046 = vmatprep.mubr.msk.f32.mxu0 %vm653_vm0, %v435_v35  ;;  %v469_v34 = vld [vmem:[%s16104_s4 + $0x280] sm:$0xff] }
  0x7e   : > { %10254 = vmatprep.mubr.msk.f32.mxu1 %vm653_vm0, %v435_v35  ;;  %v470_v35 = vld [vmem:[%s16104_s4 + $0x288] sm:$0xff] }
  0x80   : > { %10047 = vmatmul.mubr.msk.f32.gmra.mrb[46].mxu0 %vm653_vm0, %v436_v37 }
  0x81   : > { %10255 = vmatmul.mubr.msk.f32.gmra.mrb[46].mxu1 %vm653_vm0, %v436_v37  ;;  %10049 = vmatprep.mubr.msk.f32.mxu0 %vm653_vm0, %v437_v38  ;;  %v471_v37 = vld [vmem:[%s16104_s4 + $0x290] sm:$0xff] }
  0x82   : > { %10257 = vmatprep.mubr.msk.f32.mxu1 %vm653_vm0, %v437_v38  ;;  %v472_v38 = vld [vmem:[%s16104_s4 + $0x298] sm:$0xff] }
  0x84   : > { %10050 = vmatmul.mubr.msk.f32.gmra.mrb[48].mxu0 %vm653_vm0, %v438_v39 }
  0x85   : > { %10258 = vmatmul.mubr.msk.f32.gmra.mrb[48].mxu1 %vm653_vm0, %v438_v39  ;;  %10052 = vmatprep.mubr.msk.f32.mxu0 %vm653_vm0, %v439_v40  ;;  %v473_v39 = vld [vmem:[%s16104_s4 + $0x2a0] sm:$0xff] }
  0x86   : > { %10260 = vmatprep.mubr.msk.f32.mxu1 %vm653_vm0, %v439_v40  ;;  %v474_v40 = vld [vmem:[%s16104_s4 + $0x2a8] sm:$0xff] }
  0x88   : > { %10053 = vmatmul.mubr.msk.f32.gmra.mrb[50].mxu0 %vm653_vm0, %v440_v42 }
  0x89   : > { %10261 = vmatmul.mubr.msk.f32.gmra.mrb[50].mxu1 %vm653_vm0, %v440_v42  ;;  %10055 = vmatprep.mubr.msk.f32.mxu0 %vm653_vm0, %v441_v43  ;;  %v11468_v10 = vpop.permute.xlu0 %11467  ;;  %v475_v42 = vld [vmem:[%s16104_s4 + $0x2b0] sm:$0xff] }
  0x8a   : > { %10263 = vmatprep.mubr.msk.f32.mxu1 %vm653_vm0, %v441_v43  ;;  %v11470_v18 = vunpack.i.h.bf16 %v11468_v10  ;;  %v11469_v19 = vunpack.i.l.bf16 %v11468_v10  ;;  %v476_v43 = vld [vmem:[%s16104_s4 + $0x2b8] sm:$0xff] }
  0x8c   : > { %10056 = vmatmul.mubr.msk.f32.gmra.mrb[52].mxu0 %vm653_vm0, %v442_v44  ;;  %v12735_v21 = vpack.c.bf16 %v11470_v18, %v11469_v19  ;;  %v498_v18 = vld [vmem:[%s16104_s4 + $0x368] sm:$0xff] }
  0x8d   : > { %10264 = vmatmul.mubr.msk.f32.gmra.mrb[52].mxu1 %vm653_vm0, %v442_v44  ;;  %10058 = vmatprep.mubr.msk.f32.mxu0 %vm653_vm0, %v443_v45  ;;  %v477_v44 = vld [vmem:[%s16104_s4 + $0x2c0] sm:$0xff] }
  0x8e   : > { %10266 = vmatprep.mubr.msk.f32.mxu1 %vm653_vm0, %v443_v45  ;;  %11274 = vmatprep.subr.bf16.mxu0 %v12735_v21  ;;  %v478_v45 = vld [vmem:[%s16104_s4 + $0x2c8] sm:$0xff] }
  0x90   : > { %10059 = vmatmul.mubr.msk.f32.gmra.mrb[54].mxu0 %vm653_vm0, %v444_v47 }
  0x91   : > { %10267 = vmatmul.mubr.msk.f32.gmra.mrb[54].mxu1 %vm653_vm0, %v444_v47  ;;  %10061 = vmatprep.mubr.msk.f32.mxu0 %vm653_vm0, %v445_v48  ;;  %v480_v47 = vld [vmem:[%s16104_s4 + $0x2d8] sm:$0xff] }
  0x92   : > { %10269 = vmatprep.mubr.msk.f32.mxu1 %vm653_vm0, %v445_v48  ;;  %v481_v48 = vld [vmem:[%s16104_s4 + $0x2e0] sm:$0xff] }
  0x94   : > { %10062 = vmatmul.mubr.msk.f32.gmra.mrb[56].mxu0 %vm653_vm0, %v446_v5 }
  0x95   : > { %10270 = vmatmul.mubr.msk.f32.gmra.mrb[56].mxu1 %vm653_vm0, %v446_v5  ;;  %10064 = vmatprep.mubr.msk.f32.mxu0 %vm653_vm0, %v447_v9  ;;  %v482_v5 = vld [vmem:[%s16104_s4 + $0x2e8] sm:$0xff] }
  0x96   : > { %10272 = vmatprep.mubr.msk.f32.mxu1 %vm653_vm0, %v447_v9  ;;  %v483_v9 = vld [vmem:[%s16104_s4 + $0x2f0] sm:$0xff] }
  0x98   : > { %10065 = vmatmul.mubr.msk.f32.gmra.mrb[58].mxu0 %vm653_vm0, %v448_v52 }
  0x99   : > { %10273 = vmatmul.mubr.msk.f32.gmra.mrb[58].mxu1 %vm653_vm0, %v448_v52  ;;  %10067 = vmatprep.mubr.msk.f32.mxu0 %vm653_vm0, %v449_v54  ;;  %v485_v52 = vld [vmem:[%s16104_s4 + $0x300] sm:$0xff] }
  0x9a   : > { %10275 = vmatprep.mubr.msk.f32.mxu1 %vm653_vm0, %v449_v54  ;;  %v487_v54 = vld [vmem:[%s16104_s4 + $0x310] sm:$0xff] }
  0x9c   : > { %10068 = vmatmul.mubr.msk.f32.gmra.mrb[60].mxu0 %vm653_vm0, %v450_v12 }
  0x9d   : > { %10276 = vmatmul.mubr.msk.f32.gmra.mrb[60].mxu1 %vm653_vm0, %v450_v12  ;;  %10070 = vmatprep.mubr.msk.f32.mxu0 %vm653_vm0, %v451_v59  ;;  %v490_v12 = vld [vmem:[%s16104_s4 + $0x328] sm:$0xff] }
  0x9e   : > { %10278 = vmatprep.mubr.msk.f32.mxu1 %vm653_vm0, %v451_v59  ;;  %v492_v59 = vld [vmem:[%s16104_s4 + $0x338] sm:$0xff] }
  0xa0   : > { %10071 = vmatmul.mubr.msk.f32.gmra.mrb[62].mxu0 %vm653_vm0, %v452_v17 }
  0xa1   : > { %10279 = vmatmul.mubr.msk.f32.gmra.mrb[62].mxu1 %vm653_vm0, %v452_v17  ;;  %10073 = vmatprep.mubr.msk.f32.mxu0 %vm653_vm0, %v453_v0  ;;  %v495_v17 = vld [vmem:[%s16104_s4 + $0x350] sm:$0xff] }
  0xa2   : > { %10281 = vmatprep.mubr.msk.f32.mxu1 %vm653_vm0, %v453_v0  ;;  %v496_v0 = vld [vmem:[%s16104_s4 + $0x358] sm:$0xff] }
  0xa4   : > { %10074 = vmatmul.mubr.msk.f32.gmra.mrb[64].mxu0 %vm653_vm0, %v454_v23 }
  0xa5   : > { %10282 = vmatmul.mubr.msk.f32.gmra.mrb[64].mxu1 %vm653_vm0, %v454_v23  ;;  %10076 = vmatprep.mubr.msk.f32.mxu0 %vm653_vm0, %v455_v24  ;;  %v497_v23 = vld [vmem:[%s16104_s4 + $0x360] sm:$0xff] }
  0xa6   : > { %10284 = vmatprep.mubr.msk.f32.mxu1 %vm653_vm0, %v455_v24 }
  0xa8   : > { %10077 = vmatmul.mubr.msk.f32.gmra.mrb[66].mxu0 %vm653_vm0, %v456_v4 }
  0xa9   : > { %10285 = vmatmul.mubr.msk.f32.gmra.mrb[66].mxu1 %vm653_vm0, %v456_v4  ;;  %10079 = vmatprep.mubr.msk.f32.mxu0 %vm653_vm0, %v457_v6 }
  0xaa   : > { %10287 = vmatprep.mubr.msk.f32.mxu1 %vm653_vm0, %v457_v6 }
  0xac   : > { %10080 = vmatmul.mubr.msk.f32.gmra.mrb[68].mxu0 %vm653_vm0, %v458_v7 }
  0xad   : > { %10288 = vmatmul.mubr.msk.f32.gmra.mrb[68].mxu1 %vm653_vm0, %v458_v7  ;;  %10082 = vmatprep.mubr.msk.f32.mxu0 %vm653_vm0, %v459_v8 }
  0xae   : > { %10290 = vmatprep.mubr.msk.f32.mxu1 %vm653_vm0, %v459_v8 }
  0xb0   : > { %10083 = vmatmul.mubr.msk.f32.gmra.mrb[70].mxu0 %vm653_vm0, %v460_v14 }
  0xb1   : > { %10291 = vmatmul.mubr.msk.f32.gmra.mrb[70].mxu1 %vm653_vm0, %v460_v14  ;;  %10085 = vmatprep.mubr.msk.f32.mxu0 %vm653_vm0, %v461_v20  ;;  %v1746_v14 = vld [vmem:[%s16103_s3 + $0x18] sm:$0xff] }
  0xb2   : > { %10293 = vmatprep.mubr.msk.f32.mxu1 %vm653_vm0, %v461_v20  ;;  %v1745_v20 = vld [vmem:[%s16103_s3 + $0x10] sm:$0xff] }
  0xb4   : > { %10086 = vmatmul.mubr.msk.f32.gmra.mrb[72].mxu0 %vm653_vm0, %v462_v25 }
  0xb5   : > { %10294 = vmatmul.mubr.msk.f32.gmra.mrb[72].mxu1 %vm653_vm0, %v462_v25  ;;  %10088 = vmatprep.mubr.msk.f32.mxu0 %vm653_vm0, %v463_v26  ;;  %v499_v25 = vld [vmem:[%s16104_s4 + $0x370] sm:$0xff] }
  0xb6   : > { %10296 = vmatprep.mubr.msk.f32.mxu1 %vm653_vm0, %v463_v26 }
  0xb8   : > { %10089 = vmatmul.mubr.msk.f32.gmra.mrb[74].mxu0 %vm653_vm0, %v464_v27 }
  0xb9   : > { %10297 = vmatmul.mubr.msk.f32.gmra.mrb[74].mxu1 %vm653_vm0, %v464_v27  ;;  %10091 = vmatprep.mubr.msk.f32.mxu0 %vm653_vm0, %v465_v28 }
  0xba   : > { %10299 = vmatprep.mubr.msk.f32.mxu1 %vm653_vm0, %v465_v28 }
  0xbc   : > { %10092 = vmatmul.mubr.msk.f32.gmra.mrb[76].mxu0 %vm653_vm0, %v466_v13 }
  0xbd   : > { %10300 = vmatmul.mubr.msk.f32.gmra.mrb[76].mxu1 %vm653_vm0, %v466_v13  ;;  %10094 = vmatprep.mubr.msk.f32.mxu0 %vm653_vm0, %v467_v15  ;;  %v5288_v13 = vld [vmem:[%s12235_s22 + $0x30] sm:$0xff] }
  0xbe   : > { %10302 = vmatprep.mubr.msk.f32.mxu1 %vm653_vm0, %v467_v15  ;;  %v5289_v15 = vld [vmem:[%s12235_s22 + $0x38] sm:$0xff] }
  0xc0   : > { %10095 = vmatmul.mubr.msk.f32.gmra.mrb[78].mxu0 %vm653_vm0, %v468_v33 }
  0xc1   : > { %10303 = vmatmul.mubr.msk.f32.gmra.mrb[78].mxu1 %vm653_vm0, %v468_v33  ;;  %10097 = vmatprep.mubr.msk.f32.mxu0 %vm653_vm0, %v469_v34  ;;  %v11481_v33 = vpack.i.bf16 %v5289_v15, %v5288_v13  ;;  %v1753_v15 = vld [vmem:[%s16103_s3 + $0x50] sm:$0xff] }
  0xc2   : > { %10305 = vmatprep.mubr.msk.f32.mxu1 %vm653_vm0, %v469_v34 }
  0xc3   : > { %11482 = vrot.lane.b32.xlu1 %v11481_v33, %s12158_s13 }
  0xc4   : > { %10098 = vmatmul.mubr.msk.f32.gmra.mrb[80].mxu0 %vm653_vm0, %v470_v35 }
  0xc5   : > { %10306 = vmatmul.mubr.msk.f32.gmra.mrb[80].mxu1 %vm653_vm0, %v470_v35  ;;  %10100 = vmatprep.mubr.msk.f32.mxu0 %vm653_vm0, %v471_v37  ;;  %v1748_v35 = vld [vmem:[%s16103_s3 + $0x28] sm:$0xff] }
  0xc6   : > { %10308 = vmatprep.mubr.msk.f32.mxu1 %vm653_vm0, %v471_v37  ;;  %v500_v37 = vld [vmem:[%s16104_s4 + $0x378] sm:$0xff] }
  0xc8   : > { %10101 = vmatmul.mubr.msk.f32.gmra.mrb[82].mxu0 %vm653_vm0, %v472_v38 }
  0xc9   : > { %10309 = vmatmul.mubr.msk.f32.gmra.mrb[82].mxu1 %vm653_vm0, %v472_v38  ;;  %10103 = vmatprep.mubr.msk.f32.mxu0 %vm653_vm0, %v473_v39 }
  0xca   : > { %10311 = vmatprep.mubr.msk.f32.mxu1 %vm653_vm0, %v473_v39  ;;  %v1747_v39 = vld [vmem:[%s16103_s3 + $0x20] sm:$0xff] }
  0xcc   : > { %10104 = vmatmul.mubr.msk.f32.gmra.mrb[84].mxu0 %vm653_vm0, %v474_v40 }
  0xcd   : > { %10312 = vmatmul.mubr.msk.f32.gmra.mrb[84].mxu1 %vm653_vm0, %v474_v40  ;;  %10106 = vmatprep.mubr.msk.f32.mxu0 %vm653_vm0, %v475_v42  ;;  %v501_v40 = vld [vmem:[%s16104_s4 + $0x380] sm:$0xff] }
  0xce   : > { %10314 = vmatprep.mubr.msk.f32.mxu1 %vm653_vm0, %v475_v42 }
  0xd0   : > { %10107 = vmatmul.mubr.msk.f32.gmra.mrb[86].mxu0 %vm653_vm0, %v476_v43 }
  0xd1   : > { %10315 = vmatmul.mubr.msk.f32.gmra.mrb[86].mxu1 %vm653_vm0, %v476_v43  ;;  %10109 = vmatprep.mubr.msk.f32.mxu0 %vm653_vm0, %v477_v44 }
  0xd2   : > { %10317 = vmatprep.mubr.msk.f32.mxu1 %vm653_vm0, %v477_v44 }
  0xd4   : > { %10110 = vmatmul.mubr.msk.f32.gmra.mrb[88].mxu0 %vm653_vm0, %v478_v45 }
  0xd5   : > { %10318 = vmatmul.mubr.msk.f32.gmra.mrb[88].mxu1 %vm653_vm0, %v478_v45  ;;  %10112 = vmatprep.mubr.msk.f32.mxu0 %vm653_vm0, %v479_v46 }
  0xd6   : > { %10320 = vmatprep.mubr.msk.f32.mxu1 %vm653_vm0, %v479_v46 }
  0xd8   : > { %10113 = vmatmul.mubr.msk.f32.gmra.mrb[90].mxu0 %vm653_vm0, %v480_v47 }
  0xd9   : > { %10321 = vmatmul.mubr.msk.f32.gmra.mrb[90].mxu1 %vm653_vm0, %v480_v47  ;;  %10115 = vmatprep.mubr.msk.f32.mxu0 %vm653_vm0, %v481_v48 }
  0xda   : > { %10323 = vmatprep.mubr.msk.f32.mxu1 %vm653_vm0, %v481_v48 }
  0xdc   : > { %10116 = vmatmul.mubr.msk.f32.gmra.mrb[92].mxu0 %vm653_vm0, %v482_v5 }
  0xdd   : > { %10324 = vmatmul.mubr.msk.f32.gmra.mrb[92].mxu1 %vm653_vm0, %v482_v5  ;;  %10118 = vmatprep.mubr.msk.f32.mxu0 %vm653_vm0, %v483_v9  ;;  %v1750_v5 = vld [vmem:[%s16103_s3 + $0x38] sm:$0xff] }
  0xde   : > { %10326 = vmatprep.mubr.msk.f32.mxu1 %vm653_vm0, %v483_v9  ;;  %v502_v9 = vld [vmem:[%s16104_s4 + $0x388] sm:$0xff] }
  0xe0   : > { %10119 = vmatmul.mubr.msk.f32.gmra.mrb[94].mxu0 %vm653_vm0, %v484_v51 }
  0xe1   : > { %10327 = vmatmul.mubr.msk.f32.gmra.mrb[94].mxu1 %vm653_vm0, %v484_v51  ;;  %10121 = vmatprep.mubr.msk.f32.mxu0 %vm653_vm0, %v485_v52 }
  0xe2   : > { %10329 = vmatprep.mubr.msk.f32.mxu1 %vm653_vm0, %v485_v52  ;;  %v1749_v52 = vld [vmem:[%s16103_s3 + $0x30] sm:$0xff] }
  0xe4   : > { %10122 = vmatmul.mubr.msk.f32.gmra.mrb[96].mxu0 %vm653_vm0, %v486_v53 }
  0xe5   : > { %10330 = vmatmul.mubr.msk.f32.gmra.mrb[96].mxu1 %vm653_vm0, %v486_v53  ;;  %10124 = vmatprep.mubr.msk.f32.mxu0 %vm653_vm0, %v487_v54  ;;  %v503_v53 = vld [vmem:[%s16104_s4 + $0x390] sm:$0xff] }
  0xe6   : > { %10332 = vmatprep.mubr.msk.f32.mxu1 %vm653_vm0, %v487_v54 }
  0xe8   : > { %10125 = vmatmul.mubr.msk.f32.gmra.mrb[98].mxu0 %vm653_vm0, %v488_v55 }
  0xe9   : > { %10333 = vmatmul.mubr.msk.f32.gmra.mrb[98].mxu1 %vm653_vm0, %v488_v55  ;;  %10127 = vmatprep.mubr.msk.f32.mxu0 %vm653_vm0, %v489_v57 }
  0xea   : > { %10335 = vmatprep.mubr.msk.f32.mxu1 %vm653_vm0, %v489_v57 }
  0xec   : > { %10128 = vmatmul.mubr.msk.f32.gmra.mrb[100].mxu0 %vm653_vm0, %v490_v12 }
  0xed   : > { %10336 = vmatmul.mubr.msk.f32.gmra.mrb[100].mxu1 %vm653_vm0, %v490_v12  ;;  %10130 = vmatprep.mubr.msk.f32.mxu0 %vm653_vm0, %v491_v58 }
  0xee   : > { %10338 = vmatprep.mubr.msk.f32.mxu1 %vm653_vm0, %v491_v58 }
  0xf0   : > { %10131 = vmatmul.mubr.msk.f32.gmra.mrb[102].mxu0 %vm653_vm0, %v492_v59 }
  0xf1   : > { %10339 = vmatmul.mubr.msk.f32.gmra.mrb[102].mxu1 %vm653_vm0, %v492_v59  ;;  %10133 = vmatprep.mubr.msk.f32.mxu0 %vm653_vm0, %v493_v60 }
  0xf2   : > { %10341 = vmatprep.mubr.msk.f32.mxu1 %vm653_vm0, %v493_v60 }
  0xf4   : > { %10134 = vmatmul.mubr.msk.f32.gmra.mrb[104].mxu0 %vm653_vm0, %v494_v62 }
  0xf5   : > { %10342 = vmatmul.mubr.msk.f32.gmra.mrb[104].mxu1 %vm653_vm0, %v494_v62  ;;  %10136 = vmatprep.mubr.msk.f32.mxu0 %vm653_vm0, %v495_v17  ;;  %v1752_v62 = vld [vmem:[%s16103_s3 + $0x48] sm:$0xff] }
  0xf6   : > { %10344 = vmatprep.mubr.msk.f32.mxu1 %vm653_vm0, %v495_v17  ;;  %v504_v17 = vld [vmem:[%s16104_s4 + $0x398] sm:$0xff] }
  0xf7   : > { %v9979_v24 = vpop.f32.mrb[0].mxu0 }
  0xf8   : > { %v12927_v4 = vpop.f32.mrb[0].mxu1  ;;  %v1872_v6 = vmul.f32 %v9979_v24, %v1744_v63  ;;  %v1104_v7 = vpop.f32.mrb[1].mxu0  ;;  %10137 = vmatmul.mubr.msk.f32.gmra.mrb[106].mxu0 %vm653_vm0, %v496_v0 }
  0xf9   : > { %10345 = vmatmul.mubr.msk.f32.gmra.mrb[106].mxu1 %vm653_vm0, %v496_v0  ;;  %v12931_v8 = vpop.f32.mrb[1].mxu1  ;;  %v1871_v10 = vmul.f32 %v1743_v3, %v1104_v7  ;;  %10139 = vmatprep.mubr.msk.f32.mxu0 %vm653_vm0, %v497_v23  ;;  %v1751_v3 = vld [vmem:[%s16103_s3 + $0x40] sm:$0xff] }
  0xfa   : > { %10347 = vmatprep.mubr.msk.f32.mxu1 %vm653_vm0, %v497_v23  ;;  %v2001_v19 = vmul.f32 1.442695, %v1872_v6  ;;  %v505_v23 = vld [vmem:[%s16104_s4 + $0x3a0] sm:$0xff] }
  0xfb   : > { %v1999_v26 = vmul.f32 1.442695, %v1871_v10  ;;  %v9982_v27 = vpop.f32.mrb[2].mxu0 }
  0xfc   : > { %v12947_v28 = vpop.f32.mrb[2].mxu1  ;;  %11486 = vpow2.f32 %v2001_v19  ;;  %v1874_v29 = vmul.f32 %v9982_v27, %v1746_v14  ;;  %v1114_v30 = vpop.f32.mrb[3].mxu0  ;;  %10140 = vmatmul.mubr.msk.f32.gmra.mrb[108].mxu0 %vm653_vm0, %v498_v18 }
  0xfd   : > { %10348 = vmatmul.mubr.msk.f32.gmra.mrb[108].mxu1 %vm653_vm0, %v498_v18  ;;  %v12953_v32 = vpop.f32.mrb[3].mxu1  ;;  %11488 = vpow2.f32 %v1999_v26  ;;  %v1873_v34 = vmul.f32 %v1745_v20, %v1114_v30  ;;  %10142 = vmatprep.mubr.msk.f32.mxu0 %vm653_vm0, %v499_v25  ;;  %v506_v26 = vld [vmem:[%s16104_s4 + $0x3a8] sm:$0xff] }
  0xfe   : > { %10350 = vmatprep.mubr.msk.f32.mxu1 %vm653_vm0, %v499_v25  ;;  %v2005_v38 = vmul.f32 1.442695, %v1874_v29  ;;  %v1754_v25 = vld [vmem:[%s16103_s3 + $0x58] sm:$0xff]  ;;  %v507_v29 = vld [vmem:[%s16104_s4 + $0x3b0] sm:$0xff] }
  0xff   : > { %v2003_v42 = vmul.f32 1.442695, %v1873_v34  ;;  %v9985_v43 = vpop.f32.mrb[4].mxu0 }
 0x100   : > { %v12970_v44 = vpop.f32.mrb[4].mxu1  ;;  %11490 = vpow2.f32 %v2005_v38  ;;  %v1876_v45 = vmul.f32 %v9985_v43, %v1748_v35  ;;  %v1124_v46 = vpop.f32.mrb[5].mxu0  ;;  %10143 = vmatmul.mubr.msk.f32.gmra.mrb[110].mxu0 %vm653_vm0, %v500_v37  ;;  %v508_v43 = vld [vmem:[%s16104_s4 + $0x3b8] sm:$0xff] }
 0x101   : > { %10351 = vmatmul.mubr.msk.f32.gmra.mrb[110].mxu1 %vm653_vm0, %v500_v37  ;;  %v12974_v47 = vpop.f32.mrb[5].mxu1  ;;  %11492 = vpow2.f32 %v2003_v42  ;;  %v1875_v48 = vmul.f32 %v1747_v39, %v1124_v46  ;;  %10145 = vmatprep.mubr.msk.f32.mxu0 %vm653_vm0, %v501_v40  ;;  %v1756_v42 = vld [vmem:[%s16103_s3 + $0x68] sm:$0xff] }
 0x102   : > { %10353 = vmatprep.mubr.msk.f32.mxu1 %vm653_vm0, %v501_v40  ;;  %v2009_v51 = vmul.f32 1.442695, %v1876_v45 }
 0x103   : > { %v2007_v54 = vmul.f32 1.442695, %v1875_v48  ;;  %v9988_v55 = vpop.f32.mrb[6].mxu0  ;;  %v1755_v48 = vld [vmem:[%s16103_s3 + $0x60] sm:$0xff] }
 0x104   : > { %v12990_v57 = vpop.f32.mrb[6].mxu1  ;;  %11494 = vpow2.f32 %v2009_v51  ;;  %v1878_v12 = vmul.f32 %v9988_v55, %v1750_v5  ;;  %v1134_v58 = vpop.f32.mrb[7].mxu0  ;;  %10146 = vmatmul.mubr.msk.f32.gmra.mrb[112].mxu0 %vm653_vm0, %v502_v9  ;;  %v509_v5 = vld [vmem:[%s16104_s4 + $0x3c0] sm:$0xff] }
 0x105   : > { %10354 = vmatmul.mubr.msk.f32.gmra.mrb[112].mxu1 %vm653_vm0, %v502_v9  ;;  %v12994_v59 = vpop.f32.mrb[7].mxu1  ;;  %11496 = vpow2.f32 %v2007_v54  ;;  %v1877_v60 = vmul.f32 %v1749_v52, %v1134_v58  ;;  %10148 = vmatprep.mubr.msk.f32.mxu0 %vm653_vm0, %v503_v53 }
 0x106   : > { %10356 = vmatprep.mubr.msk.f32.mxu1 %vm653_vm0, %v503_v53  ;;  %v11487_v63 = vpop.eup %11486  ;;  %v2013_v0 = vmul.f32 1.442695, %v1878_v12 }
 0x107   : > { %v11489_v24 = vpop.eup %11488  ;;  %2256 = vst [vmem:[#allocation2 + $0x8] sm:$0xff] %v11487_v63  ;;  %v2011_v6 = vmul.f32 1.442695, %v1877_v60  ;;  %v9991_v7 = vpop.f32.mrb[8].mxu0  ;;  %v1758_v60 = vld [vmem:[%s16103_s3 + $0x78] sm:$0xff] }
 0x108   : > { %v13010_v10 = vpop.f32.mrb[8].mxu1  ;;  %2255 = vst [vmem:[#allocation2] sm:$0xff] %v11489_v24  ;;  %11498 = vpow2.f32 %v2013_v0  ;;  %v1880_v14 = vmul.f32 %v9991_v7, %v1752_v62  ;;  %v1144_v18 = vpop.f32.mrb[9].mxu0  ;;  %10149 = vmatmul.mubr.msk.f32.gmra.mrb[114].mxu0 %vm653_vm0, %v504_v17  ;;  %v510_v62 = vld [vmem:[%s16104_s4 + $0x3c8] sm:$0xff]  ;;  %v1757_v0 = vld [vmem:[%s16103_s3 + $0x70] sm:$0xff] }
 0x109   : > { %10357 = vmatmul.mubr.msk.f32.gmra.mrb[114].mxu1 %vm653_vm0, %v504_v17  ;;  %v13014_v19 = vpop.f32.mrb[9].mxu1  ;;  %11500 = vpow2.f32 %v2011_v6  ;;  %v1879_v20 = vmul.f32 %v1751_v3, %v1144_v18  ;;  %10151 = vmatprep.mubr.msk.f32.mxu0 %vm653_vm0, %v505_v23  ;;  %v511_v3 = vld [vmem:[%s16104_s4 + $0x3d0] sm:$0xff] }
 0x10a   : > { %10359 = vmatprep.mubr.msk.f32.mxu1 %vm653_vm0, %v505_v23  ;;  %v11491_v27 = vpop.eup %11490  ;;  %v2017_v13 = vmul.f32 1.442695, %v1880_v14 }
 0x10b   : > { %v11493_v30 = vpop.eup %11492  ;;  %2258 = vst [vmem:[#allocation2 + $0x18] sm:$0xff] %v11491_v27  ;;  %v2015_v33 = vmul.f32 1.442695, %v1879_v20  ;;  %v9994_v34 = vpop.f32.mrb[10].mxu0  ;;  %v512_v27 = vld [vmem:[%s16104_s4 + $0x3d8] sm:$0xff] }
 0x10c   : > { %v13030_v35 = vpop.f32.mrb[10].mxu1  ;;  %2257 = vst [vmem:[#allocation2 + $0x10] sm:$0xff] %v11493_v30  ;;  %11502 = vpow2.f32 %v2017_v13  ;;  %v1882_v37 = vmul.f32 %v9994_v34, %v1754_v25  ;;  %v1154_v38 = vpop.f32.mrb[11].mxu0  ;;  %10152 = vmatmul.mubr.msk.f32.gmra.mrb[116].mxu0 %vm653_vm0, %v506_v26  ;;  %v513_v30 = vld [vmem:[%s16104_s4 + $0x3e0] sm:$0xff] }
 0x10d   : > { %10360 = vmatmul.mubr.msk.f32.gmra.mrb[116].mxu1 %vm653_vm0, %v506_v26  ;;  %v13034_v39 = vpop.f32.mrb[11].mxu1  ;;  %11504 = vpow2.f32 %v2015_v33  ;;  %v1881_v40 = vmul.f32 %v1753_v15, %v1154_v38  ;;  %10154 = vmatprep.mubr.msk.f32.mxu0 %vm653_vm0, %v507_v29  ;;  %v1760_v26 = vld [vmem:[%s16103_s3 + $0x88] sm:$0xff] }
 0x10e   : > { %10362 = vmatprep.mubr.msk.f32.mxu1 %vm653_vm0, %v507_v29  ;;  %v11495_v45 = vpop.eup %11494  ;;  %v2021_v46 = vmul.f32 1.442695, %v1882_v37  ;;  %v1759_v29 = vld [vmem:[%s16103_s3 + $0x80] sm:$0xff] }
 0x10f   : > { %v11497_v9 = vpop.eup %11496  ;;  %2260 = vst [vmem:[#allocation2 + $0x28] sm:$0xff] %v11495_v45  ;;  %v2019_v51 = vmul.f32 1.442695, %v1881_v40  ;;  %v9997_v52 = vpop.f32.mrb[12].mxu0 }
 0x110   : > { %v13050_v53 = vpop.f32.mrb[12].mxu1  ;;  %2259 = vst [vmem:[#allocation2 + $0x20] sm:$0xff] %v11497_v9  ;;  %11506 = vpow2.f32 %v2021_v46  ;;  %v1884_v54 = vmul.f32 %v9997_v52, %v1756_v42  ;;  %v1164_v55 = vpop.f32.mrb[13].mxu0  ;;  %10155 = vmatmul.mubr.msk.f32.gmra.mrb[118].mxu0 %vm653_vm0, %v508_v43  ;;  %v1762_v46 = vld [vmem:[%s16103_s3 + $0x98] sm:$0xff]  ;;  %v515_v52 = vld [vmem:[%s16104_s4 + $0x3f0] sm:$0xff] }
 0x111   : > { %10363 = vmatmul.mubr.msk.f32.gmra.mrb[118].mxu1 %vm653_vm0, %v508_v43  ;;  %v13054_v12 = vpop.f32.mrb[13].mxu1  ;;  %11508 = vpow2.f32 %v2019_v51  ;;  %v1883_v58 = vmul.f32 %v1755_v48, %v1164_v55  ;;  %10157 = vmatprep.mubr.msk.f32.mxu0 %vm653_vm0, %v509_v5  ;;  %v514_v48 = vld [vmem:[%s16104_s4 + $0x3e8] sm:$0xff]  ;;  %v1761_v51 = vld [vmem:[%s16103_s3 + $0x90] sm:$0xff]  ;;  %v11473_v55 = vpop.permute.xlu0 %11472 }
 0x112   : > { %10365 = vmatprep.mubr.msk.f32.mxu1 %vm653_vm0, %v509_v5  ;;  %v11499_v17 = vpop.eup %11498  ;;  %v2025_v63 = vmul.f32 1.442695, %v1884_v54  ;;  %v517_v54 = vld [vmem:[%s16106_s6] sm:$0xff] }
 0x113   : > { %v11501_v23 = vpop.eup %11500  ;;  %2262 = vst [vmem:[#allocation2 + $0x38] sm:$0xff] %v11499_v17  ;;  %v2023_v24 = vmul.f32 1.442695, %v1883_v58  ;;  %v10000_v6 = vpop.f32.mrb[14].mxu0 }
 0x114   : > { %v13070_v7 = vpop.f32.mrb[14].mxu1  ;;  %2261 = vst [vmem:[#allocation2 + $0x30] sm:$0xff] %v11501_v23  ;;  %11510 = vpow2.f32 %v2025_v63  ;;  %v1886_v14 = vmul.f32 %v10000_v6, %v1758_v60  ;;  %v1174_v18 = vpop.f32.mrb[15].mxu0  ;;  %10158 = vmatmul.mubr.msk.f32.gmra.mrb[120].mxu0 %vm653_vm0, %v510_v62  ;;  %v516_v6 = vld [vmem:[%s16104_s4 + $0x3f8] sm:$0xff] }
 0x115   : > { %10366 = vmatmul.mubr.msk.f32.gmra.mrb[120].mxu1 %vm653_vm0, %v510_v62  ;;  %v13074_v20 = vpop.f32.mrb[15].mxu1  ;;  %11512 = vpow2.f32 %v2023_v24  ;;  %v1885_v25 = vmul.f32 %v1757_v0, %v1174_v18  ;;  %10160 = vmatprep.mubr.msk.f32.mxu0 %vm653_vm0, %v511_v3  ;;  %v1764_v24 = vld [vmem:[%s16103_s3 + $0xa8] sm:$0xff] }
 0x116   : > { %10368 = vmatprep.mubr.msk.f32.mxu1 %vm653_vm0, %v511_v3  ;;  %v11503_v13 = vpop.eup %11502  ;;  %v2029_v15 = vmul.f32 1.442695, %v1886_v14  ;;  %v3096_v14 = vmul.f32 %v12931_v8, %v517_v54  ;;  %v518_v8 = vld [vmem:[%s16106_s6 + $0x8] sm:$0xff]  ;;  %v1765_v54 = vld [vmem:[%s16103_s3 + $0xb0] sm:$0xff] }
 0x117   : > { %v11505_v33 = vpop.eup %11504  ;;  %2264 = vst [vmem:[#allocation2 + $0x48] sm:$0xff] %v11503_v13  ;;  %v2027_v34 = vmul.f32 1.442695, %v1885_v25  ;;  %v10003_v37 = vpop.f32.mrb[16].mxu0  ;;  %v11475_v13 = vunpack.i.h.bf16 %v11473_v55 }
 0x118   : > { %v13090_v38 = vpop.f32.mrb[16].mxu1  ;;  %2263 = vst [vmem:[#allocation2 + $0x40] sm:$0xff] %v11505_v33  ;;  %11514 = vpow2.f32 %v2029_v15  ;;  %v1888_v40 = vmul.f32 %v10003_v37, %v1760_v26  ;;  %v1184_v42 = vpop.f32.mrb[17].mxu0  ;;  %10161 = vmatmul.mubr.msk.f32.gmra.mrb[122].mxu0 %vm653_vm0, %v512_v27  ;;  %v1763_v26 = vld [vmem:[%s16103_s3 + $0xa0] sm:$0xff]  ;;  %v11474_v15 = vunpack.i.l.bf16 %v11473_v55 }
 0x119   : > { %10369 = vmatmul.mubr.msk.f32.gmra.mrb[122].mxu1 %vm653_vm0, %v512_v27  ;;  %v13094_v43 = vpop.f32.mrb[17].mxu1  ;;  %11516 = vpow2.f32 %v2027_v34  ;;  %v1887_v45 = vmul.f32 %v1759_v29, %v1184_v42  ;;  %10163 = vmatprep.mubr.msk.f32.mxu0 %vm653_vm0, %v513_v30  ;;  %v519_v27 = vld [vmem:[%s16106_s6 + $0x10] sm:$0xff]  ;;  %v521_v55 = vld [vmem:[%s16106_s6 + $0x20] sm:$0xff] }
 0x11a   : > { %10371 = vmatprep.mubr.msk.f32.mxu1 %vm653_vm0, %v513_v30  ;;  %v11507_v5 = vpop.eup %11506  ;;  %v2033_v9 = vmul.f32 1.442695, %v1888_v40 }
 0x11b   : > { %v11509_v58 = vpop.eup %11508  ;;  %2266 = vst [vmem:[#allocation2 + $0x58] sm:$0xff] %v11507_v5  ;;  %v2031_v60 = vmul.f32 1.442695, %v1887_v45  ;;  %v10006_v62 = vpop.f32.mrb[18].mxu0  ;;  %v3098_v5 = vmul.f32 %v12953_v32, %v519_v27  ;;  %v520_v32 = vld [vmem:[%s16106_s6 + $0x18] sm:$0xff] }
 0x11c   : > { %v13113_v17 = vpop.f32.mrb[18].mxu1  ;;  %2265 = vst [vmem:[#allocation2 + $0x50] sm:$0xff] %v11509_v58  ;;  %11518 = vpow2.f32 %v2033_v9  ;;  %v1890_v63 = vmul.f32 %v10006_v62, %v1762_v46  ;;  %v1194_v0 = vpop.f32.mrb[19].mxu0  ;;  %10164 = vmatmul.mubr.msk.f32.gmra.mrb[124].mxu0 %vm653_vm0, %v514_v48  ;;  %v1766_v46 = vld [vmem:[%s16103_s3 + $0xb8] sm:$0xff]  ;;  %v11277_v58 = vpack.c.bf16 %v11475_v13, %v11474_v15  ;;  %v3099_v13 = vmul.f32 %v12947_v28, %v520_v32  ;;  %v11744_v15 = vld [vmem:[%s16104_s4 + $0x10] sm:$0xff]  ;;  %v522_v28 = vld [vmem:[%s16106_s6 + $0x28] sm:$0xff] }
 0x11d   : > { %10372 = vmatmul.mubr.msk.f32.gmra.mrb[124].mxu1 %vm653_vm0, %v514_v48  ;;  %v13117_v3 = vpop.f32.mrb[19].mxu1  ;;  %11520 = vpow2.f32 %v2031_v60  ;;  %v1889_v23 = vmul.f32 %v1761_v51, %v1194_v0  ;;  %10166 = vmatprep.mubr.msk.f32.mxu0 %vm653_vm0, %v515_v52  ;;  %v11742_v48 = vld [vmem:[%s16104_s4] sm:$0xff] }
 0x11e   : > { %10374 = vmatprep.mubr.msk.f32.mxu1 %vm653_vm0, %v515_v52  ;;  %v11511_v18 = vpop.eup %11510  ;;  %v2037_v25 = vmul.f32 1.442695, %v1890_v63  ;;  %v3097_v52 = vmul.f32 %v12927_v4, %v518_v8 }
 0x11f   : > { %v11513_v29 = vpop.eup %11512  ;;  %2268 = vst [vmem:[#allocation2 + $0x68] sm:$0xff] %v11511_v18  ;;  %v2035_v30 = vmul.f32 1.442695, %v1889_v23  ;;  %v10009_v33 = vpop.f32.mrb[20].mxu0  ;;  %v1768_v18 = vld [vmem:[%s16103_s3 + $0xc8] sm:$0xff] }
 0x120   : > { %v13137_v34 = vpop.f32.mrb[20].mxu1  ;;  %2267 = vst [vmem:[#allocation2 + $0x60] sm:$0xff] %v11513_v29  ;;  %11522 = vpow2.f32 %v2037_v25  ;;  %v1892_v37 = vmul.f32 %v10009_v33, %v1764_v24  ;;  %v1204_v40 = vpop.f32.mrb[21].mxu0  ;;  %10167 = vmatmul.mubr.msk.f32.gmra.mrb[126].mxu0 %vm653_vm0, %v516_v6  ;;  %v11743_v24 = vld [vmem:[%s16104_s4 + $0x8] sm:$0xff]  ;;  %v3100_v25 = vmul.f32 %v12974_v47, %v521_v55  ;;  %v523_v29 = vld [vmem:[%s16106_s6 + $0x30] sm:$0xff] }
 0x121   : > { %10375 = vmatmul.mubr.msk.f32.gmra.mrb[126].mxu1 %vm653_vm0, %v516_v6  ;;  %v13141_v42 = vpop.f32.mrb[21].mxu1  ;;  %11524 = vpow2.f32 %v2035_v30  ;;  %v1891_v45 = vmul.f32 %v1763_v26, %v1204_v40  ;;  %10393 = vmatprep.mubr.msk.f32.mxu0 %vm653_vm0, %v3096_v14  ;;  %v1769_v55 = vld [vmem:[%s16103_s3 + $0xd0] sm:$0xff] }
 0x122   : > { %10601 = vmatprep.mubr.msk.f32.mxu1 %vm653_vm0, %v11742_v48  ;;  %v11515_v9 = vpop.eup %11514  ;;  %v2041_v51 = vmul.f32 1.442695, %v1892_v37 }
 0x123   : > { %v11517_v60 = vpop.eup %11516  ;;  %2270 = vst [vmem:[#allocation2 + $0x78] sm:$0xff] %v11515_v9  ;;  %v2039_v62 = vmul.f32 1.442695, %v1891_v45  ;;  %v10012_v63 = vpop.f32.mrb[22].mxu0  ;;  %v11745_v45 = vld [vmem:[%s16104_s4 + $0x18] sm:$0xff]  ;;  %v3102_v9 = vmul.f32 %v12994_v59, %v523_v29 }
 0x124   : > { %v13162_v0 = vpop.f32.mrb[22].mxu1  ;;  %2269 = vst [vmem:[#allocation2 + $0x70] sm:$0xff] %v11517_v60  ;;  %11526 = vpow2.f32 %v2041_v51  ;;  %v1894_v4 = vmul.f32 %v10012_v63, %v1766_v46  ;;  %v1214_v23 = vpop.f32.mrb[23].mxu0  ;;  %10394 = vmatmul.mubr.msk.f32.vlgmr.msra.gmra.mrb[128].mxu0 %vm653_vm0, %v3097_v52  ;;  %v525_v60 = vld [vmem:[%s16106_s6 + $0x40] sm:$0xff]  ;;  %v524_v59 = vld [vmem:[%s16106_s6 + $0x38] sm:$0xff] }
 0x125   : > { %10602 = vmatmul.mubr.msk.f32.vlgmr.msra.gmra.mrb[128].mxu1 %vm653_vm0, %v11743_v24  ;;  %v13169_v6 = vpop.f32.mrb[23].mxu1  ;;  %11528 = vpow2.f32 %v2039_v62  ;;  %v1893_v14 = vmul.f32 %v1765_v54, %v1214_v23  ;;  %11276 = vmatpush3.bf16.msra.mxu0 %v12735_v21  ;;  %v1767_v21 = vld [vmem:[%s16103_s3 + $0xc0] sm:$0xff]  ;;  %v3101_v54 = vmul.f32 %v12970_v44, %v522_v28 }
 0x126   : > { %10396 = vmatprep.mubr.msk.f32.mxu0 %vm653_vm0, %v3098_v5  ;;  %v11519_v26 = vpop.eup %11518  ;;  %v2045_v27 = vmul.f32 1.442695, %v1894_v4  ;;  %10604 = vmatprep.mubr.msk.f32.mxu1 %vm653_vm0, %v11744_v15  ;;  %v11746_v5 = vld [vmem:[%s16104_s4 + $0x20] sm:$0xff] }
 0x127   : > { %11278 = vmatprep.subr.bf16.mxu0 %v11277_v58  ;;  %v11521_v47 = vpop.eup %11520  ;;  %2272 = vst [vmem:[#allocation2 + $0x88] sm:$0xff] %v11519_v26  ;;  %v2043_v30 = vmul.f32 1.442695, %v1893_v14  ;;  %v10015_v33 = vpop.f32.mrb[24].mxu0  ;;  %11292 = vmatpush3.bf16.msra.mxu1 %v12306_v31  ;;  %v1770_v31 = vld [vmem:[%s16103_s3 + $0xd8] sm:$0xff]  ;;  %v1771_v15 = vld [vmem:[%s16103_s3 + $0xe0] sm:$0xff] }
 0x128   : > { %v13191_v8 = vpop.f32.mrb[24].mxu1  ;;  %2271 = vst [vmem:[#allocation2 + $0x80] sm:$0xff] %v11521_v47  ;;  %11530 = vpow2.f32 %v2045_v27  ;;  %v1896_v37 = vmul.f32 %v10015_v33, %v1768_v18  ;;  %v1224_v40 = vpop.f32.mrb[25].mxu0  ;;  %10397 = vmatmul.mubr.msk.f32.gmra.mrb[130].mxu0 %vm653_vm0, %v3099_v13  ;;  %11294 = vmatprep.subr.bf16.mxu1 %v12321_v36  ;;  %v11748_v18 = vld [vmem:[%s16104_s4 + $0x30] sm:$0xff]  ;;  %v3103_v13 = vmul.f32 %v12990_v57, %v524_v59 }
 0x129   : > { %10605 = vmatmul.mubr.msk.f32.gmra.mrb[130].mxu1 %vm653_vm0, %v11745_v45  ;;  %v13199_v46 = vpop.f32.mrb[25].mxu1  ;;  %11532 = vpow2.f32 %v2043_v30  ;;  %v1895_v48 = vmul.f32 %v1767_v21, %v1224_v40  ;;  %10399 = vmatprep.mubr.msk.f32.mxu0 %vm653_vm0, %v3100_v25  ;;  %v3104_v25 = vmul.f32 %v13014_v19, %v525_v60  ;;  %v527_v21 = vld [vmem:[%s16106_s6 + $0x50] sm:$0xff]  ;;  %v526_v19 = vld [vmem:[%s16106_s6 + $0x48] sm:$0xff] }
 0x12a   : > { %10607 = vmatprep.mubr.msk.f32.mxu1 %vm653_vm0, %v11746_v5  ;;  %v11523_v51 = vpop.eup %11522  ;;  %v2049_v52 = vmul.f32 1.442695, %v1896_v37  ;;  %11280 = vmatpush3.bf16.msra.mxu0 %v11277_v58  ;;  %v11747_v58 = vld [vmem:[%s16104_s4 + $0x28] sm:$0xff]  ;;  %v11749_v37 = vld [vmem:[%s16104_s4 + $0x38] sm:$0xff]  ;;  %v11478_v5 = vpop.permute.xlu1 %11477 }
 0x12b   : > { %v11525_v62 = vpop.eup %11524  ;;  %2274 = vst [vmem:[#allocation2 + $0x98] sm:$0xff] %v11523_v51  ;;  %v2047_v63 = vmul.f32 1.442695, %v1895_v48  ;;  %v10018_v32 = vpop.f32.mrb[26].mxu0  ;;  %11296 = vmatpush3.bf16.msra.mxu1 %v12321_v36  ;;  %v1772_v36 = vld [vmem:[%s16103_s3 + $0xe8] sm:$0xff]  ;;  %v11750_v48 = vld [vmem:[%s16104_s4 + $0x40] sm:$0xff]  ;;  %v11480_v60 = vunpack.i.h.bf16 %v11478_v5 }
 0x12c   : > { %v13221_v44 = vpop.f32.mrb[26].mxu1  ;;  %2273 = vst [vmem:[#allocation2 + $0x90] sm:$0xff] %v11525_v62  ;;  %11534 = vpow2.f32 %v2049_v52  ;;  %v1898_v4 = vmul.f32 %v10018_v32, %v1770_v31  ;;  %v1234_v23 = vpop.f32.mrb[27].mxu0  ;;  %10400 = vmatmul.mubr.msk.f32.gmra.mrb[132].mxu0 %vm653_vm0, %v3101_v54  ;;  %11298 = vmatprep.subr.bf16.mxu1 %v12343_v41  ;;  %v3106_v31 = vmul.f32 %v13034_v39, %v527_v21  ;;  %v1773_v54 = vld [vmem:[%s16103_s3 + $0xf0] sm:$0xff]  ;;  %v11479_v62 = vunpack.i.l.bf16 %v11478_v5  ;;  %v1775_v21 = vld [vmem:[%s16103_s3 + $0x100] sm:$0xff] }
 0x12d   : > { %10608 = vmatmul.mubr.msk.f32.gmra.mrb[132].mxu1 %vm653_vm0, %v11747_v58  ;;  %v13229_v24 = vpop.f32.mrb[27].mxu1  ;;  %11536 = vpow2.f32 %v2047_v63  ;;  %v1897_v14 = vmul.f32 %v1769_v55, %v1234_v23  ;;  %10402 = vmatprep.mubr.msk.f32.mxu0 %vm653_vm0, %v3102_v9  ;;  %v3105_v52 = vmul.f32 %v13010_v10, %v526_v19  ;;  %v529_v55 = vld [vmem:[%s16106_s6 + $0x60] sm:$0xff]  ;;  %v528_v10 = vld [vmem:[%s16106_s6 + $0x58] sm:$0xff]  ;;  %v11751_v58 = vld [vmem:[%s16104_s4 + $0x48] sm:$0xff] }
 0x12e   : > { %10610 = vmatprep.mubr.msk.f32.mxu1 %vm653_vm0, %v11748_v18  ;;  %v11527_v26 = vpop.eup %11526  ;;  %v2053_v27 = vmul.f32 1.442695, %v1898_v4 }
 0x12f   : > { %v11529_v29 = vpop.eup %11528  ;;  %2276 = vst [vmem:[#allocation2 + $0xa8] sm:$0xff] %v11527_v26  ;;  %v2051_v47 = vmul.f32 1.442695, %v1897_v14  ;;  %v10021_v30 = vpop.f32.mrb[28].mxu0  ;;  %11300 = vmatpush3.bf16.msra.mxu1 %v12343_v41  ;;  %v1774_v41 = vld [vmem:[%s16103_s3 + $0xf8] sm:$0xff]  ;;  %v3108_v26 = vmul.f32 %v13054_v12, %v529_v55  ;;  %v530_v12 = vld [vmem:[%s16106_s6 + $0x68] sm:$0xff] }
 0x130   : > { %v13251_v33 = vpop.f32.mrb[28].mxu1  ;;  %2275 = vst [vmem:[#allocation2 + $0xa0] sm:$0xff] %v11529_v29  ;;  %11538 = vpow2.f32 %v2053_v27  ;;  %v1900_v57 = vmul.f32 %v10021_v30, %v1772_v36  ;;  %v1244_v28 = vpop.f32.mrb[29].mxu0  ;;  %10403 = vmatmul.mubr.msk.f32.gmra.mrb[134].mxu0 %vm653_vm0, %v3103_v13  ;;  %11302 = vmatprep.subr.bf16.mxu1 %v12512_v22  ;;  %v11281_v36 = vpack.c.bf16 %v11480_v60, %v11479_v62  ;;  %v531_v29 = vld [vmem:[%s16106_s6 + $0x70] sm:$0xff]  ;;  %v533_v55 = vld [vmem:[%s16106_s6 + $0x80] sm:$0xff] }
 0x131   : > { %10611 = vmatmul.mubr.msk.f32.gmra.mrb[134].mxu1 %vm653_vm0, %v11749_v37  ;;  %v13259_v40 = vpop.f32.mrb[29].mxu1  ;;  %11540 = vpow2.f32 %v2051_v47  ;;  %v1899_v45 = vmul.f32 %v1771_v15, %v1244_v28  ;;  %10405 = vmatprep.mubr.msk.f32.mxu0 %vm653_vm0, %v3104_v25  ;;  %v11752_v25 = vld [vmem:[%s16104_s4 + $0x50] sm:$0xff]  ;;  %v3107_v15 = vmul.f32 %v13030_v35, %v528_v10  ;;  %v11753_v37 = vld [vmem:[%s16104_s4 + $0x58] sm:$0xff]  ;;  %v3110_v5 = vmul.f32 %v13074_v20, %v531_v29  ;;  %v11755_v10 = vld [vmem:[%s16104_s4 + $0x68] sm:$0xff] }
 0x132   : > { %10613 = vmatprep.mubr.msk.f32.mxu1 %vm653_vm0, %v11750_v48  ;;  %v11531_v9 = vpop.eup %11530  ;;  %v2057_v51 = vmul.f32 1.442695, %v1900_v57  ;;  %11282 = vmatprep.subr.bf16.mxu0 %v11281_v36  ;;  %v1778_v48 = vld [vmem:[%s16103_s3 + $0x118] sm:$0xff] }
 0x133   : > { %v11533_v63 = vpop.eup %11532  ;;  %2278 = vst [vmem:[#allocation2 + $0xb8] sm:$0xff] %v11531_v9  ;;  %v2055_v39 = vmul.f32 1.442695, %v1899_v45  ;;  %v10024_v32 = vpop.f32.mrb[30].mxu0  ;;  %11304 = vmatpush3.bf16.msra.mxu1 %v12512_v22  ;;  %v1776_v22 = vld [vmem:[%s16103_s3 + $0x108] sm:$0xff]  ;;  %11284 = vmatpush3.bf16.msra.mxu0 %v11281_v36  ;;  %v532_v20 = vld [vmem:[%s16106_s6 + $0x78] sm:$0xff] }
 0x134   : > { %v13281_v59 = vpop.f32.mrb[30].mxu1  ;;  %2277 = vst [vmem:[#allocation2 + $0xb0] sm:$0xff] %v11533_v63  ;;  %11542 = vpow2.f32 %v2057_v51  ;;  %v1902_v4 = vmul.f32 %v10024_v32, %v1774_v41  ;;  %v1254_v23 = vpop.f32.mrb[31].mxu0  ;;  %10406 = vmatmul.mubr.msk.f32.gmra.mrb[136].mxu0 %vm653_vm0, %v3105_v52  ;;  %v3109_v52 = vmul.f32 %v13050_v53, %v530_v12  ;;  %v11756_v36 = vld [vmem:[%s16104_s4 + $0x70] sm:$0xff] }
 0x135   : > { %10614 = vmatmul.mubr.msk.f32.gmra.mrb[136].mxu1 %vm653_vm0, %v11751_v58  ;;  %v13289_v14 = vpop.f32.mrb[31].mxu1  ;;  %11544 = vpow2.f32 %v2055_v39  ;;  %v1901_v18 = vmul.f32 %v1773_v54, %v1254_v23  ;;  %10408 = vmatprep.mubr.msk.f32.mxu0 %vm653_vm0, %v3106_v31  ;;  %v11754_v31 = vld [vmem:[%s16104_s4 + $0x60] sm:$0xff]  ;;  %v1777_v54 = vld [vmem:[%s16103_s3 + $0x110] sm:$0xff]  ;;  %v1780_v58 = vld [vmem:[%s16103_s3 + $0x128] sm:$0xff] }
 0x136   : > { %10616 = vmatprep.mubr.msk.f32.mxu1 %vm653_vm0, %v11752_v25  ;;  %v11535_v27 = vpop.eup %11534  ;;  %v2061_v13 = vmul.f32 1.442695, %v1902_v4 }
 0x137   : > { %v11537_v47 = vpop.eup %11536  ;;  %2280 = vst [vmem:[#allocation2 + $0xc8] sm:$0xff] %v11535_v27  ;;  %v2059_v30 = vmul.f32 1.442695, %v1901_v18  ;;  %v10027_v19 = vpop.f32.mrb[32].mxu0  ;;  %v3112_v18 = vmul.f32 %v13094_v43, %v533_v55  ;;  %v1779_v27 = vld [vmem:[%s16103_s3 + $0x120] sm:$0xff]  ;;  %v534_v43 = vld [vmem:[%s16106_s6 + $0x88] sm:$0xff] }
 0x138   : > { %v13310_v57 = vpop.f32.mrb[32].mxu1  ;;  %2279 = vst [vmem:[#allocation2 + $0xc0] sm:$0xff] %v11537_v47  ;;  %11546 = vpow2.f32 %v2061_v13  ;;  %v1904_v35 = vmul.f32 %v10027_v19, %v1776_v22  ;;  %v1264_v28 = vpop.f32.mrb[33].mxu0  ;;  %10409 = vmatmul.mubr.msk.f32.gmra.mrb[138].mxu0 %vm653_vm0, %v3107_v15  ;;  %v535_v13 = vld [vmem:[%s16106_s6 + $0x90] sm:$0xff]  ;;  %v11757_v19 = vld [vmem:[%s16104_s4 + $0x78] sm:$0xff] }
 0x139   : > { %10617 = vmatmul.mubr.msk.f32.gmra.mrb[138].mxu1 %vm653_vm0, %v11753_v37  ;;  %v13317_v45 = vpop.f32.mrb[33].mxu1  ;;  %11548 = vpow2.f32 %v2059_v30  ;;  %v1903_v41 = vmul.f32 %v1775_v21, %v1264_v28  ;;  %10411 = vmatprep.mubr.msk.f32.mxu0 %vm653_vm0, %v3108_v26  ;;  %v3111_v26 = vmul.f32 %v13070_v7, %v532_v20  ;;  %v1782_v28 = vld [vmem:[%s16103_s3 + $0x138] sm:$0xff]  ;;  %v11758_v37 = vld [vmem:[%s16104_s4 + $0x80] sm:$0xff] }
 0x13a   : > { %10619 = vmatprep.mubr.msk.f32.mxu1 %vm653_vm0, %v11754_v31  ;;  %v11539_v9 = vpop.eup %11538  ;;  %v2065_v51 = vmul.f32 1.442695, %v1904_v35 }
 0x13b   : > { %v11541_v60 = vpop.eup %11540  ;;  %2282 = vst [vmem:[#allocation2 + $0xd8] sm:$0xff] %v11539_v9  ;;  %v2063_v62 = vmul.f32 1.442695, %v1903_v41  ;;  %v10030_v63 = vpop.f32.mrb[34].mxu0  ;;  %v3114_v41 = vmul.f32 %v13117_v3, %v535_v13  ;;  %v1781_v9 = vld [vmem:[%s16103_s3 + $0x130] sm:$0xff]  ;;  %v536_v3 = vld [vmem:[%s16106_s6 + $0x98] sm:$0xff] }
 0x13c   : > { %v13338_v39 = vpop.f32.mrb[34].mxu1  ;;  %2281 = vst [vmem:[#allocation2 + $0xd0] sm:$0xff] %v11541_v60  ;;  %11550 = vpow2.f32 %v2065_v51  ;;  %v1906_v53 = vmul.f32 %v10030_v63, %v1778_v48  ;;  %v1274_v32 = vpop.f32.mrb[35].mxu0  ;;  %10412 = vmatmul.mubr.msk.f32.gmra.mrb[140].mxu0 %vm653_vm0, %v3109_v52  ;;  %v537_v51 = vld [vmem:[%s16106_s6 + $0xa0] sm:$0xff]  ;;  %v11759_v63 = vld [vmem:[%s16104_s4 + $0x88] sm:$0xff] }
 0x13d   : > { %10620 = vmatmul.mubr.msk.f32.gmra.mrb[140].mxu1 %vm653_vm0, %v11755_v10  ;;  %v13345_v4 = vpop.f32.mrb[35].mxu1  ;;  %11552 = vpow2.f32 %v2063_v62  ;;  %v1905_v23 = vmul.f32 %v1777_v54, %v1274_v32  ;;  %10414 = vmatprep.mubr.msk.f32.mxu0 %vm653_vm0, %v3110_v5  ;;  %v3113_v5 = vmul.f32 %v13090_v38, %v534_v43  ;;  %v1784_v32 = vld [vmem:[%s16103_s3 + $0x148] sm:$0xff]  ;;  %v11760_v10 = vld [vmem:[%s16104_s4 + $0x90] sm:$0xff] }
 0x13e   : > { %10622 = vmatprep.mubr.msk.f32.mxu1 %vm653_vm0, %v11756_v36  ;;  %v11543_v22 = vpop.eup %11542  ;;  %v2069_v25 = vmul.f32 1.442695, %v1906_v53 }
 0x13f   : > { %v11545_v15 = vpop.eup %11544  ;;  %2284 = vst [vmem:[#allocation2 + $0xe8] sm:$0xff] %v11543_v22  ;;  %v2067_v21 = vmul.f32 1.442695, %v1905_v23  ;;  %v10033_v29 = vpop.f32.mrb[36].mxu0  ;;  %v3116_v23 = vmul.f32 %v13141_v42, %v537_v51  ;;  %v1783_v22 = vld [vmem:[%s16103_s3 + $0x140] sm:$0xff]  ;;  %v538_v42 = vld [vmem:[%s16106_s6 + $0xa8] sm:$0xff] }
 0x140   : > { %v13366_v47 = vpop.f32.mrb[36].mxu1  ;;  %2283 = vst [vmem:[#allocation2 + $0xe0] sm:$0xff] %v11545_v15  ;;  %11554 = vpow2.f32 %v2069_v25  ;;  %v1908_v7 = vmul.f32 %v10033_v29, %v1780_v58  ;;  %v1284_v30 = vpop.f32.mrb[37].mxu0  ;;  %10415 = vmatmul.mubr.msk.f32.gmra.mrb[142].mxu0 %vm653_vm0, %v3111_v26  ;;  %v539_v25 = vld [vmem:[%s16106_s6 + $0xb0] sm:$0xff]  ;;  %v11761_v29 = vld [vmem:[%s16104_s4 + $0x98] sm:$0xff] }
 0x141   : > { %10623 = vmatmul.mubr.msk.f32.gmra.mrb[142].mxu1 %vm653_vm0, %v11757_v19  ;;  %v13373_v12 = vpop.f32.mrb[37].mxu1  ;;  %11556 = vpow2.f32 %v2067_v21  ;;  %v1907_v35 = vmul.f32 %v1779_v27, %v1284_v30  ;;  %10417 = vmatprep.mubr.msk.f32.mxu0 %vm653_vm0, %v3112_v18  ;;  %v3115_v18 = vmul.f32 %v13113_v17, %v536_v3  ;;  %v1786_v30 = vld [vmem:[%s16103_s3 + $0x158] sm:$0xff]  ;;  %v11762_v19 = vld [vmem:[%s16104_s4 + $0xa0] sm:$0xff] }
 0x142   : > { %10625 = vmatprep.mubr.msk.f32.mxu1 %vm653_vm0, %v11758_v37  ;;  %v11547_v48 = vpop.eup %11546  ;;  %v2073_v31 = vmul.f32 1.442695, %v1908_v7 }
 0x143   : > { %v11549_v52 = vpop.eup %11548  ;;  %2286 = vst [vmem:[#allocation2 + $0xf8] sm:$0xff] %v11547_v48  ;;  %v2071_v54 = vmul.f32 1.442695, %v1907_v35  ;;  %v10036_v55 = vpop.f32.mrb[38].mxu0  ;;  %v3118_v35 = vmul.f32 %v13169_v6, %v539_v25  ;;  %v1785_v48 = vld [vmem:[%s16103_s3 + $0x150] sm:$0xff]  ;;  %v540_v6 = vld [vmem:[%s16106_s6 + $0xb8] sm:$0xff] }
 0x144   : > { %v13394_v60 = vpop.f32.mrb[38].mxu1  ;;  %2285 = vst [vmem:[#allocation2 + $0xf0] sm:$0xff] %v11549_v52  ;;  %11558 = vpow2.f32 %v2073_v31  ;;  %v1910_v38 = vmul.f32 %v10036_v55, %v1782_v28  ;;  %v1294_v62 = vpop.f32.mrb[39].mxu0  ;;  %10418 = vmatmul.mubr.msk.f32.gmra.mrb[144].mxu0 %vm653_vm0, %v3113_v5  ;;  %v541_v31 = vld [vmem:[%s16106_s6 + $0xc0] sm:$0xff]  ;;  %v11763_v55 = vld [vmem:[%s16104_s4 + $0xa8] sm:$0xff] }
 0x145   : > { %10626 = vmatmul.mubr.msk.f32.gmra.mrb[144].mxu1 %vm653_vm0, %v11759_v63  ;;  %v13401_v20 = vpop.f32.mrb[39].mxu1  ;;  %11560 = vpow2.f32 %v2071_v54  ;;  %v1909_v53 = vmul.f32 %v1781_v9, %v1294_v62  ;;  %10420 = vmatprep.mubr.msk.f32.mxu0 %vm653_vm0, %v3114_v41  ;;  %v3117_v41 = vmul.f32 %v13137_v34, %v538_v42  ;;  %v1788_v62 = vld [vmem:[%s16103_s3 + $0x168] sm:$0xff]  ;;  %v11764_v63 = vld [vmem:[%s16104_s4 + $0xb0] sm:$0xff] }
 0x146   : > { %10628 = vmatprep.mubr.msk.f32.mxu1 %vm653_vm0, %v11760_v10  ;;  %v11551_v58 = vpop.eup %11550  ;;  %v2077_v36 = vmul.f32 1.442695, %v1910_v38 }
 0x147   : > { %v11553_v26 = vpop.eup %11552  ;;  %2288 = vst [vmem:[#allocation2 + $0x108] sm:$0xff] %v11551_v58  ;;  %v2075_v27 = vmul.f32 1.442695, %v1909_v53  ;;  %v10039_v13 = vpop.f32.mrb[40].mxu0  ;;  %v3120_v53 = vmul.f32 %v13199_v46, %v541_v31  ;;  %v1787_v58 = vld [vmem:[%s16103_s3 + $0x160] sm:$0xff]  ;;  %v542_v46 = vld [vmem:[%s16106_s6 + $0xc8] sm:$0xff] }
 0x148   : > { %v13422_v15 = vpop.f32.mrb[40].mxu1  ;;  %2287 = vst [vmem:[#allocation2 + $0x100] sm:$0xff] %v11553_v26  ;;  %11562 = vpow2.f32 %v2077_v36  ;;  %v1912_v17 = vmul.f32 %v10039_v13, %v1784_v32  ;;  %v1304_v21 = vpop.f32.mrb[41].mxu0  ;;  %10421 = vmatmul.mubr.msk.f32.gmra.mrb[146].mxu0 %vm653_vm0, %v3115_v18  ;;  %v543_v36 = vld [vmem:[%s16106_s6 + $0xd0] sm:$0xff]  ;;  %v11765_v13 = vld [vmem:[%s16104_s4 + $0xb8] sm:$0xff] }
 0x149   : > { %10629 = vmatmul.mubr.msk.f32.gmra.mrb[146].mxu1 %vm653_vm0, %v11761_v29  ;;  %v13429_v43 = vpop.f32.mrb[41].mxu1  ;;  %11564 = vpow2.f32 %v2075_v27  ;;  %v1911_v7 = vmul.f32 %v1783_v22, %v1304_v21  ;;  %10423 = vmatprep.mubr.msk.f32.mxu0 %vm653_vm0, %v3116_v23  ;;  %v3119_v23 = vmul.f32 %v13162_v0, %v540_v6  ;;  %v1790_v21 = vld [vmem:[%s16103_s3 + $0x178] sm:$0xff]  ;;  %v11766_v29 = vld [vmem:[%s16104_s4 + $0xc0] sm:$0xff] }
 0x14a   : > { %10631 = vmatprep.mubr.msk.f32.mxu1 %vm653_vm0, %v11762_v19  ;;  %v11555_v28 = vpop.eup %11554  ;;  %v2081_v37 = vmul.f32 1.442695, %v1912_v17 }
 0x14b   : > { %v11557_v5 = vpop.eup %11556  ;;  %2290 = vst [vmem:[#allocation2 + $0x118] sm:$0xff] %v11555_v28  ;;  %v2079_v9 = vmul.f32 1.442695, %v1911_v7  ;;  %v10042_v51 = vpop.f32.mrb[42].mxu0  ;;  %v3122_v7 = vmul.f32 %v13229_v24, %v543_v36  ;;  %v1789_v28 = vld [vmem:[%s16103_s3 + $0x170] sm:$0xff]  ;;  %v544_v24 = vld [vmem:[%s16106_s6 + $0xd8] sm:$0xff] }
 0x14c   : > { %v13450_v52 = vpop.f32.mrb[42].mxu1  ;;  %2289 = vst [vmem:[#allocation2 + $0x110] sm:$0xff] %v11557_v5  ;;  %11566 = vpow2.f32 %v2081_v37  ;;  %v1914_v34 = vmul.f32 %v10042_v51, %v1786_v30  ;;  %v1314_v54 = vpop.f32.mrb[43].mxu0  ;;  %10424 = vmatmul.mubr.msk.f32.gmra.mrb[148].mxu0 %vm653_vm0, %v3117_v41  ;;  %v545_v37 = vld [vmem:[%s16106_s6 + $0xe0] sm:$0xff]  ;;  %v11767_v51 = vld [vmem:[%s16104_s4 + $0xc8] sm:$0xff] }
 0x14d   : > { %10632 = vmatmul.mubr.msk.f32.gmra.mrb[148].mxu1 %vm653_vm0, %v11763_v55  ;;  %v13457_v3 = vpop.f32.mrb[43].mxu1  ;;  %11568 = vpow2.f32 %v2079_v9  ;;  %v1913_v38 = vmul.f32 %v1785_v48, %v1314_v54  ;;  %10426 = vmatprep.mubr.msk.f32.mxu0 %vm653_vm0, %v3118_v35  ;;  %v3121_v35 = vmul.f32 %v13191_v8, %v542_v46  ;;  %v1792_v54 = vld [vmem:[%s16103_s3 + $0x188] sm:$0xff]  ;;  %v11768_v55 = vld [vmem:[%s16104_s4 + $0xd0] sm:$0xff] }
 0x14e   : > { %10634 = vmatprep.mubr.msk.f32.mxu1 %vm653_vm0, %v11764_v63  ;;  %v11559_v32 = vpop.eup %11558  ;;  %v2085_v10 = vmul.f32 1.442695, %v1914_v34 }
 0x14f   : > { %v11561_v18 = vpop.eup %11560  ;;  %2292 = vst [vmem:[#allocation2 + $0x128] sm:$0xff] %v11559_v32  ;;  %v2083_v22 = vmul.f32 1.442695, %v1913_v38  ;;  %v10045_v25 = vpop.f32.mrb[44].mxu0  ;;  %v3124_v38 = vmul.f32 %v13259_v40, %v545_v37  ;;  %v1791_v32 = vld [vmem:[%s16103_s3 + $0x180] sm:$0xff]  ;;  %v546_v40 = vld [vmem:[%s16106_s6 + $0xe8] sm:$0xff] }
 0x150   : > { %v13478_v26 = vpop.f32.mrb[44].mxu1  ;;  %2291 = vst [vmem:[#allocation2 + $0x120] sm:$0xff] %v11561_v18  ;;  %11570 = vpow2.f32 %v2085_v10  ;;  %v1916_v0 = vmul.f32 %v10045_v25, %v1788_v62  ;;  %v1324_v27 = vpop.f32.mrb[45].mxu0  ;;  %10427 = vmatmul.mubr.msk.f32.gmra.mrb[150].mxu0 %vm653_vm0, %v3119_v23  ;;  %v547_v10 = vld [vmem:[%s16106_s6 + $0xf0] sm:$0xff]  ;;  %v11769_v25 = vld [vmem:[%s16104_s4 + $0xd8] sm:$0xff] }
 0x151   : > { %10635 = vmatmul.mubr.msk.f32.gmra.mrb[150].mxu1 %vm653_vm0, %v11765_v13  ;;  %v13485_v42 = vpop.f32.mrb[45].mxu1  ;;  %11572 = vpow2.f32 %v2083_v22  ;;  %v1915_v17 = vmul.f32 %v1787_v58, %v1324_v27  ;;  %10429 = vmatprep.mubr.msk.f32.mxu0 %vm653_vm0, %v3120_v53  ;;  %v3123_v53 = vmul.f32 %v13221_v44, %v544_v24  ;;  %v1794_v27 = vld [vmem:[%s16103_s3 + $0x198] sm:$0xff]  ;;  %v11770_v13 = vld [vmem:[%s16104_s4 + $0xe0] sm:$0xff] }
 0x152   : > { %10637 = vmatprep.mubr.msk.f32.mxu1 %vm653_vm0, %v11766_v29  ;;  %v11563_v30 = vpop.eup %11562  ;;  %v2089_v19 = vmul.f32 1.442695, %v1916_v0 }
 0x153   : > { %v11565_v41 = vpop.eup %11564  ;;  %2294 = vst [vmem:[#allocation2 + $0x138] sm:$0xff] %v11563_v30  ;;  %v2087_v48 = vmul.f32 1.442695, %v1915_v17  ;;  %v10048_v31 = vpop.f32.mrb[46].mxu0  ;;  %v3126_v17 = vmul.f32 %v13289_v14, %v547_v10  ;;  %v1793_v30 = vld [vmem:[%s16103_s3 + $0x190] sm:$0xff]  ;;  %v548_v14 = vld [vmem:[%s16106_s6 + $0xf8] sm:$0xff] }
 0x154   : > { %v13506_v5 = vpop.f32.mrb[46].mxu1  ;;  %2293 = vst [vmem:[#allocation2 + $0x130] sm:$0xff] %v11565_v41  ;;  %11574 = vpow2.f32 %v2089_v19  ;;  %v1918_v8 = vmul.f32 %v10048_v31, %v1790_v21  ;;  %v1334_v9 = vpop.f32.mrb[47].mxu0  ;;  %10430 = vmatmul.mubr.msk.f32.gmra.mrb[152].mxu0 %vm653_vm0, %v3121_v35  ;;  %v549_v19 = vld [vmem:[%s16106_s6 + $0x100] sm:$0xff]  ;;  %v11771_v31 = vld [vmem:[%s16104_s4 + $0xe8] sm:$0xff] }
 0x155   : > { %10638 = vmatmul.mubr.msk.f32.gmra.mrb[152].mxu1 %vm653_vm0, %v11767_v51  ;;  %v13513_v6 = vpop.f32.mrb[47].mxu1  ;;  %11576 = vpow2.f32 %v2087_v48  ;;  %v1917_v34 = vmul.f32 %v1789_v28, %v1334_v9  ;;  %10432 = vmatprep.mubr.msk.f32.mxu0 %vm653_vm0, %v3122_v7  ;;  %v3125_v7 = vmul.f32 %v13251_v33, %v546_v40  ;;  %v1796_v9 = vld [vmem:[%s16103_s3 + $0x1a8] sm:$0xff]  ;;  %v11772_v51 = vld [vmem:[%s16104_s4 + $0xf0] sm:$0xff] }
 0x156   : > { %10640 = vmatprep.mubr.msk.f32.mxu1 %vm653_vm0, %v11768_v55  ;;  %v11567_v62 = vpop.eup %11566  ;;  %v2093_v63 = vmul.f32 1.442695, %v1918_v8 }
 0x157   : > { %v11569_v23 = vpop.eup %11568  ;;  %2296 = vst [vmem:[#allocation2 + $0x148] sm:$0xff] %v11567_v62  ;;  %v2091_v58 = vmul.f32 1.442695, %v1917_v34  ;;  %v10051_v36 = vpop.f32.mrb[48].mxu0  ;;  %v3128_v34 = vmul.f32 %v13317_v45, %v549_v19  ;;  %v1795_v62 = vld [vmem:[%s16103_s3 + $0x1a0] sm:$0xff]  ;;  %v550_v45 = vld [vmem:[%s16106_s6 + $0x108] sm:$0xff] }
 0x158   : > { %v13534_v18 = vpop.f32.mrb[48].mxu1  ;;  %2295 = vst [vmem:[#allocation2 + $0x140] sm:$0xff] %v11569_v23  ;;  %11578 = vpow2.f32 %v2093_v63  ;;  %v1920_v44 = vmul.f32 %v10051_v36, %v1792_v54  ;;  %v1344_v22 = vpop.f32.mrb[49].mxu0  ;;  %10433 = vmatmul.mubr.msk.f32.gmra.mrb[154].mxu0 %vm653_vm0, %v3123_v53  ;;  %v551_v63 = vld [vmem:[%s16106_s6 + $0x110] sm:$0xff]  ;;  %v11773_v36 = vld [vmem:[%s16104_s4 + $0xf8] sm:$0xff] }
 0x159   : > { %10641 = vmatmul.mubr.msk.f32.gmra.mrb[154].mxu1 %vm653_vm0, %v11769_v25  ;;  %v13541_v46 = vpop.f32.mrb[49].mxu1  ;;  %11580 = vpow2.f32 %v2091_v58  ;;  %v1919_v0 = vmul.f32 %v1791_v32, %v1344_v22  ;;  %10435 = vmatprep.mubr.msk.f32.mxu0 %vm653_vm0, %v3124_v38  ;;  %v3127_v38 = vmul.f32 %v13281_v59, %v548_v14  ;;  %v1798_v22 = vld [vmem:[%s16103_s3 + $0x1b8] sm:$0xff]  ;;  %v11774_v25 = vld [vmem:[%s16104_s4 + $0x100] sm:$0xff] }
 0x15a   : > { %10643 = vmatprep.mubr.msk.f32.mxu1 %vm653_vm0, %v11770_v13  ;;  %v11571_v21 = vpop.eup %11570  ;;  %v2097_v29 = vmul.f32 1.442695, %v1920_v44 }
 0x15b   : > { %v11573_v35 = vpop.eup %11572  ;;  %2298 = vst [vmem:[#allocation2 + $0x158] sm:$0xff] %v11571_v21  ;;  %v2095_v28 = vmul.f32 1.442695, %v1919_v0  ;;  %v10054_v37 = vpop.f32.mrb[50].mxu0  ;;  %v3130_v0 = vmul.f32 %v13345_v4, %v551_v63  ;;  %v1797_v21 = vld [vmem:[%s16103_s3 + $0x1b0] sm:$0xff]  ;;  %v552_v4 = vld [vmem:[%s16106_s6 + $0x118] sm:$0xff] }
 0x15c   : > { %v13562_v41 = vpop.f32.mrb[50].mxu1  ;;  %2297 = vst [vmem:[#allocation2 + $0x150] sm:$0xff] %v11573_v35  ;;  %11582 = vpow2.f32 %v2097_v29  ;;  %v1922_v33 = vmul.f32 %v10054_v37, %v1794_v27  ;;  %v1354_v48 = vpop.f32.mrb[51].mxu0  ;;  %10436 = vmatmul.mubr.msk.f32.gmra.mrb[156].mxu0 %vm653_vm0, %v3125_v7  ;;  %v553_v29 = vld [vmem:[%s16106_s6 + $0x120] sm:$0xff]  ;;  %v11775_v37 = vld [vmem:[%s16104_s4 + $0x108] sm:$0xff] }
 0x15d   : > { %10644 = vmatmul.mubr.msk.f32.gmra.mrb[156].mxu1 %vm653_vm0, %v11771_v31  ;;  %v13569_v24 = vpop.f32.mrb[51].mxu1  ;;  %11584 = vpow2.f32 %v2095_v28  ;;  %v1921_v8 = vmul.f32 %v1793_v30, %v1354_v48  ;;  %10438 = vmatprep.mubr.msk.f32.mxu0 %vm653_vm0, %v3126_v17  ;;  %v3129_v17 = vmul.f32 %v13310_v57, %v550_v45  ;;  %v1800_v48 = vld [vmem:[%s16103_s3 + $0x1c8] sm:$0xff]  ;;  %v11776_v31 = vld [vmem:[%s16104_s4 + $0x110] sm:$0xff] }
 0x15e   : > { %10646 = vmatprep.mubr.msk.f32.mxu1 %vm653_vm0, %v11772_v51  ;;  %v11575_v54 = vpop.eup %11574  ;;  %v2101_v55 = vmul.f32 1.442695, %v1922_v33 }
 0x15f   : > { %v11577_v53 = vpop.eup %11576  ;;  %2300 = vst [vmem:[#allocation2 + $0x168] sm:$0xff] %v11575_v54  ;;  %v2099_v32 = vmul.f32 1.442695, %v1921_v8  ;;  %v10057_v10 = vpop.f32.mrb[52].mxu0  ;;  %v3132_v8 = vmul.f32 %v13373_v12, %v553_v29  ;;  %v1799_v54 = vld [vmem:[%s16103_s3 + $0x1c0] sm:$0xff]  ;;  %v554_v12 = vld [vmem:[%s16106_s6 + $0x128] sm:$0xff] }
 0x160   : > { %v13590_v23 = vpop.f32.mrb[52].mxu1  ;;  %2299 = vst [vmem:[#allocation2 + $0x160] sm:$0xff] %v11577_v53  ;;  %11586 = vpow2.f32 %v2101_v55  ;;  %v1924_v59 = vmul.f32 %v10057_v10, %v1796_v9  ;;  %v1364_v58 = vpop.f32.mrb[53].mxu0  ;;  %10439 = vmatmul.mubr.msk.f32.gmra.mrb[158].mxu0 %vm653_vm0, %v3127_v38  ;;  %v555_v55 = vld [vmem:[%s16106_s6 + $0x130] sm:$0xff]  ;;  %v11777_v10 = vld [vmem:[%s16104_s4 + $0x118] sm:$0xff] }
 0x161   : > { %10647 = vmatmul.mubr.msk.f32.gmra.mrb[158].mxu1 %vm653_vm0, %v11773_v36  ;;  %v13597_v40 = vpop.f32.mrb[53].mxu1  ;;  %11588 = vpow2.f32 %v2099_v32  ;;  %v1923_v44 = vmul.f32 %v1795_v62, %v1364_v58  ;;  %10441 = vmatprep.mubr.msk.f32.mxu0 %vm653_vm0, %v3128_v34  ;;  %v3131_v34 = vmul.f32 %v13338_v39, %v552_v4  ;;  %v1802_v58 = vld [vmem:[%s16103_s3 + $0x1d8] sm:$0xff]  ;;  %v11778_v36 = vld [vmem:[%s16104_s4 + $0x120] sm:$0xff] }
 0x162   : > { %10649 = vmatprep.mubr.msk.f32.mxu1 %vm653_vm0, %v11774_v25  ;;  %v11579_v27 = vpop.eup %11578  ;;  %v2105_v13 = vmul.f32 1.442695, %v1924_v59 }
 0x163   : > { %v11581_v7 = vpop.eup %11580  ;;  %2302 = vst [vmem:[#allocation2 + $0x178] sm:$0xff] %v11579_v27  ;;  %v2103_v30 = vmul.f32 1.442695, %v1923_v44  ;;  %v10060_v19 = vpop.f32.mrb[54].mxu0  ;;  %v3134_v44 = vmul.f32 %v13401_v20, %v555_v55  ;;  %v1801_v27 = vld [vmem:[%s16103_s3 + $0x1d0] sm:$0xff]  ;;  %v556_v20 = vld [vmem:[%s16106_s6 + $0x138] sm:$0xff] }
 0x164   : > { %v13618_v35 = vpop.f32.mrb[54].mxu1  ;;  %2301 = vst [vmem:[#allocation2 + $0x170] sm:$0xff] %v11581_v7  ;;  %11590 = vpow2.f32 %v2105_v13  ;;  %v1926_v57 = vmul.f32 %v10060_v19, %v1798_v22  ;;  %v1374_v28 = vpop.f32.mrb[55].mxu0  ;;  %10442 = vmatmul.mubr.msk.f32.gmra.mrb[160].mxu0 %vm653_vm0, %v3129_v17  ;;  %v557_v13 = vld [vmem:[%s16106_s6 + $0x140] sm:$0xff]  ;;  %v11779_v19 = vld [vmem:[%s16104_s4 + $0x128] sm:$0xff] }
 0x165   : > { %10650 = vmatmul.mubr.msk.f32.gmra.mrb[160].mxu1 %vm653_vm0, %v11775_v37  ;;  %v13625_v14 = vpop.f32.mrb[55].mxu1  ;;  %11592 = vpow2.f32 %v2103_v30  ;;  %v1925_v33 = vmul.f32 %v1797_v21, %v1374_v28  ;;  %10444 = vmatprep.mubr.msk.f32.mxu0 %vm653_vm0, %v3130_v0  ;;  %v3133_v0 = vmul.f32 %v13366_v47, %v554_v12  ;;  %v1804_v28 = vld [vmem:[%s16103_s3 + $0x1e8] sm:$0xff]  ;;  %v11780_v37 = vld [vmem:[%s16104_s4 + $0x130] sm:$0xff] }
 0x166   : > { %10652 = vmatprep.mubr.msk.f32.mxu1 %vm653_vm0, %v11776_v31  ;;  %v11583_v9 = vpop.eup %11582  ;;  %v2109_v51 = vmul.f32 1.442695, %v1926_v57 }
 0x167   : > { %v11585_v38 = vpop.eup %11584  ;;  %2304 = vst [vmem:[#allocation2 + $0x188] sm:$0xff] %v11583_v9  ;;  %v2107_v62 = vmul.f32 1.442695, %v1925_v33  ;;  %v10063_v63 = vpop.f32.mrb[56].mxu0  ;;  %v3136_v33 = vmul.f32 %v13429_v43, %v557_v13  ;;  %v1803_v9 = vld [vmem:[%s16103_s3 + $0x1e0] sm:$0xff]  ;;  %v558_v43 = vld [vmem:[%s16106_s6 + $0x148] sm:$0xff] }
 0x168   : > { %v13646_v53 = vpop.f32.mrb[56].mxu1  ;;  %2303 = vst [vmem:[#allocation2 + $0x180] sm:$0xff] %v11585_v38  ;;  %11594 = vpow2.f32 %v2109_v51  ;;  %v1928_v39 = vmul.f32 %v10063_v63, %v1800_v48  ;;  %v1384_v32 = vpop.f32.mrb[57].mxu0  ;;  %10445 = vmatmul.mubr.msk.f32.gmra.mrb[162].mxu0 %vm653_vm0, %v3131_v34  ;;  %v559_v51 = vld [vmem:[%s16106_s6 + $0x150] sm:$0xff]  ;;  %v11781_v63 = vld [vmem:[%s16104_s4 + $0x138] sm:$0xff] }
 0x169   : > { %10653 = vmatmul.mubr.msk.f32.gmra.mrb[162].mxu1 %vm653_vm0, %v11777_v10  ;;  %v13653_v45 = vpop.f32.mrb[57].mxu1  ;;  %11596 = vpow2.f32 %v2107_v62  ;;  %v1927_v59 = vmul.f32 %v1799_v54, %v1384_v32  ;;  %10447 = vmatprep.mubr.msk.f32.mxu0 %vm653_vm0, %v3132_v8  ;;  %v3135_v8 = vmul.f32 %v13394_v60, %v556_v20  ;;  %v1806_v32 = vld [vmem:[%s16103_s3 + $0x1f8] sm:$0xff]  ;;  %v11782_v10 = vld [vmem:[%s16104_s4 + $0x140] sm:$0xff] }
 0x16a   : > { %10655 = vmatprep.mubr.msk.f32.mxu1 %vm653_vm0, %v11778_v36  ;;  %v11587_v22 = vpop.eup %11586  ;;  %v2113_v25 = vmul.f32 1.442695, %v1928_v39 }
 0x16b   : > { %v11589_v17 = vpop.eup %11588  ;;  %2306 = vst [vmem:[#allocation2 + $0x198] sm:$0xff] %v11587_v22  ;;  %v2111_v21 = vmul.f32 1.442695, %v1927_v59  ;;  %v10066_v29 = vpop.f32.mrb[58].mxu0  ;;  %v3138_v59 = vmul.f32 %v13457_v3, %v559_v51  ;;  %v3137_v22 = vmul.f32 %v13422_v15, %v558_v43  ;;  %v560_v3 = vld [vmem:[%s16106_s6 + $0x158] sm:$0xff]  ;;  %v1807_v51 = vld [vmem:[%s16103_s3 + $0x200] sm:$0xff] }
 0x16c   : > { %v13674_v7 = vpop.f32.mrb[58].mxu1  ;;  %2305 = vst [vmem:[#allocation2 + $0x190] sm:$0xff] %v11589_v17  ;;  %11598 = vpow2.f32 %v2113_v25  ;;  %v1930_v47 = vmul.f32 %v10066_v29, %v1802_v58  ;;  %v1394_v30 = vpop.f32.mrb[59].mxu0  ;;  %10448 = vmatmul.mubr.msk.f32.gmra.mrb[164].mxu0 %vm653_vm0, %v3133_v0  ;;  %v1805_v25 = vld [vmem:[%s16103_s3 + $0x1f0] sm:$0xff]  ;;  %v561_v0 = vld [vmem:[%s16106_s6 + $0x160] sm:$0xff] }
 0x16d   : > { %10656 = vmatmul.mubr.msk.f32.gmra.mrb[164].mxu1 %vm653_vm0, %v11779_v19  ;;  %v13681_v4 = vpop.f32.mrb[59].mxu1  ;;  %11600 = vpow2.f32 %v2111_v21  ;;  %v1929_v57 = vmul.f32 %v1801_v27, %v1394_v30  ;;  %10450 = vmatprep.mubr.msk.f32.mxu0 %vm653_vm0, %v3134_v44  ;;  %v11483_v58 = vpop.permute.xlu1 %11482  ;;  %v11783_v30 = vld [vmem:[%s16104_s4 + $0x148] sm:$0xff] }
 0x16e   : > { %10658 = vmatprep.mubr.msk.f32.mxu1 %vm653_vm0, %v11780_v37  ;;  %v11591_v48 = vpop.eup %11590  ;;  %v2117_v31 = vmul.f32 1.442695, %v1930_v47  ;;  %v11485_v27 = vunpack.i.h.bf16 %v11483_v58  ;;  %v11484_v13 = vunpack.i.l.bf16 %v11483_v58  ;;  %v1808_v37 = vld [vmem:[%s16103_s3 + $0x208] sm:$0xff] }
 0x16f   : > { %v11593_v34 = vpop.eup %11592  ;;  %2308 = vst [vmem:[#allocation2 + $0x1a8] sm:$0xff] %v11591_v48  ;;  %v2115_v54 = vmul.f32 1.442695, %v1929_v57  ;;  %v10069_v55 = vpop.f32.mrb[60].mxu0  ;;  %v3140_v48 = vmul.f32 %v13485_v42, %v561_v0  ;;  %v562_v42 = vld [vmem:[%s16106_s6 + $0x168] sm:$0xff]  ;;  %v565_v0 = vld [vmem:[%s16106_s6 + $0x180] sm:$0xff] }
 0x170   : > { %v13702_v38 = vpop.f32.mrb[60].mxu1  ;;  %2307 = vst [vmem:[#allocation2 + $0x1a0] sm:$0xff] %v11593_v34  ;;  %11602 = vpow2.f32 %v2117_v31  ;;  %v1932_v60 = vmul.f32 %v10069_v55, %v1804_v28  ;;  %v1404_v62 = vpop.f32.mrb[61].mxu0  ;;  %10451 = vmatmul.mubr.msk.f32.gmra.mrb[166].mxu0 %vm653_vm0, %v3135_v8  ;;  %v11285_v57 = vpack.c.bf16 %v11485_v27, %v11484_v13  ;;  %v563_v34 = vld [vmem:[%s16106_s6 + $0x170] sm:$0xff] }
 0x171   : > { %10659 = vmatmul.mubr.msk.f32.gmra.mrb[166].mxu1 %vm653_vm0, %v11781_v63  ;;  %v13709_v12 = vpop.f32.mrb[61].mxu1  ;;  %11604 = vpow2.f32 %v2115_v54  ;;  %v1931_v39 = vmul.f32 %v1803_v9, %v1404_v62  ;;  %10453 = vmatprep.mubr.msk.f32.mxu0 %vm653_vm0, %v3136_v33  ;;  %v11784_v33 = vld [vmem:[%s16104_s4 + $0x150] sm:$0xff]  ;;  %v3139_v9 = vmul.f32 %v13450_v52, %v560_v3  ;;  %v11785_v63 = vld [vmem:[%s16104_s4 + $0x158] sm:$0xff]  ;;  %v3142_v58 = vmul.f32 %v13513_v6, %v563_v34  ;;  %v11787_v3 = vld [vmem:[%s16104_s4 + $0x168] sm:$0xff] }
 0x172   : > { %10661 = vmatprep.mubr.msk.f32.mxu1 %vm653_vm0, %v11782_v10  ;;  %v11595_v36 = vpop.eup %11594  ;;  %v2121_v44 = vmul.f32 1.442695, %v1932_v60  ;;  %11286 = vmatprep.subr.bf16.mxu0 %v11285_v57  ;;  %v1810_v10 = vld [vmem:[%s16103_s3 + $0x218] sm:$0xff] }
 0x173   : > { %v11597_v17 = vpop.eup %11596  ;;  %2310 = vst [vmem:[#allocation2 + $0x1b8] sm:$0xff] %v11595_v36  ;;  %v2119_v21 = vmul.f32 1.442695, %v1931_v39  ;;  %v10072_v29 = vpop.f32.mrb[62].mxu0  ;;  %11288 = vmatpush3.bf16.msra.mxu0 %v11285_v57  ;;  %v564_v6 = vld [vmem:[%s16106_s6 + $0x178] sm:$0xff]  ;;  %v11788_v57 = vld [vmem:[%s16104_s4 + $0x170] sm:$0xff] }
 0x174   : > { %v13730_v20 = vpop.f32.mrb[62].mxu1  ;;  %2309 = vst [vmem:[#allocation2 + $0x1b0] sm:$0xff] %v11597_v17  ;;  %11606 = vpow2.f32 %v2121_v44  ;;  %v1934_v15 = vmul.f32 %v10072_v29, %v1806_v32  ;;  %v1414_v47 = vpop.f32.mrb[63].mxu0  ;;  %10454 = vmatmul.mubr.msk.f32.gmra.mrb[168].mxu0 %vm653_vm0, %v3137_v22  ;;  %v3141_v22 = vmul.f32 %v13478_v26, %v562_v42 }
 0x175   : > { %10662 = vmatmul.mubr.msk.f32.gmra.mrb[168].mxu1 %vm653_vm0, %v11783_v30  ;;  %v13737_v19 = vpop.f32.mrb[63].mxu1  ;;  %11608 = vpow2.f32 %v2119_v21  ;;  %v1933_v28 = vmul.f32 %v1805_v25, %v1414_v47  ;;  %10456 = vmatprep.mubr.msk.f32.mxu0 %vm653_vm0, %v3138_v59  ;;  %v11786_v59 = vld [vmem:[%s16104_s4 + $0x160] sm:$0xff]  ;;  %v1809_v25 = vld [vmem:[%s16103_s3 + $0x210] sm:$0xff]  ;;  %v1812_v30 = vld [vmem:[%s16103_s3 + $0x228] sm:$0xff] }
 0x176   : > { %10664 = vmatprep.mubr.msk.f32.mxu1 %vm653_vm0, %v11784_v33  ;;  %v11599_v31 = vpop.eup %11598  ;;  %v2125_v8 = vmul.f32 1.442695, %v1934_v15 }
 0x177   : > { %v11601_v54 = vpop.eup %11600  ;;  %2312 = vst [vmem:[#allocation2 + $0x1c8] sm:$0xff] %v11599_v31  ;;  %v2123_v55 = vmul.f32 1.442695, %v1933_v28  ;;  %v10075_v43 = vpop.f32.mrb[64].mxu0  ;;  %v3144_v28 = vmul.f32 %v13541_v46, %v565_v0  ;;  %v1811_v31 = vld [vmem:[%s16103_s3 + $0x220] sm:$0xff]  ;;  %v566_v46 = vld [vmem:[%s16106_s6 + $0x188] sm:$0xff] }
 0x178   : > { %v13758_v60 = vpop.f32.mrb[64].mxu1  ;;  %2311 = vst [vmem:[#allocation2 + $0x1c0] sm:$0xff] %v11601_v54  ;;  %11610 = vpow2.f32 %v2125_v8  ;;  %v1936_v52 = vmul.f32 %v10075_v43, %v1808_v37  ;;  %v1424_v62 = vpop.f32.mrb[65].mxu0  ;;  %10457 = vmatmul.mubr.msk.f32.gmra.mrb[170].mxu0 %vm653_vm0, %v3139_v9  ;;  %v567_v8 = vld [vmem:[%s16106_s6 + $0x190] sm:$0xff]  ;;  %v11789_v43 = vld [vmem:[%s16104_s4 + $0x178] sm:$0xff] }
 0x179   : > { %10665 = vmatmul.mubr.msk.f32.gmra.mrb[170].mxu1 %vm653_vm0, %v11785_v63  ;;  %v13765_v39 = vpop.f32.mrb[65].mxu1  ;;  %11612 = vpow2.f32 %v2123_v55  ;;  %v1935_v32 = vmul.f32 %v1807_v51, %v1424_v62  ;;  %10459 = vmatprep.mubr.msk.f32.mxu0 %vm653_vm0, %v3140_v48  ;;  %v3143_v48 = vmul.f32 %v13506_v5, %v564_v6  ;;  %v1814_v62 = vld [vmem:[%s16103_s3 + $0x238] sm:$0xff]  ;;  %v11790_v63 = vld [vmem:[%s16104_s4 + $0x180] sm:$0xff] }
 0x17a   : > { %10667 = vmatprep.mubr.msk.f32.mxu1 %vm653_vm0, %v11786_v59  ;;  %v11603_v36 = vpop.eup %11602  ;;  %v2129_v44 = vmul.f32 1.442695, %v1936_v52 }
 0x17b   : > { %v11605_v27 = vpop.eup %11604  ;;  %2314 = vst [vmem:[#allocation2 + $0x1d8] sm:$0xff] %v11603_v36  ;;  %v2127_v13 = vmul.f32 1.442695, %v1935_v32  ;;  %v10078_v17 = vpop.f32.mrb[66].mxu0  ;;  %v3146_v32 = vmul.f32 %v13569_v24, %v567_v8  ;;  %v1813_v36 = vld [vmem:[%s16103_s3 + $0x230] sm:$0xff]  ;;  %v568_v24 = vld [vmem:[%s16106_s6 + $0x198] sm:$0xff] }
 0x17c   : > { %v13786_v21 = vpop.f32.mrb[66].mxu1  ;;  %2313 = vst [vmem:[#allocation2 + $0x1d0] sm:$0xff] %v11605_v27  ;;  %11614 = vpow2.f32 %v2129_v44  ;;  %v1938_v26 = vmul.f32 %v10078_v17, %v1810_v10  ;;  %v1434_v29 = vpop.f32.mrb[67].mxu0  ;;  %10460 = vmatmul.mubr.msk.f32.gmra.mrb[172].mxu0 %vm653_vm0, %v3141_v22  ;;  %v569_v44 = vld [vmem:[%s16106_s6 + $0x1a0] sm:$0xff]  ;;  %v11791_v17 = vld [vmem:[%s16104_s4 + $0x188] sm:$0xff] }
 0x17d   : > { %10668 = vmatmul.mubr.msk.f32.gmra.mrb[172].mxu1 %vm653_vm0, %v11787_v3  ;;  %v13793_v15 = vpop.f32.mrb[67].mxu1  ;;  %11616 = vpow2.f32 %v2127_v13  ;;  %v1937_v47 = vmul.f32 %v1809_v25, %v1434_v29  ;;  %10462 = vmatprep.mubr.msk.f32.mxu0 %vm653_vm0, %v3142_v58  ;;  %v3145_v58 = vmul.f32 %v13534_v18, %v566_v46  ;;  %v1816_v29 = vld [vmem:[%s16103_s3 + $0x248] sm:$0xff]  ;;  %v11792_v3 = vld [vmem:[%s16104_s4 + $0x190] sm:$0xff] }
 0x17e   : > { %10670 = vmatprep.mubr.msk.f32.mxu1 %vm653_vm0, %v11788_v57  ;;  %v11607_v37 = vpop.eup %11606  ;;  %v2133_v33 = vmul.f32 1.442695, %v1938_v26 }
 0x17f   : > { %v11609_v9 = vpop.eup %11608  ;;  %2316 = vst [vmem:[#allocation2 + $0x1e8] sm:$0xff] %v11607_v37  ;;  %v2131_v51 = vmul.f32 1.442695, %v1937_v47  ;;  %v10081_v34 = vpop.f32.mrb[68].mxu0  ;;  %v3148_v47 = vmul.f32 %v13597_v40, %v569_v44  ;;  %v1815_v37 = vld [vmem:[%s16103_s3 + $0x240] sm:$0xff]  ;;  %v570_v40 = vld [vmem:[%s16106_s6 + $0x1a8] sm:$0xff] }
 0x180   : > { %v13814_v54 = vpop.f32.mrb[68].mxu1  ;;  %2315 = vst [vmem:[#allocation2 + $0x1e0] sm:$0xff] %v11609_v9  ;;  %11618 = vpow2.f32 %v2133_v33  ;;  %v1940_v5 = vmul.f32 %v10081_v34, %v1812_v30  ;;  %v1444_v55 = vpop.f32.mrb[69].mxu0  ;;  %10463 = vmatmul.mubr.msk.f32.gmra.mrb[174].mxu0 %vm653_vm0, %v3143_v48  ;;  %v571_v33 = vld [vmem:[%s16106_s6 + $0x1b0] sm:$0xff]  ;;  %v11793_v34 = vld [vmem:[%s16104_s4 + $0x198] sm:$0xff] }
 0x181   : > { %10671 = vmatmul.mubr.msk.f32.gmra.mrb[174].mxu1 %vm653_vm0, %v11789_v43  ;;  %v13821_v42 = vpop.f32.mrb[69].mxu1  ;;  %11620 = vpow2.f32 %v2131_v51  ;;  %v1939_v52 = vmul.f32 %v1811_v31, %v1444_v55  ;;  %10465 = vmatprep.mubr.msk.f32.mxu0 %vm653_vm0, %v3144_v28  ;;  %v3147_v28 = vmul.f32 %v13562_v41, %v568_v24  ;;  %v1818_v55 = vld [vmem:[%s16103_s3 + $0x258] sm:$0xff]  ;;  %v11794_v43 = vld [vmem:[%s16104_s4 + $0x1a0] sm:$0xff] }
 0x182   : > { %10673 = vmatprep.mubr.msk.f32.mxu1 %vm653_vm0, %v11790_v63  ;;  %v11611_v10 = vpop.eup %11610  ;;  %v2137_v59 = vmul.f32 1.442695, %v1940_v5 }
 0x183   : > { %v11613_v22 = vpop.eup %11612  ;;  %2318 = vst [vmem:[#allocation2 + $0x1f8] sm:$0xff] %v11611_v10  ;;  %v2135_v25 = vmul.f32 1.442695, %v1939_v52  ;;  %v10084_v0 = vpop.f32.mrb[70].mxu0  ;;  %v3150_v52 = vmul.f32 %v13625_v14, %v571_v33  ;;  %v1817_v10 = vld [vmem:[%s16103_s3 + $0x250] sm:$0xff]  ;;  %v572_v14 = vld [vmem:[%s16106_s6 + $0x1b8] sm:$0xff] }
 0x184   : > { %v13842_v27 = vpop.f32.mrb[70].mxu1  ;;  %2317 = vst [vmem:[#allocation2 + $0x1f0] sm:$0xff] %v11613_v22  ;;  %11622 = vpow2.f32 %v2137_v59  ;;  %v1942_v18 = vmul.f32 %v10084_v0, %v1814_v62  ;;  %v1454_v13 = vpop.f32.mrb[71].mxu0  ;;  %10466 = vmatmul.mubr.msk.f32.gmra.mrb[176].mxu0 %vm653_vm0, %v3145_v58  ;;  %v573_v59 = vld [vmem:[%s16106_s6 + $0x1c0] sm:$0xff]  ;;  %v11795_v0 = vld [vmem:[%s16104_s4 + $0x1a8] sm:$0xff] }
 0x185   : > { %10674 = vmatmul.mubr.msk.f32.gmra.mrb[176].mxu1 %vm653_vm0, %v11791_v17  ;;  %v13849_v6 = vpop.f32.mrb[71].mxu1  ;;  %11624 = vpow2.f32 %v2135_v25  ;;  %v1941_v26 = vmul.f32 %v1813_v36, %v1454_v13  ;;  %10468 = vmatprep.mubr.msk.f32.mxu0 %vm653_vm0, %v3146_v32  ;;  %v3149_v32 = vmul.f32 %v13590_v23, %v570_v40  ;;  %v1820_v13 = vld [vmem:[%s16103_s3 + $0x268] sm:$0xff]  ;;  %v11796_v17 = vld [vmem:[%s16104_s4 + $0x1b0] sm:$0xff] }
 0x186   : > { %10676 = vmatprep.mubr.msk.f32.mxu1 %vm653_vm0, %v11792_v3  ;;  %v11615_v30 = vpop.eup %11614  ;;  %v2141_v57 = vmul.f32 1.442695, %v1942_v18 }
 0x187   : > { %v11617_v48 = vpop.eup %11616  ;;  %2320 = vst [vmem:[#allocation2 + $0x208] sm:$0xff] %v11615_v30  ;;  %v2139_v31 = vmul.f32 1.442695, %v1941_v26  ;;  %v10087_v8 = vpop.f32.mrb[72].mxu0  ;;  %v3152_v26 = vmul.f32 %v13653_v45, %v573_v59  ;;  %v1819_v30 = vld [vmem:[%s16103_s3 + $0x260] sm:$0xff]  ;;  %v574_v45 = vld [vmem:[%s16106_s6 + $0x1c8] sm:$0xff] }
 0x188   : > { %v13870_v9 = vpop.f32.mrb[72].mxu1  ;;  %2319 = vst [vmem:[#allocation2 + $0x200] sm:$0xff] %v11617_v48  ;;  %11626 = vpow2.f32 %v2141_v57  ;;  %v1944_v41 = vmul.f32 %v10087_v8, %v1816_v29  ;;  %v1464_v51 = vpop.f32.mrb[73].mxu0  ;;  %10469 = vmatmul.mubr.msk.f32.gmra.mrb[178].mxu0 %vm653_vm0, %v3147_v28  ;;  %v575_v57 = vld [vmem:[%s16106_s6 + $0x1d0] sm:$0xff]  ;;  %v11797_v8 = vld [vmem:[%s16104_s4 + $0x1b8] sm:$0xff] }
 0x189   : > { %10677 = vmatmul.mubr.msk.f32.gmra.mrb[178].mxu1 %vm653_vm0, %v11793_v34  ;;  %v13877_v46 = vpop.f32.mrb[73].mxu1  ;;  %11628 = vpow2.f32 %v2139_v31  ;;  %v1943_v5 = vmul.f32 %v1815_v37, %v1464_v51  ;;  %10471 = vmatprep.mubr.msk.f32.mxu0 %vm653_vm0, %v3148_v47  ;;  %v3151_v47 = vmul.f32 %v13618_v35, %v572_v14  ;;  %v1822_v51 = vld [vmem:[%s16103_s3 + $0x278] sm:$0xff]  ;;  %v11798_v34 = vld [vmem:[%s16104_s4 + $0x1c0] sm:$0xff] }
 0x18a   : > { %10679 = vmatprep.mubr.msk.f32.mxu1 %vm653_vm0, %v11794_v43  ;;  %v11619_v62 = vpop.eup %11618  ;;  %v2145_v63 = vmul.f32 1.442695, %v1944_v41 }
 0x18b   : > { %v11621_v58 = vpop.eup %11620  ;;  %2322 = vst [vmem:[#allocation2 + $0x218] sm:$0xff] %v11619_v62  ;;  %v2143_v36 = vmul.f32 1.442695, %v1943_v5  ;;  %v10090_v44 = vpop.f32.mrb[74].mxu0  ;;  %v3154_v5 = vmul.f32 %v13681_v4, %v575_v57  ;;  %v1821_v62 = vld [vmem:[%s16103_s3 + $0x270] sm:$0xff]  ;;  %v576_v4 = vld [vmem:[%s16106_s6 + $0x1d8] sm:$0xff] }
 0x18c   : > { %v13898_v22 = vpop.f32.mrb[74].mxu1  ;;  %2321 = vst [vmem:[#allocation2 + $0x210] sm:$0xff] %v11621_v58  ;;  %11630 = vpow2.f32 %v2145_v63  ;;  %v1946_v23 = vmul.f32 %v10090_v44, %v1818_v55  ;;  %v1474_v25 = vpop.f32.mrb[75].mxu0  ;;  %10472 = vmatmul.mubr.msk.f32.gmra.mrb[180].mxu0 %vm653_vm0, %v3149_v32  ;;  %v577_v63 = vld [vmem:[%s16106_s6 + $0x1e0] sm:$0xff]  ;;  %v11799_v44 = vld [vmem:[%s16104_s4 + $0x1c8] sm:$0xff] }
 0x18d   : > { %10680 = vmatmul.mubr.msk.f32.gmra.mrb[180].mxu1 %vm653_vm0, %v11795_v0  ;;  %v13905_v24 = vpop.f32.mrb[75].mxu1  ;;  %11632 = vpow2.f32 %v2143_v36  ;;  %v1945_v18 = vmul.f32 %v1817_v10, %v1474_v25  ;;  %10474 = vmatprep.mubr.msk.f32.mxu0 %vm653_vm0, %v3150_v52  ;;  %v3153_v52 = vmul.f32 %v13646_v53, %v574_v45  ;;  %v1824_v25 = vld [vmem:[%s16103_s3 + $0x288] sm:$0xff]  ;;  %v11800_v0 = vld [vmem:[%s16104_s4 + $0x1d0] sm:$0xff] }
 0x18e   : > { %10682 = vmatprep.mubr.msk.f32.mxu1 %vm653_vm0, %v11796_v17  ;;  %v11623_v29 = vpop.eup %11622  ;;  %v2149_v3 = vmul.f32 1.442695, %v1946_v23 }
 0x18f   : > { %v11625_v28 = vpop.eup %11624  ;;  %2324 = vst [vmem:[#allocation2 + $0x228] sm:$0xff] %v11623_v29  ;;  %v2147_v37 = vmul.f32 1.442695, %v1945_v18  ;;  %v10093_v33 = vpop.f32.mrb[76].mxu0  ;;  %v3156_v18 = vmul.f32 %v13709_v12, %v577_v63  ;;  %v1823_v29 = vld [vmem:[%s16103_s3 + $0x280] sm:$0xff]  ;;  %v578_v12 = vld [vmem:[%s16106_s6 + $0x1e8] sm:$0xff] }
 0x190   : > { %v13926_v48 = vpop.f32.mrb[76].mxu1  ;;  %2323 = vst [vmem:[#allocation2 + $0x220] sm:$0xff] %v11625_v28  ;;  %11634 = vpow2.f32 %v2149_v3  ;;  %v1948_v35 = vmul.f32 %v10093_v33, %v1820_v13  ;;  %v1484_v31 = vpop.f32.mrb[77].mxu0  ;;  %10475 = vmatmul.mubr.msk.f32.gmra.mrb[182].mxu0 %vm653_vm0, %v3151_v47  ;;  %v579_v3 = vld [vmem:[%s16106_s6 + $0x1f0] sm:$0xff]  ;;  %v11801_v33 = vld [vmem:[%s16104_s4 + $0x1d8] sm:$0xff] }
 0x191   : > { %10683 = vmatmul.mubr.msk.f32.gmra.mrb[182].mxu1 %vm653_vm0, %v11797_v8  ;;  %v13933_v40 = vpop.f32.mrb[77].mxu1  ;;  %11636 = vpow2.f32 %v2147_v37  ;;  %v1947_v41 = vmul.f32 %v1819_v30, %v1484_v31  ;;  %10477 = vmatprep.mubr.msk.f32.mxu0 %vm653_vm0, %v3152_v26  ;;  %v3155_v26 = vmul.f32 %v13674_v7, %v576_v4  ;;  %v1826_v31 = vld [vmem:[%s16103_s3 + $0x298] sm:$0xff]  ;;  %v11802_v8 = vld [vmem:[%s16104_s4 + $0x1e0] sm:$0xff] }
 0x192   : > { %10685 = vmatprep.mubr.msk.f32.mxu1 %vm653_vm0, %v11798_v34  ;;  %v11627_v55 = vpop.eup %11626  ;;  %v2153_v43 = vmul.f32 1.442695, %v1948_v35 }
 0x193   : > { %v11629_v32 = vpop.eup %11628  ;;  %2326 = vst [vmem:[#allocation2 + $0x238] sm:$0xff] %v11627_v55  ;;  %v2151_v10 = vmul.f32 1.442695, %v1947_v41  ;;  %v10096_v59 = vpop.f32.mrb[78].mxu0  ;;  %v3158_v41 = vmul.f32 %v13737_v19, %v579_v3  ;;  %v1825_v55 = vld [vmem:[%s16103_s3 + $0x290] sm:$0xff]  ;;  %v580_v19 = vld [vmem:[%s16106_s6 + $0x1f8] sm:$0xff] }
 0x194   : > { %v13954_v58 = vpop.f32.mrb[78].mxu1  ;;  %2325 = vst [vmem:[#allocation2 + $0x230] sm:$0xff] %v11629_v32  ;;  %11638 = vpow2.f32 %v2153_v43  ;;  %v1950_v53 = vmul.f32 %v10096_v59, %v1822_v51  ;;  %v1494_v36 = vpop.f32.mrb[79].mxu0  ;;  %10478 = vmatmul.mubr.msk.f32.gmra.mrb[184].mxu0 %vm653_vm0, %v3153_v52  ;;  %v581_v43 = vld [vmem:[%s16106_s6 + $0x200] sm:$0xff]  ;;  %v11803_v59 = vld [vmem:[%s16104_s4 + $0x1e8] sm:$0xff] }
 0x195   : > { %10686 = vmatmul.mubr.msk.f32.gmra.mrb[184].mxu1 %vm653_vm0, %v11799_v44  ;;  %v13961_v14 = vpop.f32.mrb[79].mxu1  ;;  %11640 = vpow2.f32 %v2151_v10  ;;  %v1949_v23 = vmul.f32 %v1821_v62, %v1494_v36  ;;  %10480 = vmatprep.mubr.msk.f32.mxu0 %vm653_vm0, %v3154_v5  ;;  %v3157_v5 = vmul.f32 %v13702_v38, %v578_v12  ;;  %v1828_v36 = vld [vmem:[%s16103_s3 + $0x2a8] sm:$0xff]  ;;  %v11804_v44 = vld [vmem:[%s16104_s4 + $0x1f0] sm:$0xff] }
 0x196   : > { %10688 = vmatprep.mubr.msk.f32.mxu1 %vm653_vm0, %v11800_v0  ;;  %v11631_v13 = vpop.eup %11630  ;;  %v2157_v17 = vmul.f32 1.442695, %v1950_v53 }
 0x197   : > { %v11633_v47 = vpop.eup %11632  ;;  %2328 = vst [vmem:[#allocation2 + $0x248] sm:$0xff] %v11631_v13  ;;  %v2155_v30 = vmul.f32 1.442695, %v1949_v23  ;;  %v10099_v57 = vpop.f32.mrb[80].mxu0  ;;  %v3160_v23 = vmul.f32 %v13765_v39, %v581_v43  ;;  %v1827_v13 = vld [vmem:[%s16103_s3 + $0x2a0] sm:$0xff]  ;;  %v582_v39 = vld [vmem:[%s16106_s6 + $0x208] sm:$0xff] }
 0x198   : > { %v13982_v28 = vpop.f32.mrb[80].mxu1  ;;  %2327 = vst [vmem:[#allocation2 + $0x240] sm:$0xff] %v11633_v47  ;;  %11642 = vpow2.f32 %v2157_v17  ;;  %v1952_v7 = vmul.f32 %v10099_v57, %v1824_v25  ;;  %v1504_v37 = vpop.f32.mrb[81].mxu0  ;;  %10481 = vmatmul.mubr.msk.f32.gmra.mrb[186].mxu0 %vm653_vm0, %v3155_v26  ;;  %v583_v17 = vld [vmem:[%s16106_s6 + $0x210] sm:$0xff]  ;;  %v11805_v57 = vld [vmem:[%s16104_s4 + $0x1f8] sm:$0xff] }
 0x199   : > { %10689 = vmatmul.mubr.msk.f32.gmra.mrb[186].mxu1 %vm653_vm0, %v11801_v33  ;;  %v13989_v45 = vpop.f32.mrb[81].mxu1  ;;  %11644 = vpow2.f32 %v2155_v30  ;;  %v1951_v35 = vmul.f32 %v1823_v29, %v1504_v37  ;;  %10483 = vmatprep.mubr.msk.f32.mxu0 %vm653_vm0, %v3156_v18  ;;  %v3159_v18 = vmul.f32 %v13730_v20, %v580_v19  ;;  %v1830_v37 = vld [vmem:[%s16103_s3 + $0x2b8] sm:$0xff]  ;;  %v11806_v33 = vld [vmem:[%s16104_s4 + $0x200] sm:$0xff] }
 0x19a   : > { %10691 = vmatprep.mubr.msk.f32.mxu1 %vm653_vm0, %v11802_v8  ;;  %v11635_v51 = vpop.eup %11634  ;;  %v2161_v34 = vmul.f32 1.442695, %v1952_v7 }
 0x19b   : > { %v11637_v52 = vpop.eup %11636  ;;  %2330 = vst [vmem:[#allocation2 + $0x258] sm:$0xff] %v11635_v51  ;;  %v2159_v62 = vmul.f32 1.442695, %v1951_v35  ;;  %v10102_v63 = vpop.f32.mrb[82].mxu0  ;;  %v3162_v35 = vmul.f32 %v13793_v15, %v583_v17  ;;  %v1829_v51 = vld [vmem:[%s16103_s3 + $0x2b0] sm:$0xff]  ;;  %v584_v15 = vld [vmem:[%s16106_s6 + $0x218] sm:$0xff] }
 0x19c   : > { %v14010_v32 = vpop.f32.mrb[82].mxu1  ;;  %2329 = vst [vmem:[#allocation2 + $0x250] sm:$0xff] %v11637_v52  ;;  %11646 = vpow2.f32 %v2161_v34  ;;  %v1954_v38 = vmul.f32 %v10102_v63, %v1826_v31  ;;  %v1514_v10 = vpop.f32.mrb[83].mxu0  ;;  %10484 = vmatmul.mubr.msk.f32.gmra.mrb[188].mxu0 %vm653_vm0, %v3157_v5  ;;  %v585_v34 = vld [vmem:[%s16106_s6 + $0x220] sm:$0xff]  ;;  %v11807_v63 = vld [vmem:[%s16104_s4 + $0x208] sm:$0xff] }
 0x19d   : > { %10692 = vmatmul.mubr.msk.f32.gmra.mrb[188].mxu1 %vm653_vm0, %v11803_v59  ;;  %v14017_v4 = vpop.f32.mrb[83].mxu1  ;;  %11648 = vpow2.f32 %v2159_v62  ;;  %v1953_v53 = vmul.f32 %v1825_v55, %v1514_v10  ;;  %10486 = vmatprep.mubr.msk.f32.mxu0 %vm653_vm0, %v3158_v41  ;;  %v3161_v41 = vmul.f32 %v13758_v60, %v582_v39  ;;  %v1832_v10 = vld [vmem:[%s16103_s3 + $0x2c8] sm:$0xff]  ;;  %v11808_v59 = vld [vmem:[%s16104_s4 + $0x210] sm:$0xff] }
 0x19e   : > { %10694 = vmatprep.mubr.msk.f32.mxu1 %vm653_vm0, %v11804_v44  ;;  %v11639_v25 = vpop.eup %11638  ;;  %v2165_v0 = vmul.f32 1.442695, %v1954_v38 }
 0x19f   : > { %v11641_v26 = vpop.eup %11640  ;;  %2332 = vst [vmem:[#allocation2 + $0x268] sm:$0xff] %v11639_v25  ;;  %v2163_v29 = vmul.f32 1.442695, %v1953_v53  ;;  %v10105_v3 = vpop.f32.mrb[84].mxu0  ;;  %v3164_v53 = vmul.f32 %v13821_v42, %v585_v34  ;;  %v1831_v25 = vld [vmem:[%s16103_s3 + $0x2c0] sm:$0xff]  ;;  %v586_v42 = vld [vmem:[%s16106_s6 + $0x228] sm:$0xff] }
 0x1a0   : > { %v14038_v47 = vpop.f32.mrb[84].mxu1  ;;  %2331 = vst [vmem:[#allocation2 + $0x260] sm:$0xff] %v11641_v26  ;;  %11650 = vpow2.f32 %v2165_v0  ;;  %v1956_v20 = vmul.f32 %v10105_v3, %v1828_v36  ;;  %v1524_v30 = vpop.f32.mrb[85].mxu0  ;;  %10487 = vmatmul.mubr.msk.f32.gmra.mrb[190].mxu0 %vm653_vm0, %v3159_v18  ;;  %v587_v0 = vld [vmem:[%s16106_s6 + $0x230] sm:$0xff]  ;;  %v11809_v3 = vld [vmem:[%s16104_s4 + $0x218] sm:$0xff] }
 0x1a1   : > { %10695 = vmatmul.mubr.msk.f32.gmra.mrb[190].mxu1 %vm653_vm0, %v11805_v57  ;;  %v14045_v12 = vpop.f32.mrb[85].mxu1  ;;  %11652 = vpow2.f32 %v2163_v29  ;;  %v1955_v7 = vmul.f32 %v1827_v13, %v1524_v30  ;;  %10489 = vmatprep.mubr.msk.f32.mxu0 %vm653_vm0, %v3160_v23  ;;  %v3163_v23 = vmul.f32 %v13786_v21, %v584_v15  ;;  %v1834_v30 = vld [vmem:[%s16103_s3 + $0x2d8] sm:$0xff]  ;;  %v11810_v57 = vld [vmem:[%s16104_s4 + $0x220] sm:$0xff] }
 0x1a2   : > { %10697 = vmatprep.mubr.msk.f32.mxu1 %vm653_vm0, %v11806_v33  ;;  %v11643_v31 = vpop.eup %11642  ;;  %v2169_v8 = vmul.f32 1.442695, %v1956_v20 }
 0x1a3   : > { %v11645_v5 = vpop.eup %11644  ;;  %2334 = vst [vmem:[#allocation2 + $0x278] sm:$0xff] %v11643_v31  ;;  %v2167_v55 = vmul.f32 1.442695, %v1955_v7  ;;  %v10108_v43 = vpop.f32.mrb[86].mxu0  ;;  %v3166_v7 = vmul.f32 %v13849_v6, %v587_v0  ;;  %v1833_v31 = vld [vmem:[%s16103_s3 + $0x2d0] sm:$0xff]  ;;  %v588_v6 = vld [vmem:[%s16106_s6 + $0x238] sm:$0xff] }
 0x1a4   : > { %v14066_v52 = vpop.f32.mrb[86].mxu1  ;;  %2333 = vst [vmem:[#allocation2 + $0x270] sm:$0xff] %v11645_v5  ;;  %11654 = vpow2.f32 %v2169_v8  ;;  %v1958_v60 = vmul.f32 %v10108_v43, %v1830_v37  ;;  %v1534_v62 = vpop.f32.mrb[87].mxu0  ;;  %10490 = vmatmul.mubr.msk.f32.gmra.mrb[192].mxu0 %vm653_vm0, %v3161_v41  ;;  %v589_v8 = vld [vmem:[%s16106_s6 + $0x240] sm:$0xff]  ;;  %v11811_v43 = vld [vmem:[%s16104_s4 + $0x228] sm:$0xff] }
 0x1a5   : > { %10698 = vmatmul.mubr.msk.f32.gmra.mrb[192].mxu1 %vm653_vm0, %v11807_v63  ;;  %v14073_v19 = vpop.f32.mrb[87].mxu1  ;;  %11656 = vpow2.f32 %v2167_v55  ;;  %v1957_v38 = vmul.f32 %v1829_v51, %v1534_v62  ;;  %10492 = vmatprep.mubr.msk.f32.mxu0 %vm653_vm0, %v3162_v35  ;;  %v3165_v35 = vmul.f32 %v13814_v54, %v586_v42  ;;  %v1836_v62 = vld [vmem:[%s16103_s3 + $0x2e8] sm:$0xff]  ;;  %v11812_v63 = vld [vmem:[%s16104_s4 + $0x230] sm:$0xff] }
 0x1a6   : > { %10700 = vmatprep.mubr.msk.f32.mxu1 %vm653_vm0, %v11808_v59  ;;  %v11647_v36 = vpop.eup %11646  ;;  %v2173_v44 = vmul.f32 1.442695, %v1958_v60 }
 0x1a7   : > { %v11649_v18 = vpop.eup %11648  ;;  %2336 = vst [vmem:[#allocation2 + $0x288] sm:$0xff] %v11647_v36  ;;  %v2171_v13 = vmul.f32 1.442695, %v1957_v38  ;;  %v10111_v17 = vpop.f32.mrb[88].mxu0  ;;  %v3168_v38 = vmul.f32 %v13877_v46, %v589_v8  ;;  %v1835_v36 = vld [vmem:[%s16103_s3 + $0x2e0] sm:$0xff]  ;;  %v590_v46 = vld [vmem:[%s16106_s6 + $0x248] sm:$0xff] }
 0x1a8   : > { %v14094_v26 = vpop.f32.mrb[88].mxu1  ;;  %2335 = vst [vmem:[#allocation2 + $0x280] sm:$0xff] %v11649_v18  ;;  %11658 = vpow2.f32 %v2173_v44  ;;  %v1960_v21 = vmul.f32 %v10111_v17, %v1832_v10  ;;  %v1544_v29 = vpop.f32.mrb[89].mxu0  ;;  %10493 = vmatmul.mubr.msk.f32.gmra.mrb[194].mxu0 %vm653_vm0, %v3163_v23  ;;  %v591_v44 = vld [vmem:[%s16106_s6 + $0x250] sm:$0xff]  ;;  %v11813_v17 = vld [vmem:[%s16104_s4 + $0x238] sm:$0xff] }
 0x1a9   : > { %10701 = vmatmul.mubr.msk.f32.gmra.mrb[194].mxu1 %vm653_vm0, %v11809_v3  ;;  %v14101_v39 = vpop.f32.mrb[89].mxu1  ;;  %11660 = vpow2.f32 %v2171_v13  ;;  %v1959_v20 = vmul.f32 %v1831_v25, %v1544_v29  ;;  %10495 = vmatprep.mubr.msk.f32.mxu0 %vm653_vm0, %v3164_v53  ;;  %v3167_v53 = vmul.f32 %v13842_v27, %v588_v6  ;;  %v1838_v29 = vld [vmem:[%s16103_s3 + $0x2f8] sm:$0xff]  ;;  %v11814_v3 = vld [vmem:[%s16104_s4 + $0x240] sm:$0xff] }
 0x1aa   : > { %10703 = vmatprep.mubr.msk.f32.mxu1 %vm653_vm0, %v11810_v57  ;;  %v11651_v37 = vpop.eup %11650  ;;  %v2177_v33 = vmul.f32 1.442695, %v1960_v21 }
 0x1ab   : > { %v11653_v41 = vpop.eup %11652  ;;  %2338 = vst [vmem:[#allocation2 + $0x298] sm:$0xff] %v11651_v37  ;;  %v2175_v51 = vmul.f32 1.442695, %v1959_v20  ;;  %v10114_v34 = vpop.f32.mrb[90].mxu0  ;;  %v3170_v20 = vmul.f32 %v13905_v24, %v591_v44  ;;  %v1837_v37 = vld [vmem:[%s16103_s3 + $0x2f0] sm:$0xff]  ;;  %v592_v24 = vld [vmem:[%s16106_s6 + $0x258] sm:$0xff] }
 0x1ac   : > { %v14122_v5 = vpop.f32.mrb[90].mxu1  ;;  %2337 = vst [vmem:[#allocation2 + $0x290] sm:$0xff] %v11653_v41  ;;  %11662 = vpow2.f32 %v2177_v33  ;;  %v1962_v54 = vmul.f32 %v10114_v34, %v1834_v30  ;;  %v1554_v55 = vpop.f32.mrb[91].mxu0  ;;  %10496 = vmatmul.mubr.msk.f32.gmra.mrb[196].mxu0 %vm653_vm0, %v3165_v35  ;;  %v593_v33 = vld [vmem:[%s16106_s6 + $0x260] sm:$0xff]  ;;  %v11815_v34 = vld [vmem:[%s16104_s4 + $0x248] sm:$0xff] }
 0x1ad   : > { %10704 = vmatmul.mubr.msk.f32.gmra.mrb[196].mxu1 %vm653_vm0, %v11811_v43  ;;  %v14129_v15 = vpop.f32.mrb[91].mxu1  ;;  %11664 = vpow2.f32 %v2175_v51  ;;  %v1961_v60 = vmul.f32 %v1833_v31, %v1554_v55  ;;  %10498 = vmatprep.mubr.msk.f32.mxu0 %vm653_vm0, %v3166_v7  ;;  %v3169_v7 = vmul.f32 %v13870_v9, %v590_v46  ;;  %v1840_v55 = vld [vmem:[%s16103_s3 + $0x308] sm:$0xff]  ;;  %v11816_v43 = vld [vmem:[%s16104_s4 + $0x250] sm:$0xff] }
 0x1ae   : > { %10706 = vmatprep.mubr.msk.f32.mxu1 %vm653_vm0, %v11812_v63  ;;  %v11655_v10 = vpop.eup %11654  ;;  %v2181_v59 = vmul.f32 1.442695, %v1962_v54 }
 0x1af   : > { %v11657_v23 = vpop.eup %11656  ;;  %2340 = vst [vmem:[#allocation2 + $0x2a8] sm:$0xff] %v11655_v10  ;;  %v2179_v25 = vmul.f32 1.442695, %v1961_v60  ;;  %v10117_v0 = vpop.f32.mrb[92].mxu0  ;;  %v3172_v60 = vmul.f32 %v13933_v40, %v593_v33  ;;  %v1839_v10 = vld [vmem:[%s16103_s3 + $0x300] sm:$0xff]  ;;  %v594_v40 = vld [vmem:[%s16106_s6 + $0x268] sm:$0xff] }
 0x1b0   : > { %v14150_v18 = vpop.f32.mrb[92].mxu1  ;;  %2339 = vst [vmem:[#allocation2 + $0x2a0] sm:$0xff] %v11657_v23  ;;  %11666 = vpow2.f32 %v2181_v59  ;;  %v1964_v27 = vmul.f32 %v10117_v0, %v1836_v62  ;;  %v1564_v13 = vpop.f32.mrb[93].mxu0  ;;  %10499 = vmatmul.mubr.msk.f32.gmra.mrb[198].mxu0 %vm653_vm0, %v3167_v53  ;;  %v595_v59 = vld [vmem:[%s16106_s6 + $0x270] sm:$0xff]  ;;  %v11817_v0 = vld [vmem:[%s16104_s4 + $0x258] sm:$0xff] }
 0x1b1   : > { %10707 = vmatmul.mubr.msk.f32.gmra.mrb[198].mxu1 %vm653_vm0, %v11813_v17  ;;  %v14157_v42 = vpop.f32.mrb[93].mxu1  ;;  %11668 = vpow2.f32 %v2179_v25  ;;  %v1963_v21 = vmul.f32 %v1835_v36, %v1564_v13  ;;  %10501 = vmatprep.mubr.msk.f32.mxu0 %vm653_vm0, %v3168_v38  ;;  %v3171_v38 = vmul.f32 %v13898_v22, %v592_v24  ;;  %v1842_v13 = vld [vmem:[%s16103_s3 + $0x318] sm:$0xff]  ;;  %v11818_v17 = vld [vmem:[%s16104_s4 + $0x260] sm:$0xff] }
 0x1b2   : > { %10709 = vmatprep.mubr.msk.f32.mxu1 %vm653_vm0, %v11814_v3  ;;  %v11659_v30 = vpop.eup %11658  ;;  %v2185_v57 = vmul.f32 1.442695, %v1964_v27 }
 0x1b3   : > { %v11661_v35 = vpop.eup %11660  ;;  %2342 = vst [vmem:[#allocation2 + $0x2b8] sm:$0xff] %v11659_v30  ;;  %v2183_v31 = vmul.f32 1.442695, %v1963_v21  ;;  %v10120_v8 = vpop.f32.mrb[94].mxu0  ;;  %v3174_v21 = vmul.f32 %v13961_v14, %v595_v59  ;;  %v1841_v30 = vld [vmem:[%s16103_s3 + $0x310] sm:$0xff]  ;;  %v596_v14 = vld [vmem:[%s16106_s6 + $0x278] sm:$0xff] }
 0x1b4   : > { %v14178_v41 = vpop.f32.mrb[94].mxu1  ;;  %2341 = vst [vmem:[#allocation2 + $0x2b0] sm:$0xff] %v11661_v35  ;;  %11670 = vpow2.f32 %v2185_v57  ;;  %v1966_v9 = vmul.f32 %v10120_v8, %v1838_v29  ;;  %v1574_v51 = vpop.f32.mrb[95].mxu0  ;;  %10502 = vmatmul.mubr.msk.f32.gmra.mrb[200].mxu0 %vm653_vm0, %v3169_v7  ;;  %v597_v57 = vld [vmem:[%s16106_s6 + $0x280] sm:$0xff]  ;;  %v11819_v8 = vld [vmem:[%s16104_s4 + $0x268] sm:$0xff] }
 0x1b5   : > { %10710 = vmatmul.mubr.msk.f32.gmra.mrb[200].mxu1 %vm653_vm0, %v11815_v34  ;;  %v14185_v6 = vpop.f32.mrb[95].mxu1  ;;  %11672 = vpow2.f32 %v2183_v31  ;;  %v1965_v54 = vmul.f32 %v1837_v37, %v1574_v51  ;;  %10504 = vmatprep.mubr.msk.f32.mxu0 %vm653_vm0, %v3170_v20  ;;  %v3173_v20 = vmul.f32 %v13926_v48, %v594_v40  ;;  %v1844_v51 = vld [vmem:[%s16103_s3 + $0x328] sm:$0xff]  ;;  %v11820_v34 = vld [vmem:[%s16104_s4 + $0x270] sm:$0xff] }
 0x1b6   : > { %10712 = vmatprep.mubr.msk.f32.mxu1 %vm653_vm0, %v11816_v43  ;;  %v11663_v62 = vpop.eup %11662  ;;  %v2189_v63 = vmul.f32 1.442695, %v1966_v9 }
 0x1b7   : > { %v11665_v53 = vpop.eup %11664  ;;  %2344 = vst [vmem:[#allocation2 + $0x2c8] sm:$0xff] %v11663_v62  ;;  %v2187_v36 = vmul.f32 1.442695, %v1965_v54  ;;  %v10123_v44 = vpop.f32.mrb[96].mxu0  ;;  %v3176_v54 = vmul.f32 %v13989_v45, %v597_v57  ;;  %v1843_v62 = vld [vmem:[%s16103_s3 + $0x320] sm:$0xff]  ;;  %v598_v45 = vld [vmem:[%s16106_s6 + $0x288] sm:$0xff] }
 0x1b8   : > { %v14206_v23 = vpop.f32.mrb[96].mxu1  ;;  %2343 = vst [vmem:[#allocation2 + $0x2c0] sm:$0xff] %v11665_v53  ;;  %11674 = vpow2.f32 %v2189_v63  ;;  %v1968_v22 = vmul.f32 %v10123_v44, %v1840_v55  ;;  %v1584_v25 = vpop.f32.mrb[97].mxu0  ;;  %10505 = vmatmul.mubr.msk.f32.gmra.mrb[202].mxu0 %vm653_vm0, %v3171_v38  ;;  %v599_v63 = vld [vmem:[%s16106_s6 + $0x290] sm:$0xff]  ;;  %v11821_v44 = vld [vmem:[%s16104_s4 + $0x278] sm:$0xff] }
 0x1b9   : > { %10713 = vmatmul.mubr.msk.f32.gmra.mrb[202].mxu1 %vm653_vm0, %v11817_v0  ;;  %v14213_v46 = vpop.f32.mrb[97].mxu1  ;;  %11676 = vpow2.f32 %v2187_v36  ;;  %v1967_v27 = vmul.f32 %v1839_v10, %v1584_v25  ;;  %10507 = vmatprep.mubr.msk.f32.mxu0 %vm653_vm0, %v3172_v60  ;;  %v3175_v60 = vmul.f32 %v13954_v58, %v596_v14  ;;  %v1846_v25 = vld [vmem:[%s16103_s3 + $0x338] sm:$0xff]  ;;  %v11822_v0 = vld [vmem:[%s16104_s4 + $0x280] sm:$0xff] }
 0x1ba   : > { %10715 = vmatprep.mubr.msk.f32.mxu1 %vm653_vm0, %v11818_v17  ;;  %v11667_v29 = vpop.eup %11666  ;;  %v2193_v3 = vmul.f32 1.442695, %v1968_v22 }
 0x1bb   : > { %v11669_v7 = vpop.eup %11668  ;;  %2346 = vst [vmem:[#allocation2 + $0x2d8] sm:$0xff] %v11667_v29  ;;  %v2191_v37 = vmul.f32 1.442695, %v1967_v27  ;;  %v10126_v33 = vpop.f32.mrb[98].mxu0  ;;  %v3178_v27 = vmul.f32 %v14017_v4, %v599_v63  ;;  %v1845_v29 = vld [vmem:[%s16103_s3 + $0x330] sm:$0xff]  ;;  %v600_v4 = vld [vmem:[%s16106_s6 + $0x298] sm:$0xff] }
 0x1bc   : > { %v14234_v35 = vpop.f32.mrb[98].mxu1  ;;  %2345 = vst [vmem:[#allocation2 + $0x2d0] sm:$0xff] %v11669_v7  ;;  %11678 = vpow2.f32 %v2193_v3  ;;  %v1970_v48 = vmul.f32 %v10126_v33, %v1842_v13  ;;  %v1594_v31 = vpop.f32.mrb[99].mxu0  ;;  %10508 = vmatmul.mubr.msk.f32.gmra.mrb[204].mxu0 %vm653_vm0, %v3173_v20  ;;  %v601_v3 = vld [vmem:[%s16106_s6 + $0x2a0] sm:$0xff]  ;;  %v11823_v33 = vld [vmem:[%s16104_s4 + $0x288] sm:$0xff] }
 0x1bd   : > { %10716 = vmatmul.mubr.msk.f32.gmra.mrb[204].mxu1 %vm653_vm0, %v11819_v8  ;;  %v14241_v24 = vpop.f32.mrb[99].mxu1  ;;  %11680 = vpow2.f32 %v2191_v37  ;;  %v1969_v9 = vmul.f32 %v1841_v30, %v1594_v31  ;;  %10510 = vmatprep.mubr.msk.f32.mxu0 %vm653_vm0, %v3174_v21  ;;  %v3177_v21 = vmul.f32 %v13982_v28, %v598_v45  ;;  %v1848_v31 = vld [vmem:[%s16103_s3 + $0x348] sm:$0xff]  ;;  %v11824_v8 = vld [vmem:[%s16104_s4 + $0x290] sm:$0xff] }
 0x1be   : > { %10718 = vmatprep.mubr.msk.f32.mxu1 %vm653_vm0, %v11820_v34  ;;  %v11671_v55 = vpop.eup %11670  ;;  %v2197_v43 = vmul.f32 1.442695, %v1970_v48 }
 0x1bf   : > { %v11673_v38 = vpop.eup %11672  ;;  %2348 = vst [vmem:[#allocation2 + $0x2e8] sm:$0xff] %v11671_v55  ;;  %v2195_v10 = vmul.f32 1.442695, %v1969_v9  ;;  %v10129_v59 = vpop.f32.mrb[100].mxu0  ;;  %v3180_v9 = vmul.f32 %v14045_v12, %v601_v3  ;;  %v1847_v55 = vld [vmem:[%s16103_s3 + $0x340] sm:$0xff]  ;;  %v602_v12 = vld [vmem:[%s16106_s6 + $0x2a8] sm:$0xff] }
 0x1c0   : > { %v14262_v53 = vpop.f32.mrb[100].mxu1  ;;  %2347 = vst [vmem:[#allocation2 + $0x2e0] sm:$0xff] %v11673_v38  ;;  %11682 = vpow2.f32 %v2197_v43  ;;  %v1972_v58 = vmul.f32 %v10129_v59, %v1844_v51  ;;  %v1604_v36 = vpop.f32.mrb[101].mxu0  ;;  %10511 = vmatmul.mubr.msk.f32.gmra.mrb[206].mxu0 %vm653_vm0, %v3175_v60  ;;  %v603_v43 = vld [vmem:[%s16106_s6 + $0x2b0] sm:$0xff]  ;;  %v11825_v59 = vld [vmem:[%s16104_s4 + $0x298] sm:$0xff] }
 0x1c1   : > { %10719 = vmatmul.mubr.msk.f32.gmra.mrb[206].mxu1 %vm653_vm0, %v11821_v44  ;;  %v14269_v40 = vpop.f32.mrb[101].mxu1  ;;  %11684 = vpow2.f32 %v2195_v10  ;;  %v1971_v22 = vmul.f32 %v1843_v62, %v1604_v36  ;;  %10513 = vmatprep.mubr.msk.f32.mxu0 %vm653_vm0, %v3176_v54  ;;  %v3179_v54 = vmul.f32 %v14010_v32, %v600_v4  ;;  %v1850_v36 = vld [vmem:[%s16103_s3 + $0x358] sm:$0xff]  ;;  %v11826_v44 = vld [vmem:[%s16104_s4 + $0x2a0] sm:$0xff] }
 0x1c2   : > { %10721 = vmatprep.mubr.msk.f32.mxu1 %vm653_vm0, %v11822_v0  ;;  %v11675_v13 = vpop.eup %11674  ;;  %v2201_v17 = vmul.f32 1.442695, %v1972_v58 }
 0x1c3   : > { %v11677_v20 = vpop.eup %11676  ;;  %2350 = vst [vmem:[#allocation2 + $0x2f8] sm:$0xff] %v11675_v13  ;;  %v2199_v30 = vmul.f32 1.442695, %v1971_v22  ;;  %v10132_v57 = vpop.f32.mrb[102].mxu0  ;;  %v3182_v22 = vmul.f32 %v14073_v19, %v603_v43  ;;  %v1849_v13 = vld [vmem:[%s16103_s3 + $0x350] sm:$0xff]  ;;  %v604_v19 = vld [vmem:[%s16106_s6 + $0x2b8] sm:$0xff] }
 0x1c4   : > { %v14290_v7 = vpop.f32.mrb[102].mxu1  ;;  %2349 = vst [vmem:[#allocation2 + $0x2f0] sm:$0xff] %v11677_v20  ;;  %11686 = vpow2.f32 %v2201_v17  ;;  %v1974_v28 = vmul.f32 %v10132_v57, %v1846_v25  ;;  %v1614_v37 = vpop.f32.mrb[103].mxu0  ;;  %10514 = vmatmul.mubr.msk.f32.gmra.mrb[208].mxu0 %vm653_vm0, %v3177_v21  ;;  %v605_v17 = vld [vmem:[%s16106_s6 + $0x2c0] sm:$0xff]  ;;  %v11827_v57 = vld [vmem:[%s16104_s4 + $0x2a8] sm:$0xff] }
 0x1c5   : > { %10722 = vmatmul.mubr.msk.f32.gmra.mrb[208].mxu1 %vm653_vm0, %v11823_v33  ;;  %v14297_v14 = vpop.f32.mrb[103].mxu1  ;;  %11688 = vpow2.f32 %v2199_v30  ;;  %v1973_v48 = vmul.f32 %v1845_v29, %v1614_v37  ;;  %10516 = vmatprep.mubr.msk.f32.mxu0 %vm653_vm0, %v3178_v27  ;;  %v3181_v27 = vmul.f32 %v14038_v47, %v602_v12  ;;  %v1852_v37 = vld [vmem:[%s16103_s3 + $0x368] sm:$0xff]  ;;  %v11828_v33 = vld [vmem:[%s16104_s4 + $0x2b0] sm:$0xff] }
 0x1c6   : > { %10724 = vmatprep.mubr.msk.f32.mxu1 %vm653_vm0, %v11824_v8  ;;  %v11679_v51 = vpop.eup %11678  ;;  %v2205_v34 = vmul.f32 1.442695, %v1974_v28 }
 0x1c7   : > { %v11681_v60 = vpop.eup %11680  ;;  %2352 = vst [vmem:[#allocation2 + $0x308] sm:$0xff] %v11679_v51  ;;  %v2203_v62 = vmul.f32 1.442695, %v1973_v48  ;;  %v10135_v63 = vpop.f32.mrb[104].mxu0  ;;  %v3184_v48 = vmul.f32 %v14101_v39, %v605_v17  ;;  %v1851_v51 = vld [vmem:[%s16103_s3 + $0x360] sm:$0xff]  ;;  %v606_v39 = vld [vmem:[%s16106_s6 + $0x2c8] sm:$0xff] }
 0x1c8   : > { %v14318_v38 = vpop.f32.mrb[104].mxu1  ;;  %2351 = vst [vmem:[#allocation2 + $0x300] sm:$0xff] %v11681_v60  ;;  %11690 = vpow2.f32 %v2205_v34  ;;  %v1976_v32 = vmul.f32 %v10135_v63, %v1848_v31  ;;  %v1624_v10 = vpop.f32.mrb[105].mxu0  ;;  %10517 = vmatmul.mubr.msk.f32.gmra.mrb[210].mxu0 %vm653_vm0, %v3179_v54  ;;  %v607_v34 = vld [vmem:[%s16106_s6 + $0x2d0] sm:$0xff]  ;;  %v11829_v63 = vld [vmem:[%s16104_s4 + $0x2b8] sm:$0xff] }
 0x1c9   : > { %10725 = vmatmul.mubr.msk.f32.gmra.mrb[210].mxu1 %vm653_vm0, %v11825_v59  ;;  %v14325_v45 = vpop.f32.mrb[105].mxu1  ;;  %11692 = vpow2.f32 %v2203_v62  ;;  %v1975_v58 = vmul.f32 %v1847_v55, %v1624_v10  ;;  %10519 = vmatprep.mubr.msk.f32.mxu0 %vm653_vm0, %v3180_v9  ;;  %v3183_v9 = vmul.f32 %v14066_v52, %v604_v19  ;;  %v3186_v10 = vmul.f32 %v14129_v15, %v607_v34  ;;  %v1854_v59 = vld [vmem:[%s16103_s3 + $0x378] sm:$0xff]  ;;  %v1853_v15 = vld [vmem:[%s16103_s3 + $0x370] sm:$0xff] }
 0x1ca   : > { %10727 = vmatprep.mubr.msk.f32.mxu1 %vm653_vm0, %v11826_v44  ;;  %v11683_v25 = vpop.eup %11682  ;;  %v2209_v0 = vmul.f32 1.442695, %v1976_v32 }
 0x1cb   : > { %v11685_v21 = vpop.eup %11684  ;;  %2354 = vst [vmem:[#allocation2 + $0x318] sm:$0xff] %v11683_v25  ;;  %v2207_v29 = vmul.f32 1.442695, %v1975_v58  ;;  %v10138_v3 = vpop.f32.mrb[106].mxu0  ;;  %v11830_v58 = vld [vmem:[%s16104_s4 + $0x2c0] sm:$0xff] }
 0x1cc   : > { %v14346_v20 = vpop.f32.mrb[106].mxu1  ;;  %2353 = vst [vmem:[#allocation2 + $0x310] sm:$0xff] %v11685_v21  ;;  %11694 = vpow2.f32 %v2209_v0  ;;  %v1978_v47 = vmul.f32 %v10138_v3, %v1850_v36  ;;  %v1634_v30 = vpop.f32.mrb[107].mxu0  ;;  %10520 = vmatmul.mubr.msk.f32.gmra.mrb[212].mxu0 %vm653_vm0, %v3181_v27  ;;  %v609_v25 = vld [vmem:[%s16106_s6 + $0x2e0] sm:$0xff]  ;;  %v11831_v3 = vld [vmem:[%s16104_s4 + $0x2c8] sm:$0xff] }
 0x1cd   : > { %10728 = vmatmul.mubr.msk.f32.gmra.mrb[212].mxu1 %vm653_vm0, %v11827_v57  ;;  %v14353_v4 = vpop.f32.mrb[107].mxu1  ;;  %11696 = vpow2.f32 %v2207_v29  ;;  %v1977_v28 = vmul.f32 %v1849_v13, %v1634_v30  ;;  %10522 = vmatprep.mubr.msk.f32.mxu0 %vm653_vm0, %v3182_v22  ;;  %v3185_v22 = vmul.f32 %v14094_v26, %v606_v39  ;;  %v608_v13 = vld [vmem:[%s16106_s6 + $0x2d8] sm:$0xff]  ;;  %v3188_v30 = vmul.f32 %v14157_v42, %v609_v25  ;;  %v1856_v57 = vld [vmem:[%s16103_s3 + $0x388] sm:$0xff]  ;;  %v611_v42 = vld [vmem:[%s16106_s6 + $0x2f0] sm:$0xff] }
 0x1ce   : > { %10730 = vmatprep.mubr.msk.f32.mxu1 %vm653_vm0, %v11828_v33  ;;  %v11687_v31 = vpop.eup %11686  ;;  %v2213_v8 = vmul.f32 1.442695, %v1978_v47  ;;  %v3187_v33 = vmul.f32 %v14122_v5, %v608_v13  ;;  %v11835_v13 = vld [vmem:[%s16104_s4 + $0x2e8] sm:$0xff] }
 0x1cf   : > { %v11689_v54 = vpop.eup %11688  ;;  %2356 = vst [vmem:[#allocation2 + $0x328] sm:$0xff] %v11687_v31  ;;  %v2211_v55 = vmul.f32 1.442695, %v1977_v28  ;;  %v10141_v43 = vpop.f32.mrb[108].mxu0  ;;  %v11832_v28 = vld [vmem:[%s16104_s4 + $0x2d0] sm:$0xff]  ;;  %v1855_v31 = vld [vmem:[%s16103_s3 + $0x380] sm:$0xff] }
 0x1d0   : > { %v14374_v60 = vpop.f32.mrb[108].mxu1  ;;  %2355 = vst [vmem:[#allocation2 + $0x320] sm:$0xff] %v11689_v54  ;;  %11698 = vpow2.f32 %v2213_v8  ;;  %v1980_v52 = vmul.f32 %v10141_v43, %v1852_v37  ;;  %v1644_v62 = vpop.f32.mrb[109].mxu0  ;;  %10523 = vmatmul.mubr.msk.f32.gmra.mrb[214].mxu0 %vm653_vm0, %v3183_v9  ;;  %v610_v9 = vld [vmem:[%s16106_s6 + $0x2e8] sm:$0xff]  ;;  %v11833_v43 = vld [vmem:[%s16104_s4 + $0x2d8] sm:$0xff] }
 0x1d1   : > { %10731 = vmatmul.mubr.msk.f32.gmra.mrb[214].mxu1 %vm653_vm0, %v11829_v63  ;;  %v14381_v12 = vpop.f32.mrb[109].mxu1  ;;  %11700 = vpow2.f32 %v2211_v55  ;;  %v1979_v32 = vmul.f32 %v1851_v51, %v1644_v62  ;;  %10525 = vmatprep.mubr.msk.f32.mxu0 %vm653_vm0, %v3184_v48  ;;  %v1858_v63 = vld [vmem:[%s16103_s3 + $0x398] sm:$0xff] }
 0x1d2   : > { %10733 = vmatprep.mubr.msk.f32.mxu1 %vm653_vm0, %v11830_v58  ;;  %v11691_v36 = vpop.eup %11690  ;;  %v2217_v44 = vmul.f32 1.442695, %v1980_v52  ;;  %v3190_v52 = vmul.f32 %v14185_v6, %v611_v42  ;;  %v613_v6 = vld [vmem:[%s16106_s6 + $0x300] sm:$0xff] }
 0x1d3   : > { %v11693_v0 = vpop.eup %11692  ;;  %2358 = vst [vmem:[#allocation2 + $0x338] sm:$0xff] %v11691_v36  ;;  %v2215_v27 = vmul.f32 1.442695, %v1979_v32  ;;  %v10144_v17 = vpop.f32.mrb[110].mxu0  ;;  %v11834_v32 = vld [vmem:[%s16104_s4 + $0x2e0] sm:$0xff]  ;;  %v1857_v36 = vld [vmem:[%s16103_s3 + $0x390] sm:$0xff] }
 0x1d4   : > { %v14402_v21 = vpop.f32.mrb[110].mxu1  ;;  %2357 = vst [vmem:[#allocation2 + $0x330] sm:$0xff] %v11693_v0  ;;  %11702 = vpow2.f32 %v2217_v44  ;;  %v1982_v26 = vmul.f32 %v10144_v17, %v1854_v59  ;;  %v1654_v29 = vpop.f32.mrb[111].mxu0  ;;  %10526 = vmatmul.mubr.msk.f32.gmra.mrb[216].mxu0 %vm653_vm0, %v3185_v22  ;;  %v3189_v59 = vmul.f32 %v14150_v18, %v610_v9  ;;  %v612_v22 = vld [vmem:[%s16106_s6 + $0x2f8] sm:$0xff] }
 0x1d5   : > { %10734 = vmatmul.mubr.msk.f32.gmra.mrb[216].mxu1 %vm653_vm0, %v11831_v3  ;;  %v14409_v19 = vpop.f32.mrb[111].mxu1  ;;  %11704 = vpow2.f32 %v2215_v27  ;;  %v1981_v47 = vmul.f32 %v1853_v15, %v1654_v29  ;;  %10528 = vmatprep.mubr.msk.f32.mxu0 %vm653_vm0, %v3186_v10  ;;  %v1860_v3 = vld [vmem:[%s16103_s3 + $0x3a8] sm:$0xff] }
 0x1d6   : > { %10736 = vmatprep.mubr.msk.f32.mxu1 %vm653_vm0, %v11832_v28  ;;  %v11695_v37 = vpop.eup %11694  ;;  %v2221_v48 = vmul.f32 1.442695, %v1982_v26  ;;  %v3192_v26 = vmul.f32 %v14213_v46, %v613_v6  ;;  %v615_v46 = vld [vmem:[%s16106_s6 + $0x310] sm:$0xff] }
 0x1d7   : > { %v11697_v8 = vpop.eup %11696  ;;  %2360 = vst [vmem:[#allocation2 + $0x348] sm:$0xff] %v11695_v37  ;;  %v2219_v51 = vmul.f32 1.442695, %v1981_v47  ;;  %v10147_v34 = vpop.f32.mrb[112].mxu0  ;;  %v11836_v47 = vld [vmem:[%s16104_s4 + $0x2f0] sm:$0xff]  ;;  %v1859_v37 = vld [vmem:[%s16103_s3 + $0x3a0] sm:$0xff] }
 0x1d8   : > { %v14430_v54 = vpop.f32.mrb[112].mxu1  ;;  %2359 = vst [vmem:[#allocation2 + $0x340] sm:$0xff] %v11697_v8  ;;  %11706 = vpow2.f32 %v2221_v48  ;;  %v1984_v5 = vmul.f32 %v10147_v34, %v1856_v57  ;;  %v1664_v55 = vpop.f32.mrb[113].mxu0  ;;  %10529 = vmatmul.mubr.msk.f32.gmra.mrb[218].mxu0 %vm653_vm0, %v3187_v33  ;;  %v3191_v57 = vmul.f32 %v14178_v41, %v612_v22  ;;  %v614_v48 = vld [vmem:[%s16106_s6 + $0x308] sm:$0xff] }
 0x1d9   : > { %10737 = vmatmul.mubr.msk.f32.gmra.mrb[218].mxu1 %vm653_vm0, %v11833_v43  ;;  %v14437_v39 = vpop.f32.mrb[113].mxu1  ;;  %11708 = vpow2.f32 %v2219_v51  ;;  %v1983_v62 = vmul.f32 %v1855_v31, %v1664_v55  ;;  %10531 = vmatprep.mubr.msk.f32.mxu0 %vm653_vm0, %v3188_v30  ;;  %v11837_v51 = vld [vmem:[%s16104_s4 + $0x2f8] sm:$0xff] }
 0x1da   : > { %10739 = vmatprep.mubr.msk.f32.mxu1 %vm653_vm0, %v11834_v32  ;;  %v11699_v10 = vpop.eup %11698  ;;  %v2225_v58 = vmul.f32 1.442695, %v1984_v5  ;;  %v3194_v5 = vmul.f32 %v14241_v24, %v615_v46  ;;  %v1862_v43 = vld [vmem:[%s16103_s3 + $0x3b8] sm:$0xff]  ;;  %v617_v24 = vld [vmem:[%s16106_s6 + $0x320] sm:$0xff]  ;;  %v618_v46 = vld [vmem:[%s16106_s6 + $0x328] sm:$0xff] }
 0x1db   : > { %v11701_v44 = vpop.eup %11700  ;;  %2362 = vst [vmem:[#allocation2 + $0x358] sm:$0xff] %v11699_v10  ;;  %v2223_v15 = vmul.f32 1.442695, %v1983_v62  ;;  %v10150_v25 = vpop.f32.mrb[114].mxu0  ;;  %v1861_v10 = vld [vmem:[%s16103_s3 + $0x3b0] sm:$0xff] }
 0x1dc   : > { %v14458_v0 = vpop.f32.mrb[114].mxu1  ;;  %2361 = vst [vmem:[#allocation2 + $0x350] sm:$0xff] %v11701_v44  ;;  %11710 = vpow2.f32 %v2225_v58  ;;  %v1986_v18 = vmul.f32 %v10150_v25, %v1858_v63  ;;  %v1674_v27 = vpop.f32.mrb[115].mxu0  ;;  %10532 = vmatmul.mubr.msk.f32.gmra.mrb[220].mxu0 %vm653_vm0, %v3189_v59  ;;  %v3193_v63 = vmul.f32 %v14206_v23, %v614_v48  ;;  %v616_v58 = vld [vmem:[%s16106_s6 + $0x318] sm:$0xff] }
 0x1dd   : > { %10740 = vmatmul.mubr.msk.f32.gmra.mrb[220].mxu1 %vm653_vm0, %v11835_v13  ;;  %v14465_v17 = vpop.f32.mrb[115].mxu1  ;;  %11712 = vpow2.f32 %v2223_v15  ;;  %v1985_v29 = vmul.f32 %v1857_v36, %v1674_v27  ;;  %10534 = vmatprep.mubr.msk.f32.mxu0 %vm653_vm0, %v3190_v52  ;;  %v11838_v52 = vld [vmem:[%s16104_s4 + $0x300] sm:$0xff]  ;;  %v11839_v15 = vld [vmem:[%s16104_s4 + $0x308] sm:$0xff] }
 0x1de   : > { %10742 = vmatprep.mubr.msk.f32.mxu1 %vm653_vm0, %v11836_v47  ;;  %v11703_v30 = vpop.eup %11702  ;;  %v2229_v28 = vmul.f32 1.442695, %v1986_v18  ;;  %v3196_v18 = vmul.f32 %v14269_v40, %v617_v24  ;;  %v1864_v13 = vld [vmem:[%s16103_s3 + $0x3c8] sm:$0xff]  ;;  %v619_v40 = vld [vmem:[%s16106_s6 + $0x330] sm:$0xff]  ;;  %v620_v24 = vld [vmem:[%s16106_s6 + $0x338] sm:$0xff] }
 0x1df   : > { %v11705_v33 = vpop.eup %11704  ;;  %2364 = vst [vmem:[#allocation2 + $0x368] sm:$0xff] %v11703_v30  ;;  %v2227_v42 = vmul.f32 1.442695, %v1985_v29  ;;  %v10153_v31 = vpop.f32.mrb[116].mxu0  ;;  %v1863_v30 = vld [vmem:[%s16103_s3 + $0x3c0] sm:$0xff] }
 0x1e0   : > { %v14486_v8 = vpop.f32.mrb[116].mxu1  ;;  %2363 = vst [vmem:[#allocation2 + $0x360] sm:$0xff] %v11705_v33  ;;  %11714 = vpow2.f32 %v2229_v28  ;;  %v1988_v41 = vmul.f32 %v10153_v31, %v1860_v3  ;;  %v1684_v9 = vpop.f32.mrb[117].mxu0  ;;  %10535 = vmatmul.mubr.msk.f32.gmra.mrb[222].mxu0 %vm653_vm0, %v3191_v57  ;;  %v3195_v3 = vmul.f32 %v14234_v35, %v616_v58 }
 0x1e1   : > { %10743 = vmatmul.mubr.msk.f32.gmra.mrb[222].mxu1 %vm653_vm0, %v11837_v51  ;;  %v14493_v34 = vpop.f32.mrb[117].mxu1  ;;  %11716 = vpow2.f32 %v2227_v42  ;;  %v1987_v55 = vmul.f32 %v1859_v37, %v1684_v9  ;;  %10537 = vmatprep.mubr.msk.f32.mxu0 %vm653_vm0, %v3192_v26  ;;  %v11840_v26 = vld [vmem:[%s16104_s4 + $0x310] sm:$0xff]  ;;  %v11841_v42 = vld [vmem:[%s16104_s4 + $0x318] sm:$0xff] }
 0x1e2   : > { %10745 = vmatprep.mubr.msk.f32.mxu1 %vm653_vm0, %v11838_v52  ;;  %v11707_v62 = vpop.eup %11706  ;;  %v2233_v32 = vmul.f32 1.442695, %v1988_v41  ;;  %v3198_v41 = vmul.f32 %v14297_v14, %v619_v40  ;;  %v1866_v51 = vld [vmem:[%s16103_s3 + $0x3d8] sm:$0xff]  ;;  %v621_v14 = vld [vmem:[%s16106_s6 + $0x340] sm:$0xff]  ;;  %v622_v40 = vld [vmem:[%s16106_s6 + $0x348] sm:$0xff] }
 0x1e3   : > { %v11709_v59 = vpop.eup %11708  ;;  %2366 = vst [vmem:[#allocation2 + $0x378] sm:$0xff] %v11707_v62  ;;  %v2231_v6 = vmul.f32 1.442695, %v1987_v55  ;;  %v10156_v36 = vpop.f32.mrb[118].mxu0  ;;  %v1865_v62 = vld [vmem:[%s16103_s3 + $0x3d0] sm:$0xff] }
 0x1e4   : > { %v14514_v44 = vpop.f32.mrb[118].mxu1  ;;  %2365 = vst [vmem:[#allocation2 + $0x370] sm:$0xff] %v11709_v59  ;;  %11718 = vpow2.f32 %v2233_v32  ;;  %v1990_v23 = vmul.f32 %v10156_v36, %v1862_v43  ;;  %v1694_v22 = vpop.f32.mrb[119].mxu0  ;;  %10538 = vmatmul.mubr.msk.f32.gmra.mrb[224].mxu0 %vm653_vm0, %v3193_v63  ;;  %v3197_v43 = vmul.f32 %v14262_v53, %v618_v46 }
 0x1e5   : > { %10746 = vmatmul.mubr.msk.f32.gmra.mrb[224].mxu1 %vm653_vm0, %v11839_v15  ;;  %v14521_v25 = vpop.f32.mrb[119].mxu1  ;;  %11720 = vpow2.f32 %v2231_v6  ;;  %v1989_v27 = vmul.f32 %v1861_v10, %v1694_v22  ;;  %10540 = vmatprep.mubr.msk.f32.mxu0 %vm653_vm0, %v3194_v5  ;;  %v11842_v5 = vld [vmem:[%s16104_s4 + $0x320] sm:$0xff]  ;;  %v11843_v6 = vld [vmem:[%s16104_s4 + $0x328] sm:$0xff] }
 0x1e6   : > { %10748 = vmatprep.mubr.msk.f32.mxu1 %vm653_vm0, %v11840_v26  ;;  %v11711_v29 = vpop.eup %11710  ;;  %v2237_v47 = vmul.f32 1.442695, %v1990_v23  ;;  %v3200_v23 = vmul.f32 %v14325_v45, %v621_v14  ;;  %v1868_v15 = vld [vmem:[%s16103_s3 + $0x3e8] sm:$0xff]  ;;  %v623_v45 = vld [vmem:[%s16106_s6 + $0x350] sm:$0xff]  ;;  %v624_v14 = vld [vmem:[%s16106_s6 + $0x358] sm:$0xff] }
 0x1e7   : > { %v11713_v57 = vpop.eup %11712  ;;  %2368 = vst [vmem:[#allocation2 + $0x388] sm:$0xff] %v11711_v29  ;;  %v2235_v28 = vmul.f32 1.442695, %v1989_v27  ;;  %v10159_v37 = vpop.f32.mrb[120].mxu0  ;;  %v1867_v29 = vld [vmem:[%s16103_s3 + $0x3e0] sm:$0xff] }
 0x1e8   : > { %v14542_v33 = vpop.f32.mrb[120].mxu1  ;;  %2367 = vst [vmem:[#allocation2 + $0x380] sm:$0xff] %v11713_v57  ;;  %11722 = vpow2.f32 %v2237_v47  ;;  %v1992_v35 = vmul.f32 %v10159_v37, %v1864_v13  ;;  %v1704_v48 = vpop.f32.mrb[121].mxu0  ;;  %10541 = vmatmul.mubr.msk.f32.gmra.mrb[226].mxu0 %vm653_vm0, %v3195_v3  ;;  %v3199_v13 = vmul.f32 %v14290_v7, %v620_v24 }
 0x1e9   : > { %10749 = vmatmul.mubr.msk.f32.gmra.mrb[226].mxu1 %vm653_vm0, %v11841_v42  ;;  %v14549_v31 = vpop.f32.mrb[121].mxu1  ;;  %11724 = vpow2.f32 %v2235_v28  ;;  %v1991_v9 = vmul.f32 %v1863_v30, %v1704_v48  ;;  %10543 = vmatprep.mubr.msk.f32.mxu0 %vm653_vm0, %v3196_v18  ;;  %v11844_v18 = vld [vmem:[%s16104_s4 + $0x330] sm:$0xff]  ;;  %v11845_v28 = vld [vmem:[%s16104_s4 + $0x338] sm:$0xff] }
 0x1ea   : > { %10751 = vmatprep.mubr.msk.f32.mxu1 %vm653_vm0, %v11842_v5  ;;  %v11715_v55 = vpop.eup %11714  ;;  %v2241_v52 = vmul.f32 1.442695, %v1992_v35  ;;  %v3202_v35 = vmul.f32 %v14353_v4, %v623_v45  ;;  %v1870_v42 = vld [vmem:[%s16103_s3 + $0x3f8] sm:$0xff]  ;;  %v625_v4 = vld [vmem:[%s16106_s6 + $0x360] sm:$0xff] }
 0x1eb   : > { %v11717_v63 = vpop.eup %11716  ;;  %2370 = vst [vmem:[#allocation2 + $0x398] sm:$0xff] %v11715_v55  ;;  %v2239_v32 = vmul.f32 1.442695, %v1991_v9  ;;  %v10162_v10 = vpop.f32.mrb[122].mxu0  ;;  %v1869_v55 = vld [vmem:[%s16103_s3 + $0x3f0] sm:$0xff] }
 0x1ec   : > { %v14570_v59 = vpop.f32.mrb[122].mxu1  ;;  %2369 = vst [vmem:[#allocation2 + $0x390] sm:$0xff] %v11717_v63  ;;  %11726 = vpow2.f32 %v2241_v52  ;;  %v1994_v53 = vmul.f32 %v10162_v10, %v1866_v51  ;;  %v1714_v58 = vpop.f32.mrb[123].mxu0  ;;  %10544 = vmatmul.mubr.msk.f32.gmra.mrb[228].mxu0 %vm653_vm0, %v3197_v43  ;;  %v3201_v51 = vmul.f32 %v14318_v38, %v622_v40  ;;  %v11849_v40 = vld [vmem:[%s16104_s4 + $0x358] sm:$0xff] }
 0x1ed   : > { %10752 = vmatmul.mubr.msk.f32.gmra.mrb[228].mxu1 %vm653_vm0, %v11843_v6  ;;  %v14577_v36 = vpop.f32.mrb[123].mxu1  ;;  %11728 = vpow2.f32 %v2239_v32  ;;  %v1993_v22 = vmul.f32 %v1865_v62, %v1714_v58  ;;  %10546 = vmatprep.mubr.msk.f32.mxu0 %vm653_vm0, %v3198_v41  ;;  %v11846_v41 = vld [vmem:[%s16104_s4 + $0x340] sm:$0xff]  ;;  %v11847_v32 = vld [vmem:[%s16104_s4 + $0x348] sm:$0xff]  ;;  %v11848_v6 = vld [vmem:[%s16104_s4 + $0x350] sm:$0xff] }
 0x1ee   : > { %10754 = vmatprep.mubr.msk.f32.mxu1 %vm653_vm0, %v11844_v18  ;;  %v11719_v27 = vpop.eup %11718  ;;  %v2245_v26 = vmul.f32 1.442695, %v1994_v53  ;;  %v3204_v53 = vmul.f32 %v14381_v12, %v625_v4  ;;  %v626_v12 = vld [vmem:[%s16106_s6 + $0x368] sm:$0xff] }
 0x1ef   : > { %v11721_v3 = vpop.eup %11720  ;;  %2372 = vst [vmem:[#allocation2 + $0x3a8] sm:$0xff] %v11719_v27  ;;  %v2243_v47 = vmul.f32 1.442695, %v1993_v22  ;;  %v10165_v30 = vpop.f32.mrb[124].mxu0  ;;  %v3203_v22 = vmul.f32 %v14346_v20, %v624_v14  ;;  %v11851_v4 = vld [vmem:[%s16104_s4 + $0x368] sm:$0xff] }
 0x1f0   : > { %v14598_v57 = vpop.f32.mrb[124].mxu1  ;;  %2371 = vst [vmem:[#allocation2 + $0x3a0] sm:$0xff] %v11721_v3  ;;  %11730 = vpow2.f32 %v2245_v26  ;;  %v1996_v7 = vmul.f32 %v10165_v30, %v1868_v15  ;;  %v1724_v46 = vpop.f32.mrb[125].mxu0  ;;  %10547 = vmatmul.mubr.msk.f32.gmra.mrb[230].mxu0 %vm653_vm0, %v3199_v13  ;;  %v627_v15 = vld [vmem:[%s16106_s6 + $0x370] sm:$0xff] }
 0x1f1   : > { %10755 = vmatmul.mubr.msk.f32.gmra.mrb[230].mxu1 %vm653_vm0, %v11845_v28  ;;  %v14605_v37 = vpop.f32.mrb[125].mxu1  ;;  %11732 = vpow2.f32 %v2243_v47  ;;  %v1995_v48 = vmul.f32 %v1867_v29, %v1724_v46  ;;  %10549 = vmatprep.mubr.msk.f32.mxu0 %vm653_vm0, %v3200_v23  ;;  %v3206_v47 = vmul.f32 %v14409_v19, %v627_v15  ;;  %v3205_v28 = vmul.f32 %v14374_v60, %v626_v12  ;;  %v628_v19 = vld [vmem:[%s16106_s6 + $0x378] sm:$0xff]  ;;  %v11854_v15 = vld [vmem:[%s16104_s4 + $0x380] sm:$0xff] }
 0x1f2   : > { %10757 = vmatprep.mubr.msk.f32.mxu1 %vm653_vm0, %v11846_v41  ;;  %v11723_v9 = vpop.eup %11722  ;;  %v2249_v5 = vmul.f32 1.442695, %v1996_v7  ;;  %v11850_v7 = vld [vmem:[%s16104_s4 + $0x360] sm:$0xff] }
 0x1f3   : > { %v11725_v43 = vpop.eup %11724  ;;  %2374 = vst [vmem:[#allocation2 + $0x3b8] sm:$0xff] %v11723_v9  ;;  %v2247_v52 = vmul.f32 1.442695, %v1995_v48  ;;  %v10168_v62 = vpop.f32.mrb[126].mxu0  ;;  %v633_v12 = vld [vmem:[%s16106_s6 + $0x3a0] sm:$0xff] }
 0x1f4   : > { %v14626_v63 = vpop.f32.mrb[126].mxu1  ;;  %2373 = vst [vmem:[#allocation2 + $0x3b0] sm:$0xff] %v11725_v43  ;;  %11734 = vpow2.f32 %v2249_v5  ;;  %v1998_v38 = vmul.f32 %v10168_v62, %v1870_v42  ;;  %v1734_v24 = vpop.f32.mrb[127].mxu0  ;;  %10550 = vmatmul.mubr.msk.f32.gmra.mrb[232].mxu0 %vm653_vm0, %v3201_v51  ;;  %v11852_v43 = vld [vmem:[%s16104_s4 + $0x370] sm:$0xff] }
 0x1f5   : > { %10758 = vmatmul.mubr.msk.f32.gmra.mrb[232].mxu1 %vm653_vm0, %v11847_v32  ;;  %v14633_v10 = vpop.f32.mrb[127].mxu1  ;;  %11736 = vpow2.f32 %v2247_v52  ;;  %v1997_v58 = vmul.f32 %v1869_v55, %v1734_v24  ;;  %10552 = vmatprep.mubr.msk.f32.mxu0 %vm653_vm0, %v3202_v35  ;;  %v629_v35 = vld [vmem:[%s16106_s6 + $0x380] sm:$0xff]  ;;  %v3207_v52 = vmul.f32 %v14402_v21, %v628_v19  ;;  %v631_v62 = vld [vmem:[%s16106_s6 + $0x390] sm:$0xff] }
 0x1f6   : > { %10760 = vmatprep.mubr.msk.f32.mxu1 %vm653_vm0, %v11848_v6  ;;  %v11727_v23 = vpop.eup %11726  ;;  %v2253_v18 = vmul.f32 1.442695, %v1998_v38  ;;  %v3208_v5 = vmul.f32 %v14437_v39, %v629_v35  ;;  %v630_v39 = vld [vmem:[%s16106_s6 + $0x388] sm:$0xff]  ;;  %v11853_v6 = vld [vmem:[%s16104_s4 + $0x378] sm:$0xff] }
 0x1f7   : > { %v11729_v27 = vpop.eup %11728  ;;  %2376 = vst [vmem:[#allocation2 + $0x3c8] sm:$0xff] %v11727_v23  ;;  %v2251_v13 = vmul.f32 1.442695, %v1997_v58  ;;  %v10395_v45 = vpop.f32.mrb[128].mxu0  ;;  %v3210_v23 = vmul.f32 %v14465_v17, %v631_v62  ;;  %v632_v17 = vld [vmem:[%s16106_s6 + $0x398] sm:$0xff] }
 0x1f8   : > { %v10603_v26 = vpop.f32.mrb[128].mxu1  ;;  %2375 = vst [vmem:[#allocation2 + $0x3c0] sm:$0xff] %v11729_v27  ;;  %11738 = vpow2.f32 %v2253_v18  ;;  %v3674_v3 = vpop.f32.mrb[129].mxu0  ;;  %10553 = vmatmul.mubr.msk.f32.gmra.mrb[234].mxu0 %vm653_vm0, %v3203_v22  ;;  %v3209_v27 = vmul.f32 %v14430_v54, %v630_v39  ;;  %v11860_v39 = vld [vmem:[%s16104_s4 + $0x3b0] sm:$0xff] }
 0x1f9   : > { %v5027_v29 = vmul.f32 %v10603_v26, %v10395_v45  ;;  %v4387_v20 = vpop.f32.mrb[129].mxu1  ;;  %10761 = vmatmul.mubr.msk.f32.gmra.mrb[234].mxu1 %vm653_vm0, %v11849_v40  ;;  %11740 = vpow2.f32 %v2251_v13  ;;  %10555 = vmatprep.mubr.msk.f32.mxu0 %vm653_vm0, %v3204_v53  ;;  %v3212_v40 = vmul.f32 %v14493_v34, %v633_v12  ;;  %v634_v34 = vld [vmem:[%s16106_s6 + $0x3a8] sm:$0xff]  ;;  %v641_v12 = vld [vmem:[%s16106_s6 + $0x3e0] sm:$0xff] }
 0x1fa   : > { %v5026_v30 = vmul.f32 %v4387_v20, %v3674_v3  ;;  %10763 = vmatprep.mubr.msk.f32.mxu1 %vm653_vm0, %v11850_v7  ;;  %v11731_v46 = vpop.eup %11730  ;;  %v11855_v20 = vld [vmem:[%s16104_s4 + $0x388] sm:$0xff]  ;;  %v3211_v7 = vmul.f32 %v14458_v0, %v632_v17  ;;  %v11857_v0 = vld [vmem:[%s16104_s4 + $0x398] sm:$0xff] }
 0x1fb   : > { %5155 = vst [vmem:[#allocation3 + $0x8] sm:$0xff] %v5027_v29  ;;  %v11733_v48 = vpop.eup %11732  ;;  %2378 = vst [vmem:[#allocation2 + $0x3d8] sm:$0xff] %v11731_v46  ;;  %v10398_v42 = vpop.f32.mrb[130].mxu0  ;;  %v635_v46 = vld [vmem:[%s16106_s6 + $0x3b0] sm:$0xff] }
 0x1fc   : > { %5154 = vst [vmem:[#allocation3] sm:$0xff] %v5026_v30  ;;  %v10606_v41 = vpop.f32.mrb[130].mxu1  ;;  %2377 = vst [vmem:[#allocation2 + $0x3d0] sm:$0xff] %v11733_v48  ;;  %v3684_v51 = vpop.f32.mrb[131].mxu0  ;;  %10556 = vmatmul.mubr.msk.f32.gmra.mrb[236].mxu0 %vm653_vm0, %v3205_v28  ;;  %v11856_v30 = vld [vmem:[%s16104_s4 + $0x390] sm:$0xff] }
 0x1fd   : > { %v5029_v9 = vmul.f32 %v10606_v41, %v10398_v42  ;;  %v4397_v60 = vpop.f32.mrb[131].mxu1  ;;  %10764 = vmatmul.mubr.msk.f32.gmra.mrb[236].mxu1 %vm653_vm0, %v11851_v4  ;;  %10558 = vmatprep.mubr.msk.f32.mxu0 %vm653_vm0, %v3206_v47  ;;  %v3214_v41 = vmul.f32 %v14521_v25, %v635_v46  ;;  %v637_v4 = vld [vmem:[%s16106_s6 + $0x3c0] sm:$0xff]  ;;  %v636_v25 = vld [vmem:[%s16106_s6 + $0x3b8] sm:$0xff] }
 0x1fe   : > { %v5028_v55 = vmul.f32 %v4397_v60, %v3684_v51  ;;  %10766 = vmatprep.mubr.msk.f32.mxu1 %vm653_vm0, %v11852_v43  ;;  %v11735_v14 = vpop.eup %11734  ;;  %v11858_v51 = vld [vmem:[%s16104_s4 + $0x3a0] sm:$0xff]  ;;  %v3213_v60 = vmul.f32 %v14486_v8, %v634_v34  ;;  %v11859_v8 = vld [vmem:[%s16104_s4 + $0x3a8] sm:$0xff]  ;;  %v3216_v62 = vmul.f32 %v14549_v31, %v637_v4 }
 0x1ff   : > { %5157 = vst [vmem:[#allocation3 + $0x18] sm:$0xff] %v5029_v9  ;;  %v11737_v38 = vpop.eup %11736  ;;  %2380 = vst [vmem:[#allocation2 + $0x3e8] sm:$0xff] %v11735_v14  ;;  %v10401_v24 = vpop.f32.mrb[132].mxu0  ;;  %v638_v31 = vld [vmem:[%s16106_s6 + $0x3c8] sm:$0xff] }
 0x200   : > { %5156 = vst [vmem:[#allocation3 + $0x10] sm:$0xff] %v5028_v55  ;;  %v10609_v32 = vpop.f32.mrb[132].mxu1  ;;  %2379 = vst [vmem:[#allocation2 + $0x3e0] sm:$0xff] %v11737_v38  ;;  %v3694_v58 = vpop.f32.mrb[133].mxu0  ;;  %10559 = vmatmul.mubr.msk.f32.gmra.mrb[238].mxu0 %vm653_vm0, %v3207_v52  ;;  %v11867_v4 = vld [vmem:[%s16104_s4 + $0x3e8] sm:$0xff] }
 0x201   : > { %v5031_v53 = vmul.f32 %v10609_v32, %v10401_v24  ;;  %v4407_v21 = vpop.f32.mrb[133].mxu1  ;;  %10767 = vmatmul.mubr.msk.f32.gmra.mrb[238].mxu1 %vm653_vm0, %v11853_v6  ;;  %10561 = vmatprep.mubr.msk.f32.mxu0 %vm653_vm0, %v3208_v5  ;;  %v3215_v24 = vmul.f32 %v14514_v44, %v636_v25  ;;  %v639_v32 = vld [vmem:[%s16106_s6 + $0x3d0] sm:$0xff]  ;;  %v11861_v44 = vld [vmem:[%s16104_s4 + $0x3b8] sm:$0xff] }
 0x202   : > { %v5030_v22 = vmul.f32 %v4407_v21, %v3694_v58  ;;  %10769 = vmatprep.mubr.msk.f32.mxu1 %vm653_vm0, %v11854_v15  ;;  %v11739_v18 = vpop.eup %11738  ;;  %v11868_v25 = vld [vmem:[%s16104_s4 + $0x3f0] sm:$0xff] }
 0x203   : > { %5159 = vst [vmem:[#allocation3 + $0x28] sm:$0xff] %v5031_v53  ;;  %v11741_v13 = vpop.eup %11740  ;;  %2382 = vst [vmem:[#allocation2 + $0x3f8] sm:$0xff] %v11739_v18  ;;  %v10404_v45 = vpop.f32.mrb[134].mxu0  ;;  %v11862_v18 = vld [vmem:[%s16104_s4 + $0x3c0] sm:$0xff] }
 0x204   : > { %5158 = vst [vmem:[#allocation3 + $0x20] sm:$0xff] %v5030_v22  ;;  %v10612_v26 = vpop.f32.mrb[134].mxu1  ;;  %2381 = vst [vmem:[#allocation2 + $0x3f0] sm:$0xff] %v11741_v13  ;;  %v3704_v3 = vpop.f32.mrb[135].mxu0  ;;  %10562 = vmatmul.mubr.msk.f32.gmra.mrb[240].mxu0 %vm653_vm0, %v3209_v27  ;;  %v3218_v22 = vmul.f32 %v14577_v36, %v639_v32  ;;  %v3217_v27 = vmul.f32 %v14542_v33, %v638_v31  ;;  %v640_v36 = vld [vmem:[%s16106_s6 + $0x3d8] sm:$0xff]  ;;  %v11863_v33 = vld [vmem:[%s16104_s4 + $0x3c8] sm:$0xff] }
 0x205   : > { %v5033_v29 = vmul.f32 %v10612_v26, %v10404_v45  ;;  %v4417_v54 = vpop.f32.mrb[135].mxu1  ;;  %10770 = vmatmul.mubr.msk.f32.gmra.mrb[240].mxu1 %vm653_vm0, %v11855_v20  ;;  %10564 = vmatprep.mubr.msk.f32.mxu0 %vm653_vm0, %v3210_v23  ;;  %v11864_v20 = vld [vmem:[%s16104_s4 + $0x3d0] sm:$0xff] }
 0x206   : > { %v5032_v47 = vmul.f32 %v4417_v54, %v3704_v3  ;;  %10772 = vmatprep.mubr.msk.f32.mxu1 %vm653_vm0, %v11856_v30  ;;  %v3220_v3 = vmul.f32 %v14605_v37, %v641_v12  ;;  %v642_v37 = vld [vmem:[%s16106_s6 + $0x3e8] sm:$0xff] }
 0x207   : > { %5161 = vst [vmem:[#allocation3 + $0x38] sm:$0xff] %v5033_v29  ;;  %v10407_v28 = vpop.f32.mrb[136].mxu0 }
 0x208   : > { %5160 = vst [vmem:[#allocation3 + $0x30] sm:$0xff] %v5032_v47  ;;  %v10615_v35 = vpop.f32.mrb[136].mxu1  ;;  %v3714_v19 = vpop.f32.mrb[137].mxu0  ;;  %10565 = vmatmul.mubr.msk.f32.gmra.mrb[242].mxu0 %vm653_vm0, %v3211_v7  ;;  %v643_v47 = vld [vmem:[%s16106_s6 + $0x3f0] sm:$0xff] }
 0x209   : > { %v5035_v48 = vmul.f32 %v10615_v35, %v10407_v28  ;;  %v4427_v42 = vpop.f32.mrb[137].mxu1  ;;  %10773 = vmatmul.mubr.msk.f32.gmra.mrb[242].mxu1 %vm653_vm0, %v11857_v0  ;;  %10567 = vmatprep.mubr.msk.f32.mxu0 %vm653_vm0, %v3212_v40  ;;  %v3219_v40 = vmul.f32 %v14570_v59, %v640_v36  ;;  %v11865_v59 = vld [vmem:[%s16104_s4 + $0x3d8] sm:$0xff]  ;;  %v3222_v35 = vmul.f32 %v14633_v10, %v643_v47  ;;  %v11874_v36 = vld [vmem:[%s16104_s4 + $0x20] sm:$0xff] }
 0x20a   : > { %v5034_v9 = vmul.f32 %v4427_v42, %v3714_v19  ;;  %10775 = vmatprep.mubr.msk.f32.mxu1 %vm653_vm0, %v11858_v51  ;;  %v11866_v19 = vld [vmem:[%s16104_s4 + $0x3e0] sm:$0xff]  ;;  %v3221_v42 = vmul.f32 %v14598_v57, %v642_v37  ;;  %v644_v0 = vld [vmem:[%s16106_s6 + $0x3f8] sm:$0xff] }
 0x20b   : > { %5163 = vst [vmem:[#allocation3 + $0x48] sm:$0xff] %v5035_v48  ;;  %v10410_v5 = vpop.f32.mrb[138].mxu0 }
 0x20c   : > { %5162 = vst [vmem:[#allocation3 + $0x40] sm:$0xff] %v5034_v9  ;;  %v10618_v55 = vpop.f32.mrb[138].mxu1  ;;  %v3724_v14 = vpop.f32.mrb[139].mxu0  ;;  %10568 = vmatmul.mubr.msk.f32.gmra.mrb[244].mxu0 %vm653_vm0, %v3213_v60 }
 0x20d   : > { %v5037_v43 = vmul.f32 %v10618_v55, %v10410_v5  ;;  %v4437_v52 = vpop.f32.mrb[139].mxu1  ;;  %10776 = vmatmul.mubr.msk.f32.gmra.mrb[244].mxu1 %vm653_vm0, %v11859_v8  ;;  %10570 = vmatprep.mubr.msk.f32.mxu0 %vm653_vm0, %v3214_v41  ;;  %v3223_v5 = vmul.f32 %v14626_v63, %v644_v0  ;;  %v11870_v63 = vld [vmem:[%s16104_s4] sm:$0xff] }
 0x20e   : > { %v5036_v38 = vmul.f32 %v4437_v52, %v3724_v14  ;;  %10778 = vmatprep.mubr.msk.f32.mxu1 %vm653_vm0, %v11860_v39 }
 0x20f   : > { %5165 = vst [vmem:[#allocation3 + $0x58] sm:$0xff] %v5037_v43  ;;  %v10413_v53 = vpop.f32.mrb[140].mxu0 }
 0x210   : > { %5164 = vst [vmem:[#allocation3 + $0x50] sm:$0xff] %v5036_v38  ;;  %v10621_v58 = vpop.f32.mrb[140].mxu1  ;;  %v3734_v6 = vpop.f32.mrb[141].mxu0  ;;  %10571 = vmatmul.mubr.msk.f32.gmra.mrb[246].mxu0 %vm653_vm0, %v3215_v24 }
 0x211   : > { %v5039_v21 = vmul.f32 %v10621_v58, %v10413_v53  ;;  %v4447_v23 = vpop.f32.mrb[141].mxu1  ;;  %10779 = vmatmul.mubr.msk.f32.gmra.mrb[246].mxu1 %vm653_vm0, %v11861_v44  ;;  %10573 = vmatprep.mubr.msk.f32.mxu0 %vm653_vm0, %v3216_v62  ;;  %v11869_v62 = vld [vmem:[%s16104_s4 + $0x3f8] sm:$0xff]  ;;  %v11871_v58 = vld [vmem:[%s16104_s4 + $0x8] sm:$0xff] }
 0x212   : > { %v5038_v15 = vmul.f32 %v4447_v23, %v3734_v6  ;;  %10781 = vmatprep.mubr.msk.f32.mxu1 %vm653_vm0, %v11862_v18  ;;  %v11872_v6 = vld [vmem:[%s16104_s4 + $0x10] sm:$0xff] }
 0x213   : > { %5167 = vst [vmem:[#allocation3 + $0x68] sm:$0xff] %v5039_v21  ;;  %v10416_v13 = vpop.f32.mrb[142].mxu0 }
 0x214   : > { %5166 = vst [vmem:[#allocation3 + $0x60] sm:$0xff] %v5038_v15  ;;  %v10624_v17 = vpop.f32.mrb[142].mxu1  ;;  %v3744_v26 = vpop.f32.mrb[143].mxu0  ;;  %10574 = vmatmul.mubr.msk.f32.gmra.mrb[248].mxu0 %vm653_vm0, %v3217_v27  ;;  %v11873_v27 = vld [vmem:[%s16104_s4 + $0x18] sm:$0xff] }
 0x215   : > { %v5041_v45 = vmul.f32 %v10624_v17, %v10416_v13  ;;  %v4457_v29 = vpop.f32.mrb[143].mxu1  ;;  %10782 = vmatmul.mubr.msk.f32.gmra.mrb[248].mxu1 %vm653_vm0, %v11863_v33  ;;  %10576 = vmatprep.mubr.msk.f32.mxu0 %vm653_vm0, %v3218_v22  ;;  %v11875_v33 = vld [vmem:[%s16104_s4 + $0x28] sm:$0xff] }
 0x216   : > { %v5040_v54 = vmul.f32 %v4457_v29, %v3744_v26  ;;  %10784 = vmatprep.mubr.msk.f32.mxu1 %vm653_vm0, %v11864_v20 }
 0x217   : > { %5169 = vst [vmem:[#allocation3 + $0x78] sm:$0xff] %v5041_v45  ;;  %v10419_v30 = vpop.f32.mrb[144].mxu0 }
 0x218   : > { %5168 = vst [vmem:[#allocation3 + $0x70] sm:$0xff] %v5040_v54  ;;  %v10627_v7 = vpop.f32.mrb[144].mxu1  ;;  %v3754_v34 = vpop.f32.mrb[145].mxu0  ;;  %10577 = vmatmul.mubr.msk.f32.gmra.mrb[250].mxu0 %vm653_vm0, %v3219_v40  ;;  %v11876_v54 = vld [vmem:[%s16104_s4 + $0x30] sm:$0xff] }
 0x219   : > { %v5043_v46 = vmul.f32 %v10627_v7, %v10419_v30  ;;  %v4467_v28 = vpop.f32.mrb[145].mxu1  ;;  %10785 = vmatmul.mubr.msk.f32.gmra.mrb[250].mxu1 %vm653_vm0, %v11865_v59  ;;  %10579 = vmatprep.mubr.msk.f32.mxu0 %vm653_vm0, %v3220_v3  ;;  %v11877_v7 = vld [vmem:[%s16104_s4 + $0x38] sm:$0xff] }
 0x21a   : > { %v5042_v48 = vmul.f32 %v4467_v28, %v3754_v34  ;;  %10787 = vmatprep.mubr.msk.f32.mxu1 %vm653_vm0, %v11866_v19  ;;  %v11878_v34 = vld [vmem:[%s16104_s4 + $0x40] sm:$0xff] }
 0x21b   : > { %5171 = vst [vmem:[#allocation3 + $0x88] sm:$0xff] %v5043_v46  ;;  %v10422_v41 = vpop.f32.mrb[146].mxu0 }
 0x21c   : > { %5170 = vst [vmem:[#allocation3 + $0x80] sm:$0xff] %v5042_v48  ;;  %v10630_v9 = vpop.f32.mrb[146].mxu1  ;;  %v3764_v51 = vpop.f32.mrb[147].mxu0  ;;  %10580 = vmatmul.mubr.msk.f32.gmra.mrb[252].mxu0 %vm653_vm0, %v3221_v42  ;;  %v11879_v42 = vld [vmem:[%s16104_s4 + $0x48] sm:$0xff] }
 0x21d   : > { %v5045_v10 = vmul.f32 %v10630_v9, %v10422_v41  ;;  %v4477_v60 = vpop.f32.mrb[147].mxu1  ;;  %10788 = vmatmul.mubr.msk.f32.gmra.mrb[252].mxu1 %vm653_vm0, %v11867_v4  ;;  %10582 = vmatprep.mubr.msk.f32.mxu0 %vm653_vm0, %v3222_v35  ;;  %v11880_v41 = vld [vmem:[%s16104_s4 + $0x50] sm:$0xff] }
 0x21e   : > { %v5044_v57 = vmul.f32 %v4477_v60, %v3764_v51  ;;  %10790 = vmatprep.mubr.msk.f32.mxu1 %vm653_vm0, %v11868_v25 }
 0x21f   : > { %5173 = vst [vmem:[#allocation3 + $0x98] sm:$0xff] %v5045_v10  ;;  %v10425_v55 = vpop.f32.mrb[148].mxu0 }
 0x220   : > { %5172 = vst [vmem:[#allocation3 + $0x90] sm:$0xff] %v5044_v57  ;;  %v10633_v43 = vpop.f32.mrb[148].mxu1  ;;  %v3774_v52 = vpop.f32.mrb[149].mxu0  ;;  %10583 = vmatmul.mubr.msk.f32.gmra.mrb[254].mxu0 %vm653_vm0, %v3223_v5  ;;  %v11881_v57 = vld [vmem:[%s16104_s4 + $0x58] sm:$0xff]  ;;  %v11882_v5 = vld [vmem:[%s16104_s4 + $0x60] sm:$0xff] }
 0x221   : > { %v5047_v14 = vmul.f32 %v10633_v43, %v10425_v55  ;;  %v4487_v8 = vpop.f32.mrb[149].mxu1  ;;  %10791 = vmatmul.mubr.msk.f32.gmra.mrb[254].mxu1 %vm653_vm0, %v11869_v62  ;;  %10809 = vmatprep.mubr.msk.f32.mxu0 %vm653_vm0, %v11870_v63  ;;  %v11883_v62 = vld [vmem:[%s16104_s4 + $0x68] sm:$0xff]  ;;  %v11884_v63 = vld [vmem:[%s16104_s4 + $0x70] sm:$0xff] }
 0x222   : > { %v5046_v38 = vmul.f32 %v4487_v8, %v3774_v52 }
 0x223   : > { %5175 = vst [vmem:[#allocation3 + $0xa8] sm:$0xff] %v5047_v14  ;;  %v10428_v39 = vpop.f32.mrb[150].mxu0 }
 0x224   : > { %5174 = vst [vmem:[#allocation3 + $0xa0] sm:$0xff] %v5046_v38  ;;  %v10636_v24 = vpop.f32.mrb[150].mxu1  ;;  %v3784_v31 = vpop.f32.mrb[151].mxu0  ;;  %10810 = vmatmul.mubr.msk.f32.vlgmr.msra.gmra.mrb[0].mxu0 %vm653_vm0, %v11871_v58  ;;  %v11885_v58 = vld [vmem:[%s16104_s4 + $0x78] sm:$0xff] }
 0x225   : > { %v5049_v32 = vmul.f32 %v10636_v24, %v10428_v39  ;;  %v4497_v53 = vpop.f32.mrb[151].mxu1  ;;  %10812 = vmatprep.mubr.msk.f32.mxu0 %vm653_vm0, %v11872_v6  ;;  %v11886_v6 = vld [vmem:[%s16104_s4 + $0x80] sm:$0xff] }
 0x226   : > { %v5048_v21 = vmul.f32 %v4497_v53, %v3784_v31 }
 0x227   : > { %5177 = vst [vmem:[#allocation3 + $0xb8] sm:$0xff] %v5049_v32  ;;  %v10431_v23 = vpop.f32.mrb[152].mxu0 }
 0x228   : > { %5176 = vst [vmem:[#allocation3 + $0xb0] sm:$0xff] %v5048_v21  ;;  %v10639_v44 = vpop.f32.mrb[152].mxu1  ;;  %v3794_v15 = vpop.f32.mrb[153].mxu0  ;;  %10813 = vmatmul.mubr.msk.f32.gmra.mrb[2].mxu0 %vm653_vm0, %v11873_v27  ;;  %v11887_v27 = vld [vmem:[%s16104_s4 + $0x88] sm:$0xff] }
 0x229   : > { %v5051_v22 = vmul.f32 %v10639_v44, %v10431_v23  ;;  %v4507_v18 = vpop.f32.mrb[153].mxu1  ;;  %10815 = vmatprep.mubr.msk.f32.mxu0 %vm653_vm0, %v11874_v36  ;;  %v11888_v36 = vld [vmem:[%s16104_s4 + $0x90] sm:$0xff] }
 0x22a   : > { %v5050_v12 = vmul.f32 %v4507_v18, %v3794_v15 }
 0x22b   : > { %5179 = vst [vmem:[#allocation3 + $0xc8] sm:$0xff] %v5051_v22  ;;  %v10434_v13 = vpop.f32.mrb[154].mxu0 }
 0x22c   : > { %5178 = vst [vmem:[#allocation3 + $0xc0] sm:$0xff] %v5050_v12  ;;  %v10642_v17 = vpop.f32.mrb[154].mxu1  ;;  %v3804_v26 = vpop.f32.mrb[155].mxu0  ;;  %10816 = vmatmul.mubr.msk.f32.gmra.mrb[4].mxu0 %vm653_vm0, %v11875_v33  ;;  %v11889_v33 = vld [vmem:[%s16104_s4 + $0x98] sm:$0xff] }
 0x22d   : > { %v5053_v45 = vmul.f32 %v10642_v17, %v10434_v13  ;;  %v4517_v29 = vpop.f32.mrb[155].mxu1  ;;  %10818 = vmatprep.mubr.msk.f32.mxu0 %vm653_vm0, %v11876_v54  ;;  %v11890_v54 = vld [vmem:[%s16104_s4 + $0xa0] sm:$0xff] }
 0x22e   : > { %v5052_v3 = vmul.f32 %v4517_v29, %v3804_v26 }
 0x22f   : > { %5181 = vst [vmem:[#allocation3 + $0xd8] sm:$0xff] %v5053_v45  ;;  %v10437_v20 = vpop.f32.mrb[156].mxu0 }
 0x230   : > { %5180 = vst [vmem:[#allocation3 + $0xd0] sm:$0xff] %v5052_v3  ;;  %v10645_v40 = vpop.f32.mrb[156].mxu1  ;;  %v3814_v37 = vpop.f32.mrb[157].mxu0  ;;  %10819 = vmatmul.mubr.msk.f32.gmra.mrb[6].mxu0 %vm653_vm0, %v11877_v7  ;;  %v11891_v7 = vld [vmem:[%s16104_s4 + $0xa8] sm:$0xff] }
 0x231   : > { %v5055_v47 = vmul.f32 %v10645_v40, %v10437_v20  ;;  %v4527_v30 = vpop.f32.mrb[157].mxu1  ;;  %10821 = vmatprep.mubr.msk.f32.mxu0 %vm653_vm0, %v11878_v34  ;;  %v11892_v34 = vld [vmem:[%s16104_s4 + $0xb0] sm:$0xff] }
 0x232   : > { %v5054_v46 = vmul.f32 %v4527_v30, %v3814_v37 }
 0x233   : > { %5183 = vst [vmem:[#allocation3 + $0xe8] sm:$0xff] %v5055_v47  ;;  %v10440_v28 = vpop.f32.mrb[158].mxu0 }
 0x234   : > { %5182 = vst [vmem:[#allocation3 + $0xe0] sm:$0xff] %v5054_v46  ;;  %v10648_v59 = vpop.f32.mrb[158].mxu1  ;;  %v3824_v48 = vpop.f32.mrb[159].mxu0  ;;  %10822 = vmatmul.mubr.msk.f32.gmra.mrb[8].mxu0 %vm653_vm0, %v11879_v42  ;;  %v11893_v42 = vld [vmem:[%s16104_s4 + $0xb8] sm:$0xff] }
 0x235   : > { %v5057_v35 = vmul.f32 %v10648_v59, %v10440_v28  ;;  %v4537_v19 = vpop.f32.mrb[159].mxu1  ;;  %10824 = vmatprep.mubr.msk.f32.mxu0 %vm653_vm0, %v11880_v41  ;;  %v11894_v41 = vld [vmem:[%s16104_s4 + $0xc0] sm:$0xff] }
 0x236   : > { %v5056_v0 = vmul.f32 %v4537_v19, %v3824_v48 }
 0x237   : > { %5185 = vst [vmem:[#allocation3 + $0xf8] sm:$0xff] %v5057_v35  ;;  %v10443_v9 = vpop.f32.mrb[160].mxu0 }
 0x238   : > { %5184 = vst [vmem:[#allocation3 + $0xf0] sm:$0xff] %v5056_v0  ;;  %v10651_v10 = vpop.f32.mrb[160].mxu1  ;;  %v3834_v60 = vpop.f32.mrb[161].mxu0  ;;  %10825 = vmatmul.mubr.msk.f32.gmra.mrb[10].mxu0 %vm653_vm0, %v11881_v57  ;;  %v11895_v57 = vld [vmem:[%s16104_s4 + $0xc8] sm:$0xff] }
 0x239   : > { %v5059_v51 = vmul.f32 %v10651_v10, %v10443_v9  ;;  %v4547_v4 = vpop.f32.mrb[161].mxu1  ;;  %10827 = vmatprep.mubr.msk.f32.mxu0 %vm653_vm0, %v11882_v5  ;;  %v11896_v5 = vld [vmem:[%s16104_s4 + $0xd0] sm:$0xff] }
 0x23a   : > { %v5058_v25 = vmul.f32 %v4547_v4, %v3834_v60 }
 0x23b   : > { %5187 = vst [vmem:[#allocation3 + $0x108] sm:$0xff] %v5059_v51  ;;  %v10446_v55 = vpop.f32.mrb[162].mxu0 }
 0x23c   : > { %5186 = vst [vmem:[#allocation3 + $0x100] sm:$0xff] %v5058_v25  ;;  %v10654_v43 = vpop.f32.mrb[162].mxu1  ;;  %v3844_v52 = vpop.f32.mrb[163].mxu0  ;;  %10828 = vmatmul.mubr.msk.f32.gmra.mrb[12].mxu0 %vm653_vm0, %v11883_v62  ;;  %v11897_v62 = vld [vmem:[%s16104_s4 + $0xd8] sm:$0xff] }
 0x23d   : > { %v5061_v14 = vmul.f32 %v10654_v43, %v10446_v55  ;;  %v4557_v8 = vpop.f32.mrb[163].mxu1  ;;  %10830 = vmatprep.mubr.msk.f32.mxu0 %vm653_vm0, %v11884_v63  ;;  %v11898_v63 = vld [vmem:[%s16104_s4 + $0xe0] sm:$0xff] }
 0x23e   : > { %v5060_v38 = vmul.f32 %v4557_v8, %v3844_v52 }
 0x23f   : > { %5189 = vst [vmem:[#allocation3 + $0x118] sm:$0xff] %v5061_v14  ;;  %v10449_v39 = vpop.f32.mrb[164].mxu0 }
 0x240   : > { %5188 = vst [vmem:[#allocation3 + $0x110] sm:$0xff] %v5060_v38  ;;  %v10657_v24 = vpop.f32.mrb[164].mxu1  ;;  %v3854_v31 = vpop.f32.mrb[165].mxu0  ;;  %10831 = vmatmul.mubr.msk.f32.gmra.mrb[14].mxu0 %vm653_vm0, %v11885_v58  ;;  %v11899_v58 = vld [vmem:[%s16104_s4 + $0xe8] sm:$0xff] }
 0x241   : > { %v5063_v32 = vmul.f32 %v10657_v24, %v10449_v39  ;;  %v4567_v53 = vpop.f32.mrb[165].mxu1  ;;  %10833 = vmatprep.mubr.msk.f32.mxu0 %vm653_vm0, %v11886_v6  ;;  %v11900_v6 = vld [vmem:[%s16104_s4 + $0xf0] sm:$0xff] }
 0x242   : > { %v5062_v21 = vmul.f32 %v4567_v53, %v3854_v31 }
 0x243   : > { %5191 = vst [vmem:[#allocation3 + $0x128] sm:$0xff] %v5063_v32  ;;  %v10452_v23 = vpop.f32.mrb[166].mxu0 }
 0x244   : > { %5190 = vst [vmem:[#allocation3 + $0x120] sm:$0xff] %v5062_v21  ;;  %v10660_v44 = vpop.f32.mrb[166].mxu1  ;;  %v3864_v15 = vpop.f32.mrb[167].mxu0  ;;  %10834 = vmatmul.mubr.msk.f32.gmra.mrb[16].mxu0 %vm653_vm0, %v11887_v27  ;;  %v11901_v27 = vld [vmem:[%s16104_s4 + $0xf8] sm:$0xff] }
 0x245   : > { %v5065_v22 = vmul.f32 %v10660_v44, %v10452_v23  ;;  %v4577_v18 = vpop.f32.mrb[167].mxu1  ;;  %10836 = vmatprep.mubr.msk.f32.mxu0 %vm653_vm0, %v11888_v36  ;;  %v11902_v36 = vld [vmem:[%s16104_s4 + $0x100] sm:$0xff] }
 0x246   : > { %v5064_v12 = vmul.f32 %v4577_v18, %v3864_v15 }
 0x247   : > { %5193 = vst [vmem:[#allocation3 + $0x138] sm:$0xff] %v5065_v22  ;;  %v10455_v13 = vpop.f32.mrb[168].mxu0 }
 0x248   : > { %5192 = vst [vmem:[#allocation3 + $0x130] sm:$0xff] %v5064_v12  ;;  %v10663_v17 = vpop.f32.mrb[168].mxu1  ;;  %v3874_v26 = vpop.f32.mrb[169].mxu0  ;;  %10837 = vmatmul.mubr.msk.f32.gmra.mrb[18].mxu0 %vm653_vm0, %v11889_v33  ;;  %v11903_v33 = vld [vmem:[%s16104_s4 + $0x108] sm:$0xff] }
 0x249   : > { %v5067_v45 = vmul.f32 %v10663_v17, %v10455_v13  ;;  %v4587_v29 = vpop.f32.mrb[169].mxu1  ;;  %10839 = vmatprep.mubr.msk.f32.mxu0 %vm653_vm0, %v11890_v54  ;;  %v11904_v54 = vld [vmem:[%s16104_s4 + $0x110] sm:$0xff] }
 0x24a   : > { %v5066_v3 = vmul.f32 %v4587_v29, %v3874_v26 }
 0x24b   : > { %5195 = vst [vmem:[#allocation3 + $0x148] sm:$0xff] %v5067_v45  ;;  %v10458_v20 = vpop.f32.mrb[170].mxu0 }
 0x24c   : > { %5194 = vst [vmem:[#allocation3 + $0x140] sm:$0xff] %v5066_v3  ;;  %v10666_v40 = vpop.f32.mrb[170].mxu1  ;;  %v3884_v37 = vpop.f32.mrb[171].mxu0  ;;  %10840 = vmatmul.mubr.msk.f32.gmra.mrb[20].mxu0 %vm653_vm0, %v11891_v7  ;;  %v11905_v7 = vld [vmem:[%s16104_s4 + $0x118] sm:$0xff] }
 0x24d   : > { %v5069_v47 = vmul.f32 %v10666_v40, %v10458_v20  ;;  %v4597_v30 = vpop.f32.mrb[171].mxu1  ;;  %10842 = vmatprep.mubr.msk.f32.mxu0 %vm653_vm0, %v11892_v34  ;;  %v11906_v34 = vld [vmem:[%s16104_s4 + $0x120] sm:$0xff] }
 0x24e   : > { %v5068_v46 = vmul.f32 %v4597_v30, %v3884_v37 }
 0x24f   : > { %5197 = vst [vmem:[#allocation3 + $0x158] sm:$0xff] %v5069_v47  ;;  %v10461_v28 = vpop.f32.mrb[172].mxu0 }
 0x250   : > { %5196 = vst [vmem:[#allocation3 + $0x150] sm:$0xff] %v5068_v46  ;;  %v10669_v59 = vpop.f32.mrb[172].mxu1  ;;  %v3894_v48 = vpop.f32.mrb[173].mxu0  ;;  %10843 = vmatmul.mubr.msk.f32.gmra.mrb[22].mxu0 %vm653_vm0, %v11893_v42  ;;  %v11907_v42 = vld [vmem:[%s16104_s4 + $0x128] sm:$0xff] }
 0x251   : > { %v5071_v35 = vmul.f32 %v10669_v59, %v10461_v28  ;;  %v4607_v19 = vpop.f32.mrb[173].mxu1  ;;  %10845 = vmatprep.mubr.msk.f32.mxu0 %vm653_vm0, %v11894_v41  ;;  %v11908_v41 = vld [vmem:[%s16104_s4 + $0x130] sm:$0xff] }
 0x252   : > { %v5070_v0 = vmul.f32 %v4607_v19, %v3894_v48 }
 0x253   : > { %5199 = vst [vmem:[#allocation3 + $0x168] sm:$0xff] %v5071_v35  ;;  %v10464_v9 = vpop.f32.mrb[174].mxu0 }
 0x254   : > { %5198 = vst [vmem:[#allocation3 + $0x160] sm:$0xff] %v5070_v0  ;;  %v10672_v10 = vpop.f32.mrb[174].mxu1  ;;  %v3904_v60 = vpop.f32.mrb[175].mxu0  ;;  %10846 = vmatmul.mubr.msk.f32.gmra.mrb[24].mxu0 %vm653_vm0, %v11895_v57  ;;  %v11909_v57 = vld [vmem:[%s16104_s4 + $0x138] sm:$0xff] }
 0x255   : > { %v5073_v51 = vmul.f32 %v10672_v10, %v10464_v9  ;;  %v4617_v4 = vpop.f32.mrb[175].mxu1  ;;  %10848 = vmatprep.mubr.msk.f32.mxu0 %vm653_vm0, %v11896_v5  ;;  %v11910_v5 = vld [vmem:[%s16104_s4 + $0x140] sm:$0xff] }
 0x256   : > { %v5072_v25 = vmul.f32 %v4617_v4, %v3904_v60 }
 0x257   : > { %5201 = vst [vmem:[#allocation3 + $0x178] sm:$0xff] %v5073_v51  ;;  %v10467_v55 = vpop.f32.mrb[176].mxu0 }
 0x258   : > { %5200 = vst [vmem:[#allocation3 + $0x170] sm:$0xff] %v5072_v25  ;;  %v10675_v43 = vpop.f32.mrb[176].mxu1  ;;  %v3914_v52 = vpop.f32.mrb[177].mxu0  ;;  %10849 = vmatmul.mubr.msk.f32.gmra.mrb[26].mxu0 %vm653_vm0, %v11897_v62  ;;  %v11911_v62 = vld [vmem:[%s16104_s4 + $0x148] sm:$0xff] }
 0x259   : > { %v5075_v14 = vmul.f32 %v10675_v43, %v10467_v55  ;;  %v4627_v8 = vpop.f32.mrb[177].mxu1  ;;  %10851 = vmatprep.mubr.msk.f32.mxu0 %vm653_vm0, %v11898_v63  ;;  %v11912_v63 = vld [vmem:[%s16104_s4 + $0x150] sm:$0xff] }
 0x25a   : > { %v5074_v38 = vmul.f32 %v4627_v8, %v3914_v52 }
 0x25b   : > { %5203 = vst [vmem:[#allocation3 + $0x188] sm:$0xff] %v5075_v14  ;;  %v10470_v39 = vpop.f32.mrb[178].mxu0 }
 0x25c   : > { %5202 = vst [vmem:[#allocation3 + $0x180] sm:$0xff] %v5074_v38  ;;  %v10678_v24 = vpop.f32.mrb[178].mxu1  ;;  %v3924_v31 = vpop.f32.mrb[179].mxu0  ;;  %10852 = vmatmul.mubr.msk.f32.gmra.mrb[28].mxu0 %vm653_vm0, %v11899_v58  ;;  %v11913_v58 = vld [vmem:[%s16104_s4 + $0x158] sm:$0xff] }
 0x25d   : > { %v5077_v32 = vmul.f32 %v10678_v24, %v10470_v39  ;;  %v4637_v53 = vpop.f32.mrb[179].mxu1  ;;  %10854 = vmatprep.mubr.msk.f32.mxu0 %vm653_vm0, %v11900_v6  ;;  %v11914_v6 = vld [vmem:[%s16104_s4 + $0x160] sm:$0xff] }
 0x25e   : > { %v5076_v21 = vmul.f32 %v4637_v53, %v3924_v31 }
 0x25f   : > { %5205 = vst [vmem:[#allocation3 + $0x198] sm:$0xff] %v5077_v32  ;;  %v10473_v23 = vpop.f32.mrb[180].mxu0 }
 0x260   : > { %5204 = vst [vmem:[#allocation3 + $0x190] sm:$0xff] %v5076_v21  ;;  %v10681_v44 = vpop.f32.mrb[180].mxu1  ;;  %v3934_v15 = vpop.f32.mrb[181].mxu0  ;;  %10855 = vmatmul.mubr.msk.f32.gmra.mrb[30].mxu0 %vm653_vm0, %v11901_v27  ;;  %v11915_v27 = vld [vmem:[%s16104_s4 + $0x168] sm:$0xff] }
 0x261   : > { %v5079_v22 = vmul.f32 %v10681_v44, %v10473_v23  ;;  %v4647_v18 = vpop.f32.mrb[181].mxu1  ;;  %10857 = vmatprep.mubr.msk.f32.mxu0 %vm653_vm0, %v11902_v36  ;;  %v11916_v36 = vld [vmem:[%s16104_s4 + $0x170] sm:$0xff] }
 0x262   : > { %v5078_v12 = vmul.f32 %v4647_v18, %v3934_v15 }
 0x263   : > { %5207 = vst [vmem:[#allocation3 + $0x1a8] sm:$0xff] %v5079_v22  ;;  %v10476_v13 = vpop.f32.mrb[182].mxu0 }
 0x264   : > { %5206 = vst [vmem:[#allocation3 + $0x1a0] sm:$0xff] %v5078_v12  ;;  %v10684_v17 = vpop.f32.mrb[182].mxu1  ;;  %v3944_v26 = vpop.f32.mrb[183].mxu0  ;;  %10858 = vmatmul.mubr.msk.f32.gmra.mrb[32].mxu0 %vm653_vm0, %v11903_v33  ;;  %v11917_v33 = vld [vmem:[%s16104_s4 + $0x178] sm:$0xff] }
 0x265   : > { %v5081_v45 = vmul.f32 %v10684_v17, %v10476_v13  ;;  %v4657_v29 = vpop.f32.mrb[183].mxu1  ;;  %10860 = vmatprep.mubr.msk.f32.mxu0 %vm653_vm0, %v11904_v54  ;;  %v11918_v54 = vld [vmem:[%s16104_s4 + $0x180] sm:$0xff] }
 0x266   : > { %v5080_v3 = vmul.f32 %v4657_v29, %v3944_v26 }
 0x267   : > { %5209 = vst [vmem:[#allocation3 + $0x1b8] sm:$0xff] %v5081_v45  ;;  %v10479_v20 = vpop.f32.mrb[184].mxu0 }
 0x268   : > { %5208 = vst [vmem:[#allocation3 + $0x1b0] sm:$0xff] %v5080_v3  ;;  %v10687_v40 = vpop.f32.mrb[184].mxu1  ;;  %v3954_v37 = vpop.f32.mrb[185].mxu0  ;;  %10861 = vmatmul.mubr.msk.f32.gmra.mrb[34].mxu0 %vm653_vm0, %v11905_v7  ;;  %v11919_v7 = vld [vmem:[%s16104_s4 + $0x188] sm:$0xff] }
 0x269   : > { %v5083_v47 = vmul.f32 %v10687_v40, %v10479_v20  ;;  %v4667_v30 = vpop.f32.mrb[185].mxu1  ;;  %10863 = vmatprep.mubr.msk.f32.mxu0 %vm653_vm0, %v11906_v34  ;;  %v11920_v34 = vld [vmem:[%s16104_s4 + $0x190] sm:$0xff] }
 0x26a   : > { %v5082_v46 = vmul.f32 %v4667_v30, %v3954_v37 }
 0x26b   : > { %5211 = vst [vmem:[#allocation3 + $0x1c8] sm:$0xff] %v5083_v47  ;;  %v10482_v28 = vpop.f32.mrb[186].mxu0 }
 0x26c   : > { %5210 = vst [vmem:[#allocation3 + $0x1c0] sm:$0xff] %v5082_v46  ;;  %v10690_v59 = vpop.f32.mrb[186].mxu1  ;;  %v3964_v48 = vpop.f32.mrb[187].mxu0  ;;  %10864 = vmatmul.mubr.msk.f32.gmra.mrb[36].mxu0 %vm653_vm0, %v11907_v42  ;;  %v11921_v42 = vld [vmem:[%s16104_s4 + $0x198] sm:$0xff] }
 0x26d   : > { %v5085_v35 = vmul.f32 %v10690_v59, %v10482_v28  ;;  %v4677_v19 = vpop.f32.mrb[187].mxu1  ;;  %10866 = vmatprep.mubr.msk.f32.mxu0 %vm653_vm0, %v11908_v41  ;;  %v11922_v41 = vld [vmem:[%s16104_s4 + $0x1a0] sm:$0xff] }
 0x26e   : > { %v5084_v0 = vmul.f32 %v4677_v19, %v3964_v48 }
 0x26f   : > { %5213 = vst [vmem:[#allocation3 + $0x1d8] sm:$0xff] %v5085_v35  ;;  %v10485_v9 = vpop.f32.mrb[188].mxu0 }
 0x270   : > { %5212 = vst [vmem:[#allocation3 + $0x1d0] sm:$0xff] %v5084_v0  ;;  %v10693_v10 = vpop.f32.mrb[188].mxu1  ;;  %v3974_v60 = vpop.f32.mrb[189].mxu0  ;;  %10867 = vmatmul.mubr.msk.f32.gmra.mrb[38].mxu0 %vm653_vm0, %v11909_v57  ;;  %v11923_v57 = vld [vmem:[%s16104_s4 + $0x1a8] sm:$0xff] }
 0x271   : > { %v5087_v51 = vmul.f32 %v10693_v10, %v10485_v9  ;;  %v4687_v4 = vpop.f32.mrb[189].mxu1  ;;  %10869 = vmatprep.mubr.msk.f32.mxu0 %vm653_vm0, %v11910_v5  ;;  %v11924_v5 = vld [vmem:[%s16104_s4 + $0x1b0] sm:$0xff] }
 0x272   : > { %v5086_v25 = vmul.f32 %v4687_v4, %v3974_v60 }
 0x273   : > { %5215 = vst [vmem:[#allocation3 + $0x1e8] sm:$0xff] %v5087_v51  ;;  %v10488_v55 = vpop.f32.mrb[190].mxu0 }
 0x274   : > { %5214 = vst [vmem:[#allocation3 + $0x1e0] sm:$0xff] %v5086_v25  ;;  %v10696_v43 = vpop.f32.mrb[190].mxu1  ;;  %v3984_v52 = vpop.f32.mrb[191].mxu0  ;;  %10870 = vmatmul.mubr.msk.f32.gmra.mrb[40].mxu0 %vm653_vm0, %v11911_v62  ;;  %v11925_v62 = vld [vmem:[%s16104_s4 + $0x1b8] sm:$0xff] }
 0x275   : > { %v5089_v14 = vmul.f32 %v10696_v43, %v10488_v55  ;;  %v4697_v8 = vpop.f32.mrb[191].mxu1  ;;  %10872 = vmatprep.mubr.msk.f32.mxu0 %vm653_vm0, %v11912_v63  ;;  %v11926_v63 = vld [vmem:[%s16104_s4 + $0x1c0] sm:$0xff] }
 0x276   : > { %v5088_v38 = vmul.f32 %v4697_v8, %v3984_v52 }
 0x277   : > { %5217 = vst [vmem:[#allocation3 + $0x1f8] sm:$0xff] %v5089_v14  ;;  %v10491_v39 = vpop.f32.mrb[192].mxu0 }
 0x278   : > { %5216 = vst [vmem:[#allocation3 + $0x1f0] sm:$0xff] %v5088_v38  ;;  %v10699_v24 = vpop.f32.mrb[192].mxu1  ;;  %v3994_v31 = vpop.f32.mrb[193].mxu0  ;;  %10873 = vmatmul.mubr.msk.f32.gmra.mrb[42].mxu0 %vm653_vm0, %v11913_v58  ;;  %v11927_v58 = vld [vmem:[%s16104_s4 + $0x1c8] sm:$0xff] }
 0x279   : > { %v5091_v32 = vmul.f32 %v10699_v24, %v10491_v39  ;;  %v4707_v53 = vpop.f32.mrb[193].mxu1  ;;  %10875 = vmatprep.mubr.msk.f32.mxu0 %vm653_vm0, %v11914_v6  ;;  %v11928_v6 = vld [vmem:[%s16104_s4 + $0x1d0] sm:$0xff] }
 0x27a   : > { %v5090_v21 = vmul.f32 %v4707_v53, %v3994_v31 }
 0x27b   : > { %5219 = vst [vmem:[#allocation3 + $0x208] sm:$0xff] %v5091_v32  ;;  %v10494_v23 = vpop.f32.mrb[194].mxu0 }
 0x27c   : > { %5218 = vst [vmem:[#allocation3 + $0x200] sm:$0xff] %v5090_v21  ;;  %v10702_v44 = vpop.f32.mrb[194].mxu1  ;;  %v4004_v15 = vpop.f32.mrb[195].mxu0  ;;  %10876 = vmatmul.mubr.msk.f32.gmra.mrb[44].mxu0 %vm653_vm0, %v11915_v27  ;;  %v11929_v27 = vld [vmem:[%s16104_s4 + $0x1d8] sm:$0xff] }
 0x27d   : > { %v5093_v22 = vmul.f32 %v10702_v44, %v10494_v23  ;;  %v4717_v18 = vpop.f32.mrb[195].mxu1  ;;  %10878 = vmatprep.mubr.msk.f32.mxu0 %vm653_vm0, %v11916_v36  ;;  %v11930_v36 = vld [vmem:[%s16104_s4 + $0x1e0] sm:$0xff] }
 0x27e   : > { %v5092_v12 = vmul.f32 %v4717_v18, %v4004_v15 }
 0x27f   : > { %5221 = vst [vmem:[#allocation3 + $0x218] sm:$0xff] %v5093_v22  ;;  %v10497_v13 = vpop.f32.mrb[196].mxu0 }
 0x280   : > { %5220 = vst [vmem:[#allocation3 + $0x210] sm:$0xff] %v5092_v12  ;;  %v10705_v17 = vpop.f32.mrb[196].mxu1  ;;  %v4014_v26 = vpop.f32.mrb[197].mxu0  ;;  %10879 = vmatmul.mubr.msk.f32.gmra.mrb[46].mxu0 %vm653_vm0, %v11917_v33  ;;  %v11931_v33 = vld [vmem:[%s16104_s4 + $0x1e8] sm:$0xff] }
 0x281   : > { %v5095_v45 = vmul.f32 %v10705_v17, %v10497_v13  ;;  %v4727_v29 = vpop.f32.mrb[197].mxu1  ;;  %10881 = vmatprep.mubr.msk.f32.mxu0 %vm653_vm0, %v11918_v54  ;;  %v11932_v54 = vld [vmem:[%s16104_s4 + $0x1f0] sm:$0xff] }
 0x282   : > { %v5094_v3 = vmul.f32 %v4727_v29, %v4014_v26 }
 0x283   : > { %5223 = vst [vmem:[#allocation3 + $0x228] sm:$0xff] %v5095_v45  ;;  %v10500_v20 = vpop.f32.mrb[198].mxu0 }
 0x284   : > { %5222 = vst [vmem:[#allocation3 + $0x220] sm:$0xff] %v5094_v3  ;;  %v10708_v40 = vpop.f32.mrb[198].mxu1  ;;  %v4024_v37 = vpop.f32.mrb[199].mxu0  ;;  %10882 = vmatmul.mubr.msk.f32.gmra.mrb[48].mxu0 %vm653_vm0, %v11919_v7  ;;  %v11933_v7 = vld [vmem:[%s16104_s4 + $0x1f8] sm:$0xff] }
 0x285   : > { %v5097_v47 = vmul.f32 %v10708_v40, %v10500_v20  ;;  %v4737_v30 = vpop.f32.mrb[199].mxu1  ;;  %10884 = vmatprep.mubr.msk.f32.mxu0 %vm653_vm0, %v11920_v34  ;;  %v11934_v34 = vld [vmem:[%s16104_s4 + $0x200] sm:$0xff] }
 0x286   : > { %v5096_v46 = vmul.f32 %v4737_v30, %v4024_v37 }
 0x287   : > { %5225 = vst [vmem:[#allocation3 + $0x238] sm:$0xff] %v5097_v47  ;;  %v10503_v28 = vpop.f32.mrb[200].mxu0 }
 0x288   : > { %5224 = vst [vmem:[#allocation3 + $0x230] sm:$0xff] %v5096_v46  ;;  %v10711_v59 = vpop.f32.mrb[200].mxu1  ;;  %v4034_v48 = vpop.f32.mrb[201].mxu0  ;;  %10885 = vmatmul.mubr.msk.f32.gmra.mrb[50].mxu0 %vm653_vm0, %v11921_v42  ;;  %v11935_v42 = vld [vmem:[%s16104_s4 + $0x208] sm:$0xff] }
 0x289   : > { %v5099_v35 = vmul.f32 %v10711_v59, %v10503_v28  ;;  %v4747_v19 = vpop.f32.mrb[201].mxu1  ;;  %10887 = vmatprep.mubr.msk.f32.mxu0 %vm653_vm0, %v11922_v41  ;;  %v11936_v41 = vld [vmem:[%s16104_s4 + $0x210] sm:$0xff] }
 0x28a   : > { %v5098_v0 = vmul.f32 %v4747_v19, %v4034_v48 }
 0x28b   : > { %5227 = vst [vmem:[#allocation3 + $0x248] sm:$0xff] %v5099_v35  ;;  %v10506_v9 = vpop.f32.mrb[202].mxu0 }
 0x28c   : > { %5226 = vst [vmem:[#allocation3 + $0x240] sm:$0xff] %v5098_v0  ;;  %v10714_v10 = vpop.f32.mrb[202].mxu1  ;;  %v4044_v60 = vpop.f32.mrb[203].mxu0  ;;  %10888 = vmatmul.mubr.msk.f32.gmra.mrb[52].mxu0 %vm653_vm0, %v11923_v57  ;;  %v11937_v57 = vld [vmem:[%s16104_s4 + $0x218] sm:$0xff] }
 0x28d   : > { %v5101_v51 = vmul.f32 %v10714_v10, %v10506_v9  ;;  %v4757_v4 = vpop.f32.mrb[203].mxu1  ;;  %10890 = vmatprep.mubr.msk.f32.mxu0 %vm653_vm0, %v11924_v5  ;;  %v11938_v5 = vld [vmem:[%s16104_s4 + $0x220] sm:$0xff] }
 0x28e   : > { %v5100_v25 = vmul.f32 %v4757_v4, %v4044_v60 }
 0x28f   : > { %5229 = vst [vmem:[#allocation3 + $0x258] sm:$0xff] %v5101_v51  ;;  %v10509_v55 = vpop.f32.mrb[204].mxu0 }
 0x290   : > { %5228 = vst [vmem:[#allocation3 + $0x250] sm:$0xff] %v5100_v25  ;;  %v10717_v43 = vpop.f32.mrb[204].mxu1  ;;  %v4054_v52 = vpop.f32.mrb[205].mxu0  ;;  %10891 = vmatmul.mubr.msk.f32.gmra.mrb[54].mxu0 %vm653_vm0, %v11925_v62  ;;  %v11939_v62 = vld [vmem:[%s16104_s4 + $0x228] sm:$0xff] }
 0x291   : > { %v5103_v14 = vmul.f32 %v10717_v43, %v10509_v55  ;;  %v4767_v8 = vpop.f32.mrb[205].mxu1  ;;  %10893 = vmatprep.mubr.msk.f32.mxu0 %vm653_vm0, %v11926_v63  ;;  %v11940_v63 = vld [vmem:[%s16104_s4 + $0x230] sm:$0xff] }
 0x292   : > { %v5102_v38 = vmul.f32 %v4767_v8, %v4054_v52 }
 0x293   : > { %5231 = vst [vmem:[#allocation3 + $0x268] sm:$0xff] %v5103_v14  ;;  %v10512_v39 = vpop.f32.mrb[206].mxu0 }
 0x294   : > { %5230 = vst [vmem:[#allocation3 + $0x260] sm:$0xff] %v5102_v38  ;;  %v10720_v24 = vpop.f32.mrb[206].mxu1  ;;  %v4064_v31 = vpop.f32.mrb[207].mxu0  ;;  %10894 = vmatmul.mubr.msk.f32.gmra.mrb[56].mxu0 %vm653_vm0, %v11927_v58  ;;  %v11941_v58 = vld [vmem:[%s16104_s4 + $0x238] sm:$0xff] }
 0x295   : > { %v5105_v32 = vmul.f32 %v10720_v24, %v10512_v39  ;;  %v4777_v53 = vpop.f32.mrb[207].mxu1  ;;  %10896 = vmatprep.mubr.msk.f32.mxu0 %vm653_vm0, %v11928_v6  ;;  %v11942_v6 = vld [vmem:[%s16104_s4 + $0x240] sm:$0xff] }
 0x296   : > { %v5104_v21 = vmul.f32 %v4777_v53, %v4064_v31 }
 0x297   : > { %5233 = vst [vmem:[#allocation3 + $0x278] sm:$0xff] %v5105_v32  ;;  %v10515_v23 = vpop.f32.mrb[208].mxu0 }
 0x298   : > { %5232 = vst [vmem:[#allocation3 + $0x270] sm:$0xff] %v5104_v21  ;;  %v10723_v44 = vpop.f32.mrb[208].mxu1  ;;  %v4074_v15 = vpop.f32.mrb[209].mxu0  ;;  %10897 = vmatmul.mubr.msk.f32.gmra.mrb[58].mxu0 %vm653_vm0, %v11929_v27  ;;  %v11943_v27 = vld [vmem:[%s16104_s4 + $0x248] sm:$0xff] }
 0x299   : > { %v5107_v22 = vmul.f32 %v10723_v44, %v10515_v23  ;;  %v4787_v18 = vpop.f32.mrb[209].mxu1  ;;  %10899 = vmatprep.mubr.msk.f32.mxu0 %vm653_vm0, %v11930_v36  ;;  %v11944_v36 = vld [vmem:[%s16104_s4 + $0x250] sm:$0xff] }
 0x29a   : > { %v5106_v12 = vmul.f32 %v4787_v18, %v4074_v15 }
 0x29b   : > { %5235 = vst [vmem:[#allocation3 + $0x288] sm:$0xff] %v5107_v22  ;;  %v10518_v13 = vpop.f32.mrb[210].mxu0 }
 0x29c   : > { %5234 = vst [vmem:[#allocation3 + $0x280] sm:$0xff] %v5106_v12  ;;  %v10726_v17 = vpop.f32.mrb[210].mxu1  ;;  %v4084_v26 = vpop.f32.mrb[211].mxu0  ;;  %10900 = vmatmul.mubr.msk.f32.gmra.mrb[60].mxu0 %vm653_vm0, %v11931_v33  ;;  %v11945_v33 = vld [vmem:[%s16104_s4 + $0x258] sm:$0xff] }
 0x29d   : > { %v5109_v45 = vmul.f32 %v10726_v17, %v10518_v13  ;;  %v4797_v29 = vpop.f32.mrb[211].mxu1  ;;  %10902 = vmatprep.mubr.msk.f32.mxu0 %vm653_vm0, %v11932_v54  ;;  %v11946_v54 = vld [vmem:[%s16104_s4 + $0x260] sm:$0xff] }
 0x29e   : > { %v5108_v3 = vmul.f32 %v4797_v29, %v4084_v26 }
 0x29f   : > { %5237 = vst [vmem:[#allocation3 + $0x298] sm:$0xff] %v5109_v45  ;;  %v10521_v20 = vpop.f32.mrb[212].mxu0 }
 0x2a0   : > { %5236 = vst [vmem:[#allocation3 + $0x290] sm:$0xff] %v5108_v3  ;;  %v10729_v40 = vpop.f32.mrb[212].mxu1  ;;  %v4094_v37 = vpop.f32.mrb[213].mxu0  ;;  %10903 = vmatmul.mubr.msk.f32.gmra.mrb[62].mxu0 %vm653_vm0, %v11933_v7  ;;  %v11947_v7 = vld [vmem:[%s16104_s4 + $0x268] sm:$0xff] }
 0x2a1   : > { %v5111_v47 = vmul.f32 %v10729_v40, %v10521_v20  ;;  %v4807_v30 = vpop.f32.mrb[213].mxu1  ;;  %10905 = vmatprep.mubr.msk.f32.mxu0 %vm653_vm0, %v11934_v34  ;;  %v11948_v34 = vld [vmem:[%s16104_s4 + $0x270] sm:$0xff] }
 0x2a2   : > { %v5110_v46 = vmul.f32 %v4807_v30, %v4094_v37 }
 0x2a3   : > { %5239 = vst [vmem:[#allocation3 + $0x2a8] sm:$0xff] %v5111_v47  ;;  %v10524_v28 = vpop.f32.mrb[214].mxu0 }
 0x2a4   : > { %5238 = vst [vmem:[#allocation3 + $0x2a0] sm:$0xff] %v5110_v46  ;;  %v10732_v59 = vpop.f32.mrb[214].mxu1  ;;  %v4104_v48 = vpop.f32.mrb[215].mxu0  ;;  %10906 = vmatmul.mubr.msk.f32.gmra.mrb[64].mxu0 %vm653_vm0, %v11935_v42  ;;  %v11949_v42 = vld [vmem:[%s16104_s4 + $0x278] sm:$0xff] }
 0x2a5   : > { %v5113_v35 = vmul.f32 %v10732_v59, %v10524_v28  ;;  %v4817_v19 = vpop.f32.mrb[215].mxu1  ;;  %10908 = vmatprep.mubr.msk.f32.mxu0 %vm653_vm0, %v11936_v41  ;;  %v11950_v41 = vld [vmem:[%s16104_s4 + $0x280] sm:$0xff] }
 0x2a6   : > { %v5112_v0 = vmul.f32 %v4817_v19, %v4104_v48 }
 0x2a7   : > { %5241 = vst [vmem:[#allocation3 + $0x2b8] sm:$0xff] %v5113_v35  ;;  %v10527_v9 = vpop.f32.mrb[216].mxu0 }
 0x2a8   : > { %5240 = vst [vmem:[#allocation3 + $0x2b0] sm:$0xff] %v5112_v0  ;;  %v10735_v10 = vpop.f32.mrb[216].mxu1  ;;  %v4114_v60 = vpop.f32.mrb[217].mxu0  ;;  %10909 = vmatmul.mubr.msk.f32.gmra.mrb[66].mxu0 %vm653_vm0, %v11937_v57  ;;  %v11951_v57 = vld [vmem:[%s16104_s4 + $0x288] sm:$0xff] }
 0x2a9   : > { %v5115_v51 = vmul.f32 %v10735_v10, %v10527_v9  ;;  %v4827_v4 = vpop.f32.mrb[217].mxu1  ;;  %10911 = vmatprep.mubr.msk.f32.mxu0 %vm653_vm0, %v11938_v5  ;;  %v11952_v5 = vld [vmem:[%s16104_s4 + $0x290] sm:$0xff] }
 0x2aa   : > { %v5114_v25 = vmul.f32 %v4827_v4, %v4114_v60 }
 0x2ab   : > { %5243 = vst [vmem:[#allocation3 + $0x2c8] sm:$0xff] %v5115_v51  ;;  %v10530_v55 = vpop.f32.mrb[218].mxu0 }
 0x2ac   : > { %5242 = vst [vmem:[#allocation3 + $0x2c0] sm:$0xff] %v5114_v25  ;;  %v10738_v43 = vpop.f32.mrb[218].mxu1  ;;  %v4124_v52 = vpop.f32.mrb[219].mxu0  ;;  %10912 = vmatmul.mubr.msk.f32.gmra.mrb[68].mxu0 %vm653_vm0, %v11939_v62  ;;  %v11953_v62 = vld [vmem:[%s16104_s4 + $0x298] sm:$0xff] }
 0x2ad   : > { %v5117_v14 = vmul.f32 %v10738_v43, %v10530_v55  ;;  %v4837_v8 = vpop.f32.mrb[219].mxu1  ;;  %10914 = vmatprep.mubr.msk.f32.mxu0 %vm653_vm0, %v11940_v63  ;;  %v11954_v63 = vld [vmem:[%s16104_s4 + $0x2a0] sm:$0xff] }
 0x2ae   : > { %v5116_v38 = vmul.f32 %v4837_v8, %v4124_v52 }
 0x2af   : > { %5245 = vst [vmem:[#allocation3 + $0x2d8] sm:$0xff] %v5117_v14  ;;  %v10533_v39 = vpop.f32.mrb[220].mxu0 }
 0x2b0   : > { %5244 = vst [vmem:[#allocation3 + $0x2d0] sm:$0xff] %v5116_v38  ;;  %v10741_v24 = vpop.f32.mrb[220].mxu1  ;;  %v4134_v31 = vpop.f32.mrb[221].mxu0  ;;  %10915 = vmatmul.mubr.msk.f32.gmra.mrb[70].mxu0 %vm653_vm0, %v11941_v58  ;;  %v11955_v58 = vld [vmem:[%s16104_s4 + $0x2a8] sm:$0xff] }
 0x2b1   : > { %v5119_v32 = vmul.f32 %v10741_v24, %v10533_v39  ;;  %v4847_v53 = vpop.f32.mrb[221].mxu1  ;;  %10917 = vmatprep.mubr.msk.f32.mxu0 %vm653_vm0, %v11942_v6  ;;  %v11956_v6 = vld [vmem:[%s16104_s4 + $0x2b0] sm:$0xff] }
 0x2b2   : > { %v5118_v21 = vmul.f32 %v4847_v53, %v4134_v31 }
 0x2b3   : > { %5247 = vst [vmem:[#allocation3 + $0x2e8] sm:$0xff] %v5119_v32  ;;  %v10536_v23 = vpop.f32.mrb[222].mxu0 }
 0x2b4   : > { %5246 = vst [vmem:[#allocation3 + $0x2e0] sm:$0xff] %v5118_v21  ;;  %v10744_v44 = vpop.f32.mrb[222].mxu1  ;;  %v4144_v15 = vpop.f32.mrb[223].mxu0  ;;  %10918 = vmatmul.mubr.msk.f32.gmra.mrb[72].mxu0 %vm653_vm0, %v11943_v27  ;;  %v11957_v27 = vld [vmem:[%s16104_s4 + $0x2b8] sm:$0xff] }
 0x2b5   : > { %v5121_v22 = vmul.f32 %v10744_v44, %v10536_v23  ;;  %v4857_v18 = vpop.f32.mrb[223].mxu1  ;;  %10920 = vmatprep.mubr.msk.f32.mxu0 %vm653_vm0, %v11944_v36  ;;  %v11958_v36 = vld [vmem:[%s16104_s4 + $0x2c0] sm:$0xff] }
 0x2b6   : > { %v5120_v12 = vmul.f32 %v4857_v18, %v4144_v15 }
 0x2b7   : > { %5249 = vst [vmem:[#allocation3 + $0x2f8] sm:$0xff] %v5121_v22  ;;  %v10539_v13 = vpop.f32.mrb[224].mxu0 }
 0x2b8   : > { %5248 = vst [vmem:[#allocation3 + $0x2f0] sm:$0xff] %v5120_v12  ;;  %v10747_v17 = vpop.f32.mrb[224].mxu1  ;;  %v4154_v26 = vpop.f32.mrb[225].mxu0  ;;  %10921 = vmatmul.mubr.msk.f32.gmra.mrb[74].mxu0 %vm653_vm0, %v11945_v33  ;;  %v11959_v33 = vld [vmem:[%s16104_s4 + $0x2c8] sm:$0xff] }
 0x2b9   : > { %v5123_v45 = vmul.f32 %v10747_v17, %v10539_v13  ;;  %v4867_v29 = vpop.f32.mrb[225].mxu1  ;;  %10923 = vmatprep.mubr.msk.f32.mxu0 %vm653_vm0, %v11946_v54  ;;  %v11960_v54 = vld [vmem:[%s16104_s4 + $0x2d0] sm:$0xff] }
 0x2ba   : > { %v5122_v3 = vmul.f32 %v4867_v29, %v4154_v26 }
 0x2bb   : > { %5251 = vst [vmem:[#allocation3 + $0x308] sm:$0xff] %v5123_v45  ;;  %v10542_v20 = vpop.f32.mrb[226].mxu0 }
 0x2bc   : > { %5250 = vst [vmem:[#allocation3 + $0x300] sm:$0xff] %v5122_v3  ;;  %v10750_v40 = vpop.f32.mrb[226].mxu1  ;;  %v4164_v37 = vpop.f32.mrb[227].mxu0  ;;  %10924 = vmatmul.mubr.msk.f32.gmra.mrb[76].mxu0 %vm653_vm0, %v11947_v7  ;;  %v11961_v7 = vld [vmem:[%s16104_s4 + $0x2d8] sm:$0xff] }
 0x2bd   : > { %v5125_v47 = vmul.f32 %v10750_v40, %v10542_v20  ;;  %v4877_v30 = vpop.f32.mrb[227].mxu1  ;;  %10926 = vmatprep.mubr.msk.f32.mxu0 %vm653_vm0, %v11948_v34  ;;  %v11962_v34 = vld [vmem:[%s16104_s4 + $0x2e0] sm:$0xff] }
 0x2be   : > { %v5124_v46 = vmul.f32 %v4877_v30, %v4164_v37 }
 0x2bf   : > { %5253 = vst [vmem:[#allocation3 + $0x318] sm:$0xff] %v5125_v47  ;;  %v10545_v28 = vpop.f32.mrb[228].mxu0 }
 0x2c0   : > { %5252 = vst [vmem:[#allocation3 + $0x310] sm:$0xff] %v5124_v46  ;;  %v10753_v59 = vpop.f32.mrb[228].mxu1  ;;  %v4174_v48 = vpop.f32.mrb[229].mxu0  ;;  %10927 = vmatmul.mubr.msk.f32.gmra.mrb[78].mxu0 %vm653_vm0, %v11949_v42  ;;  %v11963_v42 = vld [vmem:[%s16104_s4 + $0x2e8] sm:$0xff] }
 0x2c1   : > { %v5127_v35 = vmul.f32 %v10753_v59, %v10545_v28  ;;  %v4887_v19 = vpop.f32.mrb[229].mxu1  ;;  %10929 = vmatprep.mubr.msk.f32.mxu0 %vm653_vm0, %v11950_v41  ;;  %v11964_v41 = vld [vmem:[%s16104_s4 + $0x2f0] sm:$0xff] }
 0x2c2   : > { %v5126_v0 = vmul.f32 %v4887_v19, %v4174_v48 }
 0x2c3   : > { %5255 = vst [vmem:[#allocation3 + $0x328] sm:$0xff] %v5127_v35  ;;  %v10548_v9 = vpop.f32.mrb[230].mxu0 }
 0x2c4   : > { %5254 = vst [vmem:[#allocation3 + $0x320] sm:$0xff] %v5126_v0  ;;  %v10756_v10 = vpop.f32.mrb[230].mxu1  ;;  %v4184_v60 = vpop.f32.mrb[231].mxu0  ;;  %10930 = vmatmul.mubr.msk.f32.gmra.mrb[80].mxu0 %vm653_vm0, %v11951_v57  ;;  %v11965_v57 = vld [vmem:[%s16104_s4 + $0x2f8] sm:$0xff] }
 0x2c5   : > { %v5129_v51 = vmul.f32 %v10756_v10, %v10548_v9  ;;  %v4897_v4 = vpop.f32.mrb[231].mxu1  ;;  %10932 = vmatprep.mubr.msk.f32.mxu0 %vm653_vm0, %v11952_v5  ;;  %v11966_v5 = vld [vmem:[%s16104_s4 + $0x300] sm:$0xff] }
 0x2c6   : > { %v5128_v25 = vmul.f32 %v4897_v4, %v4184_v60 }
 0x2c7   : > { %5257 = vst [vmem:[#allocation3 + $0x338] sm:$0xff] %v5129_v51  ;;  %v10551_v55 = vpop.f32.mrb[232].mxu0 }
 0x2c8   : > { %5256 = vst [vmem:[#allocation3 + $0x330] sm:$0xff] %v5128_v25  ;;  %v10759_v43 = vpop.f32.mrb[232].mxu1  ;;  %v4194_v52 = vpop.f32.mrb[233].mxu0  ;;  %10933 = vmatmul.mubr.msk.f32.gmra.mrb[82].mxu0 %vm653_vm0, %v11953_v62  ;;  %v11967_v62 = vld [vmem:[%s16104_s4 + $0x308] sm:$0xff] }
 0x2c9   : > { %v5131_v14 = vmul.f32 %v10759_v43, %v10551_v55  ;;  %v4907_v8 = vpop.f32.mrb[233].mxu1  ;;  %10935 = vmatprep.mubr.msk.f32.mxu0 %vm653_vm0, %v11954_v63  ;;  %v11968_v63 = vld [vmem:[%s16104_s4 + $0x310] sm:$0xff] }
 0x2ca   : > { %v5130_v38 = vmul.f32 %v4907_v8, %v4194_v52 }
 0x2cb   : > { %5259 = vst [vmem:[#allocation3 + $0x348] sm:$0xff] %v5131_v14  ;;  %v10554_v39 = vpop.f32.mrb[234].mxu0 }
 0x2cc   : > { %5258 = vst [vmem:[#allocation3 + $0x340] sm:$0xff] %v5130_v38  ;;  %v10762_v24 = vpop.f32.mrb[234].mxu1  ;;  %v4204_v31 = vpop.f32.mrb[235].mxu0  ;;  %10936 = vmatmul.mubr.msk.f32.gmra.mrb[84].mxu0 %vm653_vm0, %v11955_v58  ;;  %v11969_v58 = vld [vmem:[%s16104_s4 + $0x318] sm:$0xff] }
 0x2cd   : > { %v5133_v32 = vmul.f32 %v10762_v24, %v10554_v39  ;;  %v4917_v53 = vpop.f32.mrb[235].mxu1  ;;  %10938 = vmatprep.mubr.msk.f32.mxu0 %vm653_vm0, %v11956_v6  ;;  %v11970_v6 = vld [vmem:[%s16104_s4 + $0x320] sm:$0xff] }
 0x2ce   : > { %v5132_v21 = vmul.f32 %v4917_v53, %v4204_v31 }
 0x2cf   : > { %5261 = vst [vmem:[#allocation3 + $0x358] sm:$0xff] %v5133_v32  ;;  %v10557_v23 = vpop.f32.mrb[236].mxu0 }
 0x2d0   : > { %5260 = vst [vmem:[#allocation3 + $0x350] sm:$0xff] %v5132_v21  ;;  %v10765_v44 = vpop.f32.mrb[236].mxu1  ;;  %v4214_v15 = vpop.f32.mrb[237].mxu0  ;;  %10939 = vmatmul.mubr.msk.f32.gmra.mrb[86].mxu0 %vm653_vm0, %v11957_v27  ;;  %v11971_v27 = vld [vmem:[%s16104_s4 + $0x328] sm:$0xff] }
 0x2d1   : > { %v5135_v22 = vmul.f32 %v10765_v44, %v10557_v23  ;;  %v4927_v18 = vpop.f32.mrb[237].mxu1  ;;  %10941 = vmatprep.mubr.msk.f32.mxu0 %vm653_vm0, %v11958_v36  ;;  %v11972_v36 = vld [vmem:[%s16104_s4 + $0x330] sm:$0xff] }
 0x2d2   : > { %v5134_v12 = vmul.f32 %v4927_v18, %v4214_v15 }
 0x2d3   : > { %5263 = vst [vmem:[#allocation3 + $0x368] sm:$0xff] %v5135_v22  ;;  %v10560_v13 = vpop.f32.mrb[238].mxu0 }
 0x2d4   : > { %5262 = vst [vmem:[#allocation3 + $0x360] sm:$0xff] %v5134_v12  ;;  %v10768_v17 = vpop.f32.mrb[238].mxu1  ;;  %v4224_v26 = vpop.f32.mrb[239].mxu0  ;;  %10942 = vmatmul.mubr.msk.f32.gmra.mrb[88].mxu0 %vm653_vm0, %v11959_v33  ;;  %v11973_v33 = vld [vmem:[%s16104_s4 + $0x338] sm:$0xff] }
 0x2d5   : > { %v5137_v45 = vmul.f32 %v10768_v17, %v10560_v13  ;;  %v4937_v29 = vpop.f32.mrb[239].mxu1  ;;  %10944 = vmatprep.mubr.msk.f32.mxu0 %vm653_vm0, %v11960_v54  ;;  %v11974_v54 = vld [vmem:[%s16104_s4 + $0x340] sm:$0xff] }
 0x2d6   : > { %v5136_v3 = vmul.f32 %v4937_v29, %v4224_v26 }
 0x2d7   : > { %5265 = vst [vmem:[#allocation3 + $0x378] sm:$0xff] %v5137_v45  ;;  %v10563_v20 = vpop.f32.mrb[240].mxu0 }
 0x2d8   : > { %5264 = vst [vmem:[#allocation3 + $0x370] sm:$0xff] %v5136_v3  ;;  %v10771_v40 = vpop.f32.mrb[240].mxu1  ;;  %v4234_v37 = vpop.f32.mrb[241].mxu0  ;;  %10945 = vmatmul.mubr.msk.f32.gmra.mrb[90].mxu0 %vm653_vm0, %v11961_v7  ;;  %v11975_v7 = vld [vmem:[%s16104_s4 + $0x348] sm:$0xff] }
 0x2d9   : > { %v5139_v47 = vmul.f32 %v10771_v40, %v10563_v20  ;;  %v4947_v30 = vpop.f32.mrb[241].mxu1  ;;  %10947 = vmatprep.mubr.msk.f32.mxu0 %vm653_vm0, %v11962_v34  ;;  %v11976_v34 = vld [vmem:[%s16104_s4 + $0x350] sm:$0xff] }
 0x2da   : > { %v5138_v46 = vmul.f32 %v4947_v30, %v4234_v37 }
 0x2db   : > { %5267 = vst [vmem:[#allocation3 + $0x388] sm:$0xff] %v5139_v47  ;;  %v10566_v28 = vpop.f32.mrb[242].mxu0 }
 0x2dc   : > { %5266 = vst [vmem:[#allocation3 + $0x380] sm:$0xff] %v5138_v46  ;;  %v10774_v59 = vpop.f32.mrb[242].mxu1  ;;  %v4244_v48 = vpop.f32.mrb[243].mxu0  ;;  %10948 = vmatmul.mubr.msk.f32.gmra.mrb[92].mxu0 %vm653_vm0, %v11963_v42  ;;  %v11979_v42 = vld [vmem:[%s16104_s4 + $0x360] sm:$0xff] }
 0x2dd   : > { %v5141_v35 = vmul.f32 %v10774_v59, %v10566_v28  ;;  %v4957_v19 = vpop.f32.mrb[243].mxu1  ;;  %10950 = vmatprep.mubr.msk.f32.mxu0 %vm653_vm0, %v11964_v41 }
 0x2de   : > { %v5140_v0 = vmul.f32 %v4957_v19, %v4244_v48  ;;  %v11978_v48 = vld [vmem:[%s16106_s6] sm:$0xff] }
 0x2df   : > { %5269 = vst [vmem:[#allocation3 + $0x398] sm:$0xff] %v5141_v35  ;;  %v10569_v9 = vpop.f32.mrb[244].mxu0  ;;  %v11977_v35 = vld [vmem:[%s16104_s4 + $0x358] sm:$0xff] }
 0x2e0   : > { %5268 = vst [vmem:[#allocation3 + $0x390] sm:$0xff] %v5140_v0  ;;  %v10777_v10 = vpop.f32.mrb[244].mxu1  ;;  %v4254_v60 = vpop.f32.mrb[245].mxu0  ;;  %10951 = vmatmul.mubr.msk.f32.gmra.mrb[94].mxu0 %vm653_vm0, %v11965_v57  ;;  %v11980_v0 = vld [vmem:[%s16106_s6 + $0x8] sm:$0xff]  ;;  %v11983_v57 = vld [vmem:[%s16104_s4 + $0x370] sm:$0xff] }
 0x2e1   : > { %v5143_v51 = vmul.f32 %v10777_v10, %v10569_v9  ;;  %v4967_v4 = vpop.f32.mrb[245].mxu1  ;;  %10953 = vmatprep.mubr.msk.f32.mxu0 %vm653_vm0, %v11966_v5 }
 0x2e2   : > { %v5142_v25 = vmul.f32 %v4967_v4, %v4254_v60  ;;  %v11982_v60 = vld [vmem:[%s16106_s6 + $0x10] sm:$0xff] }
 0x2e3   : > { %5271 = vst [vmem:[#allocation3 + $0x3a8] sm:$0xff] %v5143_v51  ;;  %v10572_v55 = vpop.f32.mrb[246].mxu0  ;;  %v11981_v51 = vld [vmem:[%s16104_s4 + $0x368] sm:$0xff] }
 0x2e4   : > { %5270 = vst [vmem:[#allocation3 + $0x3a0] sm:$0xff] %v5142_v25  ;;  %v10780_v43 = vpop.f32.mrb[246].mxu1  ;;  %v4264_v52 = vpop.f32.mrb[247].mxu0  ;;  %10954 = vmatmul.mubr.msk.f32.gmra.mrb[96].mxu0 %vm653_vm0, %v11967_v62  ;;  %v11984_v25 = vld [vmem:[%s16106_s6 + $0x18] sm:$0xff]  ;;  %v11987_v62 = vld [vmem:[%s16104_s4 + $0x380] sm:$0xff] }
 0x2e5   : > { %v5145_v14 = vmul.f32 %v10780_v43, %v10572_v55  ;;  %v4977_v8 = vpop.f32.mrb[247].mxu1  ;;  %10956 = vmatprep.mubr.msk.f32.mxu0 %vm653_vm0, %v11968_v63 }
 0x2e6   : > { %v5144_v38 = vmul.f32 %v4977_v8, %v4264_v52  ;;  %v11986_v52 = vld [vmem:[%s16106_s6 + $0x20] sm:$0xff] }
 0x2e7   : > { %5273 = vst [vmem:[#allocation3 + $0x3b8] sm:$0xff] %v5145_v14  ;;  %v10575_v39 = vpop.f32.mrb[248].mxu0  ;;  %v11985_v14 = vld [vmem:[%s16104_s4 + $0x378] sm:$0xff] }
 0x2e8   : > { %5272 = vst [vmem:[#allocation3 + $0x3b0] sm:$0xff] %v5144_v38  ;;  %v10783_v24 = vpop.f32.mrb[248].mxu1  ;;  %v4274_v31 = vpop.f32.mrb[249].mxu0  ;;  %10957 = vmatmul.mubr.msk.f32.gmra.mrb[98].mxu0 %vm653_vm0, %v11969_v58  ;;  %v11988_v38 = vld [vmem:[%s16106_s6 + $0x28] sm:$0xff]  ;;  %v11991_v58 = vld [vmem:[%s16104_s4 + $0x390] sm:$0xff] }
 0x2e9   : > { %v5147_v32 = vmul.f32 %v10783_v24, %v10575_v39  ;;  %v4987_v53 = vpop.f32.mrb[249].mxu1  ;;  %10959 = vmatprep.mubr.msk.f32.mxu0 %vm653_vm0, %v11970_v6 }
 0x2ea   : > { %v5146_v21 = vmul.f32 %v4987_v53, %v4274_v31  ;;  %v11990_v31 = vld [vmem:[%s16106_s6 + $0x30] sm:$0xff] }
 0x2eb   : > { %5275 = vst [vmem:[#allocation3 + $0x3c8] sm:$0xff] %v5147_v32  ;;  %v10578_v23 = vpop.f32.mrb[250].mxu0  ;;  %v11989_v32 = vld [vmem:[%s16104_s4 + $0x388] sm:$0xff] }
 0x2ec   : > { %5274 = vst [vmem:[#allocation3 + $0x3c0] sm:$0xff] %v5146_v21  ;;  %v10786_v44 = vpop.f32.mrb[250].mxu1  ;;  %v4284_v15 = vpop.f32.mrb[251].mxu0  ;;  %10960 = vmatmul.mubr.msk.f32.gmra.mrb[100].mxu0 %vm653_vm0, %v11971_v27  ;;  %v11992_v21 = vld [vmem:[%s16106_s6 + $0x38] sm:$0xff]  ;;  %v11995_v27 = vld [vmem:[%s16104_s4 + $0x3a0] sm:$0xff] }
 0x2ed   : > { %v5149_v22 = vmul.f32 %v10786_v44, %v10578_v23  ;;  %v4997_v18 = vpop.f32.mrb[251].mxu1  ;;  %10962 = vmatprep.mubr.msk.f32.mxu0 %vm653_vm0, %v11972_v36 }
 0x2ee   : > { %v5148_v12 = vmul.f32 %v4997_v18, %v4284_v15  ;;  %v11994_v15 = vld [vmem:[%s16106_s6 + $0x40] sm:$0xff] }
 0x2ef   : > { %5277 = vst [vmem:[#allocation3 + $0x3d8] sm:$0xff] %v5149_v22  ;;  %v10581_v13 = vpop.f32.mrb[252].mxu0  ;;  %v11993_v22 = vld [vmem:[%s16104_s4 + $0x398] sm:$0xff] }
 0x2f0   : > { %5276 = vst [vmem:[#allocation3 + $0x3d0] sm:$0xff] %v5148_v12  ;;  %v10789_v17 = vpop.f32.mrb[252].mxu1  ;;  %v4294_v26 = vpop.f32.mrb[253].mxu0  ;;  %10963 = vmatmul.mubr.msk.f32.gmra.mrb[102].mxu0 %vm653_vm0, %v11973_v33  ;;  %v11996_v12 = vld [vmem:[%s16106_s6 + $0x48] sm:$0xff]  ;;  %v11999_v33 = vld [vmem:[%s16104_s4 + $0x3b0] sm:$0xff] }
 0x2f1   : > { %v5151_v45 = vmul.f32 %v10789_v17, %v10581_v13  ;;  %v5007_v29 = vpop.f32.mrb[253].mxu1  ;;  %10965 = vmatprep.mubr.msk.f32.mxu0 %vm653_vm0, %v11974_v54 }
 0x2f2   : > { %v5150_v3 = vmul.f32 %v5007_v29, %v4294_v26  ;;  %v11998_v26 = vld [vmem:[%s16106_s6 + $0x50] sm:$0xff] }
 0x2f3   : > { %5279 = vst [vmem:[#allocation3 + $0x3e8] sm:$0xff] %v5151_v45  ;;  %v10584_v20 = vpop.f32.mrb[254].mxu0  ;;  %v11997_v45 = vld [vmem:[%s16104_s4 + $0x3a8] sm:$0xff] }
 0x2f4   : > { %5278 = vst [vmem:[#allocation3 + $0x3e0] sm:$0xff] %v5150_v3  ;;  %v10792_v40 = vpop.f32.mrb[254].mxu1  ;;  %v4304_v37 = vpop.f32.mrb[255].mxu0  ;;  %10966 = vmatmul.mubr.msk.f32.gmra.mrb[104].mxu0 %vm653_vm0, %v11975_v7  ;;  %v12000_v3 = vld [vmem:[%s16106_s6 + $0x58] sm:$0xff]  ;;  %v12003_v7 = vld [vmem:[%s16104_s4 + $0x3c0] sm:$0xff] }
 0x2f5   : > { %v5153_v47 = vmul.f32 %v10792_v40, %v10584_v20  ;;  %v5017_v30 = vpop.f32.mrb[255].mxu1  ;;  %10968 = vmatprep.mubr.msk.f32.mxu0 %vm653_vm0, %v11976_v34 }
 0x2f6   : > { %v5152_v46 = vmul.f32 %v5017_v30, %v4304_v37  ;;  %v12002_v37 = vld [vmem:[%s16106_s6 + $0x60] sm:$0xff] }
 0x2f7   : > { %5281 = vst [vmem:[#allocation3 + $0x3f8] sm:$0xff] %v5153_v47  ;;  %v10811_v28 = vpop.f32.mrb[0].mxu0  ;;  %v12001_v47 = vld [vmem:[%s16104_s4 + $0x3b8] sm:$0xff] }
 0x2f8   : > { %5280 = vst [vmem:[#allocation3 + $0x3f0] sm:$0xff] %v5152_v46  ;;  %v5388_v59 = vpop.f32.mrb[1].mxu0  ;;  %10969 = vmatmul.mubr.msk.f32.gmra.mrb[106].mxu0 %vm653_vm0, %v11977_v35  ;;  %v6028_v41 = vmul.f32 %v11980_v0, %v10811_v28  ;;  %v12004_v46 = vld [vmem:[%s16106_s6 + $0x68] sm:$0xff]  ;;  %v12008_v0 = vld [vmem:[%s16106_s6 + $0x78] sm:$0xff] }
 0x2f9   : > { %v6027_v19 = vmul.f32 %v11978_v48, %v5388_v59  ;;  %10971 = vmatprep.mubr.msk.f32.mxu0 %vm653_vm0, %v11979_v42  ;;  %v12005_v35 = vld [vmem:[%s16104_s4 + $0x3c8] sm:$0xff]  ;;  %v12006_v48 = vld [vmem:[%s16106_s6 + $0x70] sm:$0xff] }
 0x2fa   : > { %v12007_v42 = vld [vmem:[%s16104_s4 + $0x3d0] sm:$0xff] }
 0x2fb   : > { %v10814_v9 = vpop.f32.mrb[2].mxu0  ;;  %11017 = vmatprep.mubr.msk.f32.mxu1 %vm653_vm0, %v6027_v19 }
 0x2fc   : > { %v5398_v10 = vpop.f32.mrb[3].mxu0  ;;  %10972 = vmatmul.mubr.msk.f32.gmra.mrb[108].mxu0 %vm653_vm0, %v11981_v51  ;;  %11018 = vmatmul.mubr.msk.f32.vlgmr.msra.gmra.mrb[0].mxu1 %vm653_vm0, %v6028_v41  ;;  %v6030_v5 = vmul.f32 %v11984_v25, %v10814_v9  ;;  %v12009_v51 = vld [vmem:[%s16104_s4 + $0x3d8] sm:$0xff]  ;;  %v12012_v25 = vld [vmem:[%s16106_s6 + $0x88] sm:$0xff] }
 0x2fd   : > { %v6029_v4 = vmul.f32 %v11982_v60, %v5398_v10  ;;  %10974 = vmatprep.mubr.msk.f32.mxu0 %vm653_vm0, %v11983_v57  ;;  %v12010_v60 = vld [vmem:[%s16106_s6 + $0x80] sm:$0xff] }
 0x2fe   : > { %v12011_v57 = vld [vmem:[%s16104_s4 + $0x3e0] sm:$0xff] }
 0x2ff   : > { %v10817_v55 = vpop.f32.mrb[4].mxu0  ;;  %11020 = vmatprep.mubr.msk.f32.mxu1 %vm653_vm0, %v6029_v4 }
 0x300   : > { %v5408_v43 = vpop.f32.mrb[5].mxu0  ;;  %10975 = vmatmul.mubr.msk.f32.gmra.mrb[110].mxu0 %vm653_vm0, %v11985_v14  ;;  %11021 = vmatmul.mubr.msk.f32.gmra.mrb[2].mxu1 %vm653_vm0, %v6030_v5  ;;  %v6032_v63 = vmul.f32 %v11988_v38, %v10817_v55  ;;  %v12013_v14 = vld [vmem:[%s16104_s4 + $0x3e8] sm:$0xff]  ;;  %v12016_v38 = vld [vmem:[%s16106_s6 + $0x98] sm:$0xff] }
 0x301   : > { %v6031_v8 = vmul.f32 %v11986_v52, %v5408_v43  ;;  %10977 = vmatprep.mubr.msk.f32.mxu0 %vm653_vm0, %v11987_v62  ;;  %v12014_v52 = vld [vmem:[%s16106_s6 + $0x90] sm:$0xff] }
 0x302   : > { %v12015_v62 = vld [vmem:[%s16104_s4 + $0x3f0] sm:$0xff] }
 0x303   : > { %v10820_v39 = vpop.f32.mrb[6].mxu0  ;;  %11023 = vmatprep.mubr.msk.f32.mxu1 %vm653_vm0, %v6031_v8 }
 0x304   : > { %v5418_v24 = vpop.f32.mrb[7].mxu0  ;;  %10978 = vmatmul.mubr.msk.f32.gmra.mrb[112].mxu0 %vm653_vm0, %v11989_v32  ;;  %11024 = vmatmul.mubr.msk.f32.gmra.mrb[4].mxu1 %vm653_vm0, %v6032_v63  ;;  %v6034_v6 = vmul.f32 %v11992_v21, %v10820_v39  ;;  %v12017_v32 = vld [vmem:[%s16104_s4 + $0x3f8] sm:$0xff] }
 0x305   : > { %v6033_v53 = vmul.f32 %v11990_v31, %v5418_v24  ;;  %10980 = vmatprep.mubr.msk.f32.mxu0 %vm653_vm0, %v11991_v58  ;;  %v12018_v31 = vld [vmem:[%s16106_s6 + $0xa0] sm:$0xff]  ;;  %v12019_v58 = vld [vmem:[%s16106_s6 + $0xa8] sm:$0xff] }
 0x307   : > { %v10823_v23 = vpop.f32.mrb[8].mxu0  ;;  %11026 = vmatprep.mubr.msk.f32.mxu1 %vm653_vm0, %v6033_v53 }
 0x308   : > { %v5428_v44 = vpop.f32.mrb[9].mxu0  ;;  %10981 = vmatmul.mubr.msk.f32.gmra.mrb[114].mxu0 %vm653_vm0, %v11993_v22  ;;  %11027 = vmatmul.mubr.msk.f32.gmra.mrb[6].mxu1 %vm653_vm0, %v6034_v6  ;;  %v6036_v36 = vmul.f32 %v11996_v12, %v10823_v23 }
 0x309   : > { %v6035_v18 = vmul.f32 %v11994_v15, %v5428_v44  ;;  %10983 = vmatprep.mubr.msk.f32.mxu0 %vm653_vm0, %v11995_v27  ;;  %v12020_v44 = vld [vmem:[%s16106_s6 + $0xb0] sm:$0xff]  ;;  %v12021_v15 = vld [vmem:[%s16106_s6 + $0xb8] sm:$0xff] }
 0x30b   : > { %v10826_v13 = vpop.f32.mrb[10].mxu0  ;;  %11029 = vmatprep.mubr.msk.f32.mxu1 %vm653_vm0, %v6035_v18 }
 0x30c   : > { %v5438_v17 = vpop.f32.mrb[11].mxu0  ;;  %10984 = vmatmul.mubr.msk.f32.gmra.mrb[116].mxu0 %vm653_vm0, %v11997_v45  ;;  %11030 = vmatmul.mubr.msk.f32.gmra.mrb[8].mxu1 %vm653_vm0, %v6036_v36  ;;  %v6038_v54 = vmul.f32 %v12000_v3, %v10826_v13  ;;  %v12022_v36 = vld [vmem:[%s16106_s6 + $0xc0] sm:$0xff] }
 0x30d   : > { %v6037_v29 = vmul.f32 %v11998_v26, %v5438_v17  ;;  %10986 = vmatprep.mubr.msk.f32.mxu0 %vm653_vm0, %v11999_v33  ;;  %v12023_v17 = vld [vmem:[%s16106_s6 + $0xc8] sm:$0xff]  ;;  %v12024_v33 = vld [vmem:[%s16106_s6 + $0xd0] sm:$0xff] }
 0x30f   : > { %v10829_v20 = vpop.f32.mrb[12].mxu0  ;;  %11032 = vmatprep.mubr.msk.f32.mxu1 %vm653_vm0, %v6037_v29 }
 0x310   : > { %v5448_v40 = vpop.f32.mrb[13].mxu0  ;;  %10987 = vmatmul.mubr.msk.f32.gmra.mrb[118].mxu0 %vm653_vm0, %v12001_v47  ;;  %11033 = vmatmul.mubr.msk.f32.gmra.mrb[10].mxu1 %vm653_vm0, %v6038_v54  ;;  %v6040_v34 = vmul.f32 %v12004_v46, %v10829_v20  ;;  %v12025_v54 = vld [vmem:[%s16106_s6 + $0xd8] sm:$0xff] }
 0x311   : > { %v6039_v30 = vmul.f32 %v12002_v37, %v5448_v40  ;;  %10989 = vmatprep.mubr.msk.f32.mxu0 %vm653_vm0, %v12003_v7  ;;  %v12026_v37 = vld [vmem:[%s16106_s6 + $0xe0] sm:$0xff]  ;;  %v12027_v7 = vld [vmem:[%s16106_s6 + $0xe8] sm:$0xff] }
 0x313   : > { %v10832_v28 = vpop.f32.mrb[14].mxu0  ;;  %11035 = vmatprep.mubr.msk.f32.mxu1 %vm653_vm0, %v6039_v30 }
 0x314   : > { %v5458_v59 = vpop.f32.mrb[15].mxu0  ;;  %10990 = vmatmul.mubr.msk.f32.gmra.mrb[120].mxu0 %vm653_vm0, %v12005_v35  ;;  %11036 = vmatmul.mubr.msk.f32.gmra.mrb[12].mxu1 %vm653_vm0, %v6040_v34  ;;  %v6042_v41 = vmul.f32 %v12008_v0, %v10832_v28 }
 0x315   : > { %v6041_v19 = vmul.f32 %v12006_v48, %v5458_v59  ;;  %10992 = vmatprep.mubr.msk.f32.mxu0 %vm653_vm0, %v12007_v42  ;;  %v12028_v59 = vld [vmem:[%s16106_s6 + $0xf0] sm:$0xff]  ;;  %v12029_v48 = vld [vmem:[%s16106_s6 + $0xf8] sm:$0xff] }
 0x317   : > { %v10835_v9 = vpop.f32.mrb[16].mxu0  ;;  %11038 = vmatprep.mubr.msk.f32.mxu1 %vm653_vm0, %v6041_v19 }
 0x318   : > { %v5468_v10 = vpop.f32.mrb[17].mxu0  ;;  %10993 = vmatmul.mubr.msk.f32.gmra.mrb[122].mxu0 %vm653_vm0, %v12009_v51  ;;  %11039 = vmatmul.mubr.msk.f32.gmra.mrb[14].mxu1 %vm653_vm0, %v6042_v41  ;;  %v6044_v5 = vmul.f32 %v12012_v25, %v10835_v9  ;;  %v12030_v41 = vld [vmem:[%s16106_s6 + $0x100] sm:$0xff] }
 0x319   : > { %v6043_v4 = vmul.f32 %v12010_v60, %v5468_v10  ;;  %10995 = vmatprep.mubr.msk.f32.mxu0 %vm653_vm0, %v12011_v57  ;;  %v12031_v10 = vld [vmem:[%s16106_s6 + $0x108] sm:$0xff]  ;;  %v12032_v57 = vld [vmem:[%s16106_s6 + $0x110] sm:$0xff] }
 0x31b   : > { %v10838_v55 = vpop.f32.mrb[18].mxu0  ;;  %11041 = vmatprep.mubr.msk.f32.mxu1 %vm653_vm0, %v6043_v4 }
 0x31c   : > { %v5478_v43 = vpop.f32.mrb[19].mxu0  ;;  %10996 = vmatmul.mubr.msk.f32.gmra.mrb[124].mxu0 %vm653_vm0, %v12013_v14  ;;  %11042 = vmatmul.mubr.msk.f32.gmra.mrb[16].mxu1 %vm653_vm0, %v6044_v5  ;;  %v6046_v63 = vmul.f32 %v12016_v38, %v10838_v55  ;;  %v12033_v5 = vld [vmem:[%s16106_s6 + $0x118] sm:$0xff] }
 0x31d   : > { %v6045_v8 = vmul.f32 %v12014_v52, %v5478_v43  ;;  %10998 = vmatprep.mubr.msk.f32.mxu0 %vm653_vm0, %v12015_v62  ;;  %v12034_v52 = vld [vmem:[%s16106_s6 + $0x120] sm:$0xff]  ;;  %v12035_v62 = vld [vmem:[%s16106_s6 + $0x128] sm:$0xff] }
 0x31f   : > { %v10841_v39 = vpop.f32.mrb[20].mxu0  ;;  %11044 = vmatprep.mubr.msk.f32.mxu1 %vm653_vm0, %v6045_v8 }
 0x320   : > { %v5488_v24 = vpop.f32.mrb[21].mxu0  ;;  %10999 = vmatmul.mubr.msk.f32.gmra.mrb[126].mxu0 %vm653_vm0, %v12017_v32  ;;  %11045 = vmatmul.mubr.msk.f32.gmra.mrb[18].mxu1 %vm653_vm0, %v6046_v63  ;;  %v6048_v21 = vmul.f32 %v12019_v58, %v10841_v39 }
 0x321   : > { %v6047_v53 = vmul.f32 %v12018_v31, %v5488_v24  ;;  %v12036_v24 = vld [vmem:[%s16106_s6 + $0x130] sm:$0xff]  ;;  %v12037_v31 = vld [vmem:[%s16106_s6 + $0x138] sm:$0xff] }
 0x323   : > { %v10844_v6 = vpop.f32.mrb[22].mxu0  ;;  %11047 = vmatprep.mubr.msk.f32.mxu1 %vm653_vm0, %v6047_v53 }
 0x324   : > { %v5498_v23 = vpop.f32.mrb[23].mxu0  ;;  %11048 = vmatmul.mubr.msk.f32.gmra.mrb[20].mxu1 %vm653_vm0, %v6048_v21  ;;  %v6050_v18 = vmul.f32 %v12021_v15, %v10844_v6  ;;  %v12038_v6 = vld [vmem:[%s16106_s6 + $0x140] sm:$0xff] }
 0x325   : > { %v6049_v22 = vmul.f32 %v12020_v44, %v5498_v23  ;;  %v12039_v44 = vld [vmem:[%s16106_s6 + $0x148] sm:$0xff] }
 0x327   : > { %v10847_v27 = vpop.f32.mrb[24].mxu0  ;;  %11050 = vmatprep.mubr.msk.f32.mxu1 %vm653_vm0, %v6049_v22 }
 0x328   : > { %v5508_v12 = vpop.f32.mrb[25].mxu0  ;;  %11051 = vmatmul.mubr.msk.f32.gmra.mrb[22].mxu1 %vm653_vm0, %v6050_v18  ;;  %v6052_v45 = vmul.f32 %v12023_v17, %v10847_v27  ;;  %v12040_v27 = vld [vmem:[%s16106_s6 + $0x150] sm:$0xff] }
 0x329   : > { %v6051_v13 = vmul.f32 %v12022_v36, %v5508_v12  ;;  %v12041_v36 = vld [vmem:[%s16106_s6 + $0x158] sm:$0xff] }
 0x32b   : > { %v10850_v26 = vpop.f32.mrb[26].mxu0  ;;  %11053 = vmatprep.mubr.msk.f32.mxu1 %vm653_vm0, %v6051_v13 }
 0x32c   : > { %v5518_v29 = vpop.f32.mrb[27].mxu0  ;;  %11054 = vmatmul.mubr.msk.f32.gmra.mrb[24].mxu1 %vm653_vm0, %v6052_v45  ;;  %v6054_v20 = vmul.f32 %v12025_v54, %v10850_v26  ;;  %v12042_v26 = vld [vmem:[%s16106_s6 + $0x160] sm:$0xff] }
 0x32d   : > { %v6053_v3 = vmul.f32 %v12024_v33, %v5518_v29  ;;  %v12043_v33 = vld [vmem:[%s16106_s6 + $0x168] sm:$0xff] }
 0x32f   : > { %v10853_v40 = vpop.f32.mrb[28].mxu0  ;;  %11056 = vmatprep.mubr.msk.f32.mxu1 %vm653_vm0, %v6053_v3 }
 0x330   : > { %v5528_v47 = vpop.f32.mrb[29].mxu0  ;;  %11057 = vmatmul.mubr.msk.f32.gmra.mrb[26].mxu1 %vm653_vm0, %v6054_v20  ;;  %v6056_v46 = vmul.f32 %v12027_v7, %v10853_v40  ;;  %v12044_v40 = vld [vmem:[%s16106_s6 + $0x170] sm:$0xff] }
 0x331   : > { %v6055_v30 = vmul.f32 %v12026_v37, %v5528_v47  ;;  %v12045_v37 = vld [vmem:[%s16106_s6 + $0x178] sm:$0xff] }
 0x333   : > { %v10856_v34 = vpop.f32.mrb[30].mxu0  ;;  %11059 = vmatprep.mubr.msk.f32.mxu1 %vm653_vm0, %v6055_v30 }
 0x334   : > { %v5538_v28 = vpop.f32.mrb[31].mxu0  ;;  %11060 = vmatmul.mubr.msk.f32.gmra.mrb[28].mxu1 %vm653_vm0, %v6056_v46  ;;  %v6058_v19 = vmul.f32 %v12029_v48, %v10856_v34  ;;  %v12046_v34 = vld [vmem:[%s16106_s6 + $0x180] sm:$0xff] }
 0x335   : > { %v6057_v35 = vmul.f32 %v12028_v59, %v5538_v28  ;;  %v12047_v59 = vld [vmem:[%s16106_s6 + $0x188] sm:$0xff] }
 0x337   : > { %v10859_v42 = vpop.f32.mrb[32].mxu0  ;;  %11062 = vmatprep.mubr.msk.f32.mxu1 %vm653_vm0, %v6057_v35 }
 0x338   : > { %v5548_v0 = vpop.f32.mrb[33].mxu0  ;;  %11063 = vmatmul.mubr.msk.f32.gmra.mrb[30].mxu1 %vm653_vm0, %v6058_v19  ;;  %v6060_v51 = vmul.f32 %v12031_v10, %v10859_v42  ;;  %v12048_v42 = vld [vmem:[%s16106_s6 + $0x190] sm:$0xff] }
 0x339   : > { %v6059_v9 = vmul.f32 %v12030_v41, %v5548_v0  ;;  %v12049_v41 = vld [vmem:[%s16106_s6 + $0x198] sm:$0xff] }
 0x33b   : > { %v10862_v60 = vpop.f32.mrb[34].mxu0  ;;  %11065 = vmatprep.mubr.msk.f32.mxu1 %vm653_vm0, %v6059_v9 }
 0x33c   : > { %v5558_v4 = vpop.f32.mrb[35].mxu0  ;;  %11066 = vmatmul.mubr.msk.f32.gmra.mrb[32].mxu1 %vm653_vm0, %v6060_v51  ;;  %v6062_v55 = vmul.f32 %v12033_v5, %v10862_v60  ;;  %v12050_v60 = vld [vmem:[%s16106_s6 + $0x1a0] sm:$0xff] }
 0x33d   : > { %v6061_v25 = vmul.f32 %v12032_v57, %v5558_v4  ;;  %v12051_v57 = vld [vmem:[%s16106_s6 + $0x1a8] sm:$0xff] }
 0x33f   : > { %v10865_v43 = vpop.f32.mrb[36].mxu0  ;;  %11068 = vmatprep.mubr.msk.f32.mxu1 %vm653_vm0, %v6061_v25 }
 0x340   : > { %v5568_v14 = vpop.f32.mrb[37].mxu0  ;;  %11069 = vmatmul.mubr.msk.f32.gmra.mrb[34].mxu1 %vm653_vm0, %v6062_v55  ;;  %v6064_v38 = vmul.f32 %v12035_v62, %v10865_v43  ;;  %v12052_v43 = vld [vmem:[%s16106_s6 + $0x1b0] sm:$0xff] }
 0x341   : > { %v6063_v8 = vmul.f32 %v12034_v52, %v5568_v14  ;;  %v12053_v52 = vld [vmem:[%s16106_s6 + $0x1b8] sm:$0xff] }
 0x343   : > { %v10868_v63 = vpop.f32.mrb[38].mxu0  ;;  %11071 = vmatprep.mubr.msk.f32.mxu1 %vm653_vm0, %v6063_v8 }
 0x344   : > { %v5578_v39 = vpop.f32.mrb[39].mxu0  ;;  %11072 = vmatmul.mubr.msk.f32.gmra.mrb[36].mxu1 %vm653_vm0, %v6064_v38  ;;  %v6066_v53 = vmul.f32 %v12037_v31, %v10868_v63  ;;  %v12054_v63 = vld [vmem:[%s16106_s6 + $0x1c0] sm:$0xff] }
 0x345   : > { %v6065_v32 = vmul.f32 %v12036_v24, %v5578_v39  ;;  %v12055_v24 = vld [vmem:[%s16106_s6 + $0x1c8] sm:$0xff] }
 0x347   : > { %v10871_v58 = vpop.f32.mrb[40].mxu0  ;;  %11074 = vmatprep.mubr.msk.f32.mxu1 %vm653_vm0, %v6065_v32 }
 0x348   : > { %v5588_v21 = vpop.f32.mrb[41].mxu0  ;;  %11075 = vmatmul.mubr.msk.f32.gmra.mrb[38].mxu1 %vm653_vm0, %v6066_v53  ;;  %v6068_v22 = vmul.f32 %v12039_v44, %v10871_v58  ;;  %v12056_v58 = vld [vmem:[%s16106_s6 + $0x1d0] sm:$0xff] }
 0x349   : > { %v6067_v23 = vmul.f32 %v12038_v6, %v5588_v21  ;;  %v12057_v6 = vld [vmem:[%s16106_s6 + $0x1d8] sm:$0xff] }
 0x34b   : > { %v10874_v15 = vpop.f32.mrb[42].mxu0  ;;  %11077 = vmatprep.mubr.msk.f32.mxu1 %vm653_vm0, %v6067_v23 }
 0x34c   : > { %v5598_v18 = vpop.f32.mrb[43].mxu0  ;;  %11078 = vmatmul.mubr.msk.f32.gmra.mrb[40].mxu1 %vm653_vm0, %v6068_v22  ;;  %v6070_v13 = vmul.f32 %v12041_v36, %v10874_v15  ;;  %v12058_v15 = vld [vmem:[%s16106_s6 + $0x1e0] sm:$0xff] }
 0x34d   : > { %v6069_v12 = vmul.f32 %v12040_v27, %v5598_v18  ;;  %v12059_v27 = vld [vmem:[%s16106_s6 + $0x1e8] sm:$0xff] }
 0x34f   : > { %v10877_v17 = vpop.f32.mrb[44].mxu0  ;;  %11080 = vmatprep.mubr.msk.f32.mxu1 %vm653_vm0, %v6069_v12 }
 0x350   : > { %v5608_v45 = vpop.f32.mrb[45].mxu0  ;;  %11081 = vmatmul.mubr.msk.f32.gmra.mrb[42].mxu1 %vm653_vm0, %v6070_v13  ;;  %v6072_v3 = vmul.f32 %v12043_v33, %v10877_v17  ;;  %v12060_v17 = vld [vmem:[%s16106_s6 + $0x1f0] sm:$0xff] }
 0x351   : > { %v6071_v29 = vmul.f32 %v12042_v26, %v5608_v45  ;;  %v12061_v26 = vld [vmem:[%s16106_s6 + $0x1f8] sm:$0xff] }
 0x353   : > { %v10880_v54 = vpop.f32.mrb[46].mxu0  ;;  %11083 = vmatprep.mubr.msk.f32.mxu1 %vm653_vm0, %v6071_v29 }
 0x354   : > { %v5618_v20 = vpop.f32.mrb[47].mxu0  ;;  %11084 = vmatmul.mubr.msk.f32.gmra.mrb[44].mxu1 %vm653_vm0, %v6072_v3  ;;  %v6074_v30 = vmul.f32 %v12045_v37, %v10880_v54  ;;  %v12062_v54 = vld [vmem:[%s16106_s6 + $0x200] sm:$0xff] }
 0x355   : > { %v6073_v47 = vmul.f32 %v12044_v40, %v5618_v20  ;;  %v12063_v40 = vld [vmem:[%s16106_s6 + $0x208] sm:$0xff] }
 0x357   : > { %v10883_v7 = vpop.f32.mrb[48].mxu0  ;;  %11086 = vmatprep.mubr.msk.f32.mxu1 %vm653_vm0, %v6073_v47 }
 0x358   : > { %v5628_v46 = vpop.f32.mrb[49].mxu0  ;;  %11087 = vmatmul.mubr.msk.f32.gmra.mrb[46].mxu1 %vm653_vm0, %v6074_v30  ;;  %v6076_v35 = vmul.f32 %v12047_v59, %v10883_v7  ;;  %v12064_v7 = vld [vmem:[%s16106_s6 + $0x210] sm:$0xff] }
 0x359   : > { %v6075_v28 = vmul.f32 %v12046_v34, %v5628_v46  ;;  %v12065_v34 = vld [vmem:[%s16106_s6 + $0x218] sm:$0xff] }
 0x35b   : > { %v10886_v48 = vpop.f32.mrb[50].mxu0  ;;  %11089 = vmatprep.mubr.msk.f32.mxu1 %vm653_vm0, %v6075_v28 }
 0x35c   : > { %v5638_v19 = vpop.f32.mrb[51].mxu0  ;;  %11090 = vmatmul.mubr.msk.f32.gmra.mrb[48].mxu1 %vm653_vm0, %v6076_v35  ;;  %v6078_v9 = vmul.f32 %v12049_v41, %v10886_v48  ;;  %v12066_v48 = vld [vmem:[%s16106_s6 + $0x220] sm:$0xff] }
 0x35d   : > { %v6077_v0 = vmul.f32 %v12048_v42, %v5638_v19  ;;  %v12067_v42 = vld [vmem:[%s16106_s6 + $0x228] sm:$0xff] }
 0x35f   : > { %v10889_v10 = vpop.f32.mrb[52].mxu0  ;;  %11092 = vmatprep.mubr.msk.f32.mxu1 %vm653_vm0, %v6077_v0 }
 0x360   : > { %v5648_v51 = vpop.f32.mrb[53].mxu0  ;;  %11093 = vmatmul.mubr.msk.f32.gmra.mrb[50].mxu1 %vm653_vm0, %v6078_v9  ;;  %v6080_v25 = vmul.f32 %v12051_v57, %v10889_v10  ;;  %v12068_v10 = vld [vmem:[%s16106_s6 + $0x230] sm:$0xff] }
 0x361   : > { %v6079_v4 = vmul.f32 %v12050_v60, %v5648_v51  ;;  %v12069_v60 = vld [vmem:[%s16106_s6 + $0x238] sm:$0xff] }
 0x363   : > { %v10892_v5 = vpop.f32.mrb[54].mxu0  ;;  %11095 = vmatprep.mubr.msk.f32.mxu1 %vm653_vm0, %v6079_v4 }
 0x364   : > { %v5658_v55 = vpop.f32.mrb[55].mxu0  ;;  %11096 = vmatmul.mubr.msk.f32.gmra.mrb[52].mxu1 %vm653_vm0, %v6080_v25  ;;  %v6082_v8 = vmul.f32 %v12053_v52, %v10892_v5  ;;  %v12070_v5 = vld [vmem:[%s16106_s6 + $0x240] sm:$0xff] }
 0x365   : > { %v6081_v14 = vmul.f32 %v12052_v43, %v5658_v55  ;;  %v12071_v43 = vld [vmem:[%s16106_s6 + $0x248] sm:$0xff] }
 0x367   : > { %v10895_v62 = vpop.f32.mrb[56].mxu0  ;;  %11098 = vmatprep.mubr.msk.f32.mxu1 %vm653_vm0, %v6081_v14 }
 0x368   : > { %v5668_v38 = vpop.f32.mrb[57].mxu0  ;;  %11099 = vmatmul.mubr.msk.f32.gmra.mrb[54].mxu1 %vm653_vm0, %v6082_v8  ;;  %v6084_v32 = vmul.f32 %v12055_v24, %v10895_v62  ;;  %v12072_v62 = vld [vmem:[%s16106_s6 + $0x250] sm:$0xff] }
 0x369   : > { %v6083_v39 = vmul.f32 %v12054_v63, %v5668_v38  ;;  %v12073_v63 = vld [vmem:[%s16106_s6 + $0x258] sm:$0xff] }
 0x36b   : > { %v10898_v31 = vpop.f32.mrb[58].mxu0  ;;  %11101 = vmatprep.mubr.msk.f32.mxu1 %vm653_vm0, %v6083_v39 }
 0x36c   : > { %v5678_v53 = vpop.f32.mrb[59].mxu0  ;;  %11102 = vmatmul.mubr.msk.f32.gmra.mrb[56].mxu1 %vm653_vm0, %v6084_v32  ;;  %v6086_v23 = vmul.f32 %v12057_v6, %v10898_v31  ;;  %v12074_v31 = vld [vmem:[%s16106_s6 + $0x260] sm:$0xff] }
 0x36d   : > { %v6085_v21 = vmul.f32 %v12056_v58, %v5678_v53  ;;  %v12075_v58 = vld [vmem:[%s16106_s6 + $0x268] sm:$0xff] }
 0x36f   : > { %v10901_v44 = vpop.f32.mrb[60].mxu0  ;;  %11104 = vmatprep.mubr.msk.f32.mxu1 %vm653_vm0, %v6085_v21 }
 0x370   : > { %v5688_v22 = vpop.f32.mrb[61].mxu0  ;;  %11105 = vmatmul.mubr.msk.f32.gmra.mrb[58].mxu1 %vm653_vm0, %v6086_v23  ;;  %v6088_v12 = vmul.f32 %v12059_v27, %v10901_v44  ;;  %v12076_v44 = vld [vmem:[%s16106_s6 + $0x270] sm:$0xff] }
 0x371   : > { %v6087_v18 = vmul.f32 %v12058_v15, %v5688_v22  ;;  %v12077_v15 = vld [vmem:[%s16106_s6 + $0x278] sm:$0xff] }
 0x373   : > { %v10904_v36 = vpop.f32.mrb[62].mxu0  ;;  %11107 = vmatprep.mubr.msk.f32.mxu1 %vm653_vm0, %v6087_v18 }
 0x374   : > { %v5698_v13 = vpop.f32.mrb[63].mxu0  ;;  %11108 = vmatmul.mubr.msk.f32.gmra.mrb[60].mxu1 %vm653_vm0, %v6088_v12  ;;  %v6090_v29 = vmul.f32 %v12061_v26, %v10904_v36  ;;  %v12078_v36 = vld [vmem:[%s16106_s6 + $0x280] sm:$0xff] }
 0x375   : > { %v6089_v45 = vmul.f32 %v12060_v17, %v5698_v13  ;;  %v12079_v17 = vld [vmem:[%s16106_s6 + $0x288] sm:$0xff] }
 0x377   : > { %v10907_v33 = vpop.f32.mrb[64].mxu0  ;;  %11110 = vmatprep.mubr.msk.f32.mxu1 %vm653_vm0, %v6089_v45 }
 0x378   : > { %v5708_v3 = vpop.f32.mrb[65].mxu0  ;;  %11111 = vmatmul.mubr.msk.f32.gmra.mrb[62].mxu1 %vm653_vm0, %v6090_v29  ;;  %v6092_v47 = vmul.f32 %v12063_v40, %v10907_v33  ;;  %v12080_v33 = vld [vmem:[%s16106_s6 + $0x290] sm:$0xff] }
 0x379   : > { %v6091_v20 = vmul.f32 %v12062_v54, %v5708_v3  ;;  %v12081_v54 = vld [vmem:[%s16106_s6 + $0x298] sm:$0xff] }
 0x37b   : > { %v10910_v37 = vpop.f32.mrb[66].mxu0  ;;  %11113 = vmatprep.mubr.msk.f32.mxu1 %vm653_vm0, %v6091_v20 }
 0x37c   : > { %v5718_v30 = vpop.f32.mrb[67].mxu0  ;;  %11114 = vmatmul.mubr.msk.f32.gmra.mrb[64].mxu1 %vm653_vm0, %v6092_v47  ;;  %v6094_v28 = vmul.f32 %v12065_v34, %v10910_v37  ;;  %v12082_v37 = vld [vmem:[%s16106_s6 + $0x2a0] sm:$0xff] }
 0x37d   : > { %v6093_v46 = vmul.f32 %v12064_v7, %v5718_v30  ;;  %v12083_v7 = vld [vmem:[%s16106_s6 + $0x2a8] sm:$0xff] }
 0x37f   : > { %v10913_v59 = vpop.f32.mrb[68].mxu0  ;;  %11116 = vmatprep.mubr.msk.f32.mxu1 %vm653_vm0, %v6093_v46 }
 0x380   : > { %v5728_v35 = vpop.f32.mrb[69].mxu0  ;;  %11117 = vmatmul.mubr.msk.f32.gmra.mrb[66].mxu1 %vm653_vm0, %v6094_v28  ;;  %v6096_v0 = vmul.f32 %v12067_v42, %v10913_v59  ;;  %v12084_v59 = vld [vmem:[%s16106_s6 + $0x2b0] sm:$0xff] }
 0x381   : > { %v6095_v19 = vmul.f32 %v12066_v48, %v5728_v35  ;;  %v12085_v48 = vld [vmem:[%s16106_s6 + $0x2b8] sm:$0xff] }
 0x383   : > { %v10916_v41 = vpop.f32.mrb[70].mxu0  ;;  %11119 = vmatprep.mubr.msk.f32.mxu1 %vm653_vm0, %v6095_v19 }
 0x384   : > { %v5738_v9 = vpop.f32.mrb[71].mxu0  ;;  %11120 = vmatmul.mubr.msk.f32.gmra.mrb[68].mxu1 %vm653_vm0, %v6096_v0  ;;  %v6098_v4 = vmul.f32 %v12069_v60, %v10916_v41  ;;  %v12086_v41 = vld [vmem:[%s16106_s6 + $0x2c0] sm:$0xff] }
 0x385   : > { %v6097_v51 = vmul.f32 %v12068_v10, %v5738_v9  ;;  %v12087_v10 = vld [vmem:[%s16106_s6 + $0x2c8] sm:$0xff] }
 0x387   : > { %v10919_v57 = vpop.f32.mrb[72].mxu0  ;;  %11122 = vmatprep.mubr.msk.f32.mxu1 %vm653_vm0, %v6097_v51 }
 0x388   : > { %v5748_v25 = vpop.f32.mrb[73].mxu0  ;;  %11123 = vmatmul.mubr.msk.f32.gmra.mrb[70].mxu1 %vm653_vm0, %v6098_v4  ;;  %v6100_v14 = vmul.f32 %v12071_v43, %v10919_v57  ;;  %v12088_v57 = vld [vmem:[%s16106_s6 + $0x2d0] sm:$0xff] }
 0x389   : > { %v6099_v55 = vmul.f32 %v12070_v5, %v5748_v25  ;;  %v12089_v5 = vld [vmem:[%s16106_s6 + $0x2d8] sm:$0xff] }
 0x38b   : > { %v10922_v52 = vpop.f32.mrb[74].mxu0  ;;  %11125 = vmatprep.mubr.msk.f32.mxu1 %vm653_vm0, %v6099_v55 }
 0x38c   : > { %v5758_v8 = vpop.f32.mrb[75].mxu0  ;;  %11126 = vmatmul.mubr.msk.f32.gmra.mrb[72].mxu1 %vm653_vm0, %v6100_v14  ;;  %v6102_v39 = vmul.f32 %v12073_v63, %v10922_v52  ;;  %v12090_v52 = vld [vmem:[%s16106_s6 + $0x2e0] sm:$0xff] }
 0x38d   : > { %v6101_v38 = vmul.f32 %v12072_v62, %v5758_v8  ;;  %v12091_v62 = vld [vmem:[%s16106_s6 + $0x2e8] sm:$0xff] }
 0x38f   : > { %v10925_v24 = vpop.f32.mrb[76].mxu0  ;;  %11128 = vmatprep.mubr.msk.f32.mxu1 %vm653_vm0, %v6101_v38 }
 0x390   : > { %v5768_v32 = vpop.f32.mrb[77].mxu0  ;;  %11129 = vmatmul.mubr.msk.f32.gmra.mrb[74].mxu1 %vm653_vm0, %v6102_v39  ;;  %v6104_v21 = vmul.f32 %v12075_v58, %v10925_v24  ;;  %v12092_v24 = vld [vmem:[%s16106_s6 + $0x2f0] sm:$0xff] }
 0x391   : > { %v6103_v53 = vmul.f32 %v12074_v31, %v5768_v32  ;;  %v12093_v31 = vld [vmem:[%s16106_s6 + $0x2f8] sm:$0xff] }
 0x393   : > { %v10928_v6 = vpop.f32.mrb[78].mxu0  ;;  %11131 = vmatprep.mubr.msk.f32.mxu1 %vm653_vm0, %v6103_v53 }
 0x394   : > { %v5778_v23 = vpop.f32.mrb[79].mxu0  ;;  %11132 = vmatmul.mubr.msk.f32.gmra.mrb[76].mxu1 %vm653_vm0, %v6104_v21  ;;  %v6106_v18 = vmul.f32 %v12077_v15, %v10928_v6  ;;  %v12094_v6 = vld [vmem:[%s16106_s6 + $0x300] sm:$0xff] }
 0x395   : > { %v6105_v22 = vmul.f32 %v12076_v44, %v5778_v23  ;;  %v12095_v44 = vld [vmem:[%s16106_s6 + $0x308] sm:$0xff] }
 0x397   : > { %v10931_v27 = vpop.f32.mrb[80].mxu0  ;;  %11134 = vmatprep.mubr.msk.f32.mxu1 %vm653_vm0, %v6105_v22 }
 0x398   : > { %v5788_v12 = vpop.f32.mrb[81].mxu0  ;;  %11135 = vmatmul.mubr.msk.f32.gmra.mrb[78].mxu1 %vm653_vm0, %v6106_v18  ;;  %v6108_v45 = vmul.f32 %v12079_v17, %v10931_v27  ;;  %v12096_v27 = vld [vmem:[%s16106_s6 + $0x310] sm:$0xff] }
 0x399   : > { %v6107_v13 = vmul.f32 %v12078_v36, %v5788_v12  ;;  %v12097_v36 = vld [vmem:[%s16106_s6 + $0x318] sm:$0xff] }
 0x39b   : > { %v10934_v26 = vpop.f32.mrb[82].mxu0  ;;  %11137 = vmatprep.mubr.msk.f32.mxu1 %vm653_vm0, %v6107_v13 }
 0x39c   : > { %v5798_v29 = vpop.f32.mrb[83].mxu0  ;;  %11138 = vmatmul.mubr.msk.f32.gmra.mrb[80].mxu1 %vm653_vm0, %v6108_v45  ;;  %v6110_v20 = vmul.f32 %v12081_v54, %v10934_v26  ;;  %v12098_v26 = vld [vmem:[%s16106_s6 + $0x320] sm:$0xff] }
 0x39d   : > { %v6109_v3 = vmul.f32 %v12080_v33, %v5798_v29  ;;  %v12099_v33 = vld [vmem:[%s16106_s6 + $0x328] sm:$0xff] }
 0x39f   : > { %v10937_v40 = vpop.f32.mrb[84].mxu0  ;;  %11140 = vmatprep.mubr.msk.f32.mxu1 %vm653_vm0, %v6109_v3 }
 0x3a0   : > { %v5808_v47 = vpop.f32.mrb[85].mxu0  ;;  %11141 = vmatmul.mubr.msk.f32.gmra.mrb[82].mxu1 %vm653_vm0, %v6110_v20  ;;  %v6112_v46 = vmul.f32 %v12083_v7, %v10937_v40  ;;  %v12100_v40 = vld [vmem:[%s16106_s6 + $0x330] sm:$0xff] }
 0x3a1   : > { %v6111_v30 = vmul.f32 %v12082_v37, %v5808_v47  ;;  %v12101_v37 = vld [vmem:[%s16106_s6 + $0x338] sm:$0xff] }
 0x3a3   : > { %v10940_v34 = vpop.f32.mrb[86].mxu0  ;;  %11143 = vmatprep.mubr.msk.f32.mxu1 %vm653_vm0, %v6111_v30 }
 0x3a4   : > { %v5818_v28 = vpop.f32.mrb[87].mxu0  ;;  %11144 = vmatmul.mubr.msk.f32.gmra.mrb[84].mxu1 %vm653_vm0, %v6112_v46  ;;  %v6114_v19 = vmul.f32 %v12085_v48, %v10940_v34  ;;  %v12102_v34 = vld [vmem:[%s16106_s6 + $0x340] sm:$0xff] }
 0x3a5   : > { %v6113_v35 = vmul.f32 %v12084_v59, %v5818_v28  ;;  %v12103_v59 = vld [vmem:[%s16106_s6 + $0x348] sm:$0xff] }
 0x3a7   : > { %v10943_v42 = vpop.f32.mrb[88].mxu0  ;;  %11146 = vmatprep.mubr.msk.f32.mxu1 %vm653_vm0, %v6113_v35 }
 0x3a8   : > { %v5828_v0 = vpop.f32.mrb[89].mxu0  ;;  %11147 = vmatmul.mubr.msk.f32.gmra.mrb[86].mxu1 %vm653_vm0, %v6114_v19  ;;  %v6116_v51 = vmul.f32 %v12087_v10, %v10943_v42  ;;  %v12104_v42 = vld [vmem:[%s16106_s6 + $0x350] sm:$0xff] }
 0x3a9   : > { %v6115_v9 = vmul.f32 %v12086_v41, %v5828_v0  ;;  %v12105_v41 = vld [vmem:[%s16106_s6 + $0x358] sm:$0xff] }
 0x3ab   : > { %v10946_v60 = vpop.f32.mrb[90].mxu0  ;;  %11149 = vmatprep.mubr.msk.f32.mxu1 %vm653_vm0, %v6115_v9 }
 0x3ac   : > { %v5838_v4 = vpop.f32.mrb[91].mxu0  ;;  %11150 = vmatmul.mubr.msk.f32.gmra.mrb[88].mxu1 %vm653_vm0, %v6116_v51  ;;  %v6118_v55 = vmul.f32 %v12089_v5, %v10946_v60  ;;  %v12107_v5 = vld [vmem:[%s16106_s6 + $0x368] sm:$0xff] }
 0x3ad   : > { %v6117_v25 = vmul.f32 %v12088_v57, %v5838_v4  ;;  %v12106_v57 = vld [vmem:[%s16106_s6 + $0x360] sm:$0xff] }
 0x3af   : > { %v10949_v43 = vpop.f32.mrb[92].mxu0  ;;  %11152 = vmatprep.mubr.msk.f32.mxu1 %vm653_vm0, %v6117_v25 }
 0x3b0   : > { %v5848_v14 = vpop.f32.mrb[93].mxu0  ;;  %11153 = vmatmul.mubr.msk.f32.gmra.mrb[90].mxu1 %vm653_vm0, %v6118_v55  ;;  %v6120_v38 = vmul.f32 %v12091_v62, %v10949_v43  ;;  %v12108_v62 = vld [vmem:[%s16106_s6 + $0x370] sm:$0xff] }
 0x3b1   : > { %v6119_v8 = vmul.f32 %v12090_v52, %v5848_v14 }
 0x3b3   : > { %v10952_v63 = vpop.f32.mrb[94].mxu0  ;;  %11155 = vmatprep.mubr.msk.f32.mxu1 %vm653_vm0, %v6119_v8 }
 0x3b4   : > { %v5858_v39 = vpop.f32.mrb[95].mxu0  ;;  %11156 = vmatmul.mubr.msk.f32.gmra.mrb[92].mxu1 %vm653_vm0, %v6120_v38  ;;  %v6122_v53 = vmul.f32 %v12093_v31, %v10952_v63  ;;  %v12109_v63 = vld [vmem:[%s16106_s6 + $0x378] sm:$0xff] }
 0x3b5   : > { %v6121_v32 = vmul.f32 %v12092_v24, %v5858_v39 }
 0x3b7   : > { %v10955_v58 = vpop.f32.mrb[96].mxu0  ;;  %11158 = vmatprep.mubr.msk.f32.mxu1 %vm653_vm0, %v6121_v32 }
 0x3b8   : > { %v5868_v21 = vpop.f32.mrb[97].mxu0  ;;  %11159 = vmatmul.mubr.msk.f32.gmra.mrb[94].mxu1 %vm653_vm0, %v6122_v53  ;;  %v6124_v22 = vmul.f32 %v12095_v44, %v10955_v58  ;;  %v12110_v58 = vld [vmem:[%s16106_s6 + $0x380] sm:$0xff] }
 0x3b9   : > { %v6123_v23 = vmul.f32 %v12094_v6, %v5868_v21  ;;  %v12111_v6 = vld [vmem:[%s16106_s6 + $0x388] sm:$0xff] }
 0x3bb   : > { %v10958_v15 = vpop.f32.mrb[98].mxu0  ;;  %11161 = vmatprep.mubr.msk.f32.mxu1 %vm653_vm0, %v6123_v23 }
 0x3bc   : > { %v5878_v18 = vpop.f32.mrb[99].mxu0  ;;  %11162 = vmatmul.mubr.msk.f32.gmra.mrb[96].mxu1 %vm653_vm0, %v6124_v22  ;;  %v6126_v13 = vmul.f32 %v12097_v36, %v10958_v15  ;;  %v12113_v36 = vld [vmem:[%s16106_s6 + $0x398] sm:$0xff] }
 0x3bd   : > { %v6125_v12 = vmul.f32 %v12096_v27, %v5878_v18  ;;  %v12112_v27 = vld [vmem:[%s16106_s6 + $0x390] sm:$0xff] }
 0x3bf   : > { %v10961_v17 = vpop.f32.mrb[100].mxu0  ;;  %11164 = vmatprep.mubr.msk.f32.mxu1 %vm653_vm0, %v6125_v12 }
 0x3c0   : > { %v5888_v45 = vpop.f32.mrb[101].mxu0  ;;  %11165 = vmatmul.mubr.msk.f32.gmra.mrb[98].mxu1 %vm653_vm0, %v6126_v13  ;;  %v6128_v3 = vmul.f32 %v12099_v33, %v10961_v17  ;;  %v12114_v33 = vld [vmem:[%s16106_s6 + $0x3a0] sm:$0xff] }
 0x3c1   : > { %v6127_v29 = vmul.f32 %v12098_v26, %v5888_v45 }
 0x3c3   : > { %v10964_v54 = vpop.f32.mrb[102].mxu0  ;;  %11167 = vmatprep.mubr.msk.f32.mxu1 %vm653_vm0, %v6127_v29 }
 0x3c4   : > { %v5898_v20 = vpop.f32.mrb[103].mxu0  ;;  %11168 = vmatmul.mubr.msk.f32.gmra.mrb[100].mxu1 %vm653_vm0, %v6128_v3  ;;  %v6130_v30 = vmul.f32 %v12101_v37, %v10964_v54  ;;  %v12115_v54 = vld [vmem:[%s16106_s6 + $0x3a8] sm:$0xff] }
 0x3c5   : > { %v6129_v47 = vmul.f32 %v12100_v40, %v5898_v20 }
 0x3c7   : > { %v10967_v7 = vpop.f32.mrb[104].mxu0  ;;  %11170 = vmatprep.mubr.msk.f32.mxu1 %vm653_vm0, %v6129_v47 }
 0x3c8   : > { %v5908_v46 = vpop.f32.mrb[105].mxu0  ;;  %11171 = vmatmul.mubr.msk.f32.gmra.mrb[102].mxu1 %vm653_vm0, %v6130_v30  ;;  %v6132_v35 = vmul.f32 %v12103_v59, %v10967_v7  ;;  %v12116_v7 = vld [vmem:[%s16106_s6 + $0x3b0] sm:$0xff] }
 0x3c9   : > { %v6131_v28 = vmul.f32 %v12102_v34, %v5908_v46  ;;  %v12117_v34 = vld [vmem:[%s16106_s6 + $0x3b8] sm:$0xff] }
 0x3cb   : > { %v10970_v48 = vpop.f32.mrb[106].mxu0  ;;  %11173 = vmatprep.mubr.msk.f32.mxu1 %vm653_vm0, %v6131_v28 }
 0x3cc   : > { %v5918_v19 = vpop.f32.mrb[107].mxu0  ;;  %11174 = vmatmul.mubr.msk.f32.gmra.mrb[104].mxu1 %vm653_vm0, %v6132_v35  ;;  %v6134_v9 = vmul.f32 %v12105_v41, %v10970_v48  ;;  %v12119_v41 = vld [vmem:[%s16106_s6 + $0x3c8] sm:$0xff] }
 0x3cd   : > { %v6133_v0 = vmul.f32 %v12104_v42, %v5918_v19  ;;  %v12118_v42 = vld [vmem:[%s16106_s6 + $0x3c0] sm:$0xff] }
 0x3cf   : > { %v10973_v10 = vpop.f32.mrb[108].mxu0  ;;  %v11019_v51 = vpop.f32.mrb[0].mxu1  ;;  %11176 = vmatprep.mubr.msk.f32.mxu1 %vm653_vm0, %v6133_v0 }
 0x3d0   : > { %7245 = vst [vmem:[#allocation4 + $0x8] sm:$0xff] %v11019_v51  ;;  %v5928_v60 = vpop.f32.mrb[109].mxu0  ;;  %v6605_v4 = vpop.f32.mrb[1].mxu1  ;;  %11177 = vmatmul.mubr.msk.f32.gmra.mrb[106].mxu1 %vm653_vm0, %v6134_v9  ;;  %v6136_v55 = vmul.f32 %v12107_v5, %v10973_v10  ;;  %v12121_v5 = vld [vmem:[%s16106_s6 + $0x3d8] sm:$0xff] }
 0x3d1   : > { %v6135_v25 = vmul.f32 %v12106_v57, %v5928_v60  ;;  %7244 = vst [vmem:[#allocation4] sm:$0xff] %v6605_v4  ;;  %v12120_v57 = vld [vmem:[%s16106_s6 + $0x3d0] sm:$0xff] }
 0x3d3   : > { %v10976_v43 = vpop.f32.mrb[110].mxu0  ;;  %v11022_v14 = vpop.f32.mrb[2].mxu1  ;;  %11179 = vmatprep.mubr.msk.f32.mxu1 %vm653_vm0, %v6135_v25 }
 0x3d4   : > { %7247 = vst [vmem:[#allocation4 + $0x18] sm:$0xff] %v11022_v14  ;;  %v5938_v52 = vpop.f32.mrb[111].mxu0  ;;  %v6615_v8 = vpop.f32.mrb[3].mxu1  ;;  %11180 = vmatmul.mubr.msk.f32.gmra.mrb[108].mxu1 %vm653_vm0, %v6136_v55  ;;  %v6138_v39 = vmul.f32 %v12109_v63, %v10976_v43  ;;  %v12123_v63 = vld [vmem:[%s16106_s6 + $0x3e8] sm:$0xff] }
 0x3d5   : > { %v6137_v38 = vmul.f32 %v12108_v62, %v5938_v52  ;;  %7246 = vst [vmem:[#allocation4 + $0x10] sm:$0xff] %v6615_v8  ;;  %v12122_v62 = vld [vmem:[%s16106_s6 + $0x3e0] sm:$0xff] }
 0x3d7   : > { %v10979_v24 = vpop.f32.mrb[112].mxu0  ;;  %v11025_v32 = vpop.f32.mrb[4].mxu1  ;;  %11182 = vmatprep.mubr.msk.f32.mxu1 %vm653_vm0, %v6137_v38 }
 0x3d8   : > { %7249 = vst [vmem:[#allocation4 + $0x28] sm:$0xff] %v11025_v32  ;;  %v5948_v31 = vpop.f32.mrb[113].mxu0  ;;  %v6625_v53 = vpop.f32.mrb[5].mxu1  ;;  %11183 = vmatmul.mubr.msk.f32.gmra.mrb[110].mxu1 %vm653_vm0, %v6138_v39  ;;  %v6140_v23 = vmul.f32 %v12111_v6, %v10979_v24  ;;  %v12125_v6 = vld [vmem:[%s16106_s6 + $0x3f8] sm:$0xff] }
 0x3d9   : > { %v6139_v21 = vmul.f32 %v12110_v58, %v5948_v31  ;;  %7248 = vst [vmem:[#allocation4 + $0x20] sm:$0xff] %v6625_v53  ;;  %v12124_v58 = vld [vmem:[%s16106_s6 + $0x3f0] sm:$0xff] }
 0x3db   : > { %v10982_v44 = vpop.f32.mrb[114].mxu0  ;;  %v11028_v22 = vpop.f32.mrb[6].mxu1  ;;  %11185 = vmatprep.mubr.msk.f32.mxu1 %vm653_vm0, %v6139_v21 }
 0x3dc   : > { %7251 = vst [vmem:[#allocation4 + $0x38] sm:$0xff] %v11028_v22  ;;  %v5958_v15 = vpop.f32.mrb[115].mxu0  ;;  %v6635_v18 = vpop.f32.mrb[7].mxu1  ;;  %11186 = vmatmul.mubr.msk.f32.gmra.mrb[112].mxu1 %vm653_vm0, %v6140_v23  ;;  %v6142_v13 = vmul.f32 %v12113_v36, %v10982_v44 }
 0x3dd   : > { %v6141_v12 = vmul.f32 %v12112_v27, %v5958_v15  ;;  %7250 = vst [vmem:[#allocation4 + $0x30] sm:$0xff] %v6635_v18 }
 0x3df   : > { %v10985_v17 = vpop.f32.mrb[116].mxu0  ;;  %v11031_v45 = vpop.f32.mrb[8].mxu1  ;;  %11188 = vmatprep.mubr.msk.f32.mxu1 %vm653_vm0, %v6141_v12 }
 0x3e0   : > { %7253 = vst [vmem:[#allocation4 + $0x48] sm:$0xff] %v11031_v45  ;;  %v5968_v26 = vpop.f32.mrb[117].mxu0  ;;  %v6645_v29 = vpop.f32.mrb[9].mxu1  ;;  %11189 = vmatmul.mubr.msk.f32.gmra.mrb[114].mxu1 %vm653_vm0, %v6142_v13  ;;  %v6144_v20 = vmul.f32 %v12115_v54, %v10985_v17 }
 0x3e1   : > { %v6143_v3 = vmul.f32 %v12114_v33, %v5968_v26  ;;  %7252 = vst [vmem:[#allocation4 + $0x40] sm:$0xff] %v6645_v29 }
 0x3e3   : > { %v10988_v40 = vpop.f32.mrb[118].mxu0  ;;  %v11034_v47 = vpop.f32.mrb[10].mxu1  ;;  %11191 = vmatprep.mubr.msk.f32.mxu1 %vm653_vm0, %v6143_v3 }
 0x3e4   : > { %7255 = vst [vmem:[#allocation4 + $0x58] sm:$0xff] %v11034_v47  ;;  %v5978_v37 = vpop.f32.mrb[119].mxu0  ;;  %v6655_v30 = vpop.f32.mrb[11].mxu1  ;;  %11192 = vmatmul.mubr.msk.f32.gmra.mrb[116].mxu1 %vm653_vm0, %v6144_v20  ;;  %v6146_v28 = vmul.f32 %v12117_v34, %v10988_v40 }
 0x3e5   : > { %v6145_v46 = vmul.f32 %v12116_v7, %v5978_v37  ;;  %7254 = vst [vmem:[#allocation4 + $0x50] sm:$0xff] %v6655_v30 }
 0x3e7   : > { %v10991_v59 = vpop.f32.mrb[120].mxu0  ;;  %v11037_v35 = vpop.f32.mrb[12].mxu1  ;;  %11194 = vmatprep.mubr.msk.f32.mxu1 %vm653_vm0, %v6145_v46 }
 0x3e8   : > { %7257 = vst [vmem:[#allocation4 + $0x68] sm:$0xff] %v11037_v35  ;;  %v5988_v48 = vpop.f32.mrb[121].mxu0  ;;  %v6665_v19 = vpop.f32.mrb[13].mxu1  ;;  %11195 = vmatmul.mubr.msk.f32.gmra.mrb[118].mxu1 %vm653_vm0, %v6146_v28  ;;  %v6148_v9 = vmul.f32 %v12119_v41, %v10991_v59 }
 0x3e9   : > { %v6147_v0 = vmul.f32 %v12118_v42, %v5988_v48  ;;  %7256 = vst [vmem:[#allocation4 + $0x60] sm:$0xff] %v6665_v19 }
 0x3eb   : > { %v10994_v10 = vpop.f32.mrb[122].mxu0  ;;  %v11040_v51 = vpop.f32.mrb[14].mxu1  ;;  %11197 = vmatprep.mubr.msk.f32.mxu1 %vm653_vm0, %v6147_v0 }
 0x3ec   : > { %7259 = vst [vmem:[#allocation4 + $0x78] sm:$0xff] %v11040_v51  ;;  %v5998_v60 = vpop.f32.mrb[123].mxu0  ;;  %v6675_v4 = vpop.f32.mrb[15].mxu1  ;;  %11198 = vmatmul.mubr.msk.f32.gmra.mrb[120].mxu1 %vm653_vm0, %v6148_v9  ;;  %v6150_v55 = vmul.f32 %v12121_v5, %v10994_v10 }
 0x3ed   : > { %v6149_v25 = vmul.f32 %v12120_v57, %v5998_v60  ;;  %7258 = vst [vmem:[#allocation4 + $0x70] sm:$0xff] %v6675_v4 }
 0x3ef   : > { %v10997_v43 = vpop.f32.mrb[124].mxu0  ;;  %v11043_v14 = vpop.f32.mrb[16].mxu1  ;;  %11200 = vmatprep.mubr.msk.f32.mxu1 %vm653_vm0, %v6149_v25 }
 0x3f0   : > { %7261 = vst [vmem:[#allocation4 + $0x88] sm:$0xff] %v11043_v14  ;;  %v6008_v52 = vpop.f32.mrb[125].mxu0  ;;  %v6685_v8 = vpop.f32.mrb[17].mxu1  ;;  %11201 = vmatmul.mubr.msk.f32.gmra.mrb[122].mxu1 %vm653_vm0, %v6150_v55  ;;  %v6152_v39 = vmul.f32 %v12123_v63, %v10997_v43 }
 0x3f1   : > { %v6151_v38 = vmul.f32 %v12122_v62, %v6008_v52  ;;  %7260 = vst [vmem:[#allocation4 + $0x80] sm:$0xff] %v6685_v8 }
 0x3f3   : > { %v11000_v24 = vpop.f32.mrb[126].mxu0  ;;  %v11046_v32 = vpop.f32.mrb[18].mxu1  ;;  %11203 = vmatprep.mubr.msk.f32.mxu1 %vm653_vm0, %v6151_v38 }
 0x3f4   : > { %7263 = vst [vmem:[#allocation4 + $0x98] sm:$0xff] %v11046_v32  ;;  %v6018_v31 = vpop.f32.mrb[127].mxu0  ;;  %v6695_v53 = vpop.f32.mrb[19].mxu1  ;;  %11204 = vmatmul.mubr.msk.f32.gmra.mrb[124].mxu1 %vm653_vm0, %v6152_v39  ;;  %v6154_v23 = vmul.f32 %v12125_v6, %v11000_v24 }
 0x3f5   : > { %v6153_v21 = vmul.f32 %v12124_v58, %v6018_v31  ;;  %7262 = vst [vmem:[#allocation4 + $0x90] sm:$0xff] %v6695_v53 }
 0x3f7   : > { %v11049_v44 = vpop.f32.mrb[20].mxu1  ;;  %11206 = vmatprep.mubr.msk.f32.mxu1 %vm653_vm0, %v6153_v21 }
 0x3f8   : > { %7265 = vst [vmem:[#allocation4 + $0xa8] sm:$0xff] %v11049_v44  ;;  %v6705_v22 = vpop.f32.mrb[21].mxu1  ;;  %11207 = vmatmul.mubr.msk.f32.gmra.mrb[126].mxu1 %vm653_vm0, %v6154_v23 }
 0x3f9   : > { %7264 = vst [vmem:[#allocation4 + $0xa0] sm:$0xff] %v6705_v22 }
 0x3fb   : > { %v11052_v15 = vpop.f32.mrb[22].mxu1 }
 0x3fc   : > { %7267 = vst [vmem:[#allocation4 + $0xb8] sm:$0xff] %v11052_v15  ;;  %v6715_v18 = vpop.f32.mrb[23].mxu1 }
 0x3fd   : > { %7266 = vst [vmem:[#allocation4 + $0xb0] sm:$0xff] %v6715_v18 }
 0x3ff   : > { %v11055_v27 = vpop.f32.mrb[24].mxu1 }
 0x400   : > { %7269 = vst [vmem:[#allocation4 + $0xc8] sm:$0xff] %v11055_v27  ;;  %v6725_v12 = vpop.f32.mrb[25].mxu1 }
 0x401   : > { %7268 = vst [vmem:[#allocation4 + $0xc0] sm:$0xff] %v6725_v12 }
 0x403   : > { %v11058_v36 = vpop.f32.mrb[26].mxu1 }
 0x404   : > { %7271 = vst [vmem:[#allocation4 + $0xd8] sm:$0xff] %v11058_v36  ;;  %v6735_v13 = vpop.f32.mrb[27].mxu1 }
 0x405   : > { %7270 = vst [vmem:[#allocation4 + $0xd0] sm:$0xff] %v6735_v13 }
 0x407   : > { %v11061_v17 = vpop.f32.mrb[28].mxu1 }
 0x408   : > { %7273 = vst [vmem:[#allocation4 + $0xe8] sm:$0xff] %v11061_v17  ;;  %v6745_v45 = vpop.f32.mrb[29].mxu1 }
 0x409   : > { %7272 = vst [vmem:[#allocation4 + $0xe0] sm:$0xff] %v6745_v45 }
 0x40b   : > { %v11064_v26 = vpop.f32.mrb[30].mxu1 }
 0x40c   : > { %7275 = vst [vmem:[#allocation4 + $0xf8] sm:$0xff] %v11064_v26  ;;  %v6755_v29 = vpop.f32.mrb[31].mxu1 }
 0x40d   : > { %7274 = vst [vmem:[#allocation4 + $0xf0] sm:$0xff] %v6755_v29 }
 0x40f   : > { %v11067_v33 = vpop.f32.mrb[32].mxu1 }
 0x410   : > { %7277 = vst [vmem:[#allocation4 + $0x108] sm:$0xff] %v11067_v33  ;;  %v6765_v3 = vpop.f32.mrb[33].mxu1 }
 0x411   : > { %7276 = vst [vmem:[#allocation4 + $0x100] sm:$0xff] %v6765_v3 }
 0x413   : > { %v11070_v54 = vpop.f32.mrb[34].mxu1 }
 0x414   : > { %7279 = vst [vmem:[#allocation4 + $0x118] sm:$0xff] %v11070_v54  ;;  %v6775_v20 = vpop.f32.mrb[35].mxu1 }
 0x415   : > { %7278 = vst [vmem:[#allocation4 + $0x110] sm:$0xff] %v6775_v20 }
 0x417   : > { %v11073_v40 = vpop.f32.mrb[36].mxu1 }
 0x418   : > { %7281 = vst [vmem:[#allocation4 + $0x128] sm:$0xff] %v11073_v40  ;;  %v6785_v47 = vpop.f32.mrb[37].mxu1 }
 0x419   : > { %7280 = vst [vmem:[#allocation4 + $0x120] sm:$0xff] %v6785_v47 }
 0x41b   : > { %v11076_v37 = vpop.f32.mrb[38].mxu1 }
 0x41c   : > { %7283 = vst [vmem:[#allocation4 + $0x138] sm:$0xff] %v11076_v37  ;;  %v6795_v30 = vpop.f32.mrb[39].mxu1 }
 0x41d   : > { %7282 = vst [vmem:[#allocation4 + $0x130] sm:$0xff] %v6795_v30 }
 0x41f   : > { %v11079_v7 = vpop.f32.mrb[40].mxu1 }
 0x420   : > { %7285 = vst [vmem:[#allocation4 + $0x148] sm:$0xff] %v11079_v7  ;;  %v6805_v46 = vpop.f32.mrb[41].mxu1 }
 0x421   : > { %7284 = vst [vmem:[#allocation4 + $0x140] sm:$0xff] %v6805_v46 }
 0x423   : > { %v11082_v34 = vpop.f32.mrb[42].mxu1 }
 0x424   : > { %7287 = vst [vmem:[#allocation4 + $0x158] sm:$0xff] %v11082_v34  ;;  %v6815_v28 = vpop.f32.mrb[43].mxu1 }
 0x425   : > { %7286 = vst [vmem:[#allocation4 + $0x150] sm:$0xff] %v6815_v28 }
 0x427   : > { %v11085_v59 = vpop.f32.mrb[44].mxu1 }
 0x428   : > { %7289 = vst [vmem:[#allocation4 + $0x168] sm:$0xff] %v11085_v59  ;;  %v6825_v35 = vpop.f32.mrb[45].mxu1 }
 0x429   : > { %7288 = vst [vmem:[#allocation4 + $0x160] sm:$0xff] %v6825_v35 }
 0x42b   : > { %v11088_v48 = vpop.f32.mrb[46].mxu1 }
 0x42c   : > { %7291 = vst [vmem:[#allocation4 + $0x178] sm:$0xff] %v11088_v48  ;;  %v6835_v19 = vpop.f32.mrb[47].mxu1 }
 0x42d   : > { %7290 = vst [vmem:[#allocation4 + $0x170] sm:$0xff] %v6835_v19 }
 0x42f   : > { %v11091_v42 = vpop.f32.mrb[48].mxu1 }
 0x430   : > { %7293 = vst [vmem:[#allocation4 + $0x188] sm:$0xff] %v11091_v42  ;;  %v6845_v0 = vpop.f32.mrb[49].mxu1 }
 0x431   : > { %7292 = vst [vmem:[#allocation4 + $0x180] sm:$0xff] %v6845_v0 }
 0x433   : > { %v11094_v41 = vpop.f32.mrb[50].mxu1 }
 0x434   : > { %7295 = vst [vmem:[#allocation4 + $0x198] sm:$0xff] %v11094_v41  ;;  %v6855_v9 = vpop.f32.mrb[51].mxu1 }
 0x435   : > { %7294 = vst [vmem:[#allocation4 + $0x190] sm:$0xff] %v6855_v9 }
 0x437   : > { %v11097_v10 = vpop.f32.mrb[52].mxu1 }
 0x438   : > { %7297 = vst [vmem:[#allocation4 + $0x1a8] sm:$0xff] %v11097_v10  ;;  %v6865_v51 = vpop.f32.mrb[53].mxu1 }
 0x439   : > { %7296 = vst [vmem:[#allocation4 + $0x1a0] sm:$0xff] %v6865_v51 }
 0x43b   : > { %v11100_v60 = vpop.f32.mrb[54].mxu1 }
 0x43c   : > { %7299 = vst [vmem:[#allocation4 + $0x1b8] sm:$0xff] %v11100_v60  ;;  %v6875_v4 = vpop.f32.mrb[55].mxu1 }
 0x43d   : > { %7298 = vst [vmem:[#allocation4 + $0x1b0] sm:$0xff] %v6875_v4 }
 0x43f   : > { %v11103_v57 = vpop.f32.mrb[56].mxu1 }
 0x440   : > { %7301 = vst [vmem:[#allocation4 + $0x1c8] sm:$0xff] %v11103_v57  ;;  %v6885_v25 = vpop.f32.mrb[57].mxu1 }
 0x441   : > { %7300 = vst [vmem:[#allocation4 + $0x1c0] sm:$0xff] %v6885_v25 }
 0x443   : > { %v11106_v5 = vpop.f32.mrb[58].mxu1 }
 0x444   : > { %7303 = vst [vmem:[#allocation4 + $0x1d8] sm:$0xff] %v11106_v5  ;;  %v6895_v55 = vpop.f32.mrb[59].mxu1 }
 0x445   : > { %7302 = vst [vmem:[#allocation4 + $0x1d0] sm:$0xff] %v6895_v55 }
 0x447   : > { %v11109_v43 = vpop.f32.mrb[60].mxu1 }
 0x448   : > { %7305 = vst [vmem:[#allocation4 + $0x1e8] sm:$0xff] %v11109_v43  ;;  %v6905_v14 = vpop.f32.mrb[61].mxu1 }
 0x449   : > { %7304 = vst [vmem:[#allocation4 + $0x1e0] sm:$0xff] %v6905_v14 }
 0x44b   : > { %v11112_v52 = vpop.f32.mrb[62].mxu1 }
 0x44c   : > { %7307 = vst [vmem:[#allocation4 + $0x1f8] sm:$0xff] %v11112_v52  ;;  %v6915_v8 = vpop.f32.mrb[63].mxu1 }
 0x44d   : > { %7306 = vst [vmem:[#allocation4 + $0x1f0] sm:$0xff] %v6915_v8 }
 0x44f   : > { %v11115_v62 = vpop.f32.mrb[64].mxu1 }
 0x450   : > { %7309 = vst [vmem:[#allocation4 + $0x208] sm:$0xff] %v11115_v62  ;;  %v6925_v38 = vpop.f32.mrb[65].mxu1 }
 0x451   : > { %7308 = vst [vmem:[#allocation4 + $0x200] sm:$0xff] %v6925_v38 }
 0x453   : > { %v11118_v63 = vpop.f32.mrb[66].mxu1 }
 0x454   : > { %7311 = vst [vmem:[#allocation4 + $0x218] sm:$0xff] %v11118_v63  ;;  %v6935_v39 = vpop.f32.mrb[67].mxu1 }
 0x455   : > { %7310 = vst [vmem:[#allocation4 + $0x210] sm:$0xff] %v6935_v39 }
 0x457   : > { %v11121_v24 = vpop.f32.mrb[68].mxu1 }
 0x458   : > { %7313 = vst [vmem:[#allocation4 + $0x228] sm:$0xff] %v11121_v24  ;;  %v6945_v32 = vpop.f32.mrb[69].mxu1 }
 0x459   : > { %7312 = vst [vmem:[#allocation4 + $0x220] sm:$0xff] %v6945_v32 }
 0x45b   : > { %v11124_v31 = vpop.f32.mrb[70].mxu1 }
 0x45c   : > { %7315 = vst [vmem:[#allocation4 + $0x238] sm:$0xff] %v11124_v31  ;;  %v6955_v53 = vpop.f32.mrb[71].mxu1 }
 0x45d   : > { %7314 = vst [vmem:[#allocation4 + $0x230] sm:$0xff] %v6955_v53 }
 0x45f   : > { %v11127_v58 = vpop.f32.mrb[72].mxu1 }
 0x460   : > { %7317 = vst [vmem:[#allocation4 + $0x248] sm:$0xff] %v11127_v58  ;;  %v6965_v21 = vpop.f32.mrb[73].mxu1  ;;  %v12146_v58 = vmov 0.0  }
 0x461   : > { %7316 = vst [vmem:[#allocation4 + $0x240] sm:$0xff] %v6965_v21  ;;  %v12150_v21 = vmov 0.0  }
 0x463   : > { %v11130_v6 = vpop.f32.mrb[74].mxu1 }
 0x464   : > { %7319 = vst [vmem:[#allocation4 + $0x258] sm:$0xff] %v11130_v6  ;;  %v6975_v23 = vpop.f32.mrb[75].mxu1 }
 0x465   : > { %7318 = vst [vmem:[#allocation4 + $0x250] sm:$0xff] %v6975_v23 }
 0x467   : > { %v11133_v44 = vpop.f32.mrb[76].mxu1 }
 0x468   : > { %7321 = vst [vmem:[#allocation4 + $0x268] sm:$0xff] %v11133_v44  ;;  %v6985_v22 = vpop.f32.mrb[77].mxu1 }
 0x469   : > { %7320 = vst [vmem:[#allocation4 + $0x260] sm:$0xff] %v6985_v22 }
 0x46b   : > { %v11136_v15 = vpop.f32.mrb[78].mxu1 }
 0x46c   : > { %7323 = vst [vmem:[#allocation4 + $0x278] sm:$0xff] %v11136_v15  ;;  %v6995_v18 = vpop.f32.mrb[79].mxu1 }
 0x46d   : > { %7322 = vst [vmem:[#allocation4 + $0x270] sm:$0xff] %v6995_v18 }
 0x46f   : > { %v11139_v27 = vpop.f32.mrb[80].mxu1 }
 0x470   : > { %7325 = vst [vmem:[#allocation4 + $0x288] sm:$0xff] %v11139_v27  ;;  %v7005_v12 = vpop.f32.mrb[81].mxu1 }
 0x471   : > { %7324 = vst [vmem:[#allocation4 + $0x280] sm:$0xff] %v7005_v12 }
 0x473   : > { %v11142_v36 = vpop.f32.mrb[82].mxu1 }
 0x474   : > { %7327 = vst [vmem:[#allocation4 + $0x298] sm:$0xff] %v11142_v36  ;;  %v7015_v13 = vpop.f32.mrb[83].mxu1 }
 0x475   : > { %7326 = vst [vmem:[#allocation4 + $0x290] sm:$0xff] %v7015_v13 }
 0x477   : > { %v11145_v17 = vpop.f32.mrb[84].mxu1 }
 0x478   : > { %7329 = vst [vmem:[#allocation4 + $0x2a8] sm:$0xff] %v11145_v17  ;;  %v7025_v45 = vpop.f32.mrb[85].mxu1 }
 0x479   : > { %7328 = vst [vmem:[#allocation4 + $0x2a0] sm:$0xff] %v7025_v45 }
 0x47b   : > { %v11148_v26 = vpop.f32.mrb[86].mxu1 }
 0x47c   : > { %7331 = vst [vmem:[#allocation4 + $0x2b8] sm:$0xff] %v11148_v26  ;;  %v7035_v29 = vpop.f32.mrb[87].mxu1 }
 0x47d   : > { %7330 = vst [vmem:[#allocation4 + $0x2b0] sm:$0xff] %v7035_v29 }
 0x47f   : > { %v11151_v33 = vpop.f32.mrb[88].mxu1 }
 0x480   : > { %7333 = vst [vmem:[#allocation4 + $0x2c8] sm:$0xff] %v11151_v33  ;;  %v7045_v3 = vpop.f32.mrb[89].mxu1 }
 0x481   : > { %7332 = vst [vmem:[#allocation4 + $0x2c0] sm:$0xff] %v7045_v3 }
 0x483   : > { %v11154_v54 = vpop.f32.mrb[90].mxu1 }
 0x484   : > { %7335 = vst [vmem:[#allocation4 + $0x2d8] sm:$0xff] %v11154_v54  ;;  %v7055_v20 = vpop.f32.mrb[91].mxu1 }
 0x485   : > { %7334 = vst [vmem:[#allocation4 + $0x2d0] sm:$0xff] %v7055_v20 }
 0x487   : > { %v11157_v40 = vpop.f32.mrb[92].mxu1 }
 0x488   : > { %7337 = vst [vmem:[#allocation4 + $0x2e8] sm:$0xff] %v11157_v40  ;;  %v7065_v47 = vpop.f32.mrb[93].mxu1 }
 0x489   : > { %7336 = vst [vmem:[#allocation4 + $0x2e0] sm:$0xff] %v7065_v47 }
 0x48b   : > { %v11160_v37 = vpop.f32.mrb[94].mxu1 }
 0x48c   : > { %7339 = vst [vmem:[#allocation4 + $0x2f8] sm:$0xff] %v11160_v37  ;;  %v7075_v30 = vpop.f32.mrb[95].mxu1 }
 0x48d   : > { %7338 = vst [vmem:[#allocation4 + $0x2f0] sm:$0xff] %v7075_v30 }
 0x48f   : > { %v11163_v7 = vpop.f32.mrb[96].mxu1 }
 0x490   : > { %7341 = vst [vmem:[#allocation4 + $0x308] sm:$0xff] %v11163_v7  ;;  %v7085_v46 = vpop.f32.mrb[97].mxu1 }
 0x491   : > { %7340 = vst [vmem:[#allocation4 + $0x300] sm:$0xff] %v7085_v46 }
 0x493   : > { %v11166_v34 = vpop.f32.mrb[98].mxu1 }
 0x494   : > { %7343 = vst [vmem:[#allocation4 + $0x318] sm:$0xff] %v11166_v34  ;;  %v7095_v28 = vpop.f32.mrb[99].mxu1 }
 0x495   : > { %7342 = vst [vmem:[#allocation4 + $0x310] sm:$0xff] %v7095_v28 }
 0x497   : > { %v11169_v59 = vpop.f32.mrb[100].mxu1 }
 0x498   : > { %7345 = vst [vmem:[#allocation4 + $0x328] sm:$0xff] %v11169_v59  ;;  %v7105_v35 = vpop.f32.mrb[101].mxu1 }
 0x499   : > { %7344 = vst [vmem:[#allocation4 + $0x320] sm:$0xff] %v7105_v35 }
 0x49b   : > { %v11172_v48 = vpop.f32.mrb[102].mxu1 }
 0x49c   : > { %7347 = vst [vmem:[#allocation4 + $0x338] sm:$0xff] %v11172_v48  ;;  %v7115_v19 = vpop.f32.mrb[103].mxu1 }
 0x49d   : > { %7346 = vst [vmem:[#allocation4 + $0x330] sm:$0xff] %v7115_v19 }
 0x49f   : > { %v11175_v42 = vpop.f32.mrb[104].mxu1 }
 0x4a0   : > { %7349 = vst [vmem:[#allocation4 + $0x348] sm:$0xff] %v11175_v42  ;;  %v7125_v0 = vpop.f32.mrb[105].mxu1 }
 0x4a1   : > { %7348 = vst [vmem:[#allocation4 + $0x340] sm:$0xff] %v7125_v0 }
 0x4a3   : > { %v11178_v41 = vpop.f32.mrb[106].mxu1 }
 0x4a4   : > { %7351 = vst [vmem:[#allocation4 + $0x358] sm:$0xff] %v11178_v41  ;;  %v7135_v9 = vpop.f32.mrb[107].mxu1 }
 0x4a5   : > { %7350 = vst [vmem:[#allocation4 + $0x350] sm:$0xff] %v7135_v9 }
 0x4a7   : > { %v11181_v10 = vpop.f32.mrb[108].mxu1 }
 0x4a8   : > { %7353 = vst [vmem:[#allocation4 + $0x368] sm:$0xff] %v11181_v10  ;;  %v7145_v51 = vpop.f32.mrb[109].mxu1 }
 0x4a9   : > { %7352 = vst [vmem:[#allocation4 + $0x360] sm:$0xff] %v7145_v51 }
 0x4ab   : > { %v11184_v60 = vpop.f32.mrb[110].mxu1 }
 0x4ac   : > { %7355 = vst [vmem:[#allocation4 + $0x378] sm:$0xff] %v11184_v60  ;;  %v7155_v4 = vpop.f32.mrb[111].mxu1 }
 0x4ad   : > { %7354 = vst [vmem:[#allocation4 + $0x370] sm:$0xff] %v7155_v4 }
 0x4af   : > { %v11187_v57 = vpop.f32.mrb[112].mxu1 }
 0x4b0   : > { %7357 = vst [vmem:[#allocation4 + $0x388] sm:$0xff] %v11187_v57  ;;  %v7165_v25 = vpop.f32.mrb[113].mxu1 }
 0x4b1   : > { %7356 = vst [vmem:[#allocation4 + $0x380] sm:$0xff] %v7165_v25 }
 0x4b3   : > { %v11190_v5 = vpop.f32.mrb[114].mxu1 }
 0x4b4   : > { %7359 = vst [vmem:[#allocation4 + $0x398] sm:$0xff] %v11190_v5  ;;  %v7175_v55 = vpop.f32.mrb[115].mxu1 }
 0x4b5   : > { %7358 = vst [vmem:[#allocation4 + $0x390] sm:$0xff] %v7175_v55 }
 0x4b7   : > { %v11193_v43 = vpop.f32.mrb[116].mxu1 }
 0x4b8   : > { %7361 = vst [vmem:[#allocation4 + $0x3a8] sm:$0xff] %v11193_v43  ;;  %v7185_v14 = vpop.f32.mrb[117].mxu1 }
 0x4b9   : > { %7360 = vst [vmem:[#allocation4 + $0x3a0] sm:$0xff] %v7185_v14 }
 0x4bb   : > { %v11196_v52 = vpop.f32.mrb[118].mxu1 }
 0x4bc   : > { %7363 = vst [vmem:[#allocation4 + $0x3b8] sm:$0xff] %v11196_v52  ;;  %v7195_v8 = vpop.f32.mrb[119].mxu1 }
 0x4bd   : > { %7362 = vst [vmem:[#allocation4 + $0x3b0] sm:$0xff] %v7195_v8 }
 0x4bf   : > { %v11199_v62 = vpop.f32.mrb[120].mxu1 }
 0x4c0   : > { %7365 = vst [vmem:[#allocation4 + $0x3c8] sm:$0xff] %v11199_v62  ;;  %v7205_v38 = vpop.f32.mrb[121].mxu1 }
 0x4c1   : > { %7364 = vst [vmem:[#allocation4 + $0x3c0] sm:$0xff] %v7205_v38 }
 0x4c3   : > { %v11202_v63 = vpop.f32.mrb[122].mxu1 }
 0x4c4   : > { %7367 = vst [vmem:[#allocation4 + $0x3d8] sm:$0xff] %v11202_v63  ;;  %v7215_v39 = vpop.f32.mrb[123].mxu1 }
 0x4c5   : > { %7366 = vst [vmem:[#allocation4 + $0x3d0] sm:$0xff] %v7215_v39 }
 0x4c7   : > { %v11205_v24 = vpop.f32.mrb[124].mxu1 }
 0x4c8   : > { %7369 = vst [vmem:[#allocation4 + $0x3e8] sm:$0xff] %v11205_v24  ;;  %v7225_v32 = vpop.f32.mrb[125].mxu1 }
 0x4c9   : > { %7368 = vst [vmem:[#allocation4 + $0x3e0] sm:$0xff] %v7225_v32 }
 0x4cb   : > { %v11208_v31 = vpop.f32.mrb[126].mxu1 }
 0x4cc   : > { %7371 = vst [vmem:[#allocation4 + $0x3f8] sm:$0xff] %v11208_v31  ;;  %v7235_v53 = vpop.f32.mrb[127].mxu1 }
 0x4cd   : > { %7370 = vst [vmem:[#allocation4 + $0x3f0] sm:$0xff] %v7235_v53 }
 0x4ce LB: >> { %s8913_s17 = sshll.u32 %s12156_s15, 4  ;;  %s7377_s15 = sadd.s32 1, %s12156_s15   ;;  %s12156_s15 = sphi %s15847_s15, %s7377_s15   ;;  %v12152_v21 = vphi %v12150_v21, %v7389_v21   ;;  %v12148_v58 = vphi %v12146_v58, %v7390_v58  }
 0x4cf   : >> { %s7381_s18 = scalar_lea.vmem [#allocation2], %s8913_s17  ;;  %s7386_s19 = scalar_lea.vmem [#allocation3], %s8913_s17 }
 0x4d0   : >> { %v7382_v6 = vld [vmem:[%s7381_s18] sm:$0xff]  ;;  %v7383_v44 = vld [vmem:[%s7381_s18 + $0x8] sm:$0xff]  ;;  %s7391_s20 = scalar_lea.vmem [#allocation4], %s8913_s17  ;;  %s7396_s21 = scalar_lea.vmem [#allocation5], %s8913_s17 }
 0x4d1   : >> { %v7387_v23 = vld [vmem:[%s7386_s19] sm:$0xff]  ;;  %v7384_v22 = vmul.f32 %v12152_v21, %v7382_v6  ;;  %v7385_v15 = vmul.f32 %v12148_v58, %v7383_v44  ;;  %v7388_v18 = vld [vmem:[%s7386_s19 + $0x8] sm:$0xff]  ;;  %p7374_p4 = scmp.ge.s32.totalorder %s7377_s15, 64  }
 0x4d3   : >> { %v7389_v21 = vadd.f32 %v7387_v23, %v7384_v22   ;;  %v7390_v58 = vadd.f32 %v7388_v18, %v7385_v15   ;;  %7376 = sbr.rel (!%p7374_p4) target bundleno = 1230 (0x4ce), region = 103 }
 0x4d4   : >> { %v7392_v27 = vld [vmem:[%s7391_s20] sm:$0xff]  ;;  %v7393_v12 = vld [vmem:[%s7391_s20 + $0x8] sm:$0xff] }
 0x4d5   : >> { %v7394_v36 = vmul.f32 %v7392_v27, %v7389_v21  ;;  %v7395_v13 = vmul.f32 %v7393_v12, %v7390_v58 }
 0x4d7   : >> { %7397 = vst [vmem:[%s7396_s21] sm:$0xff] %v7394_v36  ;;  %7398 = vst [vmem:[%s7396_s21 + $0x8] sm:$0xff] %v7395_v13 }
 0x4de   : > { %v7479_v17 = vld [vmem:[#allocation5 + $0x80] sm:$0xff]  ;;  %v7480_v45 = vld [vmem:[#allocation5 + $0x88] sm:$0xff]  ;;  %v7481_v30 = vld [vmem:[#allocation5 + $0x90] sm:$0xff] }
 0x4df   : > { %v7463_v26 = vld [vmem:[#allocation5] sm:$0xff]  ;;  %v11305_v29 = vpack.c.bf16 %v7480_v45, %v7479_v17  ;;  %v7464_v33 = vld [vmem:[#allocation5 + $0x8] sm:$0xff]  ;;  %v7482_v46 = vld [vmem:[#allocation5 + $0x98] sm:$0xff] }
 0x4e0   : > { %v7511_v3 = vld [vmem:[#allocation5 + $0x180] sm:$0xff]  ;;  %v7512_v54 = vld [vmem:[#allocation5 + $0x188] sm:$0xff]  ;;  %v11307_v20 = vpack.c.bf16 %v7464_v33, %v7463_v26  ;;  %v7465_v34 = vld [vmem:[#allocation5 + $0x10] sm:$0xff]  ;;  %v11309_v59 = vpack.c.bf16 %v7482_v46, %v7481_v30 }
 0x4e1   : > { %v11337_v40 = vpack.c.bf16 %v7512_v54, %v7511_v3  ;;  %v7495_v47 = vld [vmem:[#allocation5 + $0x100] sm:$0xff]  ;;  %v7496_v37 = vld [vmem:[#allocation5 + $0x108] sm:$0xff]  ;;  %11306 = vmatprep.subr.bf16.mxu0 %v11305_v29  ;;  %v7466_v28 = vld [vmem:[#allocation5 + $0x18] sm:$0xff] }
 0x4e2   : > { %v11339_v7 = vpack.c.bf16 %v7496_v37, %v7495_v47  ;;  %11308 = vmatpush3.bf16.msra.mxu0 %v11307_v20  ;;  %v11311_v35 = vpack.c.bf16 %v7466_v28, %v7465_v34  ;;  %v7513_v48 = vld [vmem:[#allocation5 + $0x190] sm:$0xff]  ;;  %v7514_v19 = vld [vmem:[#allocation5 + $0x198] sm:$0xff]  ;;  %v7483_v9 = vld [vmem:[#allocation5 + $0xa0] sm:$0xff] }
 0x4e3   : > { %11338 = vmatprep.subr.bf16.mxu1 %v11337_v40  ;;  %v7497_v42 = vld [vmem:[#allocation5 + $0x110] sm:$0xff]  ;;  %v11341_v0 = vpack.c.bf16 %v7514_v19, %v7513_v48  ;;  %v7498_v41 = vld [vmem:[#allocation5 + $0x118] sm:$0xff]  ;;  %v7484_v10 = vld [vmem:[#allocation5 + $0xa8] sm:$0xff]  ;;  %11310 = vmatprep.subr.bf16.mxu0 %v11309_v59 }
 0x4e4   : > { %11340 = vmatpush3.bf16.msra.mxu1 %v11339_v7  ;;  %v11343_v51 = vpack.c.bf16 %v7498_v41, %v7497_v42  ;;  %v11313_v60 = vpack.c.bf16 %v7484_v10, %v7483_v9  ;;  %v7467_v4 = vld [vmem:[#allocation5 + $0x20] sm:$0xff]  ;;  %v7468_v57 = vld [vmem:[#allocation5 + $0x28] sm:$0xff]  ;;  %v7485_v8 = vld [vmem:[#allocation5 + $0xb0] sm:$0xff] }
 0x4e5   : > { %v7515_v25 = vld [vmem:[#allocation5 + $0x1a0] sm:$0xff]  ;;  %11342 = vmatprep.subr.bf16.mxu1 %v11341_v0  ;;  %v7516_v5 = vld [vmem:[#allocation5 + $0x1a8] sm:$0xff]  ;;  %v11315_v14 = vpack.c.bf16 %v7468_v57, %v7467_v4  ;;  %v7486_v62 = vld [vmem:[#allocation5 + $0xb8] sm:$0xff] }
 0x4e6   : > { %v7499_v55 = vld [vmem:[#allocation5 + $0x120] sm:$0xff]  ;;  %v7500_v43 = vld [vmem:[#allocation5 + $0x128] sm:$0xff]  ;;  %11312 = vmatpush3.bf16.msra.mxu0 %v11311_v35  ;;  %v11345_v52 = vpack.c.bf16 %v7516_v5, %v7515_v25  ;;  %v7469_v38 = vld [vmem:[#allocation5 + $0x30] sm:$0xff]  ;;  %v11317_v39 = vpack.c.bf16 %v7486_v62, %v7485_v8 }
 0x4e7   : > { %11314 = vmatprep.subr.bf16.mxu0 %v11313_v60  ;;  %v11347_v63 = vpack.c.bf16 %v7500_v43, %v7499_v55  ;;  %v7470_v24 = vld [vmem:[#allocation5 + $0x38] sm:$0xff]  ;;  %v7517_v32 = vld [vmem:[#allocation5 + $0x1b0] sm:$0xff]  ;;  %v7487_v6 = vld [vmem:[#allocation5 + $0xc0] sm:$0xff] }
 0x4e8   : > { %11344 = vmatpush3.bf16.msra.mxu1 %v11343_v51  ;;  %v7518_v31 = vld [vmem:[#allocation5 + $0x1b8] sm:$0xff]  ;;  %v7501_v58 = vld [vmem:[#allocation5 + $0x130] sm:$0xff]  ;;  %v7488_v23 = vld [vmem:[#allocation5 + $0xc8] sm:$0xff]  ;;  %v11319_v44 = vpack.c.bf16 %v7470_v24, %v7469_v38 }
 0x4e9   : > { %11346 = vmatprep.subr.bf16.mxu1 %v11345_v52  ;;  %v11349_v53 = vpack.c.bf16 %v7518_v31, %v7517_v32  ;;  %v7502_v21 = vld [vmem:[#allocation5 + $0x138] sm:$0xff]  ;;  %v7519_v22 = vld [vmem:[#allocation5 + $0x1c0] sm:$0xff]  ;;  %v7520_v15 = vld [vmem:[#allocation5 + $0x1c8] sm:$0xff]  ;;  %v11321_v27 = vpack.c.bf16 %v7488_v23, %v7487_v6 }
 0x4ea   : > { %11316 = vmatpush3.bf16.msra.mxu0 %v11315_v14  ;;  %v11351_v18 = vpack.c.bf16 %v7502_v21, %v7501_v58  ;;  %v7471_v12 = vld [vmem:[#allocation5 + $0x40] sm:$0xff]  ;;  %v7472_v36 = vld [vmem:[#allocation5 + $0x48] sm:$0xff]  ;;  %v11353_v17 = vpack.c.bf16 %v7520_v15, %v7519_v22  ;;  %v7489_v26 = vld [vmem:[#allocation5 + $0xd0] sm:$0xff] }
 0x4eb   : > { %11318 = vmatprep.subr.bf16.mxu0 %v11317_v39  ;;  %v7503_v13 = vld [vmem:[#allocation5 + $0x140] sm:$0xff]  ;;  %v7504_v45 = vld [vmem:[#allocation5 + $0x148] sm:$0xff]  ;;  %v7490_v29 = vld [vmem:[#allocation5 + $0xd8] sm:$0xff]  ;;  %v11323_v54 = vpack.c.bf16 %v7472_v36, %v7471_v12 }
 0x4ec   : > { %11348 = vmatpush3.bf16.msra.mxu1 %v11347_v63  ;;  %v7521_v33 = vld [vmem:[#allocation5 + $0x1d0] sm:$0xff]  ;;  %v7522_v3 = vld [vmem:[#allocation5 + $0x1d8] sm:$0xff]  ;;  %v11355_v20 = vpack.c.bf16 %v7504_v45, %v7503_v13  ;;  %v11325_v40 = vpack.c.bf16 %v7490_v29, %v7489_v26  ;;  %v7491_v34 = vld [vmem:[#allocation5 + $0xe0] sm:$0xff] }
 0x4ed   : > { %11350 = vmatprep.subr.bf16.mxu1 %v11349_v53  ;;  %v7473_v47 = vld [vmem:[#allocation5 + $0x50] sm:$0xff]  ;;  %v7474_v37 = vld [vmem:[#allocation5 + $0x58] sm:$0xff]  ;;  %v11357_v7 = vpack.c.bf16 %v7522_v3, %v7521_v33  ;;  %v7492_v28 = vld [vmem:[#allocation5 + $0xe8] sm:$0xff] }
 0x4ee   : > { %11320 = vmatpush3.bf16.msra.mxu0 %v11319_v44  ;;  %v7505_v30 = vld [vmem:[#allocation5 + $0x150] sm:$0xff]  ;;  %v7506_v46 = vld [vmem:[#allocation5 + $0x158] sm:$0xff]  ;;  %v7523_v59 = vld [vmem:[#allocation5 + $0x1e0] sm:$0xff]  ;;  %v11327_v48 = vpack.c.bf16 %v7474_v37, %v7473_v47  ;;  %v11329_v41 = vpack.c.bf16 %v7492_v28, %v7491_v34 }
 0x4ef   : > { %11322 = vmatprep.subr.bf16.mxu0 %v11321_v27  ;;  %v7524_v35 = vld [vmem:[#allocation5 + $0x1e8] sm:$0xff]  ;;  %v7475_v19 = vld [vmem:[#allocation5 + $0x60] sm:$0xff]  ;;  %v11359_v0 = vpack.c.bf16 %v7506_v46, %v7505_v30  ;;  %v7493_v4 = vld [vmem:[#allocation5 + $0xf0] sm:$0xff] }
 0x4f0   : > { %11352 = vmatpush3.bf16.msra.mxu1 %v11351_v18  ;;  %v7400_v42 = vld [vmem:[%s16105_s5 + $0x8] sm:$0xff]  ;;  %v7507_v10 = vld [vmem:[#allocation5 + $0x160] sm:$0xff]  ;;  %v11361_v60 = vpack.c.bf16 %v7524_v35, %v7523_v59  ;;  %v7494_v57 = vld [vmem:[#allocation5 + $0xf8] sm:$0xff] }
 0x4f1   : > { %11354 = vmatprep.subr.bf16.mxu1 %v11353_v17  ;;  %v7476_v9 = vld [vmem:[#allocation5 + $0x68] sm:$0xff]  ;;  %7670 = vmatprep.mubr.f32.mxu0 %v7400_v42  ;;  %v7402_v25 = vld [vmem:[%s16105_s5 + $0x18] sm:$0xff]  ;;  %v7525_v5 = vld [vmem:[#allocation5 + $0x1f0] sm:$0xff]  ;;  %v11333_v52 = vpack.c.bf16 %v7494_v57, %v7493_v4 }
 0x4f2   : > { %11324 = vmatpush3.bf16.msra.mxu0 %v11323_v54  ;;  %v7508_v51 = vld [vmem:[#allocation5 + $0x168] sm:$0xff]  ;;  %v7526_v55 = vld [vmem:[#allocation5 + $0x1f8] sm:$0xff]  ;;  %7775 = vmatprep.mubr.f32.mxu1 %v7402_v25  ;;  %v11331_v43 = vpack.c.bf16 %v7476_v9, %v7475_v19  ;;  %v7477_v8 = vld [vmem:[#allocation5 + $0x70] sm:$0xff] }
 0x4f3   : > { %11326 = vmatprep.subr.bf16.mxu0 %v11325_v40  ;;  %v11363_v14 = vpack.c.bf16 %v7508_v51, %v7507_v10  ;;  %v7478_v62 = vld [vmem:[#allocation5 + $0x78] sm:$0xff]  ;;  %v7509_v38 = vld [vmem:[#allocation5 + $0x170] sm:$0xff]  ;;  %v11365_v63 = vpack.c.bf16 %v7526_v55, %v7525_v5  ;;  %v7543_v24 = vld [vmem:[#allocation5 + $0x280] sm:$0xff] }
 0x4f4   : > { %11356 = vmatpush3.bf16.msra.mxu1 %v11355_v20  ;;  %v7510_v39 = vld [vmem:[#allocation5 + $0x178] sm:$0xff]  ;;  %v7544_v32 = vld [vmem:[#allocation5 + $0x288] sm:$0xff]  ;;  %v7575_v31 = vld [vmem:[#allocation5 + $0x380] sm:$0xff]  ;;  %v11335_v58 = vpack.c.bf16 %v7478_v62, %v7477_v8 }
 0x4f5   : > { %11358 = vmatprep.subr.bf16.mxu1 %v11357_v7  ;;  %v7576_v53 = vld [vmem:[#allocation5 + $0x388] sm:$0xff]  ;;  %v11367_v21 = vpack.c.bf16 %v7510_v39, %v7509_v38  ;;  %v11369_v6 = vpack.c.bf16 %v7544_v32, %v7543_v24  ;;  %v7527_v23 = vld [vmem:[#allocation5 + $0x200] sm:$0xff]  ;;  %v7545_v27 = vld [vmem:[#allocation5 + $0x290] sm:$0xff] }
 0x4f6   : > { %11328 = vmatpush3.bf16.msra.mxu0 %v11327_v48  ;;  %v7528_v44 = vld [vmem:[#allocation5 + $0x208] sm:$0xff]  ;;  %v11401_v22 = vpack.c.bf16 %v7576_v53, %v7575_v31  ;;  %v7559_v15 = vld [vmem:[#allocation5 + $0x300] sm:$0xff]  ;;  %v7546_v12 = vld [vmem:[#allocation5 + $0x298] sm:$0xff] }
 0x4f7   : > { %11330 = vmatprep.subr.bf16.mxu0 %v11329_v41  ;;  %v7560_v18 = vld [vmem:[#allocation5 + $0x308] sm:$0xff]  ;;  %v7399_v36 = vld [vmem:[%s16105_s5] sm:$0xff]  ;;  %v11371_v13 = vpack.c.bf16 %v7528_v44, %v7527_v23  ;;  %v7577_v17 = vld [vmem:[#allocation5 + $0x390] sm:$0xff]  ;;  %v11373_v20 = vpack.c.bf16 %v7546_v12, %v7545_v27 }
 0x4f8   : > { %11360 = vmatpush3.bf16.msra.mxu1 %v11359_v0  ;;  %v7578_v45 = vld [vmem:[#allocation5 + $0x398] sm:$0xff]  ;;  %v7401_v26 = vld [vmem:[%s16105_s5 + $0x10] sm:$0xff]  ;;  %v11403_v29 = vpack.c.bf16 %v7560_v18, %v7559_v15  ;;  %v7408_v54 = vld [vmem:[%s16105_s5 + $0x48] sm:$0xff] }
 0x4f9   : > { %11362 = vmatprep.subr.bf16.mxu1 %v11361_v60  ;;  %v7529_v33 = vld [vmem:[#allocation5 + $0x210] sm:$0xff]  ;;  %v7530_v3 = vld [vmem:[#allocation5 + $0x218] sm:$0xff]  ;;  %v11405_v30 = vpack.c.bf16 %v7578_v45, %v7577_v17  ;;  %v7547_v7 = vld [vmem:[#allocation5 + $0x2a0] sm:$0xff] }
 0x4fa   : > { %11332 = vmatpush3.bf16.msra.mxu0 %v11331_v43  ;;  %v7561_v40 = vld [vmem:[#allocation5 + $0x310] sm:$0xff]  ;;  %v7562_v47 = vld [vmem:[#allocation5 + $0x318] sm:$0xff]  ;;  %v7548_v46 = vld [vmem:[#allocation5 + $0x2a8] sm:$0xff]  ;;  %v11375_v28 = vpack.c.bf16 %v7530_v3, %v7529_v33 }
 0x4fb   : > { %11334 = vmatprep.subr.bf16.mxu0 %v11333_v52  ;;  %v7410_v37 = vld [vmem:[%s16105_s5 + $0x58] sm:$0xff]  ;;  %v7407_v34 = vld [vmem:[%s16105_s5 + $0x40] sm:$0xff]  ;;  %v7580_v35 = vld [vmem:[#allocation5 + $0x3a8] sm:$0xff]  ;;  %v11407_v19 = vpack.c.bf16 %v7562_v47, %v7561_v40  ;;  %v11377_v9 = vpack.c.bf16 %v7548_v46, %v7547_v7 }
 0x4fc   : > { %11364 = vmatpush3.bf16.msra.mxu1 %v11363_v14  ;;  %v7579_v59 = vld [vmem:[#allocation5 + $0x3a0] sm:$0xff]  ;;  %v7409_v48 = vld [vmem:[%s16105_s5 + $0x50] sm:$0xff]  ;;  %v7532_v0 = vld [vmem:[#allocation5 + $0x228] sm:$0xff] }
 0x4fd   : > { %11366 = vmatprep.subr.bf16.mxu1 %v11365_v63  ;;  %v7531_v42 = vld [vmem:[#allocation5 + $0x220] sm:$0xff]  ;;  %v7416_v41 = vld [vmem:[%s16105_s5 + $0x88] sm:$0xff]  ;;  %v7418_v60 = vld [vmem:[%s16105_s5 + $0x98] sm:$0xff]  ;;  %v11409_v4 = vpack.c.bf16 %v7580_v35, %v7579_v59 }
 0x4fe   : > { %11336 = vmatpush3.bf16.msra.mxu0 %v11335_v58  ;;  %v7563_v10 = vld [vmem:[#allocation5 + $0x320] sm:$0xff]  ;;  %v7564_v51 = vld [vmem:[#allocation5 + $0x328] sm:$0xff]  ;;  %v7549_v57 = vld [vmem:[#allocation5 + $0x2b0] sm:$0xff]  ;;  %v11379_v55 = vpack.c.bf16 %v7532_v0, %v7531_v42 }
 0x4ff   : > { %11370 = vmatprep.subr.bf16.mxu0 %v11369_v6  ;;  %v7550_v25 = vld [vmem:[#allocation5 + $0x2b8] sm:$0xff]  ;;  %v7415_v5 = vld [vmem:[%s16105_s5 + $0x80] sm:$0xff]  ;;  %v7581_v43 = vld [vmem:[#allocation5 + $0x3b0] sm:$0xff]  ;;  %v11411_v8 = vpack.c.bf16 %v7564_v51, %v7563_v10 }
 0x500   : > { %11368 = vmatpush3.bf16.msra.mxu1 %v11367_v21  ;;  %v7582_v14 = vld [vmem:[#allocation5 + $0x3b8] sm:$0xff]  ;;  %v7417_v52 = vld [vmem:[%s16105_s5 + $0x90] sm:$0xff]  ;;  %v7424_v63 = vld [vmem:[%s16105_s5 + $0xc8] sm:$0xff]  ;;  %v11381_v39 = vpack.c.bf16 %v7550_v25, %v7549_v57 }
 0x501   : > { %11402 = vmatprep.subr.bf16.mxu1 %v11401_v22  ;;  %7671 = vmatmul.mubr.f32.vlgmr.msra.gmra.mrb[128].mxu0 %v7399_v36  ;;  %v7533_v62 = vld [vmem:[#allocation5 + $0x230] sm:$0xff]  ;;  %v7534_v38 = vld [vmem:[#allocation5 + $0x238] sm:$0xff]  ;;  %v11413_v53 = vpack.c.bf16 %v7582_v14, %v7581_v43  ;;  %v7551_v58 = vld [vmem:[#allocation5 + $0x2c0] sm:$0xff] }
 0x502   : > { %11372 = vmatpush3.bf16.msra.mxu0 %v11371_v13  ;;  %7675 = vmatprep.mubr.f32.mxu0 %v7408_v54  ;;  %v7565_v24 = vld [vmem:[#allocation5 + $0x330] sm:$0xff]  ;;  %v7566_v32 = vld [vmem:[#allocation5 + $0x338] sm:$0xff]  ;;  %v7552_v21 = vld [vmem:[#allocation5 + $0x2c8] sm:$0xff]  ;;  %v11383_v23 = vpack.c.bf16 %v7534_v38, %v7533_v62 }
 0x503   : > { %7776 = vmatmul.mubr.f32.vlgmr.msra.gmra.mrb[128].mxu1 %v7401_v26  ;;  %11374 = vmatprep.subr.bf16.mxu0 %v11373_v20  ;;  %v7426_v31 = vld [vmem:[%s16105_s5 + $0xd8] sm:$0xff]  ;;  %v7423_v6 = vld [vmem:[%s16105_s5 + $0xc0] sm:$0xff]  ;;  %v7584_v22 = vld [vmem:[#allocation5 + $0x3c8] sm:$0xff]  ;;  %v11415_v18 = vpack.c.bf16 %v7566_v32, %v7565_v24  ;;  %v11385_v13 = vpack.c.bf16 %v7552_v21, %v7551_v58 }
 0x504   : > { %11404 = vmatpush3.bf16.msra.mxu1 %v11403_v29  ;;  %7780 = vmatprep.mubr.f32.mxu1 %v7410_v37  ;;  %v7583_v44 = vld [vmem:[#allocation5 + $0x3c0] sm:$0xff]  ;;  %v7425_v15 = vld [vmem:[%s16105_s5 + $0xd0] sm:$0xff]  ;;  %v7536_v12 = vld [vmem:[#allocation5 + $0x248] sm:$0xff] }
 0x505   : > { %7676 = vmatmul.mubr.f32.gmra.mrb[130].mxu0 %v7407_v34  ;;  %11406 = vmatprep.subr.bf16.mxu1 %v11405_v30  ;;  %v7535_v27 = vld [vmem:[#allocation5 + $0x240] sm:$0xff]  ;;  %v7432_v36 = vld [vmem:[%s16105_s5 + $0x108] sm:$0xff]  ;;  %v7434_v26 = vld [vmem:[%s16105_s5 + $0x118] sm:$0xff]  ;;  %v11417_v29 = vpack.c.bf16 %v7584_v22, %v7583_v44 }
 0x506   : > { %11376 = vmatpush3.bf16.msra.mxu0 %v11375_v28  ;;  %7680 = vmatprep.mubr.f32.mxu0 %v7416_v41  ;;  %v7567_v17 = vld [vmem:[#allocation5 + $0x340] sm:$0xff]  ;;  %v7568_v45 = vld [vmem:[#allocation5 + $0x348] sm:$0xff]  ;;  %v7553_v33 = vld [vmem:[#allocation5 + $0x2d0] sm:$0xff]  ;;  %v11387_v20 = vpack.c.bf16 %v7536_v12, %v7535_v27 }
 0x507   : > { %7781 = vmatmul.mubr.f32.gmra.mrb[130].mxu1 %v7409_v48  ;;  %11378 = vmatprep.subr.bf16.mxu0 %v11377_v9  ;;  %v7554_v3 = vld [vmem:[#allocation5 + $0x2d8] sm:$0xff]  ;;  %v7431_v54 = vld [vmem:[%s16105_s5 + $0x100] sm:$0xff]  ;;  %v7585_v40 = vld [vmem:[#allocation5 + $0x3d0] sm:$0xff]  ;;  %v11419_v30 = vpack.c.bf16 %v7568_v45, %v7567_v17 }
 0x508   : > { %11408 = vmatpush3.bf16.msra.mxu1 %v11407_v19  ;;  %7785 = vmatprep.mubr.f32.mxu1 %v7418_v60  ;;  %v7586_v47 = vld [vmem:[#allocation5 + $0x3d8] sm:$0xff]  ;;  %v7433_v37 = vld [vmem:[%s16105_s5 + $0x110] sm:$0xff]  ;;  %v7440_v34 = vld [vmem:[%s16105_s5 + $0x148] sm:$0xff]  ;;  %v11389_v28 = vpack.c.bf16 %v7554_v3, %v7553_v33 }
 0x509   : > { %7681 = vmatmul.mubr.f32.gmra.mrb[132].mxu0 %v7415_v5  ;;  %11410 = vmatprep.subr.bf16.mxu1 %v11409_v4  ;;  %v7537_v7 = vld [vmem:[#allocation5 + $0x250] sm:$0xff]  ;;  %v7538_v46 = vld [vmem:[#allocation5 + $0x258] sm:$0xff]  ;;  %v11421_v19 = vpack.c.bf16 %v7586_v47, %v7585_v40  ;;  %v7555_v42 = vld [vmem:[#allocation5 + $0x2e0] sm:$0xff] }
 0x50a   : > { %11380 = vmatpush3.bf16.msra.mxu0 %v11379_v55  ;;  %7685 = vmatprep.mubr.f32.mxu0 %v7424_v63  ;;  %v7569_v59 = vld [vmem:[#allocation5 + $0x350] sm:$0xff]  ;;  %v7570_v35 = vld [vmem:[#allocation5 + $0x358] sm:$0xff]  ;;  %v7556_v0 = vld [vmem:[#allocation5 + $0x2e8] sm:$0xff]  ;;  %v11391_v9 = vpack.c.bf16 %v7538_v46, %v7537_v7 }
 0x50b   : > { %7786 = vmatmul.mubr.f32.gmra.mrb[132].mxu1 %v7417_v52  ;;  %11382 = vmatprep.subr.bf16.mxu0 %v11381_v39  ;;  %v7442_v48 = vld [vmem:[%s16105_s5 + $0x158] sm:$0xff]  ;;  %v7439_v41 = vld [vmem:[%s16105_s5 + $0x140] sm:$0xff]  ;;  %v7588_v51 = vld [vmem:[#allocation5 + $0x3e8] sm:$0xff]  ;;  %v11423_v4 = vpack.c.bf16 %v7570_v35, %v7569_v59  ;;  %v11393_v55 = vpack.c.bf16 %v7556_v0, %v7555_v42 }
 0x50c   : > { %11412 = vmatpush3.bf16.msra.mxu1 %v11411_v8  ;;  %7790 = vmatprep.mubr.f32.mxu1 %v7426_v31  ;;  %v7587_v10 = vld [vmem:[#allocation5 + $0x3e0] sm:$0xff]  ;;  %v7441_v60 = vld [vmem:[%s16105_s5 + $0x150] sm:$0xff]  ;;  %v7540_v25 = vld [vmem:[#allocation5 + $0x268] sm:$0xff] }
 0x50d   : > { %7686 = vmatmul.mubr.f32.gmra.mrb[134].mxu0 %v7423_v6  ;;  %11414 = vmatprep.subr.bf16.mxu1 %v11413_v53  ;;  %v7539_v57 = vld [vmem:[#allocation5 + $0x260] sm:$0xff]  ;;  %v7448_v5 = vld [vmem:[%s16105_s5 + $0x188] sm:$0xff]  ;;  %v7450_v52 = vld [vmem:[%s16105_s5 + $0x198] sm:$0xff]  ;;  %v11425_v8 = vpack.c.bf16 %v7588_v51, %v7587_v10 }
 0x50e   : > { %11384 = vmatpush3.bf16.msra.mxu0 %v11383_v23  ;;  %7690 = vmatprep.mubr.f32.mxu0 %v7432_v36  ;;  %v7571_v43 = vld [vmem:[#allocation5 + $0x360] sm:$0xff]  ;;  %v7572_v14 = vld [vmem:[#allocation5 + $0x368] sm:$0xff]  ;;  %v7557_v62 = vld [vmem:[#allocation5 + $0x2f0] sm:$0xff]  ;;  %v11395_v39 = vpack.c.bf16 %v7540_v25, %v7539_v57 }
 0x50f   : > { %7791 = vmatmul.mubr.f32.gmra.mrb[134].mxu1 %v7425_v15  ;;  %11386 = vmatprep.subr.bf16.mxu0 %v11385_v13  ;;  %v7558_v38 = vld [vmem:[#allocation5 + $0x2f8] sm:$0xff]  ;;  %v7447_v63 = vld [vmem:[%s16105_s5 + $0x180] sm:$0xff]  ;;  %v7589_v24 = vld [vmem:[#allocation5 + $0x3f0] sm:$0xff]  ;;  %v11427_v53 = vpack.c.bf16 %v7572_v14, %v7571_v43 }
 0x510   : > { %11416 = vmatpush3.bf16.msra.mxu1 %v11415_v18  ;;  %7795 = vmatprep.mubr.f32.mxu1 %v7434_v26  ;;  %v7590_v32 = vld [vmem:[#allocation5 + $0x3f8] sm:$0xff]  ;;  %v7449_v31 = vld [vmem:[%s16105_s5 + $0x190] sm:$0xff]  ;;  %v7456_v6 = vld [vmem:[%s16105_s5 + $0x1c8] sm:$0xff]  ;;  %v11397_v23 = vpack.c.bf16 %v7558_v38, %v7557_v62 }
 0x511   : > { %7691 = vmatmul.mubr.f32.gmra.mrb[136].mxu0 %v7431_v54  ;;  %11418 = vmatprep.subr.bf16.mxu1 %v11417_v29  ;;  %v7541_v58 = vld [vmem:[#allocation5 + $0x270] sm:$0xff]  ;;  %v7542_v21 = vld [vmem:[#allocation5 + $0x278] sm:$0xff]  ;;  %v11429_v18 = vpack.c.bf16 %v7590_v32, %v7589_v24  ;;  %v7455_v27 = vld [vmem:[%s16105_s5 + $0x1c0] sm:$0xff] }
 0x512   : > { %11388 = vmatpush3.bf16.msra.mxu0 %v11387_v20  ;;  %7695 = vmatprep.mubr.f32.mxu0 %v7440_v34  ;;  %v7573_v44 = vld [vmem:[#allocation5 + $0x370] sm:$0xff]  ;;  %v7574_v22 = vld [vmem:[#allocation5 + $0x378] sm:$0xff]  ;;  %v11399_v12 = vpack.c.bf16 %v7542_v21, %v7541_v58  ;;  %v7404_v17 = vld [vmem:[%s16105_s5 + $0x28] sm:$0xff] }
 0x513   : > { %7796 = vmatmul.mubr.f32.gmra.mrb[136].mxu1 %v7433_v37  ;;  %11390 = vmatprep.subr.bf16.mxu0 %v11389_v28  ;;  %v7458_v15 = vld [vmem:[%s16105_s5 + $0x1d8] sm:$0xff]  ;;  %v7457_v36 = vld [vmem:[%s16105_s5 + $0x1d0] sm:$0xff]  ;;  %v11431_v13 = vpack.c.bf16 %v7574_v22, %v7573_v44  ;;  %v7403_v26 = vld [vmem:[%s16105_s5 + $0x20] sm:$0xff] }
 0x514   : > { %11420 = vmatpush3.bf16.msra.mxu1 %v11419_v30  ;;  %7800 = vmatprep.mubr.f32.mxu1 %v7442_v48  ;;  %v7406_v45 = vld [vmem:[%s16105_s5 + $0x38] sm:$0xff]  ;;  %v7405_v29 = vld [vmem:[%s16105_s5 + $0x30] sm:$0xff]  ;;  %v7412_v33 = vld [vmem:[%s16105_s5 + $0x68] sm:$0xff] }
 0x515   : > { %7696 = vmatmul.mubr.f32.gmra.mrb[138].mxu0 %v7439_v41  ;;  %11422 = vmatprep.subr.bf16.mxu1 %v11421_v19  ;;  %v7414_v3 = vld [vmem:[%s16105_s5 + $0x78] sm:$0xff]  ;;  %v7411_v54 = vld [vmem:[%s16105_s5 + $0x60] sm:$0xff]  ;;  %v7413_v20 = vld [vmem:[%s16105_s5 + $0x70] sm:$0xff] }
 0x516   : > { %11392 = vmatpush3.bf16.msra.mxu0 %v11391_v9  ;;  %7700 = vmatprep.mubr.f32.mxu0 %v7448_v5  ;;  %v7420_v40 = vld [vmem:[%s16105_s5 + $0xa8] sm:$0xff]  ;;  %v7422_v47 = vld [vmem:[%s16105_s5 + $0xb8] sm:$0xff]  ;;  %v7419_v37 = vld [vmem:[%s16105_s5 + $0xa0] sm:$0xff] }
 0x517   : > { %7801 = vmatmul.mubr.f32.gmra.mrb[138].mxu1 %v7441_v60  ;;  %11394 = vmatprep.subr.bf16.mxu0 %v11393_v55  ;;  %v7421_v30 = vld [vmem:[%s16105_s5 + $0xb0] sm:$0xff]  ;;  %v7428_v7 = vld [vmem:[%s16105_s5 + $0xe8] sm:$0xff]  ;;  %v7430_v46 = vld [vmem:[%s16105_s5 + $0xf8] sm:$0xff] }
 0x518   : > { %11424 = vmatpush3.bf16.msra.mxu1 %v11423_v4  ;;  %7805 = vmatprep.mubr.f32.mxu1 %v7450_v52  ;;  %v7427_v34 = vld [vmem:[%s16105_s5 + $0xe0] sm:$0xff]  ;;  %v7429_v28 = vld [vmem:[%s16105_s5 + $0xf0] sm:$0xff]  ;;  %v7436_v59 = vld [vmem:[%s16105_s5 + $0x128] sm:$0xff] }
 0x519   : > { %7701 = vmatmul.mubr.f32.gmra.mrb[140].mxu0 %v7447_v63  ;;  %11426 = vmatprep.subr.bf16.mxu1 %v11425_v8  ;;  %v7438_v35 = vld [vmem:[%s16105_s5 + $0x138] sm:$0xff]  ;;  %v7435_v48 = vld [vmem:[%s16105_s5 + $0x120] sm:$0xff]  ;;  %v7437_v19 = vld [vmem:[%s16105_s5 + $0x130] sm:$0xff] }
 0x51a   : > { %11396 = vmatpush3.bf16.msra.mxu0 %v11395_v39  ;;  %7705 = vmatprep.mubr.f32.mxu0 %v7456_v6  ;;  %v7444_v42 = vld [vmem:[%s16105_s5 + $0x168] sm:$0xff]  ;;  %v7446_v0 = vld [vmem:[%s16105_s5 + $0x178] sm:$0xff]  ;;  %v7443_v41 = vld [vmem:[%s16105_s5 + $0x160] sm:$0xff] }
 0x51b   : > { %7806 = vmatmul.mubr.f32.gmra.mrb[140].mxu1 %v7449_v31  ;;  %11398 = vmatprep.subr.bf16.mxu0 %v11397_v23  ;;  %v7445_v9 = vld [vmem:[%s16105_s5 + $0x170] sm:$0xff]  ;;  %v7452_v10 = vld [vmem:[%s16105_s5 + $0x1a8] sm:$0xff]  ;;  %v7454_v51 = vld [vmem:[%s16105_s5 + $0x1b8] sm:$0xff] }
 0x51c   : > { %11428 = vmatpush3.bf16.msra.mxu1 %v11427_v53  ;;  %7810 = vmatprep.mubr.f32.mxu1 %v7458_v15  ;;  %v7451_v60 = vld [vmem:[%s16105_s5 + $0x1a0] sm:$0xff]  ;;  %v7453_v4 = vld [vmem:[%s16105_s5 + $0x1b0] sm:$0xff]  ;;  %v7460_v57 = vld [vmem:[%s16105_s5 + $0x1e8] sm:$0xff] }
 0x51d   : > { %7706 = vmatmul.mubr.f32.gmra.mrb[142].mxu0 %v7455_v27  ;;  %11430 = vmatprep.subr.bf16.mxu1 %v11429_v18  ;;  %v7462_v25 = vld [vmem:[%s16105_s5 + $0x1f8] sm:$0xff]  ;;  %v7459_v5 = vld [vmem:[%s16105_s5 + $0x1e0] sm:$0xff]  ;;  %v7461_v55 = vld [vmem:[%s16105_s5 + $0x1f0] sm:$0xff] }
 0x51e   : > { %11400 = vmatpush3.bf16.msra.mxu0 %v11399_v12  ;;  %7880 = vmatprep.mubr.f32.mxu0 %v7404_v17  ;;  %v16047_v43 = vld [vmem:[%s16108_s8] ss:$0 sm:$0xff] }
 0x51f   : > { %7811 = vmatmul.mubr.f32.gmra.mrb[142].mxu1 %v7457_v36  ;;  %v7598_v52 = vmul.f32 %v16047_v43, %v12243_v1  ;;  %v7599_v31 = vmul.f32 %v16047_v43, %v12246_v2  ;;  %v7600_v1 = vmul.f32 %v16047_v43, %v12635_v49 }
 0x520   : > { %11432 = vmatpush3.bf16.msra.mxu1 %v11431_v13  ;;  %7985 = vmatprep.mubr.f32.mxu1 %v7406_v45 }
 0x521   : > { %7881 = vmatmul.mubr.f32.vlgmr.msra.gmra.mrb[144].mxu0 %v7403_v26  ;;  %v7601_v26 = vmul.f32 %v16047_v43, %v12640_v50 }
 0x522   : > { %7885 = vmatprep.mubr.f32.mxu0 %v7412_v33 }
 0x523   : > { %7986 = vmatmul.mubr.f32.vlgmr.msra.gmra.mrb[144].mxu1 %v7405_v29 }
 0x524   : > { %7990 = vmatprep.mubr.f32.mxu1 %v7414_v3 }
 0x525   : > { %7886 = vmatmul.mubr.f32.gmra.mrb[146].mxu0 %v7411_v54 }
 0x526   : > { %7890 = vmatprep.mubr.f32.mxu0 %v7420_v40 }
 0x527   : > { %7991 = vmatmul.mubr.f32.gmra.mrb[146].mxu1 %v7413_v20 }
 0x528   : > { %7995 = vmatprep.mubr.f32.mxu1 %v7422_v47 }
 0x529   : > { %7891 = vmatmul.mubr.f32.gmra.mrb[148].mxu0 %v7419_v37  ;;  %v7602_v37 = vmul.f32 %v16047_v43, %v12655_v56 }
 0x52a   : > { %7895 = vmatprep.mubr.f32.mxu0 %v7428_v7 }
 0x52b   : > { %7996 = vmatmul.mubr.f32.gmra.mrb[148].mxu1 %v7421_v30 }
 0x52c   : > { %8000 = vmatprep.mubr.f32.mxu1 %v7430_v46 }
 0x52d   : > { %7896 = vmatmul.mubr.f32.gmra.mrb[150].mxu0 %v7427_v34 }
 0x52e   : > { %7900 = vmatprep.mubr.f32.mxu0 %v7436_v59 }
 0x52f   : > { %8001 = vmatmul.mubr.f32.gmra.mrb[150].mxu1 %v7429_v28 }
 0x530   : > { %8005 = vmatprep.mubr.f32.mxu1 %v7438_v35 }
 0x531   : > { %7901 = vmatmul.mubr.f32.gmra.mrb[152].mxu0 %v7435_v48  ;;  %v7603_v48 = vmul.f32 %v16047_v43, %v12660_v11 }
 0x532   : > { %7905 = vmatprep.mubr.f32.mxu0 %v7444_v42 }
 0x533   : > { %8006 = vmatmul.mubr.f32.gmra.mrb[152].mxu1 %v7437_v19 }
 0x534   : > { %8010 = vmatprep.mubr.f32.mxu1 %v7446_v0 }
 0x535   : > { %7906 = vmatmul.mubr.f32.gmra.mrb[154].mxu0 %v7443_v41 }
 0x536   : > { %7910 = vmatprep.mubr.f32.mxu0 %v7452_v10 }
 0x537   : > { %8011 = vmatmul.mubr.f32.gmra.mrb[154].mxu1 %v7445_v9 }
 0x538   : > { %8015 = vmatprep.mubr.f32.mxu1 %v7454_v51 }
 0x539   : > { %7911 = vmatmul.mubr.f32.gmra.mrb[156].mxu0 %v7451_v60  ;;  %v7604_v60 = vmul.f32 %v16047_v43, %v12675_v61 }
 0x53a   : > { %7915 = vmatprep.mubr.f32.mxu0 %v7460_v57 }
 0x53b   : > { %8016 = vmatmul.mubr.f32.gmra.mrb[156].mxu1 %v7453_v4 }
 0x53c   : > { %8020 = vmatprep.mubr.f32.mxu1 %v7462_v25 }
 0x53d   : > { %7916 = vmatmul.mubr.f32.gmra.mrb[158].mxu0 %v7459_v5 }
 0x53f   : > { %8021 = vmatmul.mubr.f32.gmra.mrb[158].mxu1 %v7461_v55 }
 0x5d4   : > { %v9769_v14 = vpop.f32.mrb[128].mxu0 }
 0x5d5   : > { %v9770_v8 = vpop.f32.mrb[129].mxu0 }
 0x5d6   : > { %v9825_v62 = vpop.f32.mrb[128].mxu1  ;;  %v9771_v38 = vadd.f32 %v9770_v8, %v9769_v14  ;;  %v7605_v8 = vmul.f32 %v16047_v43, %v12680_v16 }
 0x5d7   : > { %v9826_v63 = vpop.f32.mrb[129].mxu1 }
 0x5d8   : > { %v9827_v39 = vadd.f32 %v9826_v63, %v9825_v62  ;;  %v7673_v24 = vadd.f32 %v9771_v38, %v7598_v52  ;;  %v9772_v32 = vpop.f32.mrb[130].mxu0 }
 0x5d9   : > { %v9773_v53 = vpop.f32.mrb[131].mxu0 }
 0x5da   : > { %v9828_v58 = vpop.f32.mrb[130].mxu1  ;;  %v16053_v21 = vadd.f32 %v9827_v39, %v7673_v24  ;;  %v9774_v6 = vadd.f32 %v9773_v53, %v9772_v32 }
 0x5db   : > { %v9829_v23 = vpop.f32.mrb[131].mxu1 }
 0x5dc   : > { %v9830_v44 = vadd.f32 %v9829_v23, %v9828_v58  ;;  %v7678_v22 = vadd.f32 %v9774_v6, %v7599_v31  ;;  %v9775_v15 = vpop.f32.mrb[132].mxu0 }
 0x5dd   : > { %v9776_v18 = vpop.f32.mrb[133].mxu0 }
 0x5de   : > { %v9831_v27 = vpop.f32.mrb[132].mxu1  ;;  %v16057_v12 = vadd.f32 %v9830_v44, %v7678_v22  ;;  %v9777_v36 = vadd.f32 %v9776_v18, %v9775_v15 }
 0x5df   : > { %v9832_v13 = vpop.f32.mrb[133].mxu1 }
 0x5e0   : > { %v9833_v17 = vadd.f32 %v9832_v13, %v9831_v27  ;;  %v7683_v2 = vadd.f32 %v9777_v36, %v7600_v1  ;;  %v9778_v45 = vpop.f32.mrb[134].mxu0 }
 0x5e1   : > { %v9779_v29 = vpop.f32.mrb[135].mxu0 }
 0x5e2   : > { %v9834_v33 = vpop.f32.mrb[134].mxu1  ;;  %v16061_v3 = vadd.f32 %v9833_v17, %v7683_v2  ;;  %v9780_v54 = vadd.f32 %v9779_v29, %v9778_v45 }
 0x5e3   : > { %v9835_v20 = vpop.f32.mrb[135].mxu1 }
 0x5e4   : > { %v9836_v40 = vadd.f32 %v9835_v20, %v9834_v33  ;;  %v7688_v49 = vadd.f32 %v9780_v54, %v7601_v26  ;;  %v9781_v47 = vpop.f32.mrb[136].mxu0 }
 0x5e5   : > { %v9782_v30 = vpop.f32.mrb[137].mxu0 }
 0x5e6   : > { %v9837_v7 = vpop.f32.mrb[136].mxu1  ;;  %v16065_v46 = vadd.f32 %v9836_v40, %v7688_v49  ;;  %v9783_v34 = vadd.f32 %v9782_v30, %v9781_v47 }
 0x5e7   : > { %v9838_v28 = vpop.f32.mrb[137].mxu1 }
 0x5e8   : > { %v9839_v59 = vadd.f32 %v9838_v28, %v9837_v7  ;;  %v7693_v50 = vadd.f32 %v9783_v34, %v7602_v37  ;;  %v9784_v35 = vpop.f32.mrb[138].mxu0 }
 0x5e9   : > { %v9785_v19 = vpop.f32.mrb[139].mxu0 }
 0x5ea   : > { %v9840_v42 = vpop.f32.mrb[138].mxu1  ;;  %v16069_v0 = vadd.f32 %v9839_v59, %v7693_v50  ;;  %v9786_v41 = vadd.f32 %v9785_v19, %v9784_v35 }
 0x5eb   : > { %v9841_v9 = vpop.f32.mrb[139].mxu1 }
 0x5ec   : > { %v9842_v10 = vadd.f32 %v9841_v9, %v9840_v42  ;;  %v7698_v56 = vadd.f32 %v9786_v41, %v7603_v48  ;;  %v9787_v51 = vpop.f32.mrb[140].mxu0 }
 0x5ed   : > { %v9788_v4 = vpop.f32.mrb[141].mxu0 }
 0x5ee   : > { %v9843_v57 = vpop.f32.mrb[140].mxu1  ;;  %v16073_v25 = vadd.f32 %v9842_v10, %v7698_v56  ;;  %v9789_v5 = vadd.f32 %v9788_v4, %v9787_v51 }
 0x5ef   : > { %v9844_v55 = vpop.f32.mrb[141].mxu1 }
 0x5f0   : > { %v9845_v14 = vadd.f32 %v9844_v55, %v9843_v57  ;;  %v7703_v11 = vadd.f32 %v9789_v5, %v7604_v60  ;;  %v9790_v52 = vpop.f32.mrb[142].mxu0 }
 0x5f1   : > { %v9791_v62 = vpop.f32.mrb[143].mxu0 }
 0x5f2   : > { %v9846_v38 = vpop.f32.mrb[142].mxu1  ;;  %v16077_v63 = vadd.f32 %v9845_v14, %v7703_v11  ;;  %v9792_v39 = vadd.f32 %v9791_v62, %v9790_v52 }
 0x5f3   : > { %v9847_v24 = vpop.f32.mrb[143].mxu1 }
 0x5f4   : > { %v9848_v32 = vadd.f32 %v9847_v24, %v9846_v38  ;;  %v7708_v61 = vadd.f32 %v9792_v39, %v7605_v8  ;;  %v9881_v31 = vpop.f32.mrb[144].mxu0 }
 0x5f5   : > { %v9882_v53 = vpop.f32.mrb[145].mxu0 }
 0x5f6   : > { %v9937_v58 = vpop.f32.mrb[144].mxu1  ;;  %v16079_v6 = vadd.f32 %v9848_v32, %v7708_v61  ;;  %v9883_v23 = vadd.f32 %v9882_v53, %v9881_v31 }
 0x5f7   : > { %v9938_v44 = vpop.f32.mrb[145].mxu1 }
 0x5f8   : > { %v9939_v22 = vadd.f32 %v9938_v44, %v9937_v58  ;;  %v7883_v15 = vadd.f32 %v9883_v23, %v16053_v21  ;;  %v9884_v16 = vpop.f32.mrb[146].mxu0 }
 0x5f9   : > { %v9885_v43 = vpop.f32.mrb[147].mxu0 }
 0x5fa   : > { %v9940_v1 = vpop.f32.mrb[146].mxu1  ;;  %v7988_v18 = vadd.f32 %v9939_v22, %v7883_v15  ;;  %v9886_v27 = vadd.f32 %v9885_v43, %v9884_v16 }
 0x5fb   : > { %v9941_v36 = vpop.f32.mrb[147].mxu1 }
 0x5fc   : > { %v9942_v13 = vadd.f32 %v9941_v36, %v9940_v1  ;;  %8026 = vst [vmem:[%s12240_s25] sm:$0xff] %v7988_v18  ;;  %v7888_v17 = vadd.f32 %v9886_v27, %v16057_v12  ;;  %v9887_v2 = vpop.f32.mrb[148].mxu0 }
 0x5fd   : > { %v9888_v45 = vpop.f32.mrb[149].mxu0 }
 0x5fe   : > { %v9943_v26 = vpop.f32.mrb[148].mxu1  ;;  %v7993_v29 = vadd.f32 %v9942_v13, %v7888_v17  ;;  %v9889_v33 = vadd.f32 %v9888_v45, %v9887_v2 }
 0x5ff   : > { %v9944_v54 = vpop.f32.mrb[149].mxu1 }
 0x600   : > { %v9945_v20 = vadd.f32 %v9944_v54, %v9943_v26  ;;  %8027 = vst [vmem:[%s12240_s25 + $0x8] sm:$0xff] %v7993_v29  ;;  %v7893_v21 = vadd.f32 %v9889_v33, %v16061_v3  ;;  %v9890_v40 = vpop.f32.mrb[150].mxu0 }
 0x601   : > { %v9891_v49 = vpop.f32.mrb[151].mxu0 }
 0x602   : > { %v9946_v47 = vpop.f32.mrb[150].mxu1  ;;  %v7998_v37 = vadd.f32 %v9945_v20, %v7893_v21  ;;  %v9892_v30 = vadd.f32 %v9891_v49, %v9890_v40 }
 0x603   : > { %v9947_v7 = vpop.f32.mrb[151].mxu1 }
 0x604   : > { %v9948_v34 = vadd.f32 %v9947_v7, %v9946_v47  ;;  %8028 = vst [vmem:[%s12240_s25 + $0x10] sm:$0xff] %v7998_v37  ;;  %v7898_v12 = vadd.f32 %v9892_v30, %v16065_v46  ;;  %v9893_v28 = vpop.f32.mrb[152].mxu0 }
 0x605   : > { %v9894_v59 = vpop.f32.mrb[153].mxu0 }
 0x606   : > { %v9949_v50 = vpop.f32.mrb[152].mxu1  ;;  %v8003_v35 = vadd.f32 %v9948_v34, %v7898_v12  ;;  %v9895_v48 = vadd.f32 %v9894_v59, %v9893_v28 }
 0x607   : > { %v9950_v19 = vpop.f32.mrb[153].mxu1 }
 0x608   : > { %v9951_v42 = vadd.f32 %v9950_v19, %v9949_v50  ;;  %8029 = vst [vmem:[%s12240_s25 + $0x18] sm:$0xff] %v8003_v35  ;;  %v7903_v3 = vadd.f32 %v9895_v48, %v16069_v0  ;;  %v9896_v41 = vpop.f32.mrb[154].mxu0 }
 0x609   : > { %v9897_v9 = vpop.f32.mrb[155].mxu0 }
 0x60a   : > { %v9952_v10 = vpop.f32.mrb[154].mxu1  ;;  %v8008_v56 = vadd.f32 %v9951_v42, %v7903_v3  ;;  %v9898_v51 = vadd.f32 %v9897_v9, %v9896_v41 }
 0x60b   : > { %v9953_v60 = vpop.f32.mrb[155].mxu1 }
 0x60c   : > { %v9954_v4 = vadd.f32 %v9953_v60, %v9952_v10  ;;  %8030 = vst [vmem:[%s12240_s25 + $0x20] sm:$0xff] %v8008_v56  ;;  %v7908_v46 = vadd.f32 %v9898_v51, %v16073_v25  ;;  %v9899_v57 = vpop.f32.mrb[156].mxu0 }
 0x60d   : > { %v9900_v5 = vpop.f32.mrb[157].mxu0 }
 0x60e   : > { %v9955_v55 = vpop.f32.mrb[156].mxu1  ;;  %v8013_v14 = vadd.f32 %v9954_v4, %v7908_v46  ;;  %v9901_v11 = vadd.f32 %v9900_v5, %v9899_v57 }
 0x60f   : > { %v9956_v52 = vpop.f32.mrb[157].mxu1 }
 0x610   : > { %v9957_v0 = vadd.f32 %v9956_v52, %v9955_v55  ;;  %8031 = vst [vmem:[%s12240_s25 + $0x28] sm:$0xff] %v8013_v14  ;;  %v7913_v8 = vadd.f32 %v9901_v11, %v16077_v63  ;;  %v9902_v62 = vpop.f32.mrb[158].mxu0 }
 0x611   : > { %v9903_v38 = vpop.f32.mrb[159].mxu0 }
 0x612   : > { %v9958_v39 = vpop.f32.mrb[158].mxu1  ;;  %v8018_v24 = vadd.f32 %v9957_v0, %v7913_v8  ;;  %v9904_v32 = vadd.f32 %v9903_v38, %v9902_v62 }
 0x613   : > { %v9959_v61 = vpop.f32.mrb[159].mxu1 }
 0x614   : > { %v9960_v31 = vadd.f32 %v9959_v61, %v9958_v39  ;;  %8032 = vst [vmem:[%s12240_s25 + $0x30] sm:$0xff] %v8018_v24  ;;  %v7918_v25 = vadd.f32 %v9904_v32, %v16079_v6 }
 0x616   : > { %v8023_v53 = vadd.f32 %v9960_v31, %v7918_v25 }
 0x618   : > { %8033 = vst [vmem:[%s12240_s25 + $0x38] sm:$0xff] %v8023_v53 }
 0x619 PF: > { %s19_s30 = sadd.s32 1, %s12144_s30  }
 0x61a   : > { %p16_p5 = scmp.ge.s32.totalorder %s19_s30, 4  }
 0x61c   :  { %18 = sbr.rel (!%p16_p5) target bundleno = 1 (0x1), region = 114 }

</bundles_post_ra>
